<compile_context>
chip_gen: v5e
topology: v5e:2x2
jax: 0.10.0
libtpu: 0.0.40
codegen_flags: <defaults>
</compile_context>

<pallas_src>
import functools

import jax
import jax.numpy as jnp
from jax.experimental import pallas as pl
from jax.experimental.pallas import tpu as pltpu

VMEM = pltpu.MemorySpace.VMEM
F32 = jnp.float32


# ---------------------------------------------------------------------------
# In-kernel helpers
# ---------------------------------------------------------------------------

def _softplus(x):
    # Numerically stable softplus; log1p would be marginally more precise but
    # log/exp are the known-good EUP lowerings, and the +max(x,0) term
    # dominates wherever log(1+e^-|x|) loses ULPs.
    return jnp.maximum(x, 0.0) + jnp.log(1.0 + jnp.exp(-jnp.abs(x)))


def _mm(a, w):
    return jnp.dot(a, w, preferred_element_type=F32)


# ---------------------------------------------------------------------------
# Fused VRNN_RUL forward kernel
# ---------------------------------------------------------------------------

def _vrnn_kernel(*refs, T, B, H, n_layers):
    it = iter(refs)
    nx = lambda: next(it)

    x_ref = nx()          # (T*B, x_dim)  time-major rows
    eps_ref = nx()        # (T*B, z_dim)
    px_w1, px_b1, px_w2, px_b2 = nx(), nx(), nx(), nx()
    e_w1x, e_w1h, e_b1 = nx(), nx(), nx()
    e_w2, e_b2 = nx(), nx()
    em_w, em_b = nx(), nx()
    es_w, es_b = nx(), nx()
    pz_w, pz_b = nx(), nx()
    # GRU layer 0 (input = cat([phi_x, phi_z]); x/z halves pre-split per gate)
    w_ih0x, w_ih0z, b_ih0, w_hh0, b_hh0 = nx(), nx(), nx(), nx(), nx()
    # GRU layers 1..n_layers-1
    gru_rest = [(nx(), nx(), nx(), nx()) for _ in range(n_layers - 1)]
    r_w1, r_b1, r_w2, r_b2, r_w3, r_b3 = nx(), nx(), nx(), nx(), nx(), nx()
    pred_ref, feat_ref = nx(), nx()

    Z = em_b.shape[-1]

    # ---------------- recurrence-independent compute (hoisted) -------------
    x_all = x_ref[...]                                         # (T*B, x_dim)
    t1 = jnp.maximum(_mm(x_all, px_w1[...]) + px_b1[...], 0.0)
    phi_x_all = jnp.maximum(_mm(t1, px_w2[...]) + px_b2[...], 0.0)  # (T*B, H)

    # phi_x half of enc's first layer (bias folded in)
    enc1_x_all = _mm(phi_x_all, e_w1x[...]) + e_b1[...]        # (T*B, H)

    # phi_x half of the layer-0 GRU input gates (biases folded in)
    gi0_x_all = [_mm(phi_x_all, w_ih0x[g]) + b_ih0[g] for g in range(3)]

    # Loop-invariant biases, pre-broadcast once (no per-iteration broadcasts),
    # and the hot GRU hh gate weights loaded once.
    e_b2_b = jnp.broadcast_to(e_b2[...], (B, H))
    pz_b_b = jnp.broadcast_to(pz_b[...], (B, H))
    em_b_b = jnp.broadcast_to(em_b[...], (B, Z))
    es_b_b = jnp.broadcast_to(es_b[...], (B, Z))
    w_hh0_v = [w_hh0[g] for g in range(3)]                     # 3 x (H, H)
    b_hh0_b = [jnp.broadcast_to(b_hh0[g], (B, H)) for g in range(3)]
    rest_hoist = []
    for (w_ih, b_ih, w_hh, b_hh) in gru_rest:
        rest_hoist.append((
            w_ih,                                              # kept as ref
            [jnp.broadcast_to(b_ih[g], (B, H)) for g in range(3)],
            [w_hh[g] for g in range(3)],                       # hoisted values
            [jnp.broadcast_to(b_hh[g], (B, H)) for g in range(3)],
        ))

    # ---------------- recurrence ------------------------------------------
    h = [jnp.zeros((B, H), F32) for _ in range(n_layers)]
    phi_z_t = jnp.zeros((B, H), F32)

    for t in range(T):                     # small T -> fully unrolled
        r0 = t * B
        enc1_x_t = enc1_x_all[r0:r0 + B]
        eps_t = eps_ref[pl.ds(r0, B), :]

        # encoder: only the h[-1] half is on the serial chain
        enc_t = jnp.maximum(enc1_x_t + _mm(h[-1], e_w1h[...]), 0.0)
        enc_t = jnp.maximum(_mm(enc_t, e_w2[...]) + e_b2_b, 0.0)
        enc_mean_t = _mm(enc_t, em_w[...]) + em_b_b
        enc_std_t = _softplus(_mm(enc_t, es_w[...]) + es_b_b)

        # reparameterized sample + phi_z
        z_t = eps_t * enc_std_t + enc_mean_t
        phi_z_t = jnp.maximum(_mm(z_t, pz_w[...]) + pz_b_b, 0.0)

        # -------- stacked GRU step, gate-split (lane-aligned, no slicing) --
        # layer 0: phi_x half precomputed, only phi_z half is in the loop
        gi = [gi0_x_all[g][r0:r0 + B] + _mm(phi_z_t, w_ih0z[g])
              for g in range(3)]
        gh = [_mm(h[0], w_hh0_v[g]) + b_hh0_b[g] for g in range(3)]
        r_g = jax.nn.sigmoid(gi[0] + gh[0])
        z_g = jax.nn.sigmoid(gi[1] + gh[1])
        n_g = jnp.tanh(gi[2] + r_g * gh[2])          # b_hn stays inside r*(.)
        h[0] = (1.0 - z_g) * n_g + z_g * h[0]

        inp = h[0]
        for l in range(1, n_layers):
            w_ih_ref, b_ih_b, w_hh_v, b_hh_b = rest_hoist[l - 1]
            gi_l = [_mm(inp, w_ih_ref[g]) + b_ih_b[g] for g in range(3)]
            gh_l = [_mm(h[l], w_hh_v[g]) + b_hh_b[g] for g in range(3)]
            r_g = jax.nn.sigmoid(gi_l[0] + gh_l[0])
            z_g = jax.nn.sigmoid(gi_l[1] + gh_l[1])
            n_g = jnp.tanh(gi_l[2] + r_g * gh_l[2])
            h[l] = (1.0 - z_g) * n_g + z_g * h[l]
            inp = h[l]

    # regressor on features = final phi_z_t (dropout = identity at inference)
    y = jnp.maximum(_mm(phi_z_t, r_w1[...]) + r_b1[...], 0.0)
    y = jnp.maximum(_mm(y, r_w2[...]) + r_b2[...], 0.0)
    pred = _mm(y, r_w3[...]) + r_b3[...]

    pred_ref[...] = pred
    feat_ref[...] = phi_z_t


# ---------------------------------------------------------------------------
# Python wrapper
# ---------------------------------------------------------------------------

def vrnn_rul_forward(x, eps, params, *, n_layers):
    """x: (B, T, x_dim); eps: (T, B, z_dim) N(0,1) noise.
    Returns (predictions (B, 1), phi_z_t (B, h_dim))."""
    B, T, x_dim = x.shape
    H = params['px_w2'].shape[1]
    Z = params['em_w'].shape[1]

    # host-side layout prep (free): time-major flattened rows for batched
    # recurrence-independent matmuls inside the kernel.
    x_flat = jnp.transpose(x, (1, 0, 2)).reshape(T * B, x_dim)
    eps_flat = eps.reshape(T * B, Z)

    b2d = lambda v: v.reshape(1, -1)
    # split (in, 3H) / (3H,) PyTorch-layout GRU params into per-gate stacks
    gate_w = lambda w: jnp.stack([w[:, :H], w[:, H:2 * H], w[:, 2 * H:]], 0)
    gate_b = lambda b: jnp.stack([b[:H], b[H:2 * H], b[2 * H:]], 0).reshape(3, 1, H)

    e_w1 = params['e_w1']
    args = [x_flat, eps_flat,
            params['px_w1'], b2d(params['px_b1']),
            params['px_w2'], b2d(params['px_b2']),
            e_w1[:H], e_w1[H:], b2d(params['e_b1']),
            params['e_w2'], b2d(params['e_b2']),
            params['em_w'], b2d(params['em_b']),
            params['es_w'], b2d(params['es_b']),
            params['pz_w'], b2d(params['pz_b'])]

    g0 = params['gru'][0]
    args += [gate_w(g0['w_ih'][:H]), gate_w(g0['w_ih'][H:]), gate_b(g0['b_ih']),
             gate_w(g0['w_hh']), gate_b(g0['b_hh'])]
    for l in range(1, n_layers):
        g = params['gru'][l]
        args += [gate_w(g['w_ih']), gate_b(g['b_ih']),
                 gate_w(g['w_hh']), gate_b(g['b_hh'])]

    args += [params['r_w1'], b2d(params['r_b1']),
             params['r_w2'], b2d(params['r_b2']),
             params['r_w3'], b2d(params['r_b3'])]

    kernel = functools.partial(_vrnn_kernel, T=T, B=B, H=H, n_layers=n_layers)
    preds, feats = pl.pallas_call(
        kernel,
        out_shape=(jax.ShapeDtypeStruct((B, 1), F32),
                   jax.ShapeDtypeStruct((B, H), F32)),
        in_specs=[pl.BlockSpec(memory_space=VMEM)] * len(args),
        out_specs=(pl.BlockSpec(memory_space=VMEM),
                   pl.BlockSpec(memory_space=VMEM)),
    )(*args)
    return preds, feats


def init_params(key, x_dim, h_dim, z_dim, n_layers, stdv=0.1):
    def w(k, shape):
        return jax.random.normal(k, shape, F32) * stdv

    keys = iter(jax.random.split(key, 64))
    H, Z = h_dim, z_dim
    params = dict(
        px_w1=w(next(keys), (x_dim, H)), px_b1=w(next(keys), (H,)),
        px_w2=w(next(keys), (H, H)),     px_b2=w(next(keys), (H,)),
        e_w1=w(next(keys), (2 * H, H)),  e_b1=w(next(keys), (H,)),
        e_w2=w(next(keys), (H, H)),      e_b2=w(next(keys), (H,)),
        em_w=w(next(keys), (H, Z)),      em_b=w(next(keys), (Z,)),
        es_w=w(next(keys), (H, Z)),      es_b=w(next(keys), (Z,)),
        pz_w=w(next(keys), (Z, H)),      pz_b=w(next(keys), (H,)),
        r_w1=w(next(keys), (H, H)),      r_b1=w(next(keys), (H,)),
        r_w2=w(next(keys), (H, H // 2)), r_b2=w(next(keys), (H // 2,)),
        r_w3=w(next(keys), (H // 2, 1)), r_b3=w(next(keys), (1,)),
        gru=[],
    )
    for l in range(n_layers):
        in_dim = 2 * H if l == 0 else H
        params['gru'].append(dict(
            w_ih=w(next(keys), (in_dim, 3 * H)),
            w_hh=w(next(keys), (H, 3 * H)),
            b_ih=w(next(keys), (3 * H,)),
            b_hh=w(next(keys), (3 * H,)),
        ))
    return params


# ---------------------------------------------------------------------------
# Main
# ---------------------------------------------------------------------------

if __name__ == "__main__":
    # Small shapes consistent with the module:
    # x_dim=16, h_dim=32, z_dim=16, n_layers=2, batch=2, seq_len=8.
    B, T = 2, 8
    X_DIM, H_DIM, Z_DIM, N_LAYERS = 16, 32, 16, 2

    root = jax.random.PRNGKey(0)
    k_x, k_eps, k_par = jax.random.split(root, 3)

    x = jax.random.normal(k_x, (B, T, X_DIM), F32)
    eps = jax.random.normal(k_eps, (T, B, Z_DIM), F32)   # reparam noise
    params = init_params(k_par, X_DIM, H_DIM, Z_DIM, N_LAYERS)

    predictions, features = vrnn_rul_forward(x, eps, params,
                                             n_layers=N_LAYERS)
    jax.block_until_ready((predictions, features))

    assert predictions.shape == (B, 1)
    assert features.shape == (B, H_DIM)
    assert bool(jnp.all(jnp.isfinite(predictions)))
    assert bool(jnp.all(jnp.isfinite(features)))
    print("KERNEL_OK")
</pallas_src>

<mosaic_0001>
module attributes {stable_mosaic.version = 11 : i64} {
  func.func @_vrnn_kernel(%arg0: memref<16x16xf32, #tpu.memory_space<vmem>>, %arg1: memref<16x16xf32, #tpu.memory_space<vmem>>, %arg2: memref<16x32xf32, #tpu.memory_space<vmem>>, %arg3: memref<1x32xf32, #tpu.memory_space<vmem>>, %arg4: memref<32x32xf32, #tpu.memory_space<vmem>>, %arg5: memref<1x32xf32, #tpu.memory_space<vmem>>, %arg6: memref<32x32xf32, #tpu.memory_space<vmem>>, %arg7: memref<32x32xf32, #tpu.memory_space<vmem>>, %arg8: memref<1x32xf32, #tpu.memory_space<vmem>>, %arg9: memref<32x32xf32, #tpu.memory_space<vmem>>, %arg10: memref<1x32xf32, #tpu.memory_space<vmem>>, %arg11: memref<32x16xf32, #tpu.memory_space<vmem>>, %arg12: memref<1x16xf32, #tpu.memory_space<vmem>>, %arg13: memref<32x16xf32, #tpu.memory_space<vmem>>, %arg14: memref<1x16xf32, #tpu.memory_space<vmem>>, %arg15: memref<16x32xf32, #tpu.memory_space<vmem>>, %arg16: memref<1x32xf32, #tpu.memory_space<vmem>>, %arg17: memref<3x32x32xf32, #tpu.memory_space<vmem>>, %arg18: memref<3x32x32xf32, #tpu.memory_space<vmem>>, %arg19: memref<3x1x32xf32, #tpu.memory_space<vmem>>, %arg20: memref<3x32x32xf32, #tpu.memory_space<vmem>>, %arg21: memref<3x1x32xf32, #tpu.memory_space<vmem>>, %arg22: memref<3x32x32xf32, #tpu.memory_space<vmem>>, %arg23: memref<3x1x32xf32, #tpu.memory_space<vmem>>, %arg24: memref<3x32x32xf32, #tpu.memory_space<vmem>>, %arg25: memref<3x1x32xf32, #tpu.memory_space<vmem>>, %arg26: memref<32x32xf32, #tpu.memory_space<vmem>>, %arg27: memref<1x32xf32, #tpu.memory_space<vmem>>, %arg28: memref<32x16xf32, #tpu.memory_space<vmem>>, %arg29: memref<1x16xf32, #tpu.memory_space<vmem>>, %arg30: memref<16x1xf32, #tpu.memory_space<vmem>>, %arg31: memref<1x1xf32, #tpu.memory_space<vmem>>, %arg32: memref<2x1xf32, #tpu.memory_space<vmem>>, %arg33: memref<2x32xf32, #tpu.memory_space<vmem>>) attributes {dimension_semantics = [], scalar_prefetch = 0 : i64, scratch_operands = 0 : i64, tpu.core_type = #tpu.core_type<tc>} {
    %c0 = arith.constant 0 : index
    %c0_0 = arith.constant 0 : index
    %0 = vector.load %arg0[%c0, %c0_0] : memref<16x16xf32, #tpu.memory_space<vmem>>, vector<16x16xf32>
    %c0_1 = arith.constant 0 : index
    %c0_2 = arith.constant 0 : index
    %1 = vector.load %arg2[%c0_1, %c0_2] : memref<16x32xf32, #tpu.memory_space<vmem>>, vector<16x32xf32>
    %cst = arith.constant dense<0.000000e+00> : vector<16x32xf32>
    %2 = tpu.matmul %0, %1, %cst {dimension_numbers = #tpu.dot_dimension_numbers<[1], [0], [0], [1], [0, 0, 1, 1], [], []>} : vector<16x16xf32>, vector<16x32xf32>, vector<16x32xf32> -> vector<16x32xf32>
    %c0_3 = arith.constant 0 : index
    %c0_4 = arith.constant 0 : index
    %3 = vector.load %arg3[%c0_3, %c0_4] : memref<1x32xf32, #tpu.memory_space<vmem>>, vector<1x32xf32>
    %4 = vector.broadcast %3 : vector<1x32xf32> to vector<16x32xf32>
    %5 = arith.addf %2, %4 : vector<16x32xf32>
    %cst_5 = arith.constant 0.000000e+00 : f32
    %6 = vector.broadcast %cst_5 : f32 to vector<16x32xf32>
    %7 = arith.maximumf %5, %6 : vector<16x32xf32>
    %c0_6 = arith.constant 0 : index
    %c0_7 = arith.constant 0 : index
    %8 = vector.load %arg4[%c0_6, %c0_7] : memref<32x32xf32, #tpu.memory_space<vmem>>, vector<32x32xf32>
    %cst_8 = arith.constant dense<0.000000e+00> : vector<16x32xf32>
    %9 = tpu.matmul %7, %8, %cst_8 {dimension_numbers = #tpu.dot_dimension_numbers<[1], [0], [0], [1], [0, 0, 1, 1], [], []>} : vector<16x32xf32>, vector<32x32xf32>, vector<16x32xf32> -> vector<16x32xf32>
    %c0_9 = arith.constant 0 : index
    %c0_10 = arith.constant 0 : index
    %10 = vector.load %arg5[%c0_9, %c0_10] : memref<1x32xf32, #tpu.memory_space<vmem>>, vector<1x32xf32>
    %11 = vector.broadcast %10 : vector<1x32xf32> to vector<16x32xf32>
    %12 = arith.addf %9, %11 : vector<16x32xf32>
    %cst_11 = arith.constant 0.000000e+00 : f32
    %13 = vector.broadcast %cst_11 : f32 to vector<16x32xf32>
    %14 = arith.maximumf %12, %13 : vector<16x32xf32>
    %c0_12 = arith.constant 0 : index
    %c0_13 = arith.constant 0 : index
    %15 = vector.load %arg6[%c0_12, %c0_13] : memref<32x32xf32, #tpu.memory_space<vmem>>, vector<32x32xf32>
    %cst_14 = arith.constant dense<0.000000e+00> : vector<16x32xf32>
    %16 = tpu.matmul %14, %15, %cst_14 {dimension_numbers = #tpu.dot_dimension_numbers<[1], [0], [0], [1], [0, 0, 1, 1], [], []>} : vector<16x32xf32>, vector<32x32xf32>, vector<16x32xf32> -> vector<16x32xf32>
    %c0_15 = arith.constant 0 : index
    %c0_16 = arith.constant 0 : index
    %17 = vector.load %arg8[%c0_15, %c0_16] : memref<1x32xf32, #tpu.memory_space<vmem>>, vector<1x32xf32>
    %18 = vector.broadcast %17 : vector<1x32xf32> to vector<16x32xf32>
    %19 = arith.addf %16, %18 : vector<16x32xf32>
    %c0_17 = arith.constant 0 : index
    %c0_18 = arith.constant 0 : index
    %c0_19 = arith.constant 0 : index
    %20 = vector.load %arg17[%c0_17, %c0_18, %c0_19] : memref<3x32x32xf32, #tpu.memory_space<vmem>>, vector<1x32x32xf32>
    %21 = vector.shape_cast %20 : vector<1x32x32xf32> to vector<32x32xf32>
    %cst_20 = arith.constant dense<0.000000e+00> : vector<16x32xf32>
    %22 = tpu.matmul %14, %21, %cst_20 {dimension_numbers = #tpu.dot_dimension_numbers<[1], [0], [0], [1], [0, 0, 1, 1], [], []>} : vector<16x32xf32>, vector<32x32xf32>, vector<16x32xf32> -> vector<16x32xf32>
    %c0_21 = arith.constant 0 : index
    %c0_22 = arith.constant 0 : index
    %c0_23 = arith.constant 0 : index
    %23 = vector.load %arg19[%c0_21, %c0_22, %c0_23] : memref<3x1x32xf32, #tpu.memory_space<vmem>>, vector<1x1x32xf32>
    %24 = vector.shape_cast %23 : vector<1x1x32xf32> to vector<1x32xf32>
    %25 = vector.broadcast %24 : vector<1x32xf32> to vector<16x32xf32>
    %26 = arith.addf %22, %25 : vector<16x32xf32>
    %c1 = arith.constant 1 : index
    %c0_24 = arith.constant 0 : index
    %c0_25 = arith.constant 0 : index
    %27 = vector.load %arg17[%c1, %c0_24, %c0_25] : memref<3x32x32xf32, #tpu.memory_space<vmem>>, vector<1x32x32xf32>
    %28 = vector.shape_cast %27 : vector<1x32x32xf32> to vector<32x32xf32>
    %cst_26 = arith.constant dense<0.000000e+00> : vector<16x32xf32>
    %29 = tpu.matmul %14, %28, %cst_26 {dimension_numbers = #tpu.dot_dimension_numbers<[1], [0], [0], [1], [0, 0, 1, 1], [], []>} : vector<16x32xf32>, vector<32x32xf32>, vector<16x32xf32> -> vector<16x32xf32>
    %c1_27 = arith.constant 1 : index
    %c0_28 = arith.constant 0 : index
    %c0_29 = arith.constant 0 : index
    %30 = vector.load %arg19[%c1_27, %c0_28, %c0_29] : memref<3x1x32xf32, #tpu.memory_space<vmem>>, vector<1x1x32xf32>
    %31 = vector.shape_cast %30 : vector<1x1x32xf32> to vector<1x32xf32>
    %32 = vector.broadcast %31 : vector<1x32xf32> to vector<16x32xf32>
    %33 = arith.addf %29, %32 : vector<16x32xf32>
    %c2 = arith.constant 2 : index
    %c0_30 = arith.constant 0 : index
    %c0_31 = arith.constant 0 : index
    %34 = vector.load %arg17[%c2, %c0_30, %c0_31] : memref<3x32x32xf32, #tpu.memory_space<vmem>>, vector<1x32x32xf32>
    %35 = vector.shape_cast %34 : vector<1x32x32xf32> to vector<32x32xf32>
    %cst_32 = arith.constant dense<0.000000e+00> : vector<16x32xf32>
    %36 = tpu.matmul %14, %35, %cst_32 {dimension_numbers = #tpu.dot_dimension_numbers<[1], [0], [0], [1], [0, 0, 1, 1], [], []>} : vector<16x32xf32>, vector<32x32xf32>, vector<16x32xf32> -> vector<16x32xf32>
    %c2_33 = arith.constant 2 : index
    %c0_34 = arith.constant 0 : index
    %c0_35 = arith.constant 0 : index
    %37 = vector.load %arg19[%c2_33, %c0_34, %c0_35] : memref<3x1x32xf32, #tpu.memory_space<vmem>>, vector<1x1x32xf32>
    %38 = vector.shape_cast %37 : vector<1x1x32xf32> to vector<1x32xf32>
    %39 = vector.broadcast %38 : vector<1x32xf32> to vector<16x32xf32>
    %40 = arith.addf %36, %39 : vector<16x32xf32>
    %c0_36 = arith.constant 0 : index
    %c0_37 = arith.constant 0 : index
    %41 = vector.load %arg10[%c0_36, %c0_37] : memref<1x32xf32, #tpu.memory_space<vmem>>, vector<1x32xf32>
    %42 = vector.shape_cast %41 : vector<1x32xf32> to vector<1x32xf32>
    %43 = vector.broadcast %42 : vector<1x32xf32> to vector<2x32xf32>
    %c0_38 = arith.constant 0 : index
    %c0_39 = arith.constant 0 : index
    %44 = vector.load %arg16[%c0_38, %c0_39] : memref<1x32xf32, #tpu.memory_space<vmem>>, vector<1x32xf32>
    %45 = vector.shape_cast %44 : vector<1x32xf32> to vector<1x32xf32>
    %46 = vector.broadcast %45 : vector<1x32xf32> to vector<2x32xf32>
    %c0_40 = arith.constant 0 : index
    %c0_41 = arith.constant 0 : index
    %47 = vector.load %arg12[%c0_40, %c0_41] : memref<1x16xf32, #tpu.memory_space<vmem>>, vector<1x16xf32>
    %48 = vector.shape_cast %47 : vector<1x16xf32> to vector<1x16xf32>
    %49 = vector.broadcast %48 : vector<1x16xf32> to vector<2x16xf32>
    %c0_42 = arith.constant 0 : index
    %c0_43 = arith.constant 0 : index
    %50 = vector.load %arg14[%c0_42, %c0_43] : memref<1x16xf32, #tpu.memory_space<vmem>>, vector<1x16xf32>
    %51 = vector.shape_cast %50 : vector<1x16xf32> to vector<1x16xf32>
    %52 = vector.broadcast %51 : vector<1x16xf32> to vector<2x16xf32>
    %c0_44 = arith.constant 0 : index
    %c0_45 = arith.constant 0 : index
    %c0_46 = arith.constant 0 : index
    %53 = vector.load %arg20[%c0_44, %c0_45, %c0_46] : memref<3x32x32xf32, #tpu.memory_space<vmem>>, vector<1x32x32xf32>
    %54 = vector.shape_cast %53 : vector<1x32x32xf32> to vector<32x32xf32>
    %c1_47 = arith.constant 1 : index
    %c0_48 = arith.constant 0 : index
    %c0_49 = arith.constant 0 : index
    %55 = vector.load %arg20[%c1_47, %c0_48, %c0_49] : memref<3x32x32xf32, #tpu.memory_space<vmem>>, vector<1x32x32xf32>
    %56 = vector.shape_cast %55 : vector<1x32x32xf32> to vector<32x32xf32>
    %c2_50 = arith.constant 2 : index
    %c0_51 = arith.constant 0 : index
    %c0_52 = arith.constant 0 : index
    %57 = vector.load %arg20[%c2_50, %c0_51, %c0_52] : memref<3x32x32xf32, #tpu.memory_space<vmem>>, vector<1x32x32xf32>
    %58 = vector.shape_cast %57 : vector<1x32x32xf32> to vector<32x32xf32>
    %c0_53 = arith.constant 0 : index
    %c0_54 = arith.constant 0 : index
    %c0_55 = arith.constant 0 : index
    %59 = vector.load %arg21[%c0_53, %c0_54, %c0_55] : memref<3x1x32xf32, #tpu.memory_space<vmem>>, vector<1x1x32xf32>
    %60 = vector.shape_cast %59 : vector<1x1x32xf32> to vector<1x32xf32>
    %61 = vector.shape_cast %60 : vector<1x32xf32> to vector<1x32xf32>
    %62 = vector.broadcast %61 : vector<1x32xf32> to vector<2x32xf32>
    %c1_56 = arith.constant 1 : index
    %c0_57 = arith.constant 0 : index
    %c0_58 = arith.constant 0 : index
    %63 = vector.load %arg21[%c1_56, %c0_57, %c0_58] : memref<3x1x32xf32, #tpu.memory_space<vmem>>, vector<1x1x32xf32>
    %64 = vector.shape_cast %63 : vector<1x1x32xf32> to vector<1x32xf32>
    %65 = vector.shape_cast %64 : vector<1x32xf32> to vector<1x32xf32>
    %66 = vector.broadcast %65 : vector<1x32xf32> to vector<2x32xf32>
    %c2_59 = arith.constant 2 : index
    %c0_60 = arith.constant 0 : index
    %c0_61 = arith.constant 0 : index
    %67 = vector.load %arg21[%c2_59, %c0_60, %c0_61] : memref<3x1x32xf32, #tpu.memory_space<vmem>>, vector<1x1x32xf32>
    %68 = vector.shape_cast %67 : vector<1x1x32xf32> to vector<1x32xf32>
    %69 = vector.shape_cast %68 : vector<1x32xf32> to vector<1x32xf32>
    %70 = vector.broadcast %69 : vector<1x32xf32> to vector<2x32xf32>
    %c0_62 = arith.constant 0 : index
    %c0_63 = arith.constant 0 : index
    %c0_64 = arith.constant 0 : index
    %71 = vector.load %arg23[%c0_62, %c0_63, %c0_64] : memref<3x1x32xf32, #tpu.memory_space<vmem>>, vector<1x1x32xf32>
    %72 = vector.shape_cast %71 : vector<1x1x32xf32> to vector<1x32xf32>
    %73 = vector.shape_cast %72 : vector<1x32xf32> to vector<1x32xf32>
    %74 = vector.broadcast %73 : vector<1x32xf32> to vector<2x32xf32>
    %c1_65 = arith.constant 1 : index
    %c0_66 = arith.constant 0 : index
    %c0_67 = arith.constant 0 : index
    %75 = vector.load %arg23[%c1_65, %c0_66, %c0_67] : memref<3x1x32xf32, #tpu.memory_space<vmem>>, vector<1x1x32xf32>
    %76 = vector.shape_cast %75 : vector<1x1x32xf32> to vector<1x32xf32>
    %77 = vector.shape_cast %76 : vector<1x32xf32> to vector<1x32xf32>
    %78 = vector.broadcast %77 : vector<1x32xf32> to vector<2x32xf32>
    %c2_68 = arith.constant 2 : index
    %c0_69 = arith.constant 0 : index
    %c0_70 = arith.constant 0 : index
    %79 = vector.load %arg23[%c2_68, %c0_69, %c0_70] : memref<3x1x32xf32, #tpu.memory_space<vmem>>, vector<1x1x32xf32>
    %80 = vector.shape_cast %79 : vector<1x1x32xf32> to vector<1x32xf32>
    %81 = vector.shape_cast %80 : vector<1x32xf32> to vector<1x32xf32>
    %82 = vector.broadcast %81 : vector<1x32xf32> to vector<2x32xf32>
    %c0_71 = arith.constant 0 : index
    %c0_72 = arith.constant 0 : index
    %c0_73 = arith.constant 0 : index
    %83 = vector.load %arg24[%c0_71, %c0_72, %c0_73] : memref<3x32x32xf32, #tpu.memory_space<vmem>>, vector<1x32x32xf32>
    %84 = vector.shape_cast %83 : vector<1x32x32xf32> to vector<32x32xf32>
    %c1_74 = arith.constant 1 : index
    %c0_75 = arith.constant 0 : index
    %c0_76 = arith.constant 0 : index
    %85 = vector.load %arg24[%c1_74, %c0_75, %c0_76] : memref<3x32x32xf32, #tpu.memory_space<vmem>>, vector<1x32x32xf32>
    %86 = vector.shape_cast %85 : vector<1x32x32xf32> to vector<32x32xf32>
    %c2_77 = arith.constant 2 : index
    %c0_78 = arith.constant 0 : index
    %c0_79 = arith.constant 0 : index
    %87 = vector.load %arg24[%c2_77, %c0_78, %c0_79] : memref<3x32x32xf32, #tpu.memory_space<vmem>>, vector<1x32x32xf32>
    %88 = vector.shape_cast %87 : vector<1x32x32xf32> to vector<32x32xf32>
    %c0_80 = arith.constant 0 : index
    %c0_81 = arith.constant 0 : index
    %c0_82 = arith.constant 0 : index
    %89 = vector.load %arg25[%c0_80, %c0_81, %c0_82] : memref<3x1x32xf32, #tpu.memory_space<vmem>>, vector<1x1x32xf32>
    %90 = vector.shape_cast %89 : vector<1x1x32xf32> to vector<1x32xf32>
    %91 = vector.shape_cast %90 : vector<1x32xf32> to vector<1x32xf32>
    %92 = vector.broadcast %91 : vector<1x32xf32> to vector<2x32xf32>
    %c1_83 = arith.constant 1 : index
    %c0_84 = arith.constant 0 : index
    %c0_85 = arith.constant 0 : index
    %93 = vector.load %arg25[%c1_83, %c0_84, %c0_85] : memref<3x1x32xf32, #tpu.memory_space<vmem>>, vector<1x1x32xf32>
    %94 = vector.shape_cast %93 : vector<1x1x32xf32> to vector<1x32xf32>
    %95 = vector.shape_cast %94 : vector<1x32xf32> to vector<1x32xf32>
    %96 = vector.broadcast %95 : vector<1x32xf32> to vector<2x32xf32>
    %c2_86 = arith.constant 2 : index
    %c0_87 = arith.constant 0 : index
    %c0_88 = arith.constant 0 : index
    %97 = vector.load %arg25[%c2_86, %c0_87, %c0_88] : memref<3x1x32xf32, #tpu.memory_space<vmem>>, vector<1x1x32xf32>
    %98 = vector.shape_cast %97 : vector<1x1x32xf32> to vector<1x32xf32>
    %99 = vector.shape_cast %98 : vector<1x32xf32> to vector<1x32xf32>
    %100 = vector.broadcast %99 : vector<1x32xf32> to vector<2x32xf32>
    %cst_89 = arith.constant 0.000000e+00 : f32
    %101 = vector.broadcast %cst_89 : f32 to vector<2x32xf32>
    %cst_90 = arith.constant 0.000000e+00 : f32
    %102 = vector.broadcast %cst_90 : f32 to vector<2x32xf32>
    %103 = vector.extract_strided_slice %19 {offsets = [0, 0], sizes = [2, 32], strides = [1, 1]} : vector<16x32xf32> to vector<2x32xf32>
    %c0_91 = arith.constant 0 : index
    %c0_92 = arith.constant 0 : index
    %104 = vector.load %arg1[%c0_91, %c0_92] : memref<16x16xf32, #tpu.memory_space<vmem>>, vector<2x16xf32>
    %c0_93 = arith.constant 0 : index
    %c0_94 = arith.constant 0 : index
    %105 = vector.load %arg7[%c0_93, %c0_94] : memref<32x32xf32, #tpu.memory_space<vmem>>, vector<32x32xf32>
    %cst_95 = arith.constant dense<0.000000e+00> : vector<2x32xf32>
    %106 = tpu.matmul %102, %105, %cst_95 {dimension_numbers = #tpu.dot_dimension_numbers<[1], [0], [0], [1], [0, 0, 1, 1], [], []>} : vector<2x32xf32>, vector<32x32xf32>, vector<2x32xf32> -> vector<2x32xf32>
    %107 = arith.addf %103, %106 : vector<2x32xf32>
    %cst_96 = arith.constant 0.000000e+00 : f32
    %108 = vector.broadcast %cst_96 : f32 to vector<2x32xf32>
    %109 = arith.maximumf %107, %108 : vector<2x32xf32>
    %c0_97 = arith.constant 0 : index
    %c0_98 = arith.constant 0 : index
    %110 = vector.load %arg9[%c0_97, %c0_98] : memref<32x32xf32, #tpu.memory_space<vmem>>, vector<32x32xf32>
    %cst_99 = arith.constant dense<0.000000e+00> : vector<2x32xf32>
    %111 = tpu.matmul %109, %110, %cst_99 {dimension_numbers = #tpu.dot_dimension_numbers<[1], [0], [0], [1], [0, 0, 1, 1], [], []>} : vector<2x32xf32>, vector<32x32xf32>, vector<2x32xf32> -> vector<2x32xf32>
    %112 = arith.addf %111, %43 : vector<2x32xf32>
    %cst_100 = arith.constant 0.000000e+00 : f32
    %113 = vector.broadcast %cst_100 : f32 to vector<2x32xf32>
    %114 = arith.maximumf %112, %113 : vector<2x32xf32>
    %c0_101 = arith.constant 0 : index
    %c0_102 = arith.constant 0 : index
    %115 = vector.load %arg11[%c0_101, %c0_102] : memref<32x16xf32, #tpu.memory_space<vmem>>, vector<32x16xf32>
    %cst_103 = arith.constant dense<0.000000e+00> : vector<2x16xf32>
    %116 = tpu.matmul %114, %115, %cst_103 {dimension_numbers = #tpu.dot_dimension_numbers<[1], [0], [0], [1], [0, 0, 1, 1], [], []>} : vector<2x32xf32>, vector<32x16xf32>, vector<2x16xf32> -> vector<2x16xf32>
    %117 = arith.addf %116, %49 : vector<2x16xf32>
    %c0_104 = arith.constant 0 : index
    %c0_105 = arith.constant 0 : index
    %118 = vector.load %arg13[%c0_104, %c0_105] : memref<32x16xf32, #tpu.memory_space<vmem>>, vector<32x16xf32>
    %cst_106 = arith.constant dense<0.000000e+00> : vector<2x16xf32>
    %119 = tpu.matmul %114, %118, %cst_106 {dimension_numbers = #tpu.dot_dimension_numbers<[1], [0], [0], [1], [0, 0, 1, 1], [], []>} : vector<2x32xf32>, vector<32x16xf32>, vector<2x16xf32> -> vector<2x16xf32>
    %120 = arith.addf %119, %52 : vector<2x16xf32>
    %cst_107 = arith.constant 0.000000e+00 : f32
    %121 = vector.broadcast %cst_107 : f32 to vector<2x16xf32>
    %122 = arith.maximumf %120, %121 : vector<2x16xf32>
    %123 = math.absf %120 : vector<2x16xf32>
    %cst_108 = arith.constant 0.000000e+00 : f32
    %124 = vector.broadcast %cst_108 : f32 to vector<2x16xf32>
    %125 = arith.subf %124, %123 : vector<2x16xf32>
    %126 = math.exp %125 : vector<2x16xf32>
    %cst_109 = arith.constant 1.000000e+00 : f32
    %127 = vector.broadcast %cst_109 : f32 to vector<2x16xf32>
    %128 = arith.addf %127, %126 : vector<2x16xf32>
    %129 = math.log %128 : vector<2x16xf32>
    %130 = arith.addf %122, %129 : vector<2x16xf32>
    %131 = arith.mulf %104, %130 : vector<2x16xf32>
    %132 = arith.addf %131, %117 : vector<2x16xf32>
    %c0_110 = arith.constant 0 : index
    %c0_111 = arith.constant 0 : index
    %133 = vector.load %arg15[%c0_110, %c0_111] : memref<16x32xf32, #tpu.memory_space<vmem>>, vector<16x32xf32>
    %cst_112 = arith.constant dense<0.000000e+00> : vector<2x32xf32>
    %134 = tpu.matmul %132, %133, %cst_112 {dimension_numbers = #tpu.dot_dimension_numbers<[1], [0], [0], [1], [0, 0, 1, 1], [], []>} : vector<2x16xf32>, vector<16x32xf32>, vector<2x32xf32> -> vector<2x32xf32>
    %135 = arith.addf %134, %46 : vector<2x32xf32>
    %cst_113 = arith.constant 0.000000e+00 : f32
    %136 = vector.broadcast %cst_113 : f32 to vector<2x32xf32>
    %137 = arith.maximumf %135, %136 : vector<2x32xf32>
    %138 = vector.extract_strided_slice %26 {offsets = [0, 0], sizes = [2, 32], strides = [1, 1]} : vector<16x32xf32> to vector<2x32xf32>
    %c0_114 = arith.constant 0 : index
    %c0_115 = arith.constant 0 : index
    %c0_116 = arith.constant 0 : index
    %139 = vector.load %arg18[%c0_114, %c0_115, %c0_116] : memref<3x32x32xf32, #tpu.memory_space<vmem>>, vector<1x32x32xf32>
    %140 = vector.shape_cast %139 : vector<1x32x32xf32> to vector<32x32xf32>
    %cst_117 = arith.constant dense<0.000000e+00> : vector<2x32xf32>
    %141 = tpu.matmul %137, %140, %cst_117 {dimension_numbers = #tpu.dot_dimension_numbers<[1], [0], [0], [1], [0, 0, 1, 1], [], []>} : vector<2x32xf32>, vector<32x32xf32>, vector<2x32xf32> -> vector<2x32xf32>
    %142 = arith.addf %138, %141 : vector<2x32xf32>
    %143 = vector.extract_strided_slice %33 {offsets = [0, 0], sizes = [2, 32], strides = [1, 1]} : vector<16x32xf32> to vector<2x32xf32>
    %c1_118 = arith.constant 1 : index
    %c0_119 = arith.constant 0 : index
    %c0_120 = arith.constant 0 : index
    %144 = vector.load %arg18[%c1_118, %c0_119, %c0_120] : memref<3x32x32xf32, #tpu.memory_space<vmem>>, vector<1x32x32xf32>
    %145 = vector.shape_cast %144 : vector<1x32x32xf32> to vector<32x32xf32>
    %cst_121 = arith.constant dense<0.000000e+00> : vector<2x32xf32>
    %146 = tpu.matmul %137, %145, %cst_121 {dimension_numbers = #tpu.dot_dimension_numbers<[1], [0], [0], [1], [0, 0, 1, 1], [], []>} : vector<2x32xf32>, vector<32x32xf32>, vector<2x32xf32> -> vector<2x32xf32>
    %147 = arith.addf %143, %146 : vector<2x32xf32>
    %148 = vector.extract_strided_slice %40 {offsets = [0, 0], sizes = [2, 32], strides = [1, 1]} : vector<16x32xf32> to vector<2x32xf32>
    %c2_122 = arith.constant 2 : index
    %c0_123 = arith.constant 0 : index
    %c0_124 = arith.constant 0 : index
    %149 = vector.load %arg18[%c2_122, %c0_123, %c0_124] : memref<3x32x32xf32, #tpu.memory_space<vmem>>, vector<1x32x32xf32>
    %150 = vector.shape_cast %149 : vector<1x32x32xf32> to vector<32x32xf32>
    %cst_125 = arith.constant dense<0.000000e+00> : vector<2x32xf32>
    %151 = tpu.matmul %137, %150, %cst_125 {dimension_numbers = #tpu.dot_dimension_numbers<[1], [0], [0], [1], [0, 0, 1, 1], [], []>} : vector<2x32xf32>, vector<32x32xf32>, vector<2x32xf32> -> vector<2x32xf32>
    %152 = arith.addf %148, %151 : vector<2x32xf32>
    %cst_126 = arith.constant dense<0.000000e+00> : vector<2x32xf32>
    %153 = tpu.matmul %101, %54, %cst_126 {dimension_numbers = #tpu.dot_dimension_numbers<[1], [0], [0], [1], [0, 0, 1, 1], [], []>} : vector<2x32xf32>, vector<32x32xf32>, vector<2x32xf32> -> vector<2x32xf32>
    %154 = arith.addf %153, %62 : vector<2x32xf32>
    %cst_127 = arith.constant dense<0.000000e+00> : vector<2x32xf32>
    %155 = tpu.matmul %101, %56, %cst_127 {dimension_numbers = #tpu.dot_dimension_numbers<[1], [0], [0], [1], [0, 0, 1, 1], [], []>} : vector<2x32xf32>, vector<32x32xf32>, vector<2x32xf32> -> vector<2x32xf32>
    %156 = arith.addf %155, %66 : vector<2x32xf32>
    %cst_128 = arith.constant dense<0.000000e+00> : vector<2x32xf32>
    %157 = tpu.matmul %101, %58, %cst_128 {dimension_numbers = #tpu.dot_dimension_numbers<[1], [0], [0], [1], [0, 0, 1, 1], [], []>} : vector<2x32xf32>, vector<32x32xf32>, vector<2x32xf32> -> vector<2x32xf32>
    %158 = arith.addf %157, %70 : vector<2x32xf32>
    %159 = arith.addf %142, %154 : vector<2x32xf32>
    %160 = arith.negf %159 : vector<2x32xf32>
    %161 = math.exp %160 : vector<2x32xf32>
    %cst_129 = arith.constant 1.000000e+00 : f32
    %162 = vector.broadcast %cst_129 : f32 to vector<2x32xf32>
    %163 = arith.addf %162, %161 : vector<2x32xf32>
    %164 = arith.divf %162, %163 : vector<2x32xf32>
    %165 = arith.addf %147, %156 : vector<2x32xf32>
    %166 = arith.negf %165 : vector<2x32xf32>
    %167 = math.exp %166 : vector<2x32xf32>
    %cst_130 = arith.constant 1.000000e+00 : f32
    %168 = vector.broadcast %cst_130 : f32 to vector<2x32xf32>
    %169 = arith.addf %168, %167 : vector<2x32xf32>
    %170 = arith.divf %168, %169 : vector<2x32xf32>
    %171 = arith.mulf %164, %158 : vector<2x32xf32>
    %172 = arith.addf %152, %171 : vector<2x32xf32>
    %173 = math.tanh %172 : vector<2x32xf32>
    %cst_131 = arith.constant 1.000000e+00 : f32
    %174 = vector.broadcast %cst_131 : f32 to vector<2x32xf32>
    %175 = arith.subf %174, %170 : vector<2x32xf32>
    %176 = arith.mulf %175, %173 : vector<2x32xf32>
    %177 = arith.mulf %170, %101 : vector<2x32xf32>
    %178 = arith.addf %176, %177 : vector<2x32xf32>
    %c0_132 = arith.constant 0 : index
    %c0_133 = arith.constant 0 : index
    %c0_134 = arith.constant 0 : index
    %179 = vector.load %arg22[%c0_132, %c0_133, %c0_134] : memref<3x32x32xf32, #tpu.memory_space<vmem>>, vector<1x32x32xf32>
    %180 = vector.shape_cast %179 : vector<1x32x32xf32> to vector<32x32xf32>
    %cst_135 = arith.constant dense<0.000000e+00> : vector<2x32xf32>
    %181 = tpu.matmul %178, %180, %cst_135 {dimension_numbers = #tpu.dot_dimension_numbers<[1], [0], [0], [1], [0, 0, 1, 1], [], []>} : vector<2x32xf32>, vector<32x32xf32>, vector<2x32xf32> -> vector<2x32xf32>
    %182 = arith.addf %181, %74 : vector<2x32xf32>
    %c1_136 = arith.constant 1 : index
    %c0_137 = arith.constant 0 : index
    %c0_138 = arith.constant 0 : index
    %183 = vector.load %arg22[%c1_136, %c0_137, %c0_138] : memref<3x32x32xf32, #tpu.memory_space<vmem>>, vector<1x32x32xf32>
    %184 = vector.shape_cast %183 : vector<1x32x32xf32> to vector<32x32xf32>
    %cst_139 = arith.constant dense<0.000000e+00> : vector<2x32xf32>
    %185 = tpu.matmul %178, %184, %cst_139 {dimension_numbers = #tpu.dot_dimension_numbers<[1], [0], [0], [1], [0, 0, 1, 1], [], []>} : vector<2x32xf32>, vector<32x32xf32>, vector<2x32xf32> -> vector<2x32xf32>
    %186 = arith.addf %185, %78 : vector<2x32xf32>
    %c2_140 = arith.constant 2 : index
    %c0_141 = arith.constant 0 : index
    %c0_142 = arith.constant 0 : index
    %187 = vector.load %arg22[%c2_140, %c0_141, %c0_142] : memref<3x32x32xf32, #tpu.memory_space<vmem>>, vector<1x32x32xf32>
    %188 = vector.shape_cast %187 : vector<1x32x32xf32> to vector<32x32xf32>
    %cst_143 = arith.constant dense<0.000000e+00> : vector<2x32xf32>
    %189 = tpu.matmul %178, %188, %cst_143 {dimension_numbers = #tpu.dot_dimension_numbers<[1], [0], [0], [1], [0, 0, 1, 1], [], []>} : vector<2x32xf32>, vector<32x32xf32>, vector<2x32xf32> -> vector<2x32xf32>
    %190 = arith.addf %189, %82 : vector<2x32xf32>
    %cst_144 = arith.constant dense<0.000000e+00> : vector<2x32xf32>
    %191 = tpu.matmul %102, %84, %cst_144 {dimension_numbers = #tpu.dot_dimension_numbers<[1], [0], [0], [1], [0, 0, 1, 1], [], []>} : vector<2x32xf32>, vector<32x32xf32>, vector<2x32xf32> -> vector<2x32xf32>
    %192 = arith.addf %191, %92 : vector<2x32xf32>
    %cst_145 = arith.constant dense<0.000000e+00> : vector<2x32xf32>
    %193 = tpu.matmul %102, %86, %cst_145 {dimension_numbers = #tpu.dot_dimension_numbers<[1], [0], [0], [1], [0, 0, 1, 1], [], []>} : vector<2x32xf32>, vector<32x32xf32>, vector<2x32xf32> -> vector<2x32xf32>
    %194 = arith.addf %193, %96 : vector<2x32xf32>
    %cst_146 = arith.constant dense<0.000000e+00> : vector<2x32xf32>
    %195 = tpu.matmul %102, %88, %cst_146 {dimension_numbers = #tpu.dot_dimension_numbers<[1], [0], [0], [1], [0, 0, 1, 1], [], []>} : vector<2x32xf32>, vector<32x32xf32>, vector<2x32xf32> -> vector<2x32xf32>
    %196 = arith.addf %195, %100 : vector<2x32xf32>
    %197 = arith.addf %182, %192 : vector<2x32xf32>
    %198 = arith.negf %197 : vector<2x32xf32>
    %199 = math.exp %198 : vector<2x32xf32>
    %cst_147 = arith.constant 1.000000e+00 : f32
    %200 = vector.broadcast %cst_147 : f32 to vector<2x32xf32>
    %201 = arith.addf %200, %199 : vector<2x32xf32>
    %202 = arith.divf %200, %201 : vector<2x32xf32>
    %203 = arith.addf %186, %194 : vector<2x32xf32>
    %204 = arith.negf %203 : vector<2x32xf32>
    %205 = math.exp %204 : vector<2x32xf32>
    %cst_148 = arith.constant 1.000000e+00 : f32
    %206 = vector.broadcast %cst_148 : f32 to vector<2x32xf32>
    %207 = arith.addf %206, %205 : vector<2x32xf32>
    %208 = arith.divf %206, %207 : vector<2x32xf32>
    %209 = arith.mulf %202, %196 : vector<2x32xf32>
    %210 = arith.addf %190, %209 : vector<2x32xf32>
    %211 = math.tanh %210 : vector<2x32xf32>
    %cst_149 = arith.constant 1.000000e+00 : f32
    %212 = vector.broadcast %cst_149 : f32 to vector<2x32xf32>
    %213 = arith.subf %212, %208 : vector<2x32xf32>
    %214 = arith.mulf %213, %211 : vector<2x32xf32>
    %215 = arith.mulf %208, %102 : vector<2x32xf32>
    %216 = arith.addf %214, %215 : vector<2x32xf32>
    %217 = vector.extract_strided_slice %19 {offsets = [2, 0], sizes = [2, 32], strides = [1, 1]} : vector<16x32xf32> to vector<2x32xf32>
    %c2_150 = arith.constant 2 : index
    %c0_151 = arith.constant 0 : index
    %218 = vector.load %arg1[%c2_150, %c0_151] : memref<16x16xf32, #tpu.memory_space<vmem>>, vector<2x16xf32>
    %c0_152 = arith.constant 0 : index
    %c0_153 = arith.constant 0 : index
    %219 = vector.load %arg7[%c0_152, %c0_153] : memref<32x32xf32, #tpu.memory_space<vmem>>, vector<32x32xf32>
    %cst_154 = arith.constant dense<0.000000e+00> : vector<2x32xf32>
    %220 = tpu.matmul %216, %219, %cst_154 {dimension_numbers = #tpu.dot_dimension_numbers<[1], [0], [0], [1], [0, 0, 1, 1], [], []>} : vector<2x32xf32>, vector<32x32xf32>, vector<2x32xf32> -> vector<2x32xf32>
    %221 = arith.addf %217, %220 : vector<2x32xf32>
    %cst_155 = arith.constant 0.000000e+00 : f32
    %222 = vector.broadcast %cst_155 : f32 to vector<2x32xf32>
    %223 = arith.maximumf %221, %222 : vector<2x32xf32>
    %c0_156 = arith.constant 0 : index
    %c0_157 = arith.constant 0 : index
    %224 = vector.load %arg9[%c0_156, %c0_157] : memref<32x32xf32, #tpu.memory_space<vmem>>, vector<32x32xf32>
    %cst_158 = arith.constant dense<0.000000e+00> : vector<2x32xf32>
    %225 = tpu.matmul %223, %224, %cst_158 {dimension_numbers = #tpu.dot_dimension_numbers<[1], [0], [0], [1], [0, 0, 1, 1], [], []>} : vector<2x32xf32>, vector<32x32xf32>, vector<2x32xf32> -> vector<2x32xf32>
    %226 = arith.addf %225, %43 : vector<2x32xf32>
    %cst_159 = arith.constant 0.000000e+00 : f32
    %227 = vector.broadcast %cst_159 : f32 to vector<2x32xf32>
    %228 = arith.maximumf %226, %227 : vector<2x32xf32>
    %c0_160 = arith.constant 0 : index
    %c0_161 = arith.constant 0 : index
    %229 = vector.load %arg11[%c0_160, %c0_161] : memref<32x16xf32, #tpu.memory_space<vmem>>, vector<32x16xf32>
    %cst_162 = arith.constant dense<0.000000e+00> : vector<2x16xf32>
    %230 = tpu.matmul %228, %229, %cst_162 {dimension_numbers = #tpu.dot_dimension_numbers<[1], [0], [0], [1], [0, 0, 1, 1], [], []>} : vector<2x32xf32>, vector<32x16xf32>, vector<2x16xf32> -> vector<2x16xf32>
    %231 = arith.addf %230, %49 : vector<2x16xf32>
    %c0_163 = arith.constant 0 : index
    %c0_164 = arith.constant 0 : index
    %232 = vector.load %arg13[%c0_163, %c0_164] : memref<32x16xf32, #tpu.memory_space<vmem>>, vector<32x16xf32>
    %cst_165 = arith.constant dense<0.000000e+00> : vector<2x16xf32>
    %233 = tpu.matmul %228, %232, %cst_165 {dimension_numbers = #tpu.dot_dimension_numbers<[1], [0], [0], [1], [0, 0, 1, 1], [], []>} : vector<2x32xf32>, vector<32x16xf32>, vector<2x16xf32> -> vector<2x16xf32>
    %234 = arith.addf %233, %52 : vector<2x16xf32>
    %cst_166 = arith.constant 0.000000e+00 : f32
    %235 = vector.broadcast %cst_166 : f32 to vector<2x16xf32>
    %236 = arith.maximumf %234, %235 : vector<2x16xf32>
    %237 = math.absf %234 : vector<2x16xf32>
    %cst_167 = arith.constant 0.000000e+00 : f32
    %238 = vector.broadcast %cst_167 : f32 to vector<2x16xf32>
    %239 = arith.subf %238, %237 : vector<2x16xf32>
    %240 = math.exp %239 : vector<2x16xf32>
    %cst_168 = arith.constant 1.000000e+00 : f32
    %241 = vector.broadcast %cst_168 : f32 to vector<2x16xf32>
    %242 = arith.addf %241, %240 : vector<2x16xf32>
    %243 = math.log %242 : vector<2x16xf32>
    %244 = arith.addf %236, %243 : vector<2x16xf32>
    %245 = arith.mulf %218, %244 : vector<2x16xf32>
    %246 = arith.addf %245, %231 : vector<2x16xf32>
    %c0_169 = arith.constant 0 : index
    %c0_170 = arith.constant 0 : index
    %247 = vector.load %arg15[%c0_169, %c0_170] : memref<16x32xf32, #tpu.memory_space<vmem>>, vector<16x32xf32>
    %cst_171 = arith.constant dense<0.000000e+00> : vector<2x32xf32>
    %248 = tpu.matmul %246, %247, %cst_171 {dimension_numbers = #tpu.dot_dimension_numbers<[1], [0], [0], [1], [0, 0, 1, 1], [], []>} : vector<2x16xf32>, vector<16x32xf32>, vector<2x32xf32> -> vector<2x32xf32>
    %249 = arith.addf %248, %46 : vector<2x32xf32>
    %cst_172 = arith.constant 0.000000e+00 : f32
    %250 = vector.broadcast %cst_172 : f32 to vector<2x32xf32>
    %251 = arith.maximumf %249, %250 : vector<2x32xf32>
    %252 = vector.extract_strided_slice %26 {offsets = [2, 0], sizes = [2, 32], strides = [1, 1]} : vector<16x32xf32> to vector<2x32xf32>
    %c0_173 = arith.constant 0 : index
    %c0_174 = arith.constant 0 : index
    %c0_175 = arith.constant 0 : index
    %253 = vector.load %arg18[%c0_173, %c0_174, %c0_175] : memref<3x32x32xf32, #tpu.memory_space<vmem>>, vector<1x32x32xf32>
    %254 = vector.shape_cast %253 : vector<1x32x32xf32> to vector<32x32xf32>
    %cst_176 = arith.constant dense<0.000000e+00> : vector<2x32xf32>
    %255 = tpu.matmul %251, %254, %cst_176 {dimension_numbers = #tpu.dot_dimension_numbers<[1], [0], [0], [1], [0, 0, 1, 1], [], []>} : vector<2x32xf32>, vector<32x32xf32>, vector<2x32xf32> -> vector<2x32xf32>
    %256 = arith.addf %252, %255 : vector<2x32xf32>
    %257 = vector.extract_strided_slice %33 {offsets = [2, 0], sizes = [2, 32], strides = [1, 1]} : vector<16x32xf32> to vector<2x32xf32>
    %c1_177 = arith.constant 1 : index
    %c0_178 = arith.constant 0 : index
    %c0_179 = arith.constant 0 : index
    %258 = vector.load %arg18[%c1_177, %c0_178, %c0_179] : memref<3x32x32xf32, #tpu.memory_space<vmem>>, vector<1x32x32xf32>
    %259 = vector.shape_cast %258 : vector<1x32x32xf32> to vector<32x32xf32>
    %cst_180 = arith.constant dense<0.000000e+00> : vector<2x32xf32>
    %260 = tpu.matmul %251, %259, %cst_180 {dimension_numbers = #tpu.dot_dimension_numbers<[1], [0], [0], [1], [0, 0, 1, 1], [], []>} : vector<2x32xf32>, vector<32x32xf32>, vector<2x32xf32> -> vector<2x32xf32>
    %261 = arith.addf %257, %260 : vector<2x32xf32>
    %262 = vector.extract_strided_slice %40 {offsets = [2, 0], sizes = [2, 32], strides = [1, 1]} : vector<16x32xf32> to vector<2x32xf32>
    %c2_181 = arith.constant 2 : index
    %c0_182 = arith.constant 0 : index
    %c0_183 = arith.constant 0 : index
    %263 = vector.load %arg18[%c2_181, %c0_182, %c0_183] : memref<3x32x32xf32, #tpu.memory_space<vmem>>, vector<1x32x32xf32>
    %264 = vector.shape_cast %263 : vector<1x32x32xf32> to vector<32x32xf32>
    %cst_184 = arith.constant dense<0.000000e+00> : vector<2x32xf32>
    %265 = tpu.matmul %251, %264, %cst_184 {dimension_numbers = #tpu.dot_dimension_numbers<[1], [0], [0], [1], [0, 0, 1, 1], [], []>} : vector<2x32xf32>, vector<32x32xf32>, vector<2x32xf32> -> vector<2x32xf32>
    %266 = arith.addf %262, %265 : vector<2x32xf32>
    %cst_185 = arith.constant dense<0.000000e+00> : vector<2x32xf32>
    %267 = tpu.matmul %178, %54, %cst_185 {dimension_numbers = #tpu.dot_dimension_numbers<[1], [0], [0], [1], [0, 0, 1, 1], [], []>} : vector<2x32xf32>, vector<32x32xf32>, vector<2x32xf32> -> vector<2x32xf32>
    %268 = arith.addf %267, %62 : vector<2x32xf32>
    %cst_186 = arith.constant dense<0.000000e+00> : vector<2x32xf32>
    %269 = tpu.matmul %178, %56, %cst_186 {dimension_numbers = #tpu.dot_dimension_numbers<[1], [0], [0], [1], [0, 0, 1, 1], [], []>} : vector<2x32xf32>, vector<32x32xf32>, vector<2x32xf32> -> vector<2x32xf32>
    %270 = arith.addf %269, %66 : vector<2x32xf32>
    %cst_187 = arith.constant dense<0.000000e+00> : vector<2x32xf32>
    %271 = tpu.matmul %178, %58, %cst_187 {dimension_numbers = #tpu.dot_dimension_numbers<[1], [0], [0], [1], [0, 0, 1, 1], [], []>} : vector<2x32xf32>, vector<32x32xf32>, vector<2x32xf32> -> vector<2x32xf32>
    %272 = arith.addf %271, %70 : vector<2x32xf32>
    %273 = arith.addf %256, %268 : vector<2x32xf32>
    %274 = arith.negf %273 : vector<2x32xf32>
    %275 = math.exp %274 : vector<2x32xf32>
    %cst_188 = arith.constant 1.000000e+00 : f32
    %276 = vector.broadcast %cst_188 : f32 to vector<2x32xf32>
    %277 = arith.addf %276, %275 : vector<2x32xf32>
    %278 = arith.divf %276, %277 : vector<2x32xf32>
    %279 = arith.addf %261, %270 : vector<2x32xf32>
    %280 = arith.negf %279 : vector<2x32xf32>
    %281 = math.exp %280 : vector<2x32xf32>
    %cst_189 = arith.constant 1.000000e+00 : f32
    %282 = vector.broadcast %cst_189 : f32 to vector<2x32xf32>
    %283 = arith.addf %282, %281 : vector<2x32xf32>
    %284 = arith.divf %282, %283 : vector<2x32xf32>
    %285 = arith.mulf %278, %272 : vector<2x32xf32>
    %286 = arith.addf %266, %285 : vector<2x32xf32>
    %287 = math.tanh %286 : vector<2x32xf32>
    %cst_190 = arith.constant 1.000000e+00 : f32
    %288 = vector.broadcast %cst_190 : f32 to vector<2x32xf32>
    %289 = arith.subf %288, %284 : vector<2x32xf32>
    %290 = arith.mulf %289, %287 : vector<2x32xf32>
    %291 = arith.mulf %284, %178 : vector<2x32xf32>
    %292 = arith.addf %290, %291 : vector<2x32xf32>
    %c0_191 = arith.constant 0 : index
    %c0_192 = arith.constant 0 : index
    %c0_193 = arith.constant 0 : index
    %293 = vector.load %arg22[%c0_191, %c0_192, %c0_193] : memref<3x32x32xf32, #tpu.memory_space<vmem>>, vector<1x32x32xf32>
    %294 = vector.shape_cast %293 : vector<1x32x32xf32> to vector<32x32xf32>
    %cst_194 = arith.constant dense<0.000000e+00> : vector<2x32xf32>
    %295 = tpu.matmul %292, %294, %cst_194 {dimension_numbers = #tpu.dot_dimension_numbers<[1], [0], [0], [1], [0, 0, 1, 1], [], []>} : vector<2x32xf32>, vector<32x32xf32>, vector<2x32xf32> -> vector<2x32xf32>
    %296 = arith.addf %295, %74 : vector<2x32xf32>
    %c1_195 = arith.constant 1 : index
    %c0_196 = arith.constant 0 : index
    %c0_197 = arith.constant 0 : index
    %297 = vector.load %arg22[%c1_195, %c0_196, %c0_197] : memref<3x32x32xf32, #tpu.memory_space<vmem>>, vector<1x32x32xf32>
    %298 = vector.shape_cast %297 : vector<1x32x32xf32> to vector<32x32xf32>
    %cst_198 = arith.constant dense<0.000000e+00> : vector<2x32xf32>
    %299 = tpu.matmul %292, %298, %cst_198 {dimension_numbers = #tpu.dot_dimension_numbers<[1], [0], [0], [1], [0, 0, 1, 1], [], []>} : vector<2x32xf32>, vector<32x32xf32>, vector<2x32xf32> -> vector<2x32xf32>
    %300 = arith.addf %299, %78 : vector<2x32xf32>
    %c2_199 = arith.constant 2 : index
    %c0_200 = arith.constant 0 : index
    %c0_201 = arith.constant 0 : index
    %301 = vector.load %arg22[%c2_199, %c0_200, %c0_201] : memref<3x32x32xf32, #tpu.memory_space<vmem>>, vector<1x32x32xf32>
    %302 = vector.shape_cast %301 : vector<1x32x32xf32> to vector<32x32xf32>
    %cst_202 = arith.constant dense<0.000000e+00> : vector<2x32xf32>
    %303 = tpu.matmul %292, %302, %cst_202 {dimension_numbers = #tpu.dot_dimension_numbers<[1], [0], [0], [1], [0, 0, 1, 1], [], []>} : vector<2x32xf32>, vector<32x32xf32>, vector<2x32xf32> -> vector<2x32xf32>
    %304 = arith.addf %303, %82 : vector<2x32xf32>
    %cst_203 = arith.constant dense<0.000000e+00> : vector<2x32xf32>
    %305 = tpu.matmul %216, %84, %cst_203 {dimension_numbers = #tpu.dot_dimension_numbers<[1], [0], [0], [1], [0, 0, 1, 1], [], []>} : vector<2x32xf32>, vector<32x32xf32>, vector<2x32xf32> -> vector<2x32xf32>
    %306 = arith.addf %305, %92 : vector<2x32xf32>
    %cst_204 = arith.constant dense<0.000000e+00> : vector<2x32xf32>
    %307 = tpu.matmul %216, %86, %cst_204 {dimension_numbers = #tpu.dot_dimension_numbers<[1], [0], [0], [1], [0, 0, 1, 1], [], []>} : vector<2x32xf32>, vector<32x32xf32>, vector<2x32xf32> -> vector<2x32xf32>
    %308 = arith.addf %307, %96 : vector<2x32xf32>
    %cst_205 = arith.constant dense<0.000000e+00> : vector<2x32xf32>
    %309 = tpu.matmul %216, %88, %cst_205 {dimension_numbers = #tpu.dot_dimension_numbers<[1], [0], [0], [1], [0, 0, 1, 1], [], []>} : vector<2x32xf32>, vector<32x32xf32>, vector<2x32xf32> -> vector<2x32xf32>
    %310 = arith.addf %309, %100 : vector<2x32xf32>
    %311 = arith.addf %296, %306 : vector<2x32xf32>
    %312 = arith.negf %311 : vector<2x32xf32>
    %313 = math.exp %312 : vector<2x32xf32>
    %cst_206 = arith.constant 1.000000e+00 : f32
    %314 = vector.broadcast %cst_206 : f32 to vector<2x32xf32>
    %315 = arith.addf %314, %313 : vector<2x32xf32>
    %316 = arith.divf %314, %315 : vector<2x32xf32>
    %317 = arith.addf %300, %308 : vector<2x32xf32>
    %318 = arith.negf %317 : vector<2x32xf32>
    %319 = math.exp %318 : vector<2x32xf32>
    %cst_207 = arith.constant 1.000000e+00 : f32
    %320 = vector.broadcast %cst_207 : f32 to vector<2x32xf32>
    %321 = arith.addf %320, %319 : vector<2x32xf32>
    %322 = arith.divf %320, %321 : vector<2x32xf32>
    %323 = arith.mulf %316, %310 : vector<2x32xf32>
    %324 = arith.addf %304, %323 : vector<2x32xf32>
    %325 = math.tanh %324 : vector<2x32xf32>
    %cst_208 = arith.constant 1.000000e+00 : f32
    %326 = vector.broadcast %cst_208 : f32 to vector<2x32xf32>
    %327 = arith.subf %326, %322 : vector<2x32xf32>
    %328 = arith.mulf %327, %325 : vector<2x32xf32>
    %329 = arith.mulf %322, %216 : vector<2x32xf32>
    %330 = arith.addf %328, %329 : vector<2x32xf32>
    %331 = vector.extract_strided_slice %19 {offsets = [4, 0], sizes = [2, 32], strides = [1, 1]} : vector<16x32xf32> to vector<2x32xf32>
    %c4 = arith.constant 4 : index
    %c0_209 = arith.constant 0 : index
    %332 = vector.load %arg1[%c4, %c0_209] : memref<16x16xf32, #tpu.memory_space<vmem>>, vector<2x16xf32>
    %c0_210 = arith.constant 0 : index
    %c0_211 = arith.constant 0 : index
    %333 = vector.load %arg7[%c0_210, %c0_211] : memref<32x32xf32, #tpu.memory_space<vmem>>, vector<32x32xf32>
    %cst_212 = arith.constant dense<0.000000e+00> : vector<2x32xf32>
    %334 = tpu.matmul %330, %333, %cst_212 {dimension_numbers = #tpu.dot_dimension_numbers<[1], [0], [0], [1], [0, 0, 1, 1], [], []>} : vector<2x32xf32>, vector<32x32xf32>, vector<2x32xf32> -> vector<2x32xf32>
    %335 = arith.addf %331, %334 : vector<2x32xf32>
    %cst_213 = arith.constant 0.000000e+00 : f32
    %336 = vector.broadcast %cst_213 : f32 to vector<2x32xf32>
    %337 = arith.maximumf %335, %336 : vector<2x32xf32>
    %c0_214 = arith.constant 0 : index
    %c0_215 = arith.constant 0 : index
    %338 = vector.load %arg9[%c0_214, %c0_215] : memref<32x32xf32, #tpu.memory_space<vmem>>, vector<32x32xf32>
    %cst_216 = arith.constant dense<0.000000e+00> : vector<2x32xf32>
    %339 = tpu.matmul %337, %338, %cst_216 {dimension_numbers = #tpu.dot_dimension_numbers<[1], [0], [0], [1], [0, 0, 1, 1], [], []>} : vector<2x32xf32>, vector<32x32xf32>, vector<2x32xf32> -> vector<2x32xf32>
    %340 = arith.addf %339, %43 : vector<2x32xf32>
    %cst_217 = arith.constant 0.000000e+00 : f32
    %341 = vector.broadcast %cst_217 : f32 to vector<2x32xf32>
    %342 = arith.maximumf %340, %341 : vector<2x32xf32>
    %c0_218 = arith.constant 0 : index
    %c0_219 = arith.constant 0 : index
    %343 = vector.load %arg11[%c0_218, %c0_219] : memref<32x16xf32, #tpu.memory_space<vmem>>, vector<32x16xf32>
    %cst_220 = arith.constant dense<0.000000e+00> : vector<2x16xf32>
    %344 = tpu.matmul %342, %343, %cst_220 {dimension_numbers = #tpu.dot_dimension_numbers<[1], [0], [0], [1], [0, 0, 1, 1], [], []>} : vector<2x32xf32>, vector<32x16xf32>, vector<2x16xf32> -> vector<2x16xf32>
    %345 = arith.addf %344, %49 : vector<2x16xf32>
    %c0_221 = arith.constant 0 : index
    %c0_222 = arith.constant 0 : index
    %346 = vector.load %arg13[%c0_221, %c0_222] : memref<32x16xf32, #tpu.memory_space<vmem>>, vector<32x16xf32>
    %cst_223 = arith.constant dense<0.000000e+00> : vector<2x16xf32>
    %347 = tpu.matmul %342, %346, %cst_223 {dimension_numbers = #tpu.dot_dimension_numbers<[1], [0], [0], [1], [0, 0, 1, 1], [], []>} : vector<2x32xf32>, vector<32x16xf32>, vector<2x16xf32> -> vector<2x16xf32>
    %348 = arith.addf %347, %52 : vector<2x16xf32>
    %cst_224 = arith.constant 0.000000e+00 : f32
    %349 = vector.broadcast %cst_224 : f32 to vector<2x16xf32>
    %350 = arith.maximumf %348, %349 : vector<2x16xf32>
    %351 = math.absf %348 : vector<2x16xf32>
    %cst_225 = arith.constant 0.000000e+00 : f32
    %352 = vector.broadcast %cst_225 : f32 to vector<2x16xf32>
    %353 = arith.subf %352, %351 : vector<2x16xf32>
    %354 = math.exp %353 : vector<2x16xf32>
    %cst_226 = arith.constant 1.000000e+00 : f32
    %355 = vector.broadcast %cst_226 : f32 to vector<2x16xf32>
    %356 = arith.addf %355, %354 : vector<2x16xf32>
    %357 = math.log %356 : vector<2x16xf32>
    %358 = arith.addf %350, %357 : vector<2x16xf32>
    %359 = arith.mulf %332, %358 : vector<2x16xf32>
    %360 = arith.addf %359, %345 : vector<2x16xf32>
    %c0_227 = arith.constant 0 : index
    %c0_228 = arith.constant 0 : index
    %361 = vector.load %arg15[%c0_227, %c0_228] : memref<16x32xf32, #tpu.memory_space<vmem>>, vector<16x32xf32>
    %cst_229 = arith.constant dense<0.000000e+00> : vector<2x32xf32>
    %362 = tpu.matmul %360, %361, %cst_229 {dimension_numbers = #tpu.dot_dimension_numbers<[1], [0], [0], [1], [0, 0, 1, 1], [], []>} : vector<2x16xf32>, vector<16x32xf32>, vector<2x32xf32> -> vector<2x32xf32>
    %363 = arith.addf %362, %46 : vector<2x32xf32>
    %cst_230 = arith.constant 0.000000e+00 : f32
    %364 = vector.broadcast %cst_230 : f32 to vector<2x32xf32>
    %365 = arith.maximumf %363, %364 : vector<2x32xf32>
    %366 = vector.extract_strided_slice %26 {offsets = [4, 0], sizes = [2, 32], strides = [1, 1]} : vector<16x32xf32> to vector<2x32xf32>
    %c0_231 = arith.constant 0 : index
    %c0_232 = arith.constant 0 : index
    %c0_233 = arith.constant 0 : index
    %367 = vector.load %arg18[%c0_231, %c0_232, %c0_233] : memref<3x32x32xf32, #tpu.memory_space<vmem>>, vector<1x32x32xf32>
    %368 = vector.shape_cast %367 : vector<1x32x32xf32> to vector<32x32xf32>
    %cst_234 = arith.constant dense<0.000000e+00> : vector<2x32xf32>
    %369 = tpu.matmul %365, %368, %cst_234 {dimension_numbers = #tpu.dot_dimension_numbers<[1], [0], [0], [1], [0, 0, 1, 1], [], []>} : vector<2x32xf32>, vector<32x32xf32>, vector<2x32xf32> -> vector<2x32xf32>
    %370 = arith.addf %366, %369 : vector<2x32xf32>
    %371 = vector.extract_strided_slice %33 {offsets = [4, 0], sizes = [2, 32], strides = [1, 1]} : vector<16x32xf32> to vector<2x32xf32>
    %c1_235 = arith.constant 1 : index
    %c0_236 = arith.constant 0 : index
    %c0_237 = arith.constant 0 : index
    %372 = vector.load %arg18[%c1_235, %c0_236, %c0_237] : memref<3x32x32xf32, #tpu.memory_space<vmem>>, vector<1x32x32xf32>
    %373 = vector.shape_cast %372 : vector<1x32x32xf32> to vector<32x32xf32>
    %cst_238 = arith.constant dense<0.000000e+00> : vector<2x32xf32>
    %374 = tpu.matmul %365, %373, %cst_238 {dimension_numbers = #tpu.dot_dimension_numbers<[1], [0], [0], [1], [0, 0, 1, 1], [], []>} : vector<2x32xf32>, vector<32x32xf32>, vector<2x32xf32> -> vector<2x32xf32>
    %375 = arith.addf %371, %374 : vector<2x32xf32>
    %376 = vector.extract_strided_slice %40 {offsets = [4, 0], sizes = [2, 32], strides = [1, 1]} : vector<16x32xf32> to vector<2x32xf32>
    %c2_239 = arith.constant 2 : index
    %c0_240 = arith.constant 0 : index
    %c0_241 = arith.constant 0 : index
    %377 = vector.load %arg18[%c2_239, %c0_240, %c0_241] : memref<3x32x32xf32, #tpu.memory_space<vmem>>, vector<1x32x32xf32>
    %378 = vector.shape_cast %377 : vector<1x32x32xf32> to vector<32x32xf32>
    %cst_242 = arith.constant dense<0.000000e+00> : vector<2x32xf32>
    %379 = tpu.matmul %365, %378, %cst_242 {dimension_numbers = #tpu.dot_dimension_numbers<[1], [0], [0], [1], [0, 0, 1, 1], [], []>} : vector<2x32xf32>, vector<32x32xf32>, vector<2x32xf32> -> vector<2x32xf32>
    %380 = arith.addf %376, %379 : vector<2x32xf32>
    %cst_243 = arith.constant dense<0.000000e+00> : vector<2x32xf32>
    %381 = tpu.matmul %292, %54, %cst_243 {dimension_numbers = #tpu.dot_dimension_numbers<[1], [0], [0], [1], [0, 0, 1, 1], [], []>} : vector<2x32xf32>, vector<32x32xf32>, vector<2x32xf32> -> vector<2x32xf32>
    %382 = arith.addf %381, %62 : vector<2x32xf32>
    %cst_244 = arith.constant dense<0.000000e+00> : vector<2x32xf32>
    %383 = tpu.matmul %292, %56, %cst_244 {dimension_numbers = #tpu.dot_dimension_numbers<[1], [0], [0], [1], [0, 0, 1, 1], [], []>} : vector<2x32xf32>, vector<32x32xf32>, vector<2x32xf32> -> vector<2x32xf32>
    %384 = arith.addf %383, %66 : vector<2x32xf32>
    %cst_245 = arith.constant dense<0.000000e+00> : vector<2x32xf32>
    %385 = tpu.matmul %292, %58, %cst_245 {dimension_numbers = #tpu.dot_dimension_numbers<[1], [0], [0], [1], [0, 0, 1, 1], [], []>} : vector<2x32xf32>, vector<32x32xf32>, vector<2x32xf32> -> vector<2x32xf32>
    %386 = arith.addf %385, %70 : vector<2x32xf32>
    %387 = arith.addf %370, %382 : vector<2x32xf32>
    %388 = arith.negf %387 : vector<2x32xf32>
    %389 = math.exp %388 : vector<2x32xf32>
    %cst_246 = arith.constant 1.000000e+00 : f32
    %390 = vector.broadcast %cst_246 : f32 to vector<2x32xf32>
    %391 = arith.addf %390, %389 : vector<2x32xf32>
    %392 = arith.divf %390, %391 : vector<2x32xf32>
    %393 = arith.addf %375, %384 : vector<2x32xf32>
    %394 = arith.negf %393 : vector<2x32xf32>
    %395 = math.exp %394 : vector<2x32xf32>
    %cst_247 = arith.constant 1.000000e+00 : f32
    %396 = vector.broadcast %cst_247 : f32 to vector<2x32xf32>
    %397 = arith.addf %396, %395 : vector<2x32xf32>
    %398 = arith.divf %396, %397 : vector<2x32xf32>
    %399 = arith.mulf %392, %386 : vector<2x32xf32>
    %400 = arith.addf %380, %399 : vector<2x32xf32>
    %401 = math.tanh %400 : vector<2x32xf32>
    %cst_248 = arith.constant 1.000000e+00 : f32
    %402 = vector.broadcast %cst_248 : f32 to vector<2x32xf32>
    %403 = arith.subf %402, %398 : vector<2x32xf32>
    %404 = arith.mulf %403, %401 : vector<2x32xf32>
    %405 = arith.mulf %398, %292 : vector<2x32xf32>
    %406 = arith.addf %404, %405 : vector<2x32xf32>
    %c0_249 = arith.constant 0 : index
    %c0_250 = arith.constant 0 : index
    %c0_251 = arith.constant 0 : index
    %407 = vector.load %arg22[%c0_249, %c0_250, %c0_251] : memref<3x32x32xf32, #tpu.memory_space<vmem>>, vector<1x32x32xf32>
    %408 = vector.shape_cast %407 : vector<1x32x32xf32> to vector<32x32xf32>
    %cst_252 = arith.constant dense<0.000000e+00> : vector<2x32xf32>
    %409 = tpu.matmul %406, %408, %cst_252 {dimension_numbers = #tpu.dot_dimension_numbers<[1], [0], [0], [1], [0, 0, 1, 1], [], []>} : vector<2x32xf32>, vector<32x32xf32>, vector<2x32xf32> -> vector<2x32xf32>
    %410 = arith.addf %409, %74 : vector<2x32xf32>
    %c1_253 = arith.constant 1 : index
    %c0_254 = arith.constant 0 : index
    %c0_255 = arith.constant 0 : index
    %411 = vector.load %arg22[%c1_253, %c0_254, %c0_255] : memref<3x32x32xf32, #tpu.memory_space<vmem>>, vector<1x32x32xf32>
    %412 = vector.shape_cast %411 : vector<1x32x32xf32> to vector<32x32xf32>
    %cst_256 = arith.constant dense<0.000000e+00> : vector<2x32xf32>
    %413 = tpu.matmul %406, %412, %cst_256 {dimension_numbers = #tpu.dot_dimension_numbers<[1], [0], [0], [1], [0, 0, 1, 1], [], []>} : vector<2x32xf32>, vector<32x32xf32>, vector<2x32xf32> -> vector<2x32xf32>
    %414 = arith.addf %413, %78 : vector<2x32xf32>
    %c2_257 = arith.constant 2 : index
    %c0_258 = arith.constant 0 : index
    %c0_259 = arith.constant 0 : index
    %415 = vector.load %arg22[%c2_257, %c0_258, %c0_259] : memref<3x32x32xf32, #tpu.memory_space<vmem>>, vector<1x32x32xf32>
    %416 = vector.shape_cast %415 : vector<1x32x32xf32> to vector<32x32xf32>
    %cst_260 = arith.constant dense<0.000000e+00> : vector<2x32xf32>
    %417 = tpu.matmul %406, %416, %cst_260 {dimension_numbers = #tpu.dot_dimension_numbers<[1], [0], [0], [1], [0, 0, 1, 1], [], []>} : vector<2x32xf32>, vector<32x32xf32>, vector<2x32xf32> -> vector<2x32xf32>
    %418 = arith.addf %417, %82 : vector<2x32xf32>
    %cst_261 = arith.constant dense<0.000000e+00> : vector<2x32xf32>
    %419 = tpu.matmul %330, %84, %cst_261 {dimension_numbers = #tpu.dot_dimension_numbers<[1], [0], [0], [1], [0, 0, 1, 1], [], []>} : vector<2x32xf32>, vector<32x32xf32>, vector<2x32xf32> -> vector<2x32xf32>
    %420 = arith.addf %419, %92 : vector<2x32xf32>
    %cst_262 = arith.constant dense<0.000000e+00> : vector<2x32xf32>
    %421 = tpu.matmul %330, %86, %cst_262 {dimension_numbers = #tpu.dot_dimension_numbers<[1], [0], [0], [1], [0, 0, 1, 1], [], []>} : vector<2x32xf32>, vector<32x32xf32>, vector<2x32xf32> -> vector<2x32xf32>
    %422 = arith.addf %421, %96 : vector<2x32xf32>
    %cst_263 = arith.constant dense<0.000000e+00> : vector<2x32xf32>
    %423 = tpu.matmul %330, %88, %cst_263 {dimension_numbers = #tpu.dot_dimension_numbers<[1], [0], [0], [1], [0, 0, 1, 1], [], []>} : vector<2x32xf32>, vector<32x32xf32>, vector<2x32xf32> -> vector<2x32xf32>
    %424 = arith.addf %423, %100 : vector<2x32xf32>
    %425 = arith.addf %410, %420 : vector<2x32xf32>
    %426 = arith.negf %425 : vector<2x32xf32>
    %427 = math.exp %426 : vector<2x32xf32>
    %cst_264 = arith.constant 1.000000e+00 : f32
    %428 = vector.broadcast %cst_264 : f32 to vector<2x32xf32>
    %429 = arith.addf %428, %427 : vector<2x32xf32>
    %430 = arith.divf %428, %429 : vector<2x32xf32>
    %431 = arith.addf %414, %422 : vector<2x32xf32>
    %432 = arith.negf %431 : vector<2x32xf32>
    %433 = math.exp %432 : vector<2x32xf32>
    %cst_265 = arith.constant 1.000000e+00 : f32
    %434 = vector.broadcast %cst_265 : f32 to vector<2x32xf32>
    %435 = arith.addf %434, %433 : vector<2x32xf32>
    %436 = arith.divf %434, %435 : vector<2x32xf32>
    %437 = arith.mulf %430, %424 : vector<2x32xf32>
    %438 = arith.addf %418, %437 : vector<2x32xf32>
    %439 = math.tanh %438 : vector<2x32xf32>
    %cst_266 = arith.constant 1.000000e+00 : f32
    %440 = vector.broadcast %cst_266 : f32 to vector<2x32xf32>
    %441 = arith.subf %440, %436 : vector<2x32xf32>
    %442 = arith.mulf %441, %439 : vector<2x32xf32>
    %443 = arith.mulf %436, %330 : vector<2x32xf32>
    %444 = arith.addf %442, %443 : vector<2x32xf32>
    %445 = vector.extract_strided_slice %19 {offsets = [6, 0], sizes = [2, 32], strides = [1, 1]} : vector<16x32xf32> to vector<2x32xf32>
    %c6 = arith.constant 6 : index
    %c0_267 = arith.constant 0 : index
    %446 = vector.load %arg1[%c6, %c0_267] : memref<16x16xf32, #tpu.memory_space<vmem>>, vector<2x16xf32>
    %c0_268 = arith.constant 0 : index
    %c0_269 = arith.constant 0 : index
    %447 = vector.load %arg7[%c0_268, %c0_269] : memref<32x32xf32, #tpu.memory_space<vmem>>, vector<32x32xf32>
    %cst_270 = arith.constant dense<0.000000e+00> : vector<2x32xf32>
    %448 = tpu.matmul %444, %447, %cst_270 {dimension_numbers = #tpu.dot_dimension_numbers<[1], [0], [0], [1], [0, 0, 1, 1], [], []>} : vector<2x32xf32>, vector<32x32xf32>, vector<2x32xf32> -> vector<2x32xf32>
    %449 = arith.addf %445, %448 : vector<2x32xf32>
    %cst_271 = arith.constant 0.000000e+00 : f32
    %450 = vector.broadcast %cst_271 : f32 to vector<2x32xf32>
    %451 = arith.maximumf %449, %450 : vector<2x32xf32>
    %c0_272 = arith.constant 0 : index
    %c0_273 = arith.constant 0 : index
    %452 = vector.load %arg9[%c0_272, %c0_273] : memref<32x32xf32, #tpu.memory_space<vmem>>, vector<32x32xf32>
    %cst_274 = arith.constant dense<0.000000e+00> : vector<2x32xf32>
    %453 = tpu.matmul %451, %452, %cst_274 {dimension_numbers = #tpu.dot_dimension_numbers<[1], [0], [0], [1], [0, 0, 1, 1], [], []>} : vector<2x32xf32>, vector<32x32xf32>, vector<2x32xf32> -> vector<2x32xf32>
    %454 = arith.addf %453, %43 : vector<2x32xf32>
    %cst_275 = arith.constant 0.000000e+00 : f32
    %455 = vector.broadcast %cst_275 : f32 to vector<2x32xf32>
    %456 = arith.maximumf %454, %455 : vector<2x32xf32>
    %c0_276 = arith.constant 0 : index
    %c0_277 = arith.constant 0 : index
    %457 = vector.load %arg11[%c0_276, %c0_277] : memref<32x16xf32, #tpu.memory_space<vmem>>, vector<32x16xf32>
    %cst_278 = arith.constant dense<0.000000e+00> : vector<2x16xf32>
    %458 = tpu.matmul %456, %457, %cst_278 {dimension_numbers = #tpu.dot_dimension_numbers<[1], [0], [0], [1], [0, 0, 1, 1], [], []>} : vector<2x32xf32>, vector<32x16xf32>, vector<2x16xf32> -> vector<2x16xf32>
    %459 = arith.addf %458, %49 : vector<2x16xf32>
    %c0_279 = arith.constant 0 : index
    %c0_280 = arith.constant 0 : index
    %460 = vector.load %arg13[%c0_279, %c0_280] : memref<32x16xf32, #tpu.memory_space<vmem>>, vector<32x16xf32>
    %cst_281 = arith.constant dense<0.000000e+00> : vector<2x16xf32>
    %461 = tpu.matmul %456, %460, %cst_281 {dimension_numbers = #tpu.dot_dimension_numbers<[1], [0], [0], [1], [0, 0, 1, 1], [], []>} : vector<2x32xf32>, vector<32x16xf32>, vector<2x16xf32> -> vector<2x16xf32>
    %462 = arith.addf %461, %52 : vector<2x16xf32>
    %cst_282 = arith.constant 0.000000e+00 : f32
    %463 = vector.broadcast %cst_282 : f32 to vector<2x16xf32>
    %464 = arith.maximumf %462, %463 : vector<2x16xf32>
    %465 = math.absf %462 : vector<2x16xf32>
    %cst_283 = arith.constant 0.000000e+00 : f32
    %466 = vector.broadcast %cst_283 : f32 to vector<2x16xf32>
    %467 = arith.subf %466, %465 : vector<2x16xf32>
    %468 = math.exp %467 : vector<2x16xf32>
    %cst_284 = arith.constant 1.000000e+00 : f32
    %469 = vector.broadcast %cst_284 : f32 to vector<2x16xf32>
    %470 = arith.addf %469, %468 : vector<2x16xf32>
    %471 = math.log %470 : vector<2x16xf32>
    %472 = arith.addf %464, %471 : vector<2x16xf32>
    %473 = arith.mulf %446, %472 : vector<2x16xf32>
    %474 = arith.addf %473, %459 : vector<2x16xf32>
    %c0_285 = arith.constant 0 : index
    %c0_286 = arith.constant 0 : index
    %475 = vector.load %arg15[%c0_285, %c0_286] : memref<16x32xf32, #tpu.memory_space<vmem>>, vector<16x32xf32>
    %cst_287 = arith.constant dense<0.000000e+00> : vector<2x32xf32>
    %476 = tpu.matmul %474, %475, %cst_287 {dimension_numbers = #tpu.dot_dimension_numbers<[1], [0], [0], [1], [0, 0, 1, 1], [], []>} : vector<2x16xf32>, vector<16x32xf32>, vector<2x32xf32> -> vector<2x32xf32>
    %477 = arith.addf %476, %46 : vector<2x32xf32>
    %cst_288 = arith.constant 0.000000e+00 : f32
    %478 = vector.broadcast %cst_288 : f32 to vector<2x32xf32>
    %479 = arith.maximumf %477, %478 : vector<2x32xf32>
    %480 = vector.extract_strided_slice %26 {offsets = [6, 0], sizes = [2, 32], strides = [1, 1]} : vector<16x32xf32> to vector<2x32xf32>
    %c0_289 = arith.constant 0 : index
    %c0_290 = arith.constant 0 : index
    %c0_291 = arith.constant 0 : index
    %481 = vector.load %arg18[%c0_289, %c0_290, %c0_291] : memref<3x32x32xf32, #tpu.memory_space<vmem>>, vector<1x32x32xf32>
    %482 = vector.shape_cast %481 : vector<1x32x32xf32> to vector<32x32xf32>
    %cst_292 = arith.constant dense<0.000000e+00> : vector<2x32xf32>
    %483 = tpu.matmul %479, %482, %cst_292 {dimension_numbers = #tpu.dot_dimension_numbers<[1], [0], [0], [1], [0, 0, 1, 1], [], []>} : vector<2x32xf32>, vector<32x32xf32>, vector<2x32xf32> -> vector<2x32xf32>
    %484 = arith.addf %480, %483 : vector<2x32xf32>
    %485 = vector.extract_strided_slice %33 {offsets = [6, 0], sizes = [2, 32], strides = [1, 1]} : vector<16x32xf32> to vector<2x32xf32>
    %c1_293 = arith.constant 1 : index
    %c0_294 = arith.constant 0 : index
    %c0_295 = arith.constant 0 : index
    %486 = vector.load %arg18[%c1_293, %c0_294, %c0_295] : memref<3x32x32xf32, #tpu.memory_space<vmem>>, vector<1x32x32xf32>
    %487 = vector.shape_cast %486 : vector<1x32x32xf32> to vector<32x32xf32>
    %cst_296 = arith.constant dense<0.000000e+00> : vector<2x32xf32>
    %488 = tpu.matmul %479, %487, %cst_296 {dimension_numbers = #tpu.dot_dimension_numbers<[1], [0], [0], [1], [0, 0, 1, 1], [], []>} : vector<2x32xf32>, vector<32x32xf32>, vector<2x32xf32> -> vector<2x32xf32>
    %489 = arith.addf %485, %488 : vector<2x32xf32>
    %490 = vector.extract_strided_slice %40 {offsets = [6, 0], sizes = [2, 32], strides = [1, 1]} : vector<16x32xf32> to vector<2x32xf32>
    %c2_297 = arith.constant 2 : index
    %c0_298 = arith.constant 0 : index
    %c0_299 = arith.constant 0 : index
    %491 = vector.load %arg18[%c2_297, %c0_298, %c0_299] : memref<3x32x32xf32, #tpu.memory_space<vmem>>, vector<1x32x32xf32>
    %492 = vector.shape_cast %491 : vector<1x32x32xf32> to vector<32x32xf32>
    %cst_300 = arith.constant dense<0.000000e+00> : vector<2x32xf32>
    %493 = tpu.matmul %479, %492, %cst_300 {dimension_numbers = #tpu.dot_dimension_numbers<[1], [0], [0], [1], [0, 0, 1, 1], [], []>} : vector<2x32xf32>, vector<32x32xf32>, vector<2x32xf32> -> vector<2x32xf32>
    %494 = arith.addf %490, %493 : vector<2x32xf32>
    %cst_301 = arith.constant dense<0.000000e+00> : vector<2x32xf32>
    %495 = tpu.matmul %406, %54, %cst_301 {dimension_numbers = #tpu.dot_dimension_numbers<[1], [0], [0], [1], [0, 0, 1, 1], [], []>} : vector<2x32xf32>, vector<32x32xf32>, vector<2x32xf32> -> vector<2x32xf32>
    %496 = arith.addf %495, %62 : vector<2x32xf32>
    %cst_302 = arith.constant dense<0.000000e+00> : vector<2x32xf32>
    %497 = tpu.matmul %406, %56, %cst_302 {dimension_numbers = #tpu.dot_dimension_numbers<[1], [0], [0], [1], [0, 0, 1, 1], [], []>} : vector<2x32xf32>, vector<32x32xf32>, vector<2x32xf32> -> vector<2x32xf32>
    %498 = arith.addf %497, %66 : vector<2x32xf32>
    %cst_303 = arith.constant dense<0.000000e+00> : vector<2x32xf32>
    %499 = tpu.matmul %406, %58, %cst_303 {dimension_numbers = #tpu.dot_dimension_numbers<[1], [0], [0], [1], [0, 0, 1, 1], [], []>} : vector<2x32xf32>, vector<32x32xf32>, vector<2x32xf32> -> vector<2x32xf32>
    %500 = arith.addf %499, %70 : vector<2x32xf32>
    %501 = arith.addf %484, %496 : vector<2x32xf32>
    %502 = arith.negf %501 : vector<2x32xf32>
    %503 = math.exp %502 : vector<2x32xf32>
    %cst_304 = arith.constant 1.000000e+00 : f32
    %504 = vector.broadcast %cst_304 : f32 to vector<2x32xf32>
    %505 = arith.addf %504, %503 : vector<2x32xf32>
    %506 = arith.divf %504, %505 : vector<2x32xf32>
    %507 = arith.addf %489, %498 : vector<2x32xf32>
    %508 = arith.negf %507 : vector<2x32xf32>
    %509 = math.exp %508 : vector<2x32xf32>
    %cst_305 = arith.constant 1.000000e+00 : f32
    %510 = vector.broadcast %cst_305 : f32 to vector<2x32xf32>
    %511 = arith.addf %510, %509 : vector<2x32xf32>
    %512 = arith.divf %510, %511 : vector<2x32xf32>
    %513 = arith.mulf %506, %500 : vector<2x32xf32>
    %514 = arith.addf %494, %513 : vector<2x32xf32>
    %515 = math.tanh %514 : vector<2x32xf32>
    %cst_306 = arith.constant 1.000000e+00 : f32
    %516 = vector.broadcast %cst_306 : f32 to vector<2x32xf32>
    %517 = arith.subf %516, %512 : vector<2x32xf32>
    %518 = arith.mulf %517, %515 : vector<2x32xf32>
    %519 = arith.mulf %512, %406 : vector<2x32xf32>
    %520 = arith.addf %518, %519 : vector<2x32xf32>
    %c0_307 = arith.constant 0 : index
    %c0_308 = arith.constant 0 : index
    %c0_309 = arith.constant 0 : index
    %521 = vector.load %arg22[%c0_307, %c0_308, %c0_309] : memref<3x32x32xf32, #tpu.memory_space<vmem>>, vector<1x32x32xf32>
    %522 = vector.shape_cast %521 : vector<1x32x32xf32> to vector<32x32xf32>
    %cst_310 = arith.constant dense<0.000000e+00> : vector<2x32xf32>
    %523 = tpu.matmul %520, %522, %cst_310 {dimension_numbers = #tpu.dot_dimension_numbers<[1], [0], [0], [1], [0, 0, 1, 1], [], []>} : vector<2x32xf32>, vector<32x32xf32>, vector<2x32xf32> -> vector<2x32xf32>
    %524 = arith.addf %523, %74 : vector<2x32xf32>
    %c1_311 = arith.constant 1 : index
    %c0_312 = arith.constant 0 : index
    %c0_313 = arith.constant 0 : index
    %525 = vector.load %arg22[%c1_311, %c0_312, %c0_313] : memref<3x32x32xf32, #tpu.memory_space<vmem>>, vector<1x32x32xf32>
    %526 = vector.shape_cast %525 : vector<1x32x32xf32> to vector<32x32xf32>
    %cst_314 = arith.constant dense<0.000000e+00> : vector<2x32xf32>
    %527 = tpu.matmul %520, %526, %cst_314 {dimension_numbers = #tpu.dot_dimension_numbers<[1], [0], [0], [1], [0, 0, 1, 1], [], []>} : vector<2x32xf32>, vector<32x32xf32>, vector<2x32xf32> -> vector<2x32xf32>
    %528 = arith.addf %527, %78 : vector<2x32xf32>
    %c2_315 = arith.constant 2 : index
    %c0_316 = arith.constant 0 : index
    %c0_317 = arith.constant 0 : index
    %529 = vector.load %arg22[%c2_315, %c0_316, %c0_317] : memref<3x32x32xf32, #tpu.memory_space<vmem>>, vector<1x32x32xf32>
    %530 = vector.shape_cast %529 : vector<1x32x32xf32> to vector<32x32xf32>
    %cst_318 = arith.constant dense<0.000000e+00> : vector<2x32xf32>
    %531 = tpu.matmul %520, %530, %cst_318 {dimension_numbers = #tpu.dot_dimension_numbers<[1], [0], [0], [1], [0, 0, 1, 1], [], []>} : vector<2x32xf32>, vector<32x32xf32>, vector<2x32xf32> -> vector<2x32xf32>
    %532 = arith.addf %531, %82 : vector<2x32xf32>
    %cst_319 = arith.constant dense<0.000000e+00> : vector<2x32xf32>
    %533 = tpu.matmul %444, %84, %cst_319 {dimension_numbers = #tpu.dot_dimension_numbers<[1], [0], [0], [1], [0, 0, 1, 1], [], []>} : vector<2x32xf32>, vector<32x32xf32>, vector<2x32xf32> -> vector<2x32xf32>
    %534 = arith.addf %533, %92 : vector<2x32xf32>
    %cst_320 = arith.constant dense<0.000000e+00> : vector<2x32xf32>
    %535 = tpu.matmul %444, %86, %cst_320 {dimension_numbers = #tpu.dot_dimension_numbers<[1], [0], [0], [1], [0, 0, 1, 1], [], []>} : vector<2x32xf32>, vector<32x32xf32>, vector<2x32xf32> -> vector<2x32xf32>
    %536 = arith.addf %535, %96 : vector<2x32xf32>
    %cst_321 = arith.constant dense<0.000000e+00> : vector<2x32xf32>
    %537 = tpu.matmul %444, %88, %cst_321 {dimension_numbers = #tpu.dot_dimension_numbers<[1], [0], [0], [1], [0, 0, 1, 1], [], []>} : vector<2x32xf32>, vector<32x32xf32>, vector<2x32xf32> -> vector<2x32xf32>
    %538 = arith.addf %537, %100 : vector<2x32xf32>
    %539 = arith.addf %524, %534 : vector<2x32xf32>
    %540 = arith.negf %539 : vector<2x32xf32>
    %541 = math.exp %540 : vector<2x32xf32>
    %cst_322 = arith.constant 1.000000e+00 : f32
    %542 = vector.broadcast %cst_322 : f32 to vector<2x32xf32>
    %543 = arith.addf %542, %541 : vector<2x32xf32>
    %544 = arith.divf %542, %543 : vector<2x32xf32>
    %545 = arith.addf %528, %536 : vector<2x32xf32>
    %546 = arith.negf %545 : vector<2x32xf32>
    %547 = math.exp %546 : vector<2x32xf32>
    %cst_323 = arith.constant 1.000000e+00 : f32
    %548 = vector.broadcast %cst_323 : f32 to vector<2x32xf32>
    %549 = arith.addf %548, %547 : vector<2x32xf32>
    %550 = arith.divf %548, %549 : vector<2x32xf32>
    %551 = arith.mulf %544, %538 : vector<2x32xf32>
    %552 = arith.addf %532, %551 : vector<2x32xf32>
    %553 = math.tanh %552 : vector<2x32xf32>
    %cst_324 = arith.constant 1.000000e+00 : f32
    %554 = vector.broadcast %cst_324 : f32 to vector<2x32xf32>
    %555 = arith.subf %554, %550 : vector<2x32xf32>
    %556 = arith.mulf %555, %553 : vector<2x32xf32>
    %557 = arith.mulf %550, %444 : vector<2x32xf32>
    %558 = arith.addf %556, %557 : vector<2x32xf32>
    %559 = vector.extract_strided_slice %19 {offsets = [8, 0], sizes = [2, 32], strides = [1, 1]} : vector<16x32xf32> to vector<2x32xf32>
    %c8 = arith.constant 8 : index
    %c0_325 = arith.constant 0 : index
    %560 = vector.load %arg1[%c8, %c0_325] : memref<16x16xf32, #tpu.memory_space<vmem>>, vector<2x16xf32>
    %c0_326 = arith.constant 0 : index
    %c0_327 = arith.constant 0 : index
    %561 = vector.load %arg7[%c0_326, %c0_327] : memref<32x32xf32, #tpu.memory_space<vmem>>, vector<32x32xf32>
    %cst_328 = arith.constant dense<0.000000e+00> : vector<2x32xf32>
    %562 = tpu.matmul %558, %561, %cst_328 {dimension_numbers = #tpu.dot_dimension_numbers<[1], [0], [0], [1], [0, 0, 1, 1], [], []>} : vector<2x32xf32>, vector<32x32xf32>, vector<2x32xf32> -> vector<2x32xf32>
    %563 = arith.addf %559, %562 : vector<2x32xf32>
    %cst_329 = arith.constant 0.000000e+00 : f32
    %564 = vector.broadcast %cst_329 : f32 to vector<2x32xf32>
    %565 = arith.maximumf %563, %564 : vector<2x32xf32>
    %c0_330 = arith.constant 0 : index
    %c0_331 = arith.constant 0 : index
    %566 = vector.load %arg9[%c0_330, %c0_331] : memref<32x32xf32, #tpu.memory_space<vmem>>, vector<32x32xf32>
    %cst_332 = arith.constant dense<0.000000e+00> : vector<2x32xf32>
    %567 = tpu.matmul %565, %566, %cst_332 {dimension_numbers = #tpu.dot_dimension_numbers<[1], [0], [0], [1], [0, 0, 1, 1], [], []>} : vector<2x32xf32>, vector<32x32xf32>, vector<2x32xf32> -> vector<2x32xf32>
    %568 = arith.addf %567, %43 : vector<2x32xf32>
    %cst_333 = arith.constant 0.000000e+00 : f32
    %569 = vector.broadcast %cst_333 : f32 to vector<2x32xf32>
    %570 = arith.maximumf %568, %569 : vector<2x32xf32>
    %c0_334 = arith.constant 0 : index
    %c0_335 = arith.constant 0 : index
    %571 = vector.load %arg11[%c0_334, %c0_335] : memref<32x16xf32, #tpu.memory_space<vmem>>, vector<32x16xf32>
    %cst_336 = arith.constant dense<0.000000e+00> : vector<2x16xf32>
    %572 = tpu.matmul %570, %571, %cst_336 {dimension_numbers = #tpu.dot_dimension_numbers<[1], [0], [0], [1], [0, 0, 1, 1], [], []>} : vector<2x32xf32>, vector<32x16xf32>, vector<2x16xf32> -> vector<2x16xf32>
    %573 = arith.addf %572, %49 : vector<2x16xf32>
    %c0_337 = arith.constant 0 : index
    %c0_338 = arith.constant 0 : index
    %574 = vector.load %arg13[%c0_337, %c0_338] : memref<32x16xf32, #tpu.memory_space<vmem>>, vector<32x16xf32>
    %cst_339 = arith.constant dense<0.000000e+00> : vector<2x16xf32>
    %575 = tpu.matmul %570, %574, %cst_339 {dimension_numbers = #tpu.dot_dimension_numbers<[1], [0], [0], [1], [0, 0, 1, 1], [], []>} : vector<2x32xf32>, vector<32x16xf32>, vector<2x16xf32> -> vector<2x16xf32>
    %576 = arith.addf %575, %52 : vector<2x16xf32>
    %cst_340 = arith.constant 0.000000e+00 : f32
    %577 = vector.broadcast %cst_340 : f32 to vector<2x16xf32>
    %578 = arith.maximumf %576, %577 : vector<2x16xf32>
    %579 = math.absf %576 : vector<2x16xf32>
    %cst_341 = arith.constant 0.000000e+00 : f32
    %580 = vector.broadcast %cst_341 : f32 to vector<2x16xf32>
    %581 = arith.subf %580, %579 : vector<2x16xf32>
    %582 = math.exp %581 : vector<2x16xf32>
    %cst_342 = arith.constant 1.000000e+00 : f32
    %583 = vector.broadcast %cst_342 : f32 to vector<2x16xf32>
    %584 = arith.addf %583, %582 : vector<2x16xf32>
    %585 = math.log %584 : vector<2x16xf32>
    %586 = arith.addf %578, %585 : vector<2x16xf32>
    %587 = arith.mulf %560, %586 : vector<2x16xf32>
    %588 = arith.addf %587, %573 : vector<2x16xf32>
    %c0_343 = arith.constant 0 : index
    %c0_344 = arith.constant 0 : index
    %589 = vector.load %arg15[%c0_343, %c0_344] : memref<16x32xf32, #tpu.memory_space<vmem>>, vector<16x32xf32>
    %cst_345 = arith.constant dense<0.000000e+00> : vector<2x32xf32>
    %590 = tpu.matmul %588, %589, %cst_345 {dimension_numbers = #tpu.dot_dimension_numbers<[1], [0], [0], [1], [0, 0, 1, 1], [], []>} : vector<2x16xf32>, vector<16x32xf32>, vector<2x32xf32> -> vector<2x32xf32>
    %591 = arith.addf %590, %46 : vector<2x32xf32>
    %cst_346 = arith.constant 0.000000e+00 : f32
    %592 = vector.broadcast %cst_346 : f32 to vector<2x32xf32>
    %593 = arith.maximumf %591, %592 : vector<2x32xf32>
    %594 = vector.extract_strided_slice %26 {offsets = [8, 0], sizes = [2, 32], strides = [1, 1]} : vector<16x32xf32> to vector<2x32xf32>
    %c0_347 = arith.constant 0 : index
    %c0_348 = arith.constant 0 : index
    %c0_349 = arith.constant 0 : index
    %595 = vector.load %arg18[%c0_347, %c0_348, %c0_349] : memref<3x32x32xf32, #tpu.memory_space<vmem>>, vector<1x32x32xf32>
    %596 = vector.shape_cast %595 : vector<1x32x32xf32> to vector<32x32xf32>
    %cst_350 = arith.constant dense<0.000000e+00> : vector<2x32xf32>
    %597 = tpu.matmul %593, %596, %cst_350 {dimension_numbers = #tpu.dot_dimension_numbers<[1], [0], [0], [1], [0, 0, 1, 1], [], []>} : vector<2x32xf32>, vector<32x32xf32>, vector<2x32xf32> -> vector<2x32xf32>
    %598 = arith.addf %594, %597 : vector<2x32xf32>
    %599 = vector.extract_strided_slice %33 {offsets = [8, 0], sizes = [2, 32], strides = [1, 1]} : vector<16x32xf32> to vector<2x32xf32>
    %c1_351 = arith.constant 1 : index
    %c0_352 = arith.constant 0 : index
    %c0_353 = arith.constant 0 : index
    %600 = vector.load %arg18[%c1_351, %c0_352, %c0_353] : memref<3x32x32xf32, #tpu.memory_space<vmem>>, vector<1x32x32xf32>
    %601 = vector.shape_cast %600 : vector<1x32x32xf32> to vector<32x32xf32>
    %cst_354 = arith.constant dense<0.000000e+00> : vector<2x32xf32>
    %602 = tpu.matmul %593, %601, %cst_354 {dimension_numbers = #tpu.dot_dimension_numbers<[1], [0], [0], [1], [0, 0, 1, 1], [], []>} : vector<2x32xf32>, vector<32x32xf32>, vector<2x32xf32> -> vector<2x32xf32>
    %603 = arith.addf %599, %602 : vector<2x32xf32>
    %604 = vector.extract_strided_slice %40 {offsets = [8, 0], sizes = [2, 32], strides = [1, 1]} : vector<16x32xf32> to vector<2x32xf32>
    %c2_355 = arith.constant 2 : index
    %c0_356 = arith.constant 0 : index
    %c0_357 = arith.constant 0 : index
    %605 = vector.load %arg18[%c2_355, %c0_356, %c0_357] : memref<3x32x32xf32, #tpu.memory_space<vmem>>, vector<1x32x32xf32>
    %606 = vector.shape_cast %605 : vector<1x32x32xf32> to vector<32x32xf32>
    %cst_358 = arith.constant dense<0.000000e+00> : vector<2x32xf32>
    %607 = tpu.matmul %593, %606, %cst_358 {dimension_numbers = #tpu.dot_dimension_numbers<[1], [0], [0], [1], [0, 0, 1, 1], [], []>} : vector<2x32xf32>, vector<32x32xf32>, vector<2x32xf32> -> vector<2x32xf32>
    %608 = arith.addf %604, %607 : vector<2x32xf32>
    %cst_359 = arith.constant dense<0.000000e+00> : vector<2x32xf32>
    %609 = tpu.matmul %520, %54, %cst_359 {dimension_numbers = #tpu.dot_dimension_numbers<[1], [0], [0], [1], [0, 0, 1, 1], [], []>} : vector<2x32xf32>, vector<32x32xf32>, vector<2x32xf32> -> vector<2x32xf32>
    %610 = arith.addf %609, %62 : vector<2x32xf32>
    %cst_360 = arith.constant dense<0.000000e+00> : vector<2x32xf32>
    %611 = tpu.matmul %520, %56, %cst_360 {dimension_numbers = #tpu.dot_dimension_numbers<[1], [0], [0], [1], [0, 0, 1, 1], [], []>} : vector<2x32xf32>, vector<32x32xf32>, vector<2x32xf32> -> vector<2x32xf32>
    %612 = arith.addf %611, %66 : vector<2x32xf32>
    %cst_361 = arith.constant dense<0.000000e+00> : vector<2x32xf32>
    %613 = tpu.matmul %520, %58, %cst_361 {dimension_numbers = #tpu.dot_dimension_numbers<[1], [0], [0], [1], [0, 0, 1, 1], [], []>} : vector<2x32xf32>, vector<32x32xf32>, vector<2x32xf32> -> vector<2x32xf32>
    %614 = arith.addf %613, %70 : vector<2x32xf32>
    %615 = arith.addf %598, %610 : vector<2x32xf32>
    %616 = arith.negf %615 : vector<2x32xf32>
    %617 = math.exp %616 : vector<2x32xf32>
    %cst_362 = arith.constant 1.000000e+00 : f32
    %618 = vector.broadcast %cst_362 : f32 to vector<2x32xf32>
    %619 = arith.addf %618, %617 : vector<2x32xf32>
    %620 = arith.divf %618, %619 : vector<2x32xf32>
    %621 = arith.addf %603, %612 : vector<2x32xf32>
    %622 = arith.negf %621 : vector<2x32xf32>
    %623 = math.exp %622 : vector<2x32xf32>
    %cst_363 = arith.constant 1.000000e+00 : f32
    %624 = vector.broadcast %cst_363 : f32 to vector<2x32xf32>
    %625 = arith.addf %624, %623 : vector<2x32xf32>
    %626 = arith.divf %624, %625 : vector<2x32xf32>
    %627 = arith.mulf %620, %614 : vector<2x32xf32>
    %628 = arith.addf %608, %627 : vector<2x32xf32>
    %629 = math.tanh %628 : vector<2x32xf32>
    %cst_364 = arith.constant 1.000000e+00 : f32
    %630 = vector.broadcast %cst_364 : f32 to vector<2x32xf32>
    %631 = arith.subf %630, %626 : vector<2x32xf32>
    %632 = arith.mulf %631, %629 : vector<2x32xf32>
    %633 = arith.mulf %626, %520 : vector<2x32xf32>
    %634 = arith.addf %632, %633 : vector<2x32xf32>
    %c0_365 = arith.constant 0 : index
    %c0_366 = arith.constant 0 : index
    %c0_367 = arith.constant 0 : index
    %635 = vector.load %arg22[%c0_365, %c0_366, %c0_367] : memref<3x32x32xf32, #tpu.memory_space<vmem>>, vector<1x32x32xf32>
    %636 = vector.shape_cast %635 : vector<1x32x32xf32> to vector<32x32xf32>
    %cst_368 = arith.constant dense<0.000000e+00> : vector<2x32xf32>
    %637 = tpu.matmul %634, %636, %cst_368 {dimension_numbers = #tpu.dot_dimension_numbers<[1], [0], [0], [1], [0, 0, 1, 1], [], []>} : vector<2x32xf32>, vector<32x32xf32>, vector<2x32xf32> -> vector<2x32xf32>
    %638 = arith.addf %637, %74 : vector<2x32xf32>
    %c1_369 = arith.constant 1 : index
    %c0_370 = arith.constant 0 : index
    %c0_371 = arith.constant 0 : index
    %639 = vector.load %arg22[%c1_369, %c0_370, %c0_371] : memref<3x32x32xf32, #tpu.memory_space<vmem>>, vector<1x32x32xf32>
    %640 = vector.shape_cast %639 : vector<1x32x32xf32> to vector<32x32xf32>
    %cst_372 = arith.constant dense<0.000000e+00> : vector<2x32xf32>
    %641 = tpu.matmul %634, %640, %cst_372 {dimension_numbers = #tpu.dot_dimension_numbers<[1], [0], [0], [1], [0, 0, 1, 1], [], []>} : vector<2x32xf32>, vector<32x32xf32>, vector<2x32xf32> -> vector<2x32xf32>
    %642 = arith.addf %641, %78 : vector<2x32xf32>
    %c2_373 = arith.constant 2 : index
    %c0_374 = arith.constant 0 : index
    %c0_375 = arith.constant 0 : index
    %643 = vector.load %arg22[%c2_373, %c0_374, %c0_375] : memref<3x32x32xf32, #tpu.memory_space<vmem>>, vector<1x32x32xf32>
    %644 = vector.shape_cast %643 : vector<1x32x32xf32> to vector<32x32xf32>
    %cst_376 = arith.constant dense<0.000000e+00> : vector<2x32xf32>
    %645 = tpu.matmul %634, %644, %cst_376 {dimension_numbers = #tpu.dot_dimension_numbers<[1], [0], [0], [1], [0, 0, 1, 1], [], []>} : vector<2x32xf32>, vector<32x32xf32>, vector<2x32xf32> -> vector<2x32xf32>
    %646 = arith.addf %645, %82 : vector<2x32xf32>
    %cst_377 = arith.constant dense<0.000000e+00> : vector<2x32xf32>
    %647 = tpu.matmul %558, %84, %cst_377 {dimension_numbers = #tpu.dot_dimension_numbers<[1], [0], [0], [1], [0, 0, 1, 1], [], []>} : vector<2x32xf32>, vector<32x32xf32>, vector<2x32xf32> -> vector<2x32xf32>
    %648 = arith.addf %647, %92 : vector<2x32xf32>
    %cst_378 = arith.constant dense<0.000000e+00> : vector<2x32xf32>
    %649 = tpu.matmul %558, %86, %cst_378 {dimension_numbers = #tpu.dot_dimension_numbers<[1], [0], [0], [1], [0, 0, 1, 1], [], []>} : vector<2x32xf32>, vector<32x32xf32>, vector<2x32xf32> -> vector<2x32xf32>
    %650 = arith.addf %649, %96 : vector<2x32xf32>
    %cst_379 = arith.constant dense<0.000000e+00> : vector<2x32xf32>
    %651 = tpu.matmul %558, %88, %cst_379 {dimension_numbers = #tpu.dot_dimension_numbers<[1], [0], [0], [1], [0, 0, 1, 1], [], []>} : vector<2x32xf32>, vector<32x32xf32>, vector<2x32xf32> -> vector<2x32xf32>
    %652 = arith.addf %651, %100 : vector<2x32xf32>
    %653 = arith.addf %638, %648 : vector<2x32xf32>
    %654 = arith.negf %653 : vector<2x32xf32>
    %655 = math.exp %654 : vector<2x32xf32>
    %cst_380 = arith.constant 1.000000e+00 : f32
    %656 = vector.broadcast %cst_380 : f32 to vector<2x32xf32>
    %657 = arith.addf %656, %655 : vector<2x32xf32>
    %658 = arith.divf %656, %657 : vector<2x32xf32>
    %659 = arith.addf %642, %650 : vector<2x32xf32>
    %660 = arith.negf %659 : vector<2x32xf32>
    %661 = math.exp %660 : vector<2x32xf32>
    %cst_381 = arith.constant 1.000000e+00 : f32
    %662 = vector.broadcast %cst_381 : f32 to vector<2x32xf32>
    %663 = arith.addf %662, %661 : vector<2x32xf32>
    %664 = arith.divf %662, %663 : vector<2x32xf32>
    %665 = arith.mulf %658, %652 : vector<2x32xf32>
    %666 = arith.addf %646, %665 : vector<2x32xf32>
    %667 = math.tanh %666 : vector<2x32xf32>
    %cst_382 = arith.constant 1.000000e+00 : f32
    %668 = vector.broadcast %cst_382 : f32 to vector<2x32xf32>
    %669 = arith.subf %668, %664 : vector<2x32xf32>
    %670 = arith.mulf %669, %667 : vector<2x32xf32>
    %671 = arith.mulf %664, %558 : vector<2x32xf32>
    %672 = arith.addf %670, %671 : vector<2x32xf32>
    %673 = vector.extract_strided_slice %19 {offsets = [10, 0], sizes = [2, 32], strides = [1, 1]} : vector<16x32xf32> to vector<2x32xf32>
    %c10 = arith.constant 10 : index
    %c0_383 = arith.constant 0 : index
    %674 = vector.load %arg1[%c10, %c0_383] : memref<16x16xf32, #tpu.memory_space<vmem>>, vector<2x16xf32>
    %c0_384 = arith.constant 0 : index
    %c0_385 = arith.constant 0 : index
    %675 = vector.load %arg7[%c0_384, %c0_385] : memref<32x32xf32, #tpu.memory_space<vmem>>, vector<32x32xf32>
    %cst_386 = arith.constant dense<0.000000e+00> : vector<2x32xf32>
    %676 = tpu.matmul %672, %675, %cst_386 {dimension_numbers = #tpu.dot_dimension_numbers<[1], [0], [0], [1], [0, 0, 1, 1], [], []>} : vector<2x32xf32>, vector<32x32xf32>, vector<2x32xf32> -> vector<2x32xf32>
    %677 = arith.addf %673, %676 : vector<2x32xf32>
    %cst_387 = arith.constant 0.000000e+00 : f32
    %678 = vector.broadcast %cst_387 : f32 to vector<2x32xf32>
    %679 = arith.maximumf %677, %678 : vector<2x32xf32>
    %c0_388 = arith.constant 0 : index
    %c0_389 = arith.constant 0 : index
    %680 = vector.load %arg9[%c0_388, %c0_389] : memref<32x32xf32, #tpu.memory_space<vmem>>, vector<32x32xf32>
    %cst_390 = arith.constant dense<0.000000e+00> : vector<2x32xf32>
    %681 = tpu.matmul %679, %680, %cst_390 {dimension_numbers = #tpu.dot_dimension_numbers<[1], [0], [0], [1], [0, 0, 1, 1], [], []>} : vector<2x32xf32>, vector<32x32xf32>, vector<2x32xf32> -> vector<2x32xf32>
    %682 = arith.addf %681, %43 : vector<2x32xf32>
    %cst_391 = arith.constant 0.000000e+00 : f32
    %683 = vector.broadcast %cst_391 : f32 to vector<2x32xf32>
    %684 = arith.maximumf %682, %683 : vector<2x32xf32>
    %c0_392 = arith.constant 0 : index
    %c0_393 = arith.constant 0 : index
    %685 = vector.load %arg11[%c0_392, %c0_393] : memref<32x16xf32, #tpu.memory_space<vmem>>, vector<32x16xf32>
    %cst_394 = arith.constant dense<0.000000e+00> : vector<2x16xf32>
    %686 = tpu.matmul %684, %685, %cst_394 {dimension_numbers = #tpu.dot_dimension_numbers<[1], [0], [0], [1], [0, 0, 1, 1], [], []>} : vector<2x32xf32>, vector<32x16xf32>, vector<2x16xf32> -> vector<2x16xf32>
    %687 = arith.addf %686, %49 : vector<2x16xf32>
    %c0_395 = arith.constant 0 : index
    %c0_396 = arith.constant 0 : index
    %688 = vector.load %arg13[%c0_395, %c0_396] : memref<32x16xf32, #tpu.memory_space<vmem>>, vector<32x16xf32>
    %cst_397 = arith.constant dense<0.000000e+00> : vector<2x16xf32>
    %689 = tpu.matmul %684, %688, %cst_397 {dimension_numbers = #tpu.dot_dimension_numbers<[1], [0], [0], [1], [0, 0, 1, 1], [], []>} : vector<2x32xf32>, vector<32x16xf32>, vector<2x16xf32> -> vector<2x16xf32>
    %690 = arith.addf %689, %52 : vector<2x16xf32>
    %cst_398 = arith.constant 0.000000e+00 : f32
    %691 = vector.broadcast %cst_398 : f32 to vector<2x16xf32>
    %692 = arith.maximumf %690, %691 : vector<2x16xf32>
    %693 = math.absf %690 : vector<2x16xf32>
    %cst_399 = arith.constant 0.000000e+00 : f32
    %694 = vector.broadcast %cst_399 : f32 to vector<2x16xf32>
    %695 = arith.subf %694, %693 : vector<2x16xf32>
    %696 = math.exp %695 : vector<2x16xf32>
    %cst_400 = arith.constant 1.000000e+00 : f32
    %697 = vector.broadcast %cst_400 : f32 to vector<2x16xf32>
    %698 = arith.addf %697, %696 : vector<2x16xf32>
    %699 = math.log %698 : vector<2x16xf32>
    %700 = arith.addf %692, %699 : vector<2x16xf32>
    %701 = arith.mulf %674, %700 : vector<2x16xf32>
    %702 = arith.addf %701, %687 : vector<2x16xf32>
    %c0_401 = arith.constant 0 : index
    %c0_402 = arith.constant 0 : index
    %703 = vector.load %arg15[%c0_401, %c0_402] : memref<16x32xf32, #tpu.memory_space<vmem>>, vector<16x32xf32>
    %cst_403 = arith.constant dense<0.000000e+00> : vector<2x32xf32>
    %704 = tpu.matmul %702, %703, %cst_403 {dimension_numbers = #tpu.dot_dimension_numbers<[1], [0], [0], [1], [0, 0, 1, 1], [], []>} : vector<2x16xf32>, vector<16x32xf32>, vector<2x32xf32> -> vector<2x32xf32>
    %705 = arith.addf %704, %46 : vector<2x32xf32>
    %cst_404 = arith.constant 0.000000e+00 : f32
    %706 = vector.broadcast %cst_404 : f32 to vector<2x32xf32>
    %707 = arith.maximumf %705, %706 : vector<2x32xf32>
    %708 = vector.extract_strided_slice %26 {offsets = [10, 0], sizes = [2, 32], strides = [1, 1]} : vector<16x32xf32> to vector<2x32xf32>
    %c0_405 = arith.constant 0 : index
    %c0_406 = arith.constant 0 : index
    %c0_407 = arith.constant 0 : index
    %709 = vector.load %arg18[%c0_405, %c0_406, %c0_407] : memref<3x32x32xf32, #tpu.memory_space<vmem>>, vector<1x32x32xf32>
    %710 = vector.shape_cast %709 : vector<1x32x32xf32> to vector<32x32xf32>
    %cst_408 = arith.constant dense<0.000000e+00> : vector<2x32xf32>
    %711 = tpu.matmul %707, %710, %cst_408 {dimension_numbers = #tpu.dot_dimension_numbers<[1], [0], [0], [1], [0, 0, 1, 1], [], []>} : vector<2x32xf32>, vector<32x32xf32>, vector<2x32xf32> -> vector<2x32xf32>
    %712 = arith.addf %708, %711 : vector<2x32xf32>
    %713 = vector.extract_strided_slice %33 {offsets = [10, 0], sizes = [2, 32], strides = [1, 1]} : vector<16x32xf32> to vector<2x32xf32>
    %c1_409 = arith.constant 1 : index
    %c0_410 = arith.constant 0 : index
    %c0_411 = arith.constant 0 : index
    %714 = vector.load %arg18[%c1_409, %c0_410, %c0_411] : memref<3x32x32xf32, #tpu.memory_space<vmem>>, vector<1x32x32xf32>
    %715 = vector.shape_cast %714 : vector<1x32x32xf32> to vector<32x32xf32>
    %cst_412 = arith.constant dense<0.000000e+00> : vector<2x32xf32>
    %716 = tpu.matmul %707, %715, %cst_412 {dimension_numbers = #tpu.dot_dimension_numbers<[1], [0], [0], [1], [0, 0, 1, 1], [], []>} : vector<2x32xf32>, vector<32x32xf32>, vector<2x32xf32> -> vector<2x32xf32>
    %717 = arith.addf %713, %716 : vector<2x32xf32>
    %718 = vector.extract_strided_slice %40 {offsets = [10, 0], sizes = [2, 32], strides = [1, 1]} : vector<16x32xf32> to vector<2x32xf32>
    %c2_413 = arith.constant 2 : index
    %c0_414 = arith.constant 0 : index
    %c0_415 = arith.constant 0 : index
    %719 = vector.load %arg18[%c2_413, %c0_414, %c0_415] : memref<3x32x32xf32, #tpu.memory_space<vmem>>, vector<1x32x32xf32>
    %720 = vector.shape_cast %719 : vector<1x32x32xf32> to vector<32x32xf32>
    %cst_416 = arith.constant dense<0.000000e+00> : vector<2x32xf32>
    %721 = tpu.matmul %707, %720, %cst_416 {dimension_numbers = #tpu.dot_dimension_numbers<[1], [0], [0], [1], [0, 0, 1, 1], [], []>} : vector<2x32xf32>, vector<32x32xf32>, vector<2x32xf32> -> vector<2x32xf32>
    %722 = arith.addf %718, %721 : vector<2x32xf32>
    %cst_417 = arith.constant dense<0.000000e+00> : vector<2x32xf32>
    %723 = tpu.matmul %634, %54, %cst_417 {dimension_numbers = #tpu.dot_dimension_numbers<[1], [0], [0], [1], [0, 0, 1, 1], [], []>} : vector<2x32xf32>, vector<32x32xf32>, vector<2x32xf32> -> vector<2x32xf32>
    %724 = arith.addf %723, %62 : vector<2x32xf32>
    %cst_418 = arith.constant dense<0.000000e+00> : vector<2x32xf32>
    %725 = tpu.matmul %634, %56, %cst_418 {dimension_numbers = #tpu.dot_dimension_numbers<[1], [0], [0], [1], [0, 0, 1, 1], [], []>} : vector<2x32xf32>, vector<32x32xf32>, vector<2x32xf32> -> vector<2x32xf32>
    %726 = arith.addf %725, %66 : vector<2x32xf32>
    %cst_419 = arith.constant dense<0.000000e+00> : vector<2x32xf32>
    %727 = tpu.matmul %634, %58, %cst_419 {dimension_numbers = #tpu.dot_dimension_numbers<[1], [0], [0], [1], [0, 0, 1, 1], [], []>} : vector<2x32xf32>, vector<32x32xf32>, vector<2x32xf32> -> vector<2x32xf32>
    %728 = arith.addf %727, %70 : vector<2x32xf32>
    %729 = arith.addf %712, %724 : vector<2x32xf32>
    %730 = arith.negf %729 : vector<2x32xf32>
    %731 = math.exp %730 : vector<2x32xf32>
    %cst_420 = arith.constant 1.000000e+00 : f32
    %732 = vector.broadcast %cst_420 : f32 to vector<2x32xf32>
    %733 = arith.addf %732, %731 : vector<2x32xf32>
    %734 = arith.divf %732, %733 : vector<2x32xf32>
    %735 = arith.addf %717, %726 : vector<2x32xf32>
    %736 = arith.negf %735 : vector<2x32xf32>
    %737 = math.exp %736 : vector<2x32xf32>
    %cst_421 = arith.constant 1.000000e+00 : f32
    %738 = vector.broadcast %cst_421 : f32 to vector<2x32xf32>
    %739 = arith.addf %738, %737 : vector<2x32xf32>
    %740 = arith.divf %738, %739 : vector<2x32xf32>
    %741 = arith.mulf %734, %728 : vector<2x32xf32>
    %742 = arith.addf %722, %741 : vector<2x32xf32>
    %743 = math.tanh %742 : vector<2x32xf32>
    %cst_422 = arith.constant 1.000000e+00 : f32
    %744 = vector.broadcast %cst_422 : f32 to vector<2x32xf32>
    %745 = arith.subf %744, %740 : vector<2x32xf32>
    %746 = arith.mulf %745, %743 : vector<2x32xf32>
    %747 = arith.mulf %740, %634 : vector<2x32xf32>
    %748 = arith.addf %746, %747 : vector<2x32xf32>
    %c0_423 = arith.constant 0 : index
    %c0_424 = arith.constant 0 : index
    %c0_425 = arith.constant 0 : index
    %749 = vector.load %arg22[%c0_423, %c0_424, %c0_425] : memref<3x32x32xf32, #tpu.memory_space<vmem>>, vector<1x32x32xf32>
    %750 = vector.shape_cast %749 : vector<1x32x32xf32> to vector<32x32xf32>
    %cst_426 = arith.constant dense<0.000000e+00> : vector<2x32xf32>
    %751 = tpu.matmul %748, %750, %cst_426 {dimension_numbers = #tpu.dot_dimension_numbers<[1], [0], [0], [1], [0, 0, 1, 1], [], []>} : vector<2x32xf32>, vector<32x32xf32>, vector<2x32xf32> -> vector<2x32xf32>
    %752 = arith.addf %751, %74 : vector<2x32xf32>
    %c1_427 = arith.constant 1 : index
    %c0_428 = arith.constant 0 : index
    %c0_429 = arith.constant 0 : index
    %753 = vector.load %arg22[%c1_427, %c0_428, %c0_429] : memref<3x32x32xf32, #tpu.memory_space<vmem>>, vector<1x32x32xf32>
    %754 = vector.shape_cast %753 : vector<1x32x32xf32> to vector<32x32xf32>
    %cst_430 = arith.constant dense<0.000000e+00> : vector<2x32xf32>
    %755 = tpu.matmul %748, %754, %cst_430 {dimension_numbers = #tpu.dot_dimension_numbers<[1], [0], [0], [1], [0, 0, 1, 1], [], []>} : vector<2x32xf32>, vector<32x32xf32>, vector<2x32xf32> -> vector<2x32xf32>
    %756 = arith.addf %755, %78 : vector<2x32xf32>
    %c2_431 = arith.constant 2 : index
    %c0_432 = arith.constant 0 : index
    %c0_433 = arith.constant 0 : index
    %757 = vector.load %arg22[%c2_431, %c0_432, %c0_433] : memref<3x32x32xf32, #tpu.memory_space<vmem>>, vector<1x32x32xf32>
    %758 = vector.shape_cast %757 : vector<1x32x32xf32> to vector<32x32xf32>
    %cst_434 = arith.constant dense<0.000000e+00> : vector<2x32xf32>
    %759 = tpu.matmul %748, %758, %cst_434 {dimension_numbers = #tpu.dot_dimension_numbers<[1], [0], [0], [1], [0, 0, 1, 1], [], []>} : vector<2x32xf32>, vector<32x32xf32>, vector<2x32xf32> -> vector<2x32xf32>
    %760 = arith.addf %759, %82 : vector<2x32xf32>
    %cst_435 = arith.constant dense<0.000000e+00> : vector<2x32xf32>
    %761 = tpu.matmul %672, %84, %cst_435 {dimension_numbers = #tpu.dot_dimension_numbers<[1], [0], [0], [1], [0, 0, 1, 1], [], []>} : vector<2x32xf32>, vector<32x32xf32>, vector<2x32xf32> -> vector<2x32xf32>
    %762 = arith.addf %761, %92 : vector<2x32xf32>
    %cst_436 = arith.constant dense<0.000000e+00> : vector<2x32xf32>
    %763 = tpu.matmul %672, %86, %cst_436 {dimension_numbers = #tpu.dot_dimension_numbers<[1], [0], [0], [1], [0, 0, 1, 1], [], []>} : vector<2x32xf32>, vector<32x32xf32>, vector<2x32xf32> -> vector<2x32xf32>
    %764 = arith.addf %763, %96 : vector<2x32xf32>
    %cst_437 = arith.constant dense<0.000000e+00> : vector<2x32xf32>
    %765 = tpu.matmul %672, %88, %cst_437 {dimension_numbers = #tpu.dot_dimension_numbers<[1], [0], [0], [1], [0, 0, 1, 1], [], []>} : vector<2x32xf32>, vector<32x32xf32>, vector<2x32xf32> -> vector<2x32xf32>
    %766 = arith.addf %765, %100 : vector<2x32xf32>
    %767 = arith.addf %752, %762 : vector<2x32xf32>
    %768 = arith.negf %767 : vector<2x32xf32>
    %769 = math.exp %768 : vector<2x32xf32>
    %cst_438 = arith.constant 1.000000e+00 : f32
    %770 = vector.broadcast %cst_438 : f32 to vector<2x32xf32>
    %771 = arith.addf %770, %769 : vector<2x32xf32>
    %772 = arith.divf %770, %771 : vector<2x32xf32>
    %773 = arith.addf %756, %764 : vector<2x32xf32>
    %774 = arith.negf %773 : vector<2x32xf32>
    %775 = math.exp %774 : vector<2x32xf32>
    %cst_439 = arith.constant 1.000000e+00 : f32
    %776 = vector.broadcast %cst_439 : f32 to vector<2x32xf32>
    %777 = arith.addf %776, %775 : vector<2x32xf32>
    %778 = arith.divf %776, %777 : vector<2x32xf32>
    %779 = arith.mulf %772, %766 : vector<2x32xf32>
    %780 = arith.addf %760, %779 : vector<2x32xf32>
    %781 = math.tanh %780 : vector<2x32xf32>
    %cst_440 = arith.constant 1.000000e+00 : f32
    %782 = vector.broadcast %cst_440 : f32 to vector<2x32xf32>
    %783 = arith.subf %782, %778 : vector<2x32xf32>
    %784 = arith.mulf %783, %781 : vector<2x32xf32>
    %785 = arith.mulf %778, %672 : vector<2x32xf32>
    %786 = arith.addf %784, %785 : vector<2x32xf32>
    %787 = vector.extract_strided_slice %19 {offsets = [12, 0], sizes = [2, 32], strides = [1, 1]} : vector<16x32xf32> to vector<2x32xf32>
    %c12 = arith.constant 12 : index
    %c0_441 = arith.constant 0 : index
    %788 = vector.load %arg1[%c12, %c0_441] : memref<16x16xf32, #tpu.memory_space<vmem>>, vector<2x16xf32>
    %c0_442 = arith.constant 0 : index
    %c0_443 = arith.constant 0 : index
    %789 = vector.load %arg7[%c0_442, %c0_443] : memref<32x32xf32, #tpu.memory_space<vmem>>, vector<32x32xf32>
    %cst_444 = arith.constant dense<0.000000e+00> : vector<2x32xf32>
    %790 = tpu.matmul %786, %789, %cst_444 {dimension_numbers = #tpu.dot_dimension_numbers<[1], [0], [0], [1], [0, 0, 1, 1], [], []>} : vector<2x32xf32>, vector<32x32xf32>, vector<2x32xf32> -> vector<2x32xf32>
    %791 = arith.addf %787, %790 : vector<2x32xf32>
    %cst_445 = arith.constant 0.000000e+00 : f32
    %792 = vector.broadcast %cst_445 : f32 to vector<2x32xf32>
    %793 = arith.maximumf %791, %792 : vector<2x32xf32>
    %c0_446 = arith.constant 0 : index
    %c0_447 = arith.constant 0 : index
    %794 = vector.load %arg9[%c0_446, %c0_447] : memref<32x32xf32, #tpu.memory_space<vmem>>, vector<32x32xf32>
    %cst_448 = arith.constant dense<0.000000e+00> : vector<2x32xf32>
    %795 = tpu.matmul %793, %794, %cst_448 {dimension_numbers = #tpu.dot_dimension_numbers<[1], [0], [0], [1], [0, 0, 1, 1], [], []>} : vector<2x32xf32>, vector<32x32xf32>, vector<2x32xf32> -> vector<2x32xf32>
    %796 = arith.addf %795, %43 : vector<2x32xf32>
    %cst_449 = arith.constant 0.000000e+00 : f32
    %797 = vector.broadcast %cst_449 : f32 to vector<2x32xf32>
    %798 = arith.maximumf %796, %797 : vector<2x32xf32>
    %c0_450 = arith.constant 0 : index
    %c0_451 = arith.constant 0 : index
    %799 = vector.load %arg11[%c0_450, %c0_451] : memref<32x16xf32, #tpu.memory_space<vmem>>, vector<32x16xf32>
    %cst_452 = arith.constant dense<0.000000e+00> : vector<2x16xf32>
    %800 = tpu.matmul %798, %799, %cst_452 {dimension_numbers = #tpu.dot_dimension_numbers<[1], [0], [0], [1], [0, 0, 1, 1], [], []>} : vector<2x32xf32>, vector<32x16xf32>, vector<2x16xf32> -> vector<2x16xf32>
    %801 = arith.addf %800, %49 : vector<2x16xf32>
    %c0_453 = arith.constant 0 : index
    %c0_454 = arith.constant 0 : index
    %802 = vector.load %arg13[%c0_453, %c0_454] : memref<32x16xf32, #tpu.memory_space<vmem>>, vector<32x16xf32>
    %cst_455 = arith.constant dense<0.000000e+00> : vector<2x16xf32>
    %803 = tpu.matmul %798, %802, %cst_455 {dimension_numbers = #tpu.dot_dimension_numbers<[1], [0], [0], [1], [0, 0, 1, 1], [], []>} : vector<2x32xf32>, vector<32x16xf32>, vector<2x16xf32> -> vector<2x16xf32>
    %804 = arith.addf %803, %52 : vector<2x16xf32>
    %cst_456 = arith.constant 0.000000e+00 : f32
    %805 = vector.broadcast %cst_456 : f32 to vector<2x16xf32>
    %806 = arith.maximumf %804, %805 : vector<2x16xf32>
    %807 = math.absf %804 : vector<2x16xf32>
    %cst_457 = arith.constant 0.000000e+00 : f32
    %808 = vector.broadcast %cst_457 : f32 to vector<2x16xf32>
    %809 = arith.subf %808, %807 : vector<2x16xf32>
    %810 = math.exp %809 : vector<2x16xf32>
    %cst_458 = arith.constant 1.000000e+00 : f32
    %811 = vector.broadcast %cst_458 : f32 to vector<2x16xf32>
    %812 = arith.addf %811, %810 : vector<2x16xf32>
    %813 = math.log %812 : vector<2x16xf32>
    %814 = arith.addf %806, %813 : vector<2x16xf32>
    %815 = arith.mulf %788, %814 : vector<2x16xf32>
    %816 = arith.addf %815, %801 : vector<2x16xf32>
    %c0_459 = arith.constant 0 : index
    %c0_460 = arith.constant 0 : index
    %817 = vector.load %arg15[%c0_459, %c0_460] : memref<16x32xf32, #tpu.memory_space<vmem>>, vector<16x32xf32>
    %cst_461 = arith.constant dense<0.000000e+00> : vector<2x32xf32>
    %818 = tpu.matmul %816, %817, %cst_461 {dimension_numbers = #tpu.dot_dimension_numbers<[1], [0], [0], [1], [0, 0, 1, 1], [], []>} : vector<2x16xf32>, vector<16x32xf32>, vector<2x32xf32> -> vector<2x32xf32>
    %819 = arith.addf %818, %46 : vector<2x32xf32>
    %cst_462 = arith.constant 0.000000e+00 : f32
    %820 = vector.broadcast %cst_462 : f32 to vector<2x32xf32>
    %821 = arith.maximumf %819, %820 : vector<2x32xf32>
    %822 = vector.extract_strided_slice %26 {offsets = [12, 0], sizes = [2, 32], strides = [1, 1]} : vector<16x32xf32> to vector<2x32xf32>
    %c0_463 = arith.constant 0 : index
    %c0_464 = arith.constant 0 : index
    %c0_465 = arith.constant 0 : index
    %823 = vector.load %arg18[%c0_463, %c0_464, %c0_465] : memref<3x32x32xf32, #tpu.memory_space<vmem>>, vector<1x32x32xf32>
    %824 = vector.shape_cast %823 : vector<1x32x32xf32> to vector<32x32xf32>
    %cst_466 = arith.constant dense<0.000000e+00> : vector<2x32xf32>
    %825 = tpu.matmul %821, %824, %cst_466 {dimension_numbers = #tpu.dot_dimension_numbers<[1], [0], [0], [1], [0, 0, 1, 1], [], []>} : vector<2x32xf32>, vector<32x32xf32>, vector<2x32xf32> -> vector<2x32xf32>
    %826 = arith.addf %822, %825 : vector<2x32xf32>
    %827 = vector.extract_strided_slice %33 {offsets = [12, 0], sizes = [2, 32], strides = [1, 1]} : vector<16x32xf32> to vector<2x32xf32>
    %c1_467 = arith.constant 1 : index
    %c0_468 = arith.constant 0 : index
    %c0_469 = arith.constant 0 : index
    %828 = vector.load %arg18[%c1_467, %c0_468, %c0_469] : memref<3x32x32xf32, #tpu.memory_space<vmem>>, vector<1x32x32xf32>
    %829 = vector.shape_cast %828 : vector<1x32x32xf32> to vector<32x32xf32>
    %cst_470 = arith.constant dense<0.000000e+00> : vector<2x32xf32>
    %830 = tpu.matmul %821, %829, %cst_470 {dimension_numbers = #tpu.dot_dimension_numbers<[1], [0], [0], [1], [0, 0, 1, 1], [], []>} : vector<2x32xf32>, vector<32x32xf32>, vector<2x32xf32> -> vector<2x32xf32>
    %831 = arith.addf %827, %830 : vector<2x32xf32>
    %832 = vector.extract_strided_slice %40 {offsets = [12, 0], sizes = [2, 32], strides = [1, 1]} : vector<16x32xf32> to vector<2x32xf32>
    %c2_471 = arith.constant 2 : index
    %c0_472 = arith.constant 0 : index
    %c0_473 = arith.constant 0 : index
    %833 = vector.load %arg18[%c2_471, %c0_472, %c0_473] : memref<3x32x32xf32, #tpu.memory_space<vmem>>, vector<1x32x32xf32>
    %834 = vector.shape_cast %833 : vector<1x32x32xf32> to vector<32x32xf32>
    %cst_474 = arith.constant dense<0.000000e+00> : vector<2x32xf32>
    %835 = tpu.matmul %821, %834, %cst_474 {dimension_numbers = #tpu.dot_dimension_numbers<[1], [0], [0], [1], [0, 0, 1, 1], [], []>} : vector<2x32xf32>, vector<32x32xf32>, vector<2x32xf32> -> vector<2x32xf32>
    %836 = arith.addf %832, %835 : vector<2x32xf32>
    %cst_475 = arith.constant dense<0.000000e+00> : vector<2x32xf32>
    %837 = tpu.matmul %748, %54, %cst_475 {dimension_numbers = #tpu.dot_dimension_numbers<[1], [0], [0], [1], [0, 0, 1, 1], [], []>} : vector<2x32xf32>, vector<32x32xf32>, vector<2x32xf32> -> vector<2x32xf32>
    %838 = arith.addf %837, %62 : vector<2x32xf32>
    %cst_476 = arith.constant dense<0.000000e+00> : vector<2x32xf32>
    %839 = tpu.matmul %748, %56, %cst_476 {dimension_numbers = #tpu.dot_dimension_numbers<[1], [0], [0], [1], [0, 0, 1, 1], [], []>} : vector<2x32xf32>, vector<32x32xf32>, vector<2x32xf32> -> vector<2x32xf32>
    %840 = arith.addf %839, %66 : vector<2x32xf32>
    %cst_477 = arith.constant dense<0.000000e+00> : vector<2x32xf32>
    %841 = tpu.matmul %748, %58, %cst_477 {dimension_numbers = #tpu.dot_dimension_numbers<[1], [0], [0], [1], [0, 0, 1, 1], [], []>} : vector<2x32xf32>, vector<32x32xf32>, vector<2x32xf32> -> vector<2x32xf32>
    %842 = arith.addf %841, %70 : vector<2x32xf32>
    %843 = arith.addf %826, %838 : vector<2x32xf32>
    %844 = arith.negf %843 : vector<2x32xf32>
    %845 = math.exp %844 : vector<2x32xf32>
    %cst_478 = arith.constant 1.000000e+00 : f32
    %846 = vector.broadcast %cst_478 : f32 to vector<2x32xf32>
    %847 = arith.addf %846, %845 : vector<2x32xf32>
    %848 = arith.divf %846, %847 : vector<2x32xf32>
    %849 = arith.addf %831, %840 : vector<2x32xf32>
    %850 = arith.negf %849 : vector<2x32xf32>
    %851 = math.exp %850 : vector<2x32xf32>
    %cst_479 = arith.constant 1.000000e+00 : f32
    %852 = vector.broadcast %cst_479 : f32 to vector<2x32xf32>
    %853 = arith.addf %852, %851 : vector<2x32xf32>
    %854 = arith.divf %852, %853 : vector<2x32xf32>
    %855 = arith.mulf %848, %842 : vector<2x32xf32>
    %856 = arith.addf %836, %855 : vector<2x32xf32>
    %857 = math.tanh %856 : vector<2x32xf32>
    %cst_480 = arith.constant 1.000000e+00 : f32
    %858 = vector.broadcast %cst_480 : f32 to vector<2x32xf32>
    %859 = arith.subf %858, %854 : vector<2x32xf32>
    %860 = arith.mulf %859, %857 : vector<2x32xf32>
    %861 = arith.mulf %854, %748 : vector<2x32xf32>
    %862 = arith.addf %860, %861 : vector<2x32xf32>
    %c0_481 = arith.constant 0 : index
    %c0_482 = arith.constant 0 : index
    %c0_483 = arith.constant 0 : index
    %863 = vector.load %arg22[%c0_481, %c0_482, %c0_483] : memref<3x32x32xf32, #tpu.memory_space<vmem>>, vector<1x32x32xf32>
    %864 = vector.shape_cast %863 : vector<1x32x32xf32> to vector<32x32xf32>
    %cst_484 = arith.constant dense<0.000000e+00> : vector<2x32xf32>
    %865 = tpu.matmul %862, %864, %cst_484 {dimension_numbers = #tpu.dot_dimension_numbers<[1], [0], [0], [1], [0, 0, 1, 1], [], []>} : vector<2x32xf32>, vector<32x32xf32>, vector<2x32xf32> -> vector<2x32xf32>
    %866 = arith.addf %865, %74 : vector<2x32xf32>
    %c1_485 = arith.constant 1 : index
    %c0_486 = arith.constant 0 : index
    %c0_487 = arith.constant 0 : index
    %867 = vector.load %arg22[%c1_485, %c0_486, %c0_487] : memref<3x32x32xf32, #tpu.memory_space<vmem>>, vector<1x32x32xf32>
    %868 = vector.shape_cast %867 : vector<1x32x32xf32> to vector<32x32xf32>
    %cst_488 = arith.constant dense<0.000000e+00> : vector<2x32xf32>
    %869 = tpu.matmul %862, %868, %cst_488 {dimension_numbers = #tpu.dot_dimension_numbers<[1], [0], [0], [1], [0, 0, 1, 1], [], []>} : vector<2x32xf32>, vector<32x32xf32>, vector<2x32xf32> -> vector<2x32xf32>
    %870 = arith.addf %869, %78 : vector<2x32xf32>
    %c2_489 = arith.constant 2 : index
    %c0_490 = arith.constant 0 : index
    %c0_491 = arith.constant 0 : index
    %871 = vector.load %arg22[%c2_489, %c0_490, %c0_491] : memref<3x32x32xf32, #tpu.memory_space<vmem>>, vector<1x32x32xf32>
    %872 = vector.shape_cast %871 : vector<1x32x32xf32> to vector<32x32xf32>
    %cst_492 = arith.constant dense<0.000000e+00> : vector<2x32xf32>
    %873 = tpu.matmul %862, %872, %cst_492 {dimension_numbers = #tpu.dot_dimension_numbers<[1], [0], [0], [1], [0, 0, 1, 1], [], []>} : vector<2x32xf32>, vector<32x32xf32>, vector<2x32xf32> -> vector<2x32xf32>
    %874 = arith.addf %873, %82 : vector<2x32xf32>
    %cst_493 = arith.constant dense<0.000000e+00> : vector<2x32xf32>
    %875 = tpu.matmul %786, %84, %cst_493 {dimension_numbers = #tpu.dot_dimension_numbers<[1], [0], [0], [1], [0, 0, 1, 1], [], []>} : vector<2x32xf32>, vector<32x32xf32>, vector<2x32xf32> -> vector<2x32xf32>
    %876 = arith.addf %875, %92 : vector<2x32xf32>
    %cst_494 = arith.constant dense<0.000000e+00> : vector<2x32xf32>
    %877 = tpu.matmul %786, %86, %cst_494 {dimension_numbers = #tpu.dot_dimension_numbers<[1], [0], [0], [1], [0, 0, 1, 1], [], []>} : vector<2x32xf32>, vector<32x32xf32>, vector<2x32xf32> -> vector<2x32xf32>
    %878 = arith.addf %877, %96 : vector<2x32xf32>
    %cst_495 = arith.constant dense<0.000000e+00> : vector<2x32xf32>
    %879 = tpu.matmul %786, %88, %cst_495 {dimension_numbers = #tpu.dot_dimension_numbers<[1], [0], [0], [1], [0, 0, 1, 1], [], []>} : vector<2x32xf32>, vector<32x32xf32>, vector<2x32xf32> -> vector<2x32xf32>
    %880 = arith.addf %879, %100 : vector<2x32xf32>
    %881 = arith.addf %866, %876 : vector<2x32xf32>
    %882 = arith.negf %881 : vector<2x32xf32>
    %883 = math.exp %882 : vector<2x32xf32>
    %cst_496 = arith.constant 1.000000e+00 : f32
    %884 = vector.broadcast %cst_496 : f32 to vector<2x32xf32>
    %885 = arith.addf %884, %883 : vector<2x32xf32>
    %886 = arith.divf %884, %885 : vector<2x32xf32>
    %887 = arith.addf %870, %878 : vector<2x32xf32>
    %888 = arith.negf %887 : vector<2x32xf32>
    %889 = math.exp %888 : vector<2x32xf32>
    %cst_497 = arith.constant 1.000000e+00 : f32
    %890 = vector.broadcast %cst_497 : f32 to vector<2x32xf32>
    %891 = arith.addf %890, %889 : vector<2x32xf32>
    %892 = arith.divf %890, %891 : vector<2x32xf32>
    %893 = arith.mulf %886, %880 : vector<2x32xf32>
    %894 = arith.addf %874, %893 : vector<2x32xf32>
    %895 = math.tanh %894 : vector<2x32xf32>
    %cst_498 = arith.constant 1.000000e+00 : f32
    %896 = vector.broadcast %cst_498 : f32 to vector<2x32xf32>
    %897 = arith.subf %896, %892 : vector<2x32xf32>
    %898 = arith.mulf %897, %895 : vector<2x32xf32>
    %899 = arith.mulf %892, %786 : vector<2x32xf32>
    %900 = arith.addf %898, %899 : vector<2x32xf32>
    %901 = vector.extract_strided_slice %19 {offsets = [14, 0], sizes = [2, 32], strides = [1, 1]} : vector<16x32xf32> to vector<2x32xf32>
    %c14 = arith.constant 14 : index
    %c0_499 = arith.constant 0 : index
    %902 = vector.load %arg1[%c14, %c0_499] : memref<16x16xf32, #tpu.memory_space<vmem>>, vector<2x16xf32>
    %c0_500 = arith.constant 0 : index
    %c0_501 = arith.constant 0 : index
    %903 = vector.load %arg7[%c0_500, %c0_501] : memref<32x32xf32, #tpu.memory_space<vmem>>, vector<32x32xf32>
    %cst_502 = arith.constant dense<0.000000e+00> : vector<2x32xf32>
    %904 = tpu.matmul %900, %903, %cst_502 {dimension_numbers = #tpu.dot_dimension_numbers<[1], [0], [0], [1], [0, 0, 1, 1], [], []>} : vector<2x32xf32>, vector<32x32xf32>, vector<2x32xf32> -> vector<2x32xf32>
    %905 = arith.addf %901, %904 : vector<2x32xf32>
    %cst_503 = arith.constant 0.000000e+00 : f32
    %906 = vector.broadcast %cst_503 : f32 to vector<2x32xf32>
    %907 = arith.maximumf %905, %906 : vector<2x32xf32>
    %c0_504 = arith.constant 0 : index
    %c0_505 = arith.constant 0 : index
    %908 = vector.load %arg9[%c0_504, %c0_505] : memref<32x32xf32, #tpu.memory_space<vmem>>, vector<32x32xf32>
    %cst_506 = arith.constant dense<0.000000e+00> : vector<2x32xf32>
    %909 = tpu.matmul %907, %908, %cst_506 {dimension_numbers = #tpu.dot_dimension_numbers<[1], [0], [0], [1], [0, 0, 1, 1], [], []>} : vector<2x32xf32>, vector<32x32xf32>, vector<2x32xf32> -> vector<2x32xf32>
    %910 = arith.addf %909, %43 : vector<2x32xf32>
    %cst_507 = arith.constant 0.000000e+00 : f32
    %911 = vector.broadcast %cst_507 : f32 to vector<2x32xf32>
    %912 = arith.maximumf %910, %911 : vector<2x32xf32>
    %c0_508 = arith.constant 0 : index
    %c0_509 = arith.constant 0 : index
    %913 = vector.load %arg11[%c0_508, %c0_509] : memref<32x16xf32, #tpu.memory_space<vmem>>, vector<32x16xf32>
    %cst_510 = arith.constant dense<0.000000e+00> : vector<2x16xf32>
    %914 = tpu.matmul %912, %913, %cst_510 {dimension_numbers = #tpu.dot_dimension_numbers<[1], [0], [0], [1], [0, 0, 1, 1], [], []>} : vector<2x32xf32>, vector<32x16xf32>, vector<2x16xf32> -> vector<2x16xf32>
    %915 = arith.addf %914, %49 : vector<2x16xf32>
    %c0_511 = arith.constant 0 : index
    %c0_512 = arith.constant 0 : index
    %916 = vector.load %arg13[%c0_511, %c0_512] : memref<32x16xf32, #tpu.memory_space<vmem>>, vector<32x16xf32>
    %cst_513 = arith.constant dense<0.000000e+00> : vector<2x16xf32>
    %917 = tpu.matmul %912, %916, %cst_513 {dimension_numbers = #tpu.dot_dimension_numbers<[1], [0], [0], [1], [0, 0, 1, 1], [], []>} : vector<2x32xf32>, vector<32x16xf32>, vector<2x16xf32> -> vector<2x16xf32>
    %918 = arith.addf %917, %52 : vector<2x16xf32>
    %cst_514 = arith.constant 0.000000e+00 : f32
    %919 = vector.broadcast %cst_514 : f32 to vector<2x16xf32>
    %920 = arith.maximumf %918, %919 : vector<2x16xf32>
    %921 = math.absf %918 : vector<2x16xf32>
    %cst_515 = arith.constant 0.000000e+00 : f32
    %922 = vector.broadcast %cst_515 : f32 to vector<2x16xf32>
    %923 = arith.subf %922, %921 : vector<2x16xf32>
    %924 = math.exp %923 : vector<2x16xf32>
    %cst_516 = arith.constant 1.000000e+00 : f32
    %925 = vector.broadcast %cst_516 : f32 to vector<2x16xf32>
    %926 = arith.addf %925, %924 : vector<2x16xf32>
    %927 = math.log %926 : vector<2x16xf32>
    %928 = arith.addf %920, %927 : vector<2x16xf32>
    %929 = arith.mulf %902, %928 : vector<2x16xf32>
    %930 = arith.addf %929, %915 : vector<2x16xf32>
    %c0_517 = arith.constant 0 : index
    %c0_518 = arith.constant 0 : index
    %931 = vector.load %arg15[%c0_517, %c0_518] : memref<16x32xf32, #tpu.memory_space<vmem>>, vector<16x32xf32>
    %cst_519 = arith.constant dense<0.000000e+00> : vector<2x32xf32>
    %932 = tpu.matmul %930, %931, %cst_519 {dimension_numbers = #tpu.dot_dimension_numbers<[1], [0], [0], [1], [0, 0, 1, 1], [], []>} : vector<2x16xf32>, vector<16x32xf32>, vector<2x32xf32> -> vector<2x32xf32>
    %933 = arith.addf %932, %46 : vector<2x32xf32>
    %cst_520 = arith.constant 0.000000e+00 : f32
    %934 = vector.broadcast %cst_520 : f32 to vector<2x32xf32>
    %935 = arith.maximumf %933, %934 : vector<2x32xf32>
    %c0_521 = arith.constant 0 : index
    %c0_522 = arith.constant 0 : index
    %936 = vector.load %arg26[%c0_521, %c0_522] : memref<32x32xf32, #tpu.memory_space<vmem>>, vector<32x32xf32>
    %cst_523 = arith.constant dense<0.000000e+00> : vector<2x32xf32>
    %937 = tpu.matmul %935, %936, %cst_523 {dimension_numbers = #tpu.dot_dimension_numbers<[1], [0], [0], [1], [0, 0, 1, 1], [], []>} : vector<2x32xf32>, vector<32x32xf32>, vector<2x32xf32> -> vector<2x32xf32>
    %c0_524 = arith.constant 0 : index
    %c0_525 = arith.constant 0 : index
    %938 = vector.load %arg27[%c0_524, %c0_525] : memref<1x32xf32, #tpu.memory_space<vmem>>, vector<1x32xf32>
    %939 = vector.broadcast %938 : vector<1x32xf32> to vector<2x32xf32>
    %940 = arith.addf %937, %939 : vector<2x32xf32>
    %cst_526 = arith.constant 0.000000e+00 : f32
    %941 = vector.broadcast %cst_526 : f32 to vector<2x32xf32>
    %942 = arith.maximumf %940, %941 : vector<2x32xf32>
    %c0_527 = arith.constant 0 : index
    %c0_528 = arith.constant 0 : index
    %943 = vector.load %arg28[%c0_527, %c0_528] : memref<32x16xf32, #tpu.memory_space<vmem>>, vector<32x16xf32>
    %cst_529 = arith.constant dense<0.000000e+00> : vector<2x16xf32>
    %944 = tpu.matmul %942, %943, %cst_529 {dimension_numbers = #tpu.dot_dimension_numbers<[1], [0], [0], [1], [0, 0, 1, 1], [], []>} : vector<2x32xf32>, vector<32x16xf32>, vector<2x16xf32> -> vector<2x16xf32>
    %c0_530 = arith.constant 0 : index
    %c0_531 = arith.constant 0 : index
    %945 = vector.load %arg29[%c0_530, %c0_531] : memref<1x16xf32, #tpu.memory_space<vmem>>, vector<1x16xf32>
    %946 = vector.broadcast %945 : vector<1x16xf32> to vector<2x16xf32>
    %947 = arith.addf %944, %946 : vector<2x16xf32>
    %cst_532 = arith.constant 0.000000e+00 : f32
    %948 = vector.broadcast %cst_532 : f32 to vector<2x16xf32>
    %949 = arith.maximumf %947, %948 : vector<2x16xf32>
    %c0_533 = arith.constant 0 : index
    %c0_534 = arith.constant 0 : index
    %950 = vector.load %arg30[%c0_533, %c0_534] : memref<16x1xf32, #tpu.memory_space<vmem>>, vector<16x1xf32>
    %cst_535 = arith.constant dense<0.000000e+00> : vector<2x1xf32>
    %951 = tpu.matmul %949, %950, %cst_535 {dimension_numbers = #tpu.dot_dimension_numbers<[1], [0], [0], [1], [0, 0, 1, 1], [], []>} : vector<2x16xf32>, vector<16x1xf32>, vector<2x1xf32> -> vector<2x1xf32>
    %c0_536 = arith.constant 0 : index
    %c0_537 = arith.constant 0 : index
    %952 = vector.load %arg31[%c0_536, %c0_537] : memref<1x1xf32, #tpu.memory_space<vmem>>, vector<1x1xf32>
    %953 = vector.broadcast %952 : vector<1x1xf32> to vector<2x1xf32>
    %954 = arith.addf %951, %953 : vector<2x1xf32>
    %c0_538 = arith.constant 0 : index
    %c0_539 = arith.constant 0 : index
    %955 = vector.load %arg32[%c0_538, %c0_539] : memref<2x1xf32, #tpu.memory_space<vmem>>, vector<2x1xf32>
    tpu.vector_store %arg32[%c0_538, %c0_539], %954 {strides = array<i32>} : memref<2x1xf32, #tpu.memory_space<vmem>>, vector<2x1xf32>,
    %c0_540 = arith.constant 0 : index
    %c0_541 = arith.constant 0 : index
    %956 = vector.load %arg33[%c0_540, %c0_541] : memref<2x32xf32, #tpu.memory_space<vmem>>, vector<2x32xf32>
    tpu.vector_store %arg33[%c0_540, %c0_541], %935 {strides = array<i32>} : memref<2x32xf32, #tpu.memory_space<vmem>>, vector<2x32xf32>,
    return
  }
}

</mosaic_0001>

<bundles_post_ra>
// kernel: tpu_custom_call.1
= control target key start
LH: loop header
LB: loop body
LE: loop exit
PB: predicated region body
PF: predicated region fallthrough
CT: control target
= control target key end

     0   :  { %s5362_s6 = smov 1   ;;  %s5363_s10 = smov 2   ;;  %s6996_s0 = inlined_call_operand.smem [shape: u32[34], index: -1, kind: input, shape index: {}] }
   0x1   :  { %s5421_s5 = sld [smem:[%s6996_s0]]   ;;  %s5364_s14 = smov 3  }
   0x2   :  { %s5426_s9 = sld [smem:[%s6996_s0 + %s5362_s6]]   ;;  %s5365_s18 = smov 4  }
   0x3   :  { %s5431_s13 = sld [smem:[%s6996_s0 + %s5363_s10]]   ;;  %s5366_s22 = smov 5  }
   0x4   :  { %s5436_s17 = sld [smem:[%s6996_s0 + %s5364_s14]]   ;;  %s5367_s26 = smov 6  }
   0x5   :  { %s5441_s21 = sld [smem:[%s6996_s0 + %s5365_s18]]   ;;  %s5368_s30 = smov 7  }
   0x6   :  { %s5446_s25 = sld [smem:[%s6996_s0 + %s5366_s22]]   ;;  %s5369_s4 = smov 8  }
   0x7   :  { %7149 = sst [smem:[#allocation36_spill]] %s5421_s5  ;;  %s5370_s10 = smov 9  }
   0x8   :  { %s5451_s29 = sld [smem:[%s6996_s0 + %s5367_s26]]   ;;  %s5371_s15 = smov 10  }
   0x9   :  { %s5456_s3 = sld [smem:[%s6996_s0 + %s5368_s30]]   ;;  %s5372_s20 = smov 11  }
   0xa   :  { %7150 = sst [smem:[#allocation37_spill]] %s5436_s17  ;;  %s5373_s26 = smov 12  }
   0xb   :  { %7151 = sst [smem:[#allocation38_spill]] %s5441_s21  ;;  %s5374_s1 = smov 13  }
   0xc   :  { %s5461_s8 = sld [smem:[%s6996_s0 + %s5369_s4]]   ;;  %s5375_s7 = smov 14  }
   0xd   :  { %s5466_s14 = sld [smem:[%s6996_s0 + %s5370_s10]]   ;;  %s5377_s22 = smov 16  }
   0xe   :  { %7152 = sst [smem:[#allocation39_spill]] %s5451_s29  ;;  %s5378_s28 = smov 17  }
   0xf   :  { %7153 = sst [smem:[#allocation40_spill]] %s5456_s3  ;;  %s5393_s23 = smov 32  }
  0x10   :  { %s5471_s19 = sld [smem:[%s6996_s0 + %s5371_s15]]   ;;  %s5376_s15 = smov 15  }
  0x11   :  { %s5476_s24 = sld [smem:[%s6996_s0 + %s5372_s20]]  }
  0x12   :  { %s5481_s30 = sld [smem:[%s6996_s0 + %s5373_s26]]  }
  0x13   :  { %s5486_s6 = sld [smem:[%s6996_s0 + %s5374_s1]]   ;;  %s5394_s1 = smov 33  }
  0x14   :  { %s5491_s12 = sld [smem:[%s6996_s0 + %s5375_s7]]   ;;  %s5379_s7 = smov 18  }
  0x15   :  { %s5496_s20 = sld [smem:[%s6996_s0 + %s5376_s15]]   ;;  %s5380_s15 = smov 19  }
  0x16   :  { %s5501_s27 = sld [smem:[%s6996_s0 + %s5377_s22]]   ;;  %s5381_s22 = smov 20  }
  0x17   :  { %7154 = sst [smem:[#allocation41_spill]] %s5476_s24 }
  0x18   :  { %s5506_s4 = sld [smem:[%s6996_s0 + %s5378_s28]]   ;;  %s5382_s28 = smov 21  }
  0x19   :  { %7155 = sst [smem:[#allocation42_spill]] %s5486_s6 }
  0x1a   :  { %7156 = sst [smem:[#allocation43_spill]] %s5491_s12 }
  0x1b   :  { %s5511_s12 = sld [smem:[%s6996_s0 + %s5379_s7]]   ;;  %s5383_s7 = smov 22  }
  0x1c   :  { %7157 = sst [smem:[#allocation44_spill]] %s5501_s27 }
  0x1d   :  { %s5516_s24 = sld [smem:[%s6996_s0 + %s5380_s15]]   ;;  %s5384_s15 = smov 23  }
  0x1e   :  { %s5521_s27 = sld [smem:[%s6996_s0 + %s5381_s22]]   ;;  %s5385_s22 = smov 24  }
  0x1f   :  { %s5526_s6 = sld [smem:[%s6996_s0 + %s5382_s28]]   ;;  %s5386_s28 = smov 25  }
  0x20   :  { %s5531_s3 = sld [smem:[%s6996_s0 + %s5383_s7]]   ;;  %s5387_s7 = smov 26  }
  0x21   :  { %s5541_s17 = sld [smem:[%s6996_s0 + %s5385_s22]]   ;;  %s5389_s22 = smov 28  }
  0x22   :  { %s5551_s29 = sld [smem:[%s6996_s0 + %s5387_s7]]   ;;  %s5391_s7 = smov 30  }
  0x23   :  { %7158 = sst [smem:[#allocation45_spill]] %s5516_s24 }
  0x24   :  { %s5536_s24 = sld [smem:[%s6996_s0 + %s5384_s15]]   ;;  %s5388_s15 = smov 27  }
  0x25   :  { %7159 = sst [smem:[#allocation46_spill]] %s5526_s6 }
  0x26   :  { %s5546_s6 = sld [smem:[%s6996_s0 + %s5386_s28]]   ;;  %s5390_s28 = smov 29  }
  0x27   :  { %s5561_s21 = sld [smem:[%s6996_s0 + %s5389_s22]]  }
  0x28   :  { %s5571_s5 = sld [smem:[%s6996_s0 + %s5391_s7]]  }
  0x2a   :  { %7160 = sst [smem:[#allocation47_spill]] %s5536_s24 }
  0x2b   :  { %s5556_s24 = sld [smem:[%s6996_s0 + %s5388_s15]]   ;;  %s5392_s15 = smov 31  }
  0x2c   :  { %7161 = sst [smem:[#allocation48_spill]] %s5546_s6 }
  0x2d   :  { %7163 = sst [smem:[#allocation50_spill]] %s5561_s21 }
  0x2e   :  { %s5566_s6 = sld [smem:[%s6996_s0 + %s5390_s28]]  }
  0x2f   :  { %s5579_s21 = sld [smem:[%s6996_s0 + %s5393_s23]]  }
  0x31   :  { %7162 = sst [smem:[#allocation49_spill]] %s5556_s24 }
  0x32   :  { %s4406_s24 = sld [smem:[%s6996_s0 + %s5392_s15]]  }
  0x34   :  { %7164 = sst [smem:[#allocation51_spill]] %s5566_s6 }
  0x35   :  { %s5584_s6 = sld [smem:[%s6996_s0 + %s5394_s1]]  }
  0x38   :  { %v73_v0 = vstv %s4406_s24 }
  0x39   :  { %74 = vst [vmem:[#allocation2] sm:$0x1] %v73_v0 }
  0x3a   :  { %75 = vsyncpa [#allocation4], 0 }
  0x3b   :  { %76 = vsyncpa [#allocation7], 0 }
  0x3c   :  { %77 = vsyncpa [#allocation10], 0 }
  0x3d   :  { %78 = vsyncpa [#allocation13], 0 }
  0x3e   :  { %79 = vsyncpa [#allocation16], 0 }
  0x3f   :  { %80 = vsyncpa [#allocation19], 0 }
  0x40   :  { %81 = vsyncpa [#allocation22], 0 }
  0x41   :  { %82 = vsyncpa [#allocation25], 0 }
  0x42   :  { %83 = vsyncpa [#allocation5], 0  ;;  %s103_s7 = sshll.u32 %s5431_s13, 4  ;;  %s5395_s10 = smov [#allocation6]   ;;  %s104_s7 = int_to_ptr.hbm [resolvable:$true] %s103_s7 }
  0x43   :  { %s105_s0 = sshll.u32 %s5395_s10, 4  ;;  %s136_s24 = sshll.u32 %s5461_s8, 4  ;;  %s106_s0 = int_to_ptr.vmem [resolvable:$true] %s105_s0  ;;  %s137_s24 = int_to_ptr.hbm [resolvable:$true] %s136_s24 }
  0x44   :  { %s4984_s11 = sshra.s32 %s104_s7, 4  ;;  %s4988_s16 = scalar_lea.hbm %s5431_s13, 16  ;;  %s4985_s11 = int_to_ptr.hbm [resolvable:$true] %s4984_s11 }
  0x45   :  { %s4986_s15 = scalar_lea.hbm %s4985_s11, 16  ;;  %p4989_p1 = scmp.lt.s32.totalorder %s4985_s11, %s5431_s13 }
  0x46   :  { %p4987_p0 = scmp.ne.s32.totalorder %s4985_s11, %s4986_s15  ;;  %p4990_p2 = scmp.lt.s32.totalorder %s4988_s16, %s4986_s15 }
  0x48   :  { %p4991_p3 = por %p4990_p2, %p4989_p1 }
  0x4a   :  { %p4992_p4 = pnand %p4991_p3, %p4987_p0 }
  0x4c   :  { %4995 = shalt.err (!%p4992_p4)
}
  0x4d   :  { %s5396_s18 = smov 128   ;;  %s5397_s23 = smov 8  }
  0x4e   :  { %111 = dma.hbm_to_vmem [thread:$0]  %s104_s7, 256, %s106_s0, [#allocation7], %s5396_s18, %s5396_s18, %s5397_s23  }
  0x4f   :  { %s5398_s22 = smov [#allocation9]   ;;  %s160_s1 = sshll.u32 %s5471_s19, 4  ;;  %s161_s1 = int_to_ptr.hbm [resolvable:$true] %s160_s1 }
  0x50   :  { %s138_s26 = sshll.u32 %s5398_s22, 4  ;;  %s5008_s13 = sshra.s32 %s137_s24, 4  ;;  %s139_s26 = int_to_ptr.vmem [resolvable:$true] %s138_s26  ;;  %s5009_s13 = int_to_ptr.hbm [resolvable:$true] %s5008_s13 }
  0x51   :  { %s5010_s28 = scalar_lea.hbm %s5009_s13, 1  ;;  %s5012_s2 = scalar_lea.hbm %s5461_s8, 1 }
  0x52   :  { %p5011_p5 = scmp.ne.s32.totalorder %s5009_s13, %s5010_s28  ;;  %p5013_p6 = scmp.lt.s32.totalorder %s5009_s13, %s5461_s8 }
  0x53   :  { %p5014_p7 = scmp.lt.s32.totalorder %s5012_s2, %s5010_s28 }
  0x55   :  { %p5015_p8 = por %p5014_p7, %p5013_p6 }
  0x57   :  { %p5016_p9 = pnand %p5015_p8, %p5011_p5 }
  0x59   :  { %5019 = shalt.err (!%p5016_p9)
}
  0x5a   :  { %141 = dma.hbm_to_vmem [thread:$0]  %s137_s24, 16, %s139_s26, [#allocation10]  }
  0x5b   :  { %s187_s7 = sshll.u32 %s5496_s20, 4  ;;  %s5399_s10 = smov [#allocation12]   ;;  %s5597_s7 = int_to_ptr.hbm [resolvable:$true] %s187_s7 }
  0x5c   :  { %s162_s0 = sshll.u32 %s5399_s10, 4  ;;  %s5032_s11 = sshra.s32 %s161_s1, 4  ;;  %s163_s0 = int_to_ptr.vmem [resolvable:$true] %s162_s0  ;;  %s5033_s11 = int_to_ptr.hbm [resolvable:$true] %s5032_s11 }
  0x5d   :  { %s5034_s15 = scalar_lea.hbm %s5033_s11, 1  ;;  %s5036_s16 = scalar_lea.hbm %s5471_s19, 1 }
  0x5e   :  { %p5035_p10 = scmp.ne.s32.totalorder %s5033_s11, %s5034_s15  ;;  %p5037_p11 = scmp.lt.s32.totalorder %s5033_s11, %s5471_s19 }
  0x5f   :  { %p5038_p12 = scmp.lt.s32.totalorder %s5036_s16, %s5034_s15 }
  0x61   :  { %p5039_p13 = por %p5038_p12, %p5037_p11 }
  0x63   :  { %p5040_p0 = pnand %p5039_p13, %p5035_p10 }
  0x65   :  { %5043 = shalt.err (!%p5040_p0)
}
  0x66   :  { %165 = dma.hbm_to_vmem [thread:$0]  %s161_s1, 16, %s163_s0, [#allocation13]  }
  0x67   :  { %s5400_s8 = smov [#allocation15]   ;;  %s215_s22 = sshll.u32 %s5511_s12, 4  ;;  %s5602_s22 = int_to_ptr.hbm [resolvable:$true] %s215_s22 }
  0x68   :  { %s189_s24 = sshll.u32 %s5400_s8, 4  ;;  %s5056_s26 = sshra.s32 %s5597_s7, 4  ;;  %s190_s24 = int_to_ptr.vmem [resolvable:$true] %s189_s24  ;;  %s5057_s26 = int_to_ptr.hbm [resolvable:$true] %s5056_s26 }
  0x69   :  { %s5058_s13 = scalar_lea.hbm %s5057_s26, 16  ;;  %s5060_s19 = scalar_lea.hbm %s5496_s20, 16 }
  0x6a   :  { %p5059_p1 = scmp.ne.s32.totalorder %s5057_s26, %s5058_s13  ;;  %p5061_p2 = scmp.lt.s32.totalorder %s5057_s26, %s5496_s20 }
  0x6b   :  { %p5062_p3 = scmp.lt.s32.totalorder %s5060_s19, %s5058_s13 }
  0x6d   :  { %p5063_p4 = por %p5062_p3, %p5061_p2 }
  0x6f   :  { %p5064_p5 = pnand %p5063_p4, %p5059_p1 }
  0x71   :  { %5067 = shalt.err (!%p5064_p5)
}
  0x72   :  { %195 = dma.hbm_to_vmem [thread:$0]  %s5597_s7, 256, %s190_s24, [#allocation16], %s5396_s18, %s5396_s18, %s5397_s23  }
  0x73   :  { %s245_s1 = sshll.u32 %s5531_s3, 4  ;;  %s5401_s28 = smov [#allocation18]   ;;  %s5612_s1 = int_to_ptr.hbm [resolvable:$true] %s245_s1 }
  0x74   :  { %s217_s2 = sshll.u32 %s5401_s28, 4  ;;  %s5080_s20 = sshra.s32 %s5602_s22, 4  ;;  %s218_s2 = int_to_ptr.vmem [resolvable:$true] %s217_s2  ;;  %s5081_s20 = int_to_ptr.hbm [resolvable:$true] %s5080_s20 }
  0x75   :  { %s5082_s10 = scalar_lea.hbm %s5081_s20, 96  ;;  %s5084_s0 = scalar_lea.hbm %s5511_s12, 96 }
  0x76   :  { %p5083_p6 = scmp.ne.s32.totalorder %s5081_s20, %s5082_s10  ;;  %p5085_p7 = scmp.lt.s32.totalorder %s5081_s20, %s5511_s12 }
  0x77   :  { %p5086_p8 = scmp.lt.s32.totalorder %s5084_s0, %s5082_s10 }
  0x79   :  { %p5087_p9 = por %p5086_p8, %p5085_p7 }
  0x7b   :  { %p5088_p10 = pnand %p5087_p9, %p5083_p6 }
  0x7d   :  { %5091 = shalt.err (!%p5088_p10)
}
  0x7e   :  { %223 = dma.hbm_to_vmem [thread:$0]  %s5602_s22, 1536, %s218_s2, [#allocation19], %s5396_s18, %s5396_s18, %s5397_s23  }
  0x7f   :  { %s5402_s7 = smov [#allocation21]   ;;  %s90_s15 = sshll.u32 %s5426_s9, 4  ;;  %s5622_s15 = int_to_ptr.hbm [resolvable:$true] %s90_s15 }
  0x80   :  { %s247_s11 = sshll.u32 %s5402_s7, 4  ;;  %s5104_s12 = sshra.s32 %s5612_s1, 4  ;;  %s248_s11 = int_to_ptr.vmem [resolvable:$true] %s247_s11  ;;  %s5105_s12 = int_to_ptr.hbm [resolvable:$true] %s5104_s12 }
  0x81   :  { %s5106_s16 = scalar_lea.hbm %s5105_s12, 96  ;;  %s5108_s8 = scalar_lea.hbm %s5531_s3, 96 }
  0x82   :  { %p5107_p11 = scmp.ne.s32.totalorder %s5105_s12, %s5106_s16  ;;  %p5109_p12 = scmp.lt.s32.totalorder %s5105_s12, %s5531_s3 }
  0x83   :  { %p5110_p13 = scmp.lt.s32.totalorder %s5108_s8, %s5106_s16 }
  0x85   :  { %p5111_p0 = por %p5110_p13, %p5109_p12 }
  0x87   :  { %p5112_p1 = pnand %p5111_p0, %p5107_p11 }
  0x89   :  { %5115 = shalt.err (!%p5112_p1)
}
  0x8a   :  { %253 = dma.hbm_to_vmem [thread:$0]  %s5612_s1, 1536, %s248_s11, [#allocation22], %s5396_s18, %s5396_s18, %s5397_s23  }
  0x8b   :  { %s121_s24 = sshll.u32 %s5446_s25, 4  ;;  %s5403_s22 = smov [#allocation3]   ;;  %s122_s24 = int_to_ptr.hbm [resolvable:$true] %s121_s24 }
  0x8c   :  { %s92_s26 = sshll.u32 %s5403_s22, 4  ;;  %s5128_s13 = sshra.s32 %s5622_s15, 4  ;;  %s93_s26 = int_to_ptr.vmem [resolvable:$true] %s92_s26  ;;  %s5129_s13 = int_to_ptr.hbm [resolvable:$true] %s5128_s13 }
  0x8d   :  { %s5130_s3 = scalar_lea.hbm %s5129_s13, 16  ;;  %s5132_s19 = scalar_lea.hbm %s5426_s9, 16 }
  0x8e   :  { %p5131_p2 = scmp.ne.s32.totalorder %s5129_s13, %s5130_s3  ;;  %p5133_p3 = scmp.lt.s32.totalorder %s5129_s13, %s5426_s9 }
  0x8f   :  { %p5134_p4 = scmp.lt.s32.totalorder %s5132_s19, %s5130_s3 }
  0x91   :  { %p5135_p5 = por %p5134_p4, %p5133_p3 }
  0x93   :  { %p5136_p6 = pnand %p5135_p5, %p5131_p2 }
  0x95   :  { %5139 = shalt.err (!%p5136_p6)
}
  0x96   :  { %98 = dma.hbm_to_vmem [thread:$0]  %s5622_s15, 256, %s93_s26, [#allocation4], %s5396_s18, %s5396_s18, %s5397_s23  }
  0x97   :  { %s5404_s1 = smov [#allocation8]   ;;  %s146_s2 = sshll.u32 %s5466_s14, 4  ;;  %s5640_s2 = int_to_ptr.hbm [resolvable:$true] %s146_s2 }
  0x98   :  { %s123_s28 = sshll.u32 %s5404_s1, 4  ;;  %s5152_s20 = sshra.s32 %s122_s24, 4  ;;  %s124_s28 = int_to_ptr.vmem [resolvable:$true] %s123_s28  ;;  %s5153_s20 = int_to_ptr.hbm [resolvable:$true] %s5152_s20 }
  0x99   :  { %s5154_s9 = scalar_lea.hbm %s5153_s20, 1  ;;  %s5156_s10 = scalar_lea.hbm %s5446_s25, 1 }
  0x9a   :  { %p5155_p7 = scmp.ne.s32.totalorder %s5153_s20, %s5154_s9  ;;  %p5157_p8 = scmp.lt.s32.totalorder %s5153_s20, %s5446_s25 }
  0x9b   :  { %p5158_p9 = scmp.lt.s32.totalorder %s5156_s10, %s5154_s9 }
  0x9d   :  { %p5159_p10 = por %p5158_p9, %p5157_p8 }
  0x9f   :  { %p5160_p11 = pnand %p5159_p10, %p5155_p7 }
  0xa1   :  { %5163 = shalt.err (!%p5160_p11)
}
  0xa2   :  { %126 = dma.hbm_to_vmem [thread:$0]  %s122_s24, 16, %s124_s28, [#allocation7]  }
  0xa3   :  { %s173_s0 = sshll.u32 %s5481_s30, 4  ;;  %s5405_s7 = smov [#allocation11]   ;;  %s174_s0 = int_to_ptr.hbm [resolvable:$true] %s173_s0 }
  0xa4   :  { %s148_s11 = sshll.u32 %s5405_s7, 4  ;;  %s5176_s15 = sshra.s32 %s5640_s2, 4  ;;  %s149_s11 = int_to_ptr.vmem [resolvable:$true] %s148_s11  ;;  %s5177_s15 = int_to_ptr.hbm [resolvable:$true] %s5176_s15 }
  0xa5   :  { %s5178_s12 = scalar_lea.hbm %s5177_s15, 32  ;;  %s5180_s16 = scalar_lea.hbm %s5466_s14, 32 }
  0xa6   :  { %p5179_p12 = scmp.ne.s32.totalorder %s5177_s15, %s5178_s12  ;;  %p5181_p13 = scmp.lt.s32.totalorder %s5177_s15, %s5466_s14 }
  0xa7   :  { %p5182_p0 = scmp.lt.s32.totalorder %s5180_s16, %s5178_s12 }
  0xa9   :  { %p5183_p1 = por %p5182_p0, %p5181_p13 }
  0xab   :  { %p5184_p2 = pnand %p5183_p1, %p5179_p12 }
  0xad   :  { %5187 = shalt.err (!%p5184_p2)
}
  0xae   :  { %154 = dma.hbm_to_vmem [thread:$0]  %s5640_s2, 512, %s149_s11, [#allocation10], %s5396_s18, %s5396_s18, %s5397_s23  }
  0xaf   :  { %s5406_s25 = smov [#allocation14]   ;;  %s202_s24 = sshll.u32 %s5506_s4, 4  ;;  %s5653_s24 = int_to_ptr.hbm [resolvable:$true] %s202_s24 }
  0xb0   :  { %s175_s8 = sshll.u32 %s5406_s25, 4  ;;  %s5200_s22 = sshra.s32 %s174_s0, 4  ;;  %s176_s8 = int_to_ptr.vmem [resolvable:$true] %s175_s8  ;;  %s5201_s22 = int_to_ptr.hbm [resolvable:$true] %s5200_s22 }
  0xb1   :  { %s5202_s14 = scalar_lea.hbm %s5201_s22, 1  ;;  %s5204_s26 = scalar_lea.hbm %s5481_s30, 1 }
  0xb2   :  { %p5203_p3 = scmp.ne.s32.totalorder %s5201_s22, %s5202_s14  ;;  %p5205_p4 = scmp.lt.s32.totalorder %s5201_s22, %s5481_s30 }
  0xb3   :  { %p5206_p5 = scmp.lt.s32.totalorder %s5204_s26, %s5202_s14 }
  0xb5   :  { %p5207_p6 = por %p5206_p5, %p5205_p4 }
  0xb7   :  { %p5208_p7 = pnand %p5207_p6, %p5203_p3 }
  0xb9   :  { %5211 = shalt.err (!%p5208_p7)
}
  0xba   :  { %178 = dma.hbm_to_vmem [thread:$0]  %s174_s0, 16, %s176_s8, [#allocation13]  }
  0xbb   :  { %s230_s13 = sshll.u32 %s5521_s27, 4  ;;  %s5407_s3 = smov [#allocation17]   ;;  %s5658_s13 = int_to_ptr.hbm [resolvable:$true] %s230_s13 }
  0xbc   :  { %s204_s19 = sshll.u32 %s5407_s3, 4  ;;  %s5224_s1 = sshra.s32 %s5653_s24, 4  ;;  %s205_s19 = int_to_ptr.vmem [resolvable:$true] %s204_s19  ;;  %s5225_s1 = int_to_ptr.hbm [resolvable:$true] %s5224_s1 }
  0xbd   :  { %s5226_s28 = scalar_lea.hbm %s5225_s1, 96  ;;  %s5228_s30 = scalar_lea.hbm %s5506_s4, 96 }
  0xbe   :  { %p5227_p8 = scmp.ne.s32.totalorder %s5225_s1, %s5226_s28  ;;  %p5229_p9 = scmp.lt.s32.totalorder %s5225_s1, %s5506_s4 }
  0xbf   :  { %p5230_p10 = scmp.lt.s32.totalorder %s5228_s30, %s5226_s28 }
  0xc1   :  { %p5231_p11 = por %p5230_p10, %p5229_p9 }
  0xc3   :  { %p5232_p12 = pnand %p5231_p11, %p5227_p8 }
  0xc5   :  { %5235 = shalt.err (!%p5232_p12)
}
  0xc6   :  { %210 = dma.hbm_to_vmem [thread:$0]  %s5653_s24, 1536, %s205_s19, [#allocation16], %s5396_s18, %s5396_s18, %s5397_s23  }
  0xc7   :  { %s5408_s2 = smov [#allocation20]   ;;  %s260_s9 = sshll.u32 %s5541_s17, 4  ;;  %s5668_s9 = int_to_ptr.hbm [resolvable:$true] %s260_s9 }
  0xc8   :  { %s232_s20 = sshll.u32 %s5408_s2, 4  ;;  %s5248_s4 = sshra.s32 %s5658_s13, 4  ;;  %s233_s20 = int_to_ptr.vmem [resolvable:$true] %s232_s20  ;;  %s5249_s4 = int_to_ptr.hbm [resolvable:$true] %s5248_s4 }
  0xc9   :  { %s5250_s10 = scalar_lea.hbm %s5249_s4, 96  ;;  %s5252_s0 = scalar_lea.hbm %s5521_s27, 96 }
  0xca   :  { %p5251_p13 = scmp.ne.s32.totalorder %s5249_s4, %s5250_s10  ;;  %p5253_p0 = scmp.lt.s32.totalorder %s5249_s4, %s5521_s27 }
  0xcb   :  { %p5254_p1 = scmp.lt.s32.totalorder %s5252_s0, %s5250_s10 }
  0xcd   :  { %p5255_p2 = por %p5254_p1, %p5253_p0 }
  0xcf   :  { %p5256_p3 = pnand %p5255_p2, %p5251_p13 }
  0xd1   :  { %5259 = shalt.err (!%p5256_p3)
}
  0xd2   :  { %238 = dma.hbm_to_vmem [thread:$0]  %s5658_s13, 1536, %s233_s20, [#allocation19], %s5396_s18, %s5396_s18, %s5397_s23  }
  0xd3   :  { %s275_s7 = sshll.u32 %s5551_s29, 4  ;;  %s5409_s11 = smov [#allocation23]   ;;  %s5678_s7 = int_to_ptr.hbm [resolvable:$true] %s275_s7 }
  0xd4   :  { %s262_s15 = sshll.u32 %s5409_s11, 4  ;;  %s5272_s27 = sshra.s32 %s5668_s9, 4  ;;  %s263_s15 = int_to_ptr.vmem [resolvable:$true] %s262_s15  ;;  %s5273_s27 = int_to_ptr.hbm [resolvable:$true] %s5272_s27 }
  0xd5   :  { %s5274_s12 = scalar_lea.hbm %s5273_s27, 96  ;;  %s5276_s16 = scalar_lea.hbm %s5541_s17, 96 }
  0xd6   :  { %p5275_p4 = scmp.ne.s32.totalorder %s5273_s27, %s5274_s12  ;;  %p5277_p5 = scmp.lt.s32.totalorder %s5273_s27, %s5541_s17 }
  0xd7   :  { %p5278_p6 = scmp.lt.s32.totalorder %s5276_s16, %s5274_s12 }
  0xd9   :  { %p5279_p7 = por %p5278_p6, %p5277_p5 }
  0xdb   :  { %p5280_p8 = pnand %p5279_p7, %p5275_p4 }
  0xdd   :  { %5283 = shalt.err (!%p5280_p8)
}
  0xde   :  { %268 = dma.hbm_to_vmem [thread:$0]  %s5668_s9, 1536, %s263_s15, [#allocation22], %s5396_s18, %s5396_s18, %s5397_s23  }
  0xdf   :  { %s5410_s25 = smov [#allocation24]   ;;  %s5296_s24 = sshra.s32 %s5678_s7, 4  ;;  %s5297_s24 = int_to_ptr.hbm [resolvable:$true] %s5296_s24 }
  0xe0   :  { %s277_s8 = sshll.u32 %s5410_s25, 4  ;;  %s5298_s22 = scalar_lea.hbm %s5297_s24, 32  ;;  %s278_s8 = int_to_ptr.vmem [resolvable:$true] %s277_s8 }
  0xe1   :  { %p5299_p9 = scmp.ne.s32.totalorder %s5297_s24, %s5298_s22  ;;  %s5300_s17 = scalar_lea.hbm %s5551_s29, 32 }
  0xe2   :  { %p5301_p10 = scmp.lt.s32.totalorder %s5297_s24, %s5551_s29  ;;  %p5302_p11 = scmp.lt.s32.totalorder %s5300_s17, %s5298_s22 }
  0xe4   :  { %p5303_p12 = por %p5302_p11, %p5301_p10 }
  0xe6   :  { %p5304_p13 = pnand %p5303_p12, %p5299_p9 }
  0xe8   :  { %5307 = shalt.err (!%p5304_p13)
}
  0xe9   :  { %283 = dma.hbm_to_vmem [thread:$0]  %s5678_s7, 512, %s278_s8, [#allocation25], %s5396_s18, %s5396_s18, %s5397_s23  }
  0xea   :  { %5344 = dma.done.wait [#allocation4], 256  }
  0xeb   :  { %5345 = vsyncadd [#allocation4], 4294967040 }
  0xec   :  { %5346 = dma.done.wait [#allocation7], 272  }
  0xed   :  { %5347 = vsyncadd [#allocation7], 4294967024 }
  0xee   :  { %5348 = dma.done.wait [#allocation10], 528  }
  0xef   :  { %5349 = vsyncadd [#allocation10], 4294966768 }
  0xf0   :  { %5350 = dma.done.wait [#allocation13], 32  }
  0xf1   :  { %5351 = vsyncadd [#allocation13], 4294967264 }
  0xf2   :  { %5352 = dma.done.wait [#allocation16], 1792  }
  0xf3   :  { %5353 = vsyncadd [#allocation16], 4294965504 }
  0xf4   :  { %5354 = dma.done.wait [#allocation19], 3072  }
  0xf5   :  { %5355 = vsyncadd [#allocation19], 4294964224 }
  0xf6   :  { %5356 = dma.done.wait [#allocation22], 3072  }
  0xf7   :  { %5357 = vsyncadd [#allocation22], 4294964224 }
  0xf8   :  { %5358 = dma.done.wait [#allocation25], 512  }
  0xf9   :  { %5359 = vsyncadd [#allocation25], 4294966784  ;;  %s7165_s29 = sld [smem:[#allocation36_spill]]  ;;  %v353_v1 = vld [vmem:[#allocation6 + $0x8] sm:$0xff]  ;;  %v352_v2 = vld [vmem:[#allocation6] sm:$0xff]  ;;  %vm358_vm0 = vcmask 130048  }
  0xfa   :  { %s7166_s14 = sld [smem:[#allocation38_spill]]  ;;  %379 = vmatpush.msra.mxu0 %v353_v1  ;;  %v470_v10 = vld [vmem:[#allocation17 + $0x18] sm:$0xff]  ;;  %vm398_vm1 = vcmask 261120   ;;  %v469_v21 = vld [vmem:[#allocation17 + $0x10] sm:$0xff]  ;;  %v468_v25 = vld [vmem:[#allocation17 + $0x8] sm:$0xff]  ;;  %v7010_v43 = vmov 0.0  }
  0xfb   :  { %s7167_s18 = sld [smem:[#allocation39_spill]]  ;;  %v502_v11 = vld [vmem:[#allocation17 + $0x38] sm:$0xff]  ;;  %487 = vmatpush.msra.mxu3 %v470_v10  ;;  %v501_v22 = vld [vmem:[#allocation17 + $0x30] sm:$0xff]  ;;  %v500_v26 = vld [vmem:[#allocation17 + $0x28] sm:$0xff]  ;;  %s5412_s0 = smov [#allocation26]  }
  0xfc   :  { %380 = vmatpush.msra.mxu0 %v352_v2  ;;  %s7168_s23 = sld [smem:[#allocation37_spill]]  ;;  %v535_v12 = vld [vmem:[#allocation17 + $0x58] sm:$0xff]  ;;  %v534_v23 = vld [vmem:[#allocation17 + $0x50] sm:$0xff]  ;;  %v533_v27 = vld [vmem:[#allocation17 + $0x48] sm:$0xff]  ;;  %s4355_s7 = sshll.u32 %s5412_s0, 4  ;;  %s4356_s7 = int_to_ptr.vmem [resolvable:$true] %s4355_s7 }
  0xfd   :  { %488 = vmatpush.msra.mxu3 %v469_v21  ;;  %s7169_s26 = sld [smem:[#allocation40_spill]]  ;;  %v467_v29 = vld [vmem:[#allocation17] sm:$0xff]  ;;  %v4629_v36 = vld [vmem:[#allocation8] ss:$0 sm:$0xff]  ;;  %v5739_v46 = vld [vmem:[#allocation11 + $0x8] sm:$0xff]  ;;  %s4357_s11 = sshll.u32 %s5584_s6, 4  ;;  %s4358_s11 = int_to_ptr.hbm [resolvable:$true] %s4357_s11 }
  0xfe   :  { %520 = vmatpush.msrb.mxu0 %v502_v11  ;;  %v499_v30 = vld [vmem:[#allocation17 + $0x20] sm:$0xff]  ;;  %s7174_s13 = sld [smem:[#allocation42_spill]]  ;;  %7178 = vst [vmem:[#allocation58_spill] sm:$0xff] %v5739_v46  ;;  %v5743_v47 = vld [vmem:[#allocation11] sm:$0xff]  ;;  %v4632_v53 = vld [vmem:[#allocation9] ss:$0 sm:$0xff] }
  0xff   :  { %v350_v3 = vld [vmem:[%s7165_s29] sm:$0xff]  ;;  %v351_v5 = vld [vmem:[%s7165_s29 + $0x8] sm:$0xff]  ;;  %489 = vmatpush.msra.mxu3 %v468_v25  ;;  %s7175_s3 = sld [smem:[#allocation41_spill]]  ;;  %v5737_v45 = vld [vmem:[#allocation11 + $0x10] sm:$0xff]  ;;  %7179 = vst [vmem:[#allocation59_spill] sm:$0xff] %v5743_v47  ;;  %s5332_s15 = sshra.s32 %s4358_s11, 4  ;;  %s5333_s15 = int_to_ptr.hbm [resolvable:$true] %s5332_s15 }
 0x100   :  { %v393_v4 = vld [vmem:[%s7166_s14 + $0x18] sm:$0xff]  ;;  %4409 = vmatmul.msk.f32.vlgmr.msra.gmra.mxu0 %vm358_vm0, %v350_v3  ;;  %v392_v6 = vld [vmem:[%s7166_s14 + $0x10] sm:$0xff]  ;;  %v391_v7 = vld [vmem:[%s7166_s14 + $0x8] sm:$0xff]  ;;  %7177 = vst [vmem:[#allocation57_spill] sm:$0xff] %v5737_v45  ;;  %s7181_s19 = sld [smem:[#allocation43_spill]]  ;;  %s5334_s27 = scalar_lea.hbm %s5333_s15, 2 }
 0x101   :  { %417 = vmatpush.msra.mxu1 %v393_v4  ;;  %v390_v8 = vld [vmem:[%s7166_s14] sm:$0xff]  ;;  %v433_v9 = vld [vmem:[%s7167_s18 + $0x18] sm:$0xff]  ;;  %v432_v20 = vld [vmem:[%s7167_s18 + $0x10] sm:$0xff]  ;;  %521 = vmatpush.msrb.mxu0 %v501_v22  ;;  %s7190_s1 = sld [smem:[#allocation44_spill]]  ;;  %p5335_p0 = scmp.ne.s32.totalorder %s5333_s15, %s5334_s27 }
 0x102   :  { %456 = vmatpush.msra.mxu2 %v433_v9  ;;  %v4628_v13 = vld [vmem:[%s7168_s23] ss:$0 sm:$0xff]  ;;  %v431_v24 = vld [vmem:[%s7167_s18 + $0x8] sm:$0xff]  ;;  %490 = vmatpush.msra.mxu3 %v467_v29  ;;  %v5788_v1 = vld [vmem:[#allocation12] ss:$0 sm:$0xff]  ;;  %s7191_s28 = sld [smem:[#allocation45_spill]]  ;;  %p5337_p1 = scmp.lt.s32.totalorder %s5333_s15, %s5584_s6 }
 0x103   :  { %418 = vmatpush.msra.mxu1 %v392_v6  ;;  %522 = vmatpush.msrb.mxu0 %v500_v26  ;;  %v430_v28 = vld [vmem:[%s7167_s18] sm:$0xff]  ;;  %v5710_v32 = vld [vmem:[%s7169_s26 + $0x18] sm:$0xff]  ;;  %v5714_v33 = vld [vmem:[%s7169_s26 + $0x10] sm:$0xff]  ;;  %s7192_s30 = sld [smem:[#allocation46_spill]]  ;;  %s5336_s12 = scalar_lea.hbm %s5584_s6, 2 }
 0x104   :  { %457 = vmatpush.msra.mxu2 %v432_v20  ;;  %v532_v31 = vld [vmem:[#allocation17 + $0x40] sm:$0xff]  ;;  %7170 = vst [vmem:[#allocation52_spill] sm:$0xff] %v5710_v32  ;;  %v5718_v34 = vld [vmem:[%s7169_s26 + $0x8] sm:$0xff]  ;;  %v5753_v50 = vld [vmem:[%s7174_s13 + $0x10] sm:$0xff]  ;;  %s7219_s2 = sld [smem:[#allocation48_spill]]  ;;  %p5338_p2 = scmp.lt.s32.totalorder %s5336_s12, %s5334_s27 }
 0x105   :  { %419 = vmatpush.msra.mxu1 %v391_v7  ;;  %523 = vmatpush.msrb.mxu0 %v499_v30  ;;  %7171 = vst [vmem:[#allocation53_spill] sm:$0xff] %v5714_v33  ;;  %v5721_v35 = vld [vmem:[%s7169_s26] sm:$0xff]  ;;  %v5747_v48 = vld [vmem:[%s7174_s13 + $0x18] sm:$0xff]  ;;  %v5765_v58 = vld [vmem:[%s7175_s3 + $0x10] sm:$0xff]  ;;  %s7220_s20 = sld [smem:[#allocation47_spill]] }
 0x106   :  { %458 = vmatpush.msra.mxu2 %v431_v24  ;;  %7172 = vst [vmem:[#allocation54_spill] sm:$0xff] %v5718_v34  ;;  %v5734_v44 = vld [vmem:[#allocation11 + $0x18] sm:$0xff]  ;;  %v5769_v59 = vld [vmem:[%s7174_s13 + $0x8] sm:$0xff]  ;;  %v5796_v6 = vld [vmem:[#allocation15 + $0x8] sm:$0xff]  ;;  %s7388_s9 = sld [smem:[#allocation50_spill]]  ;;  %p5339_p3 = por %p5338_p2, %p5337_p1 }
 0x107   :  { %420 = vmatpush.msra.mxu1 %v390_v8  ;;  %7173 = vst [vmem:[#allocation55_spill] sm:$0xff] %v5721_v35  ;;  %699 = vmatpush.msrb.mxu3 %v5734_v44  ;;  %v5750_v49 = vld [vmem:[%s7175_s3 + $0x18] sm:$0xff]  ;;  %v5772_v60 = vld [vmem:[%s7175_s3 + $0x8] sm:$0xff]  ;;  %v5777_v61 = vld [vmem:[%s7174_s13] sm:$0xff]  ;;  %s7389_s4 = sld [smem:[#allocation49_spill]] }
 0x108   :  { %4410 = vmatmul.msk.f32.gmra.mxu0 %vm358_vm0, %v351_v5  ;;  %459 = vmatpush.msra.mxu2 %v430_v28  ;;  %7176 = vst [vmem:[#allocation56_spill] sm:$0xff] %v5734_v44  ;;  %v5780_v62 = vld [vmem:[%s7175_s3] sm:$0xff]  ;;  %v5799_v7 = vld [vmem:[#allocation15] sm:$0xff]  ;;  %v5803_v10 = vld [vmem:[#allocation18 + $0x18] sm:$0xff]  ;;  %s7390_s10 = sld [smem:[#allocation51_spill]]  ;;  %p5340_p4 = pnand %p5339_p3, %p5335_p0 }
 0x109   :  { %553 = vmatpush.msrb.mxu1 %v535_v12  ;;  %700 = vmatpush.msrb.mxu3 %v5737_v45  ;;  %v5794_v5 = vld [vmem:[%s7181_s19] ss:$0 sm:$0xff]  ;;  %7183 = vst [vmem:[#allocation62_spill] sm:$0xff] %v5803_v10  ;;  %v5805_v11 = vld [vmem:[#allocation18 + $0x10] sm:$0xff]  ;;  %v5808_v12 = vld [vmem:[#allocation20 + $0x18] sm:$0xff] }
 0x10a   :  { %670 = vmatpush.msrb.mxu2 %v5710_v32  ;;  %789 = vmatpush.msra.mxu0 %v5796_v6  ;;  %7184 = vst [vmem:[#allocation63_spill] sm:$0xff] %v5805_v11 }
 0x10b   :  { %554 = vmatpush.msrb.mxu1 %v534_v23  ;;  %701 = vmatpush.msrb.mxu3 %v5739_v46  ;;  %v5824_v23 = vld [vmem:[#allocation14] ss:$0 sm:$0xff] }
 0x10c   :  { %671 = vmatpush.msrb.mxu2 %v5714_v33  ;;  %790 = vmatpush.msra.mxu0 %v5799_v7 }
 0x10d   :  { %555 = vmatpush.msrb.mxu1 %v533_v27  ;;  %702 = vmatpush.msrb.mxu3 %v5743_v47  ;;  %v650_v27 = vld [vmem:[#allocation3] sm:$0x3] }
 0x10e   :  { %672 = vmatpush.msrb.mxu2 %v5718_v34 }
 0x10f   :  { %556 = vmatpush.msrb.mxu1 %v532_v31 }
 0x110   :  { %673 = vmatpush.msrb.mxu2 %v5721_v35 }
 0x17d   :  { %v382_v14 = vpop.f32.mrf.mxu0 }
 0x17e   :  { %v383_v15 = vadd.f32 %v4628_v13, %v382_v14  ;;  %v5812_v14 = vld [vmem:[#allocation18 + $0x58] sm:$0xff] }
 0x180   :  { %v388_v16 = vmax.f32 %v383_v15, 0.0 }
 0x182   :  { %4411 = vmatmul.msk.f32.vlgmr.msra.gmra.mxu1 %vm398_vm1, %v388_v16  ;;  %v5814_v16 = vld [vmem:[#allocation18 + $0x8] sm:$0xff] }
 0x183   :  { %815 = vmatpush.msra.mxu1 %v5803_v10 }
 0x185   :  { %v385_v17 = vpop.f32.mrf.mxu0  ;;  %816 = vmatpush.msra.mxu1 %v5805_v11 }
 0x186   :  { %v386_v18 = vadd.f32 %v4628_v13, %v385_v17  ;;  %v5810_v13 = vld [vmem:[#allocation18 + $0x38] sm:$0xff]  ;;  %v5818_v17 = vld [vmem:[#allocation20 + $0x10] sm:$0xff] }
 0x187   :  { %817 = vmatpush.msra.mxu1 %v5814_v16 }
 0x188   :  { %v389_v19 = vmax.f32 %v386_v18, 0.0 }
 0x18a   :  { %4412 = vmatmul.msk.f32.gmra.mxu1 %vm398_vm1, %v389_v19 }
 0x1ff   :  { %v422_v37 = vpop.f32.mrf.mxu1 }
 0x200   :  { %v423_v38 = vadd.f32 %v4629_v36, %v422_v37  ;;  %v5830_v37 = vld [vmem:[#allocation18 + $0x50] sm:$0xff] }
 0x202   :  { %v428_v39 = vmax.f32 %v423_v38, 0.0  ;;  %v5834_v38 = vld [vmem:[#allocation20 + $0x8] sm:$0xff] }
 0x204   :  { %4413 = vmatmul.msk.f32.vlgmr.msra.gmra.mxu2 %vm398_vm1, %v428_v39  ;;  %4415 = vmatmul.msk.f32.vlgmr.msra.gmra.mxu3 %vm398_vm1, %v428_v39 }
 0x205   :  { %4418 = vmatmul.msk.f32.vlgmr.msrb.gmra.mxu0 %vm398_vm1, %v428_v39  ;;  %4421 = vmatmul.msk.f32.vlgmr.msrb.gmra.mxu1 %vm398_vm1, %v428_v39  ;;  %v5836_v39 = vld [vmem:[#allocation18 + $0x28] sm:$0xff] }
 0x206   :  { %751 = vmatpush.msra.mxu3 %v5747_v48  ;;  %727 = vmatpush.msra.mxu2 %v5750_v49  ;;  %7186 = vst [vmem:[#allocation65_spill] sm:$0xff] %v5836_v39 }
 0x207   :  { %v425_v40 = vpop.f32.mrf.mxu1  ;;  %888 = vmatpush.msrb.mxu0 %v5808_v12 }
 0x208   :  { %v426_v41 = vadd.f32 %v4629_v36, %v425_v40  ;;  %752 = vmatpush.msra.mxu3 %v5753_v50  ;;  %728 = vmatpush.msra.mxu2 %v5765_v58  ;;  %v5828_v36 = vld [vmem:[#allocation18 + $0x30] sm:$0xff]  ;;  %v5838_v40 = vld [vmem:[#allocation18 + $0x48] sm:$0xff] }
 0x209   :  { %889 = vmatpush.msrb.mxu0 %v5818_v17  ;;  %7185 = vst [vmem:[#allocation64_spill] sm:$0xff] %v5828_v36 }
 0x20a   :  { %v429_v42 = vmax.f32 %v426_v41, 0.0  ;;  %753 = vmatpush.msra.mxu3 %v5769_v59  ;;  %729 = vmatpush.msra.mxu2 %v5772_v60  ;;  %7187 = vst [vmem:[#allocation66_spill] sm:$0xff] %v5838_v40  ;;  %v5840_v41 = vld [vmem:[#allocation18] sm:$0xff] }
 0x20b   :  { %890 = vmatpush.msrb.mxu0 %v5834_v38  ;;  %818 = vmatpush.msra.mxu1 %v5840_v41 }
 0x20c   :  { %4414 = vmatmul.msk.f32.gmra.mxu2 %vm398_vm1, %v429_v42  ;;  %4416 = vmatmul.msk.f32.gmra.mxu3 %vm398_vm1, %v429_v42 }
 0x20d   :  { %4419 = vmatmul.msk.f32.gmra.mxu0 %vm398_vm1, %v429_v42  ;;  %4422 = vmatmul.msk.f32.gmra.mxu1 %vm398_vm1, %v429_v42  ;;  %v5844_v42 = vld [vmem:[#allocation20] sm:$0xff] }
 0x20e   :  { %754 = vmatpush.msra.mxu3 %v5777_v61  ;;  %730 = vmatpush.msra.mxu2 %v5780_v62 }
 0x20f   :  { %891 = vmatpush.msrb.mxu0 %v5844_v42 }
 0x214   :  { %674 = vmatmul.f32.vlgmr.msrb.gmra.mxu2 %v7010_v43 }
 0x215   :  { %841 = vmatpush.msrb.mxu2 %v5810_v13 }
 0x217   :  { %842 = vmatpush.msrb.mxu2 %v5828_v36 }
 0x219   :  { %843 = vmatpush.msrb.mxu2 %v5836_v39 }
 0x287   :  { %v461_v51 = vpop.f32.mrf.mxu2  ;;  %v5784_v63 = vpop.f32.mrf.mxu3 }
 0x288   :  { %v5760_v54 = vadd.f32 %v4632_v53, %v461_v51  ;;  %v5846_v51 = vld [vmem:[#allocation18 + $0x20] sm:$0xff] }
 0x289   :  { %7188 = vst [vmem:[#allocation67_spill] sm:$0xff] %v5846_v51  ;;  %v5850_v53 = vld [vmem:[#allocation18 + $0x40] sm:$0xff]  ;;  %844 = vmatpush.msrb.mxu2 %v5846_v51 }
 0x28a   :  { %7189 = vst [vmem:[#allocation68_spill] sm:$0xff] %v5850_v53 }
 0x28f   :  { %v5758_v52 = vpop.f32.mrf.mxu2  ;;  %v5786_v0 = vpop.f32.mrf.mxu3 }
 0x290   :  { %7180 = vst [vmem:[#allocation60_spill] sm:$0xff] %v5758_v52 }
 0x291   :  { %7182 = vst [vmem:[#allocation61_spill] sm:$0xff] %v5786_v0 }
 0x297   :  { %v675_v55 = vpop.f32.mrf.mxu2 }
 0x298   :  { %v678_v56 = vadd.f32 %v675_v55, %v5760_v54  ;;  %v5856_v55 = vld [vmem:[#allocation20 + $0x38] sm:$0xff] }
 0x299   :  { %908 = vmatpush.msrb.mxu1 %v5856_v55 }
 0x29a   :  { %v679_v57 = vmax.f32 %v678_v56, 0.0  ;;  %v5858_v56 = vld [vmem:[#allocation20 + $0x30] sm:$0xff] }
 0x29b   :  { %909 = vmatpush.msrb.mxu1 %v5858_v56 }
 0x29c   :  { %4429 = vmatmul.msk.f32.vlgmr.msrb.gmra.mxu3 %vm398_vm1, %v679_v57  ;;  %v5861_v57 = vld [vmem:[#allocation20 + $0x28] sm:$0xff] }
 0x29d   :  { %867 = vmatpush.msrb.mxu3 %v5812_v14  ;;  %910 = vmatpush.msrb.mxu1 %v5861_v57 }
 0x29f   :  { %868 = vmatpush.msrb.mxu3 %v5830_v37 }
 0x2a1   :  { %869 = vmatpush.msrb.mxu3 %v5838_v40 }
 0x2a3   :  { %870 = vmatpush.msrb.mxu3 %v5850_v53 }
 0x31f   :  { %v704_v2 = vpop.f32.mrf.mxu3 }
 0x320   :  { %v705_v3 = vadd.f32 %v5788_v1, %v704_v2  ;;  %v5864_v2 = vld [vmem:[#allocation20 + $0x20] sm:$0xff] }
 0x321   :  { %911 = vmatpush.msrb.mxu1 %v5864_v2 }
 0x322   :  { %v707_v4 = vmax.f32 %v705_v3, 0.0  ;;  %v5868_v3 = vld [vmem:[#allocation20 + $0x58] sm:$0xff] }
 0x324   :  { %4430 = vmatmul.msk.f32.vlgmr.msra.gmra.mxu2 %vm398_vm1, %v707_v4  ;;  %4431 = vmatmul.msk.f32.vlgmr.msra.gmra.mxu3 %vm398_vm1, %v707_v4  ;;  %v5870_v4 = vld [vmem:[#allocation20 + $0x50] sm:$0xff] }
 0x325   :  { %928 = vmatpush.msra.mxu2 %v5868_v3 }
 0x327   :  { %929 = vmatpush.msra.mxu2 %v5870_v4 }
 0x3a7   :  { %v756_v8 = vpop.f32.mrf.mxu3  ;;  %v732_v26 = vpop.f32.mrf.mxu2 }
 0x3a8   :  { %v757_v9 = vadd.f32 %v5794_v5, %v756_v8  ;;  %v733_v29 = vadd.f32 %v5824_v23, %v732_v26  ;;  %v525_v8 = vpop.f32.mrf.mxu0  ;;  %v4633_v26 = vld [vmem:[%s7191_s28] ss:$0 sm:$0xff] }
 0x3aa   :  { %v760_v15 = vand.u32 2147483647, %v757_v9  ;;  %v759_v24 = vmax.f32 %v757_v9, 0.0  ;;  %v5873_v9 = vld [vmem:[#allocation20 + $0x48] sm:$0xff] }
 0x3ab   :  { %930 = vmatpush.msra.mxu2 %v5873_v9 }
 0x3ac   :  { %v761_v18 = vsub.f32 0.0, %v760_v15  ;;  %v5876_v15 = vld [vmem:[#allocation20 + $0x40] sm:$0xff] }
 0x3ad   :  { %931 = vmatpush.msra.mxu2 %v5876_v15 }
 0x3ae   :  { %v762_v19 = vmul.f32 1.442695, %v761_v18 }
 0x3b0   :  { %4650 = vpow2.f32 %v762_v19  ;;  %v5880_v18 = vpop.f32.mrf.mxu0  ;;  %v5883_v19 = vld [vmem:[%s7190_s1] ss:$0 sm:$0xff] }
 0x3b1   :  { %7193 = vst [vmem:[#allocation69_spill] sm:$0xff] %v5880_v18 }
 0x3b2   :  { %7194 = vst [vmem:[#allocation70_spill] sm:$0xff] %v5883_v19 }
 0x3b6   :  { %v4651_v20 = vpop.eup %4650 }
 0x3b7   :  { %v764_v21 = vadd.f32 1.0, %v4651_v20 }
 0x3b9   :  { %4652 = vlog2.f32 %v764_v21 }
 0x3bf   :  { %v4653_v22 = vpop.eup %4652 }
 0x3c0   :  { %v766_v25 = vmul.f32 0.6931472, %v4653_v22 }
 0x3c2   :  { %v767_v28 = vadd.f32 %v766_v25, %v759_v24  ;;  %v5891_v24 = vpop.f32.mrf.mxu1 }
 0x3c4   :  { %v768_v30 = vmul.f32 %v767_v28, %v650_v27  ;;  %v5897_v27 = vld [vmem:[%s7192_s30] ss:$0 sm:$0xff] }
 0x3c5   :  { %7196 = vst [vmem:[#allocation72_spill] sm:$0xff] %v5897_v27 }
 0x3c6   :  { %v769_v31 = vadd.f32 %v768_v30, %v733_v29  ;;  %v5900_v29 = vadd.f32 %v4633_v26, %v5784_v63  ;;  %v5912_v26 = vld [vmem:[#allocation21 + $0x18] sm:$0xff] }
 0x3c7   :  { %1002 = vmatpush.msra.mxu3 %v5912_v26 }
 0x3c8   :  { %4432 = vmatmul.msk.f32.vlgmr.msra.gmra.mxu0 %vm358_vm0, %v769_v31  ;;  %7197 = vst [vmem:[#allocation73_spill] sm:$0xff] %v5900_v29 }
 0x3ca   :  { %v5893_v25 = vpop.f32.mrf.mxu1 }
 0x3cb   :  { %7195 = vst [vmem:[#allocation71_spill] sm:$0xff] %v5893_v25 }
 0x3d0   :  { %892 = vmatmul.f32.vlgmr.msrb.gmra.mxu0 %v7010_v43 }
 0x445   :  { %v792_v20 = vpop.f32.mrf.mxu0 }
 0x446   :  { %v793_v21 = vadd.f32 %v5883_v19, %v792_v20 }
 0x448   :  { %v795_v22 = vmax.f32 %v793_v21, 0.0  ;;  %v4630_v21 = vld [vmem:[%s7191_s28 + $0x1] ss:$0 sm:$0xff] }
 0x449   :  { %v5908_v52 = vadd.f32 %v4630_v21, %v525_v8 }
 0x44a   :  { %4433 = vmatmul.msk.f32.vlgmr.msra.gmra.mxu1 %vm398_vm1, %v795_v22  ;;  %4434 = vmatmul.msk.f32.vlgmr.msrb.gmra.mxu2 %vm398_vm1, %v795_v22 }
 0x44b   :  { %4435 = vmatmul.msk.f32.vlgmr.msrb.gmra.mxu3 %vm398_vm1, %v795_v22  ;;  %7199 = vst [vmem:[#allocation75_spill] sm:$0xff] %v5908_v52 }
 0x44d   :  { %v893_v28 = vpop.f32.mrf.mxu0 }
 0x44e   :  { %v894_v30 = vadd.f32 %v5897_v27, %v893_v28  ;;  %v5914_v28 = vld [vmem:[#allocation23 + $0x18] sm:$0xff] }
 0x44f   :  { %7200 = vst [vmem:[#allocation76_spill] sm:$0xff] %v5914_v28  ;;  %v5916_v27 = vld [vmem:[#allocation21 + $0x38] sm:$0xff]  ;;  %1072 = vmatpush.msrb.mxu2 %v5914_v28 }
 0x450   :  { %1027 = vmatpush.msra.mxu0 %v5916_v27 }
 0x452   :  { %912 = vmatmul.f32.vlgmr.msrb.gmra.mxu1 %v7010_v43  ;;  %932 = vmatmul.f32.vlgmr.msra.gmra.mxu2 %v7010_v43  ;;  %v5906_v43 = vld [vmem:[%s7192_s30 + $0x1] ss:$0 sm:$0xff] }
 0x453   :  { %7198 = vst [vmem:[#allocation74_spill] sm:$0xff] %v5906_v43 }
 0x4c7   :  { %v820_v31 = vpop.f32.mrf.mxu1 }
 0x4c8   :  { %v823_v20 = vadd.f32 %v820_v31, %v5900_v29  ;;  %v5932_v31 = vld [vmem:[#allocation21 + $0x50] sm:$0xff]  ;;  %v5948_v29 = vld [vmem:[#allocation21] sm:$0xff] }
 0x4c9   :  { %7203 = vst [vmem:[#allocation79_spill] sm:$0xff] %v5932_v31 }
 0x4ca   :  { %v936_v22 = vadd.f32 %v894_v30, %v823_v20  ;;  %v5920_v30 = vld [vmem:[#allocation21 + $0x58] sm:$0xff] }
 0x4cb   :  { %7201 = vst [vmem:[#allocation77_spill] sm:$0xff] %v5920_v30  ;;  %1052 = vmatpush.msra.mxu1 %v5920_v30  ;;  %v5974_v30 = vld [vmem:[#allocation23 + $0x20] sm:$0xff] }
 0x4cc   :  { %v4436_v18 = vmul.f32 -1.442695, %v936_v22  ;;  %v5938_v22 = vld [vmem:[#allocation23 + $0x8] sm:$0xff]  ;;  %7214 = vst [vmem:[#allocation89_spill] sm:$0xff] %v5974_v30 }
 0x4cd   :  { %v846_v0 = vpop.f32.mrf.mxu2  ;;  %1053 = vmatpush.msra.mxu1 %v5932_v31  ;;  %7204 = vst [vmem:[#allocation80_spill] sm:$0xff] %v5938_v22  ;;  %v5954_v31 = vld [vmem:[#allocation21 + $0x20] sm:$0xff] }
 0x4ce   :  { %4654 = vpow2.f32 %v4436_v18  ;;  %v849_v19 = vadd.f32 %v846_v0, %v5908_v52  ;;  %v5924_v0 = vld [vmem:[#allocation21 + $0x10] sm:$0xff]  ;;  %7208 = vst [vmem:[#allocation84_spill] sm:$0xff] %v5954_v31 }
 0x4cf   :  { %v913_v25 = vpop.f32.mrf.mxu1  ;;  %v5926_v18 = vld [vmem:[#allocation23 + $0x10] sm:$0xff]  ;;  %1003 = vmatpush.msra.mxu3 %v5924_v0 }
 0x4d0   :  { %v914_v63 = vadd.f32 %v5906_v43, %v913_v25  ;;  %7202 = vst [vmem:[#allocation78_spill] sm:$0xff] %v5926_v18  ;;  %v5928_v25 = vld [vmem:[#allocation21 + $0x30] sm:$0xff]  ;;  %1073 = vmatpush.msrb.mxu2 %v5926_v18  ;;  %v5946_v43 = vld [vmem:[#allocation21 + $0x48] sm:$0xff]  ;;  %v5956_v18 = vld [vmem:[#allocation21 + $0x40] sm:$0xff] }
 0x4d1   :  { %1028 = vmatpush.msra.mxu0 %v5928_v25  ;;  %7206 = vst [vmem:[#allocation82_spill] sm:$0xff] %v5946_v43  ;;  %1054 = vmatpush.msra.mxu1 %v5946_v43  ;;  %v5969_v43 = vld [vmem:[#allocation23 + $0x28] sm:$0xff] }
 0x4d2   :  { %v956_v8 = vadd.f32 %v914_v63, %v849_v19  ;;  %v5936_v19 = vld [vmem:[#allocation21 + $0x8] sm:$0xff]  ;;  %1074 = vmatpush.msrb.mxu2 %v5938_v22  ;;  %7209 = vst [vmem:[#allocation85_spill] sm:$0xff] %v5956_v18  ;;  %v7212_v22 = vmov 0.0  }
 0x4d3   :  { %v5940_v63 = vld [vmem:[#allocation21 + $0x28] sm:$0xff]  ;;  %1004 = vmatpush.msra.mxu3 %v5936_v19  ;;  %1055 = vmatpush.msra.mxu1 %v5956_v18  ;;  %7213 = vst [vmem:[#allocation88_spill] sm:$0xff] %v5969_v43 }
 0x4d4   :  { %v4655_v20 = vpop.eup %4654  ;;  %v4437_v21 = vmul.f32 -1.442695, %v956_v8  ;;  %7205 = vst [vmem:[#allocation81_spill] sm:$0xff] %v5940_v63  ;;  %v5950_v8 = vld [vmem:[#allocation23] sm:$0xff]  ;;  %1029 = vmatpush.msra.mxu0 %v5940_v63 }
 0x4d5   :  { %v5942_v52 = vadd.f32 1.0, %v4655_v20  ;;  %7207 = vst [vmem:[#allocation83_spill] sm:$0xff] %v5950_v8  ;;  %1005 = vmatpush.msra.mxu3 %v5948_v29  ;;  %1075 = vmatpush.msrb.mxu2 %v5950_v8  ;;  %v5963_v20 = vld [vmem:[#allocation23 + $0x38] sm:$0xff] }
 0x4d6   :  { %4656 = vpow2.f32 %v4437_v21  ;;  %1030 = vmatpush.msra.mxu0 %v5954_v31  ;;  %7210 = vst [vmem:[#allocation86_spill] sm:$0xff] %v5963_v20  ;;  %v5965_v21 = vld [vmem:[#allocation23 + $0x30] sm:$0xff]  ;;  %1076 = vmatmul.f32.vlgmr.msrb.gmra.mxu2 %v7212_v22 }
 0x4d7   :  { %4658 = vrcp.f32 %v5942_v52  ;;  %7211 = vst [vmem:[#allocation87_spill] sm:$0xff] %v5965_v21  ;;  %1092 = vmatpush.msrb.mxu3 %v5963_v20  ;;  %1183 = vmatpush.msrb.mxu1 %v5710_v32  ;;  %v5985_v32 = vld [vmem:[#allocation23 + $0x50] sm:$0xff]  ;;  %vm946_vm3 = vweird.f32 %v5942_v52 }
 0x4d8   :  { %1212 = vmatpush.msra.mxu2 %v5734_v44  ;;  %v5983_v44 = vld [vmem:[#allocation23 + $0x58] sm:$0xff]  ;;  %7216 = vst [vmem:[#allocation91_spill] sm:$0xff] %v5985_v32 }
 0x4d9   :  { %1093 = vmatpush.msrb.mxu3 %v5965_v21  ;;  %1184 = vmatpush.msrb.mxu1 %v5714_v33  ;;  %7215 = vst [vmem:[#allocation90_spill] sm:$0xff] %v5983_v44  ;;  %v5988_v33 = vld [vmem:[%s7192_s30 + $0x2] ss:$0 sm:$0xff]  ;;  %v950_v21 = vand.u32 2147483647, %v5942_v52 }
 0x4da   :  { %1213 = vmatpush.msra.mxu2 %v5737_v45  ;;  %7217 = vst [vmem:[#allocation92_spill] sm:$0xff] %v5988_v33  ;;  %1112 = vmatpush.msrb.mxu0 %v5983_v44 }
 0x4db   :  { %1094 = vmatpush.msrb.mxu3 %v5969_v43  ;;  %1185 = vmatpush.msrb.mxu1 %v5718_v34  ;;  %v952_v43 = vand.u32 2147483648, %v5942_v52  ;;  %v5993_v34 = vld [vmem:[#allocation23 + $0x48] sm:$0xff]  ;;  %vm951_vm5 = vcmp.eq.f32.partialorder %v950_v21, 8.507059e+37 }
 0x4dc   :  { %v4657_v8 = vpop.eup %4656  ;;  %1214 = vmatpush.msra.mxu2 %v5739_v46  ;;  %7218 = vst [vmem:[#allocation93_spill] sm:$0xff] %v5993_v34  ;;  %v4631_v46 = vld [vmem:[%s7191_s28 + $0x2] ss:$0 sm:$0xff]  ;;  %1113 = vmatpush.msrb.mxu0 %v5985_v32 }
 0x4dd   :  { %v4659_v18 = vpop.eup %4658  ;;  %v960_v28 = vadd.f32 1.0, %v4657_v8  ;;  %1095 = vmatpush.msrb.mxu3 %v5974_v30  ;;  %1186 = vmatpush.msrb.mxu1 %v5721_v35  ;;  %v933_v8 = vpop.f32.mrf.mxu2  ;;  %v953_v31 = vor.u32 1.1754944e-38, %v952_v43  ;;  %v6007_v63 = vadd.f32 %v4631_v46, %v5891_v24 }
 0x4de   :  { %v942_v20 = vmul.f32 %v4659_v18, %v5942_v52  ;;  %1215 = vmatpush.msra.mxu2 %v5743_v47  ;;  %vm947_vm2 = vweird.f32 %v4659_v18  ;;  %v934_v35 = vadd.f32 %v5988_v33, %v933_v8  ;;  %1114 = vmatpush.msrb.mxu0 %v5993_v34 }
 0x4df   :  { %4660 = vrcp.f32 %v960_v28  ;;  %vm948_vm4 = vmor %vm946_vm3, %vm947_vm2  ;;  %v970_v43 = vand.u32 2147483647, %v960_v28  ;;  %vm966_vm7 = vweird.f32 %v960_v28 }
 0x4e0   :  { %v943_v45 = vsub.f32 1.0, %v942_v20  ;;  %1314 = vmatpush.msrb.mxu2 %v5803_v10  ;;  %v6000_v20 = vld [vmem:[#allocation23 + $0x40] sm:$0xff] }
 0x4e1   :  { %1115 = vmatpush.msrb.mxu0 %v6000_v20  ;;  %vm971_vm9 = vcmp.eq.f32.partialorder %v970_v43, 8.507059e+37  ;;  %v6053_v43 = vld [vmem:[%s7219_s2 + $0x1] ss:$0 sm:$0xff] }
 0x4e2   :  { %v944_v30 = vmul.f32 %v4659_v18, %v943_v45  ;;  %1315 = vmatpush.msrb.mxu2 %v5805_v11  ;;  %v872_v45 = vpop.f32.mrf.mxu3  ;;  %v972_v11 = vand.u32 2147483648, %v960_v28  ;;  %7224 = vst [vmem:[#allocation97_spill] sm:$0xff] %v6053_v43 }
 0x4e3   :  { %v875_v52 = vadd.f32 %v872_v45, %v6007_v63 }
 0x4e4   :  { %v945_v44 = vadd.f32 %v4659_v18, %v944_v30  ;;  %1316 = vmatpush.msrb.mxu2 %v5814_v16 }
 0x4e5   :  { %v4661_v47 = vpop.eup %4660 }
 0x4e6   :  { %v962_v32 = vmul.f32 %v4661_v47, %v960_v28  ;;  %v949_v10 = vsel %vm948_vm4, %v4659_v18, %v945_v44  ;;  %1317 = vmatpush.msrb.mxu2 %v5840_v41  ;;  %vm967_vm6 = vweird.f32 %v4661_v47  ;;  %v973_v44 = vor.u32 1.1754944e-38, %v972_v11 }
 0x4e7   :  { %v954_v30 = vsel %vm951_vm5, %v953_v31, %v949_v10  ;;  %vm968_vm8 = vmor %vm966_vm7, %vm967_vm6 }
 0x4e8   :  { %v963_v8 = vsub.f32 1.0, %v962_v32  ;;  %v976_v33 = vmul.f32 %v954_v30, %v934_v35 }
 0x4ea   :  { %v964_v34 = vmul.f32 %v4661_v47, %v963_v8  ;;  %v977_v46 = vadd.f32 %v976_v33, %v875_v52  ;;  %v6042_v33 = vld [vmem:[%s7219_s2] ss:$0 sm:$0xff]  ;;  %v6050_v52 = vld [vmem:[%s7220_s20 + $0x1] ss:$0 sm:$0xff] }
 0x4eb   :  { %7221 = vst [vmem:[#allocation94_spill] sm:$0xff] %v6042_v33 }
 0x4ec   :  { %v965_v24 = vadd.f32 %v4661_v47, %v964_v34  ;;  %4662 = vtanh.f32 %v977_v46  ;;  %7223 = vst [vmem:[#allocation96_spill] sm:$0xff] %v6050_v52 }
 0x4ee   :  { %v969_v18 = vsel %vm968_vm8, %v4661_v47, %v965_v24  ;;  %v6045_v47 = vld [vmem:[%s7220_s20] ss:$0 sm:$0xff] }
 0x4ef   :  { %v974_v21 = vsel %vm971_vm9, %v973_v44, %v969_v18  ;;  %7222 = vst [vmem:[#allocation95_spill] sm:$0xff] %v6045_v47 }
 0x4f0   :  { %v979_v10 = vsub.f32 1.0, %v974_v21  ;;  %v981_v32 = vmul.f32 0.0, %v974_v21 }
 0x4f2   :  { %v4663_v31 = vpop.eup %4662 }
 0x4f3   :  { %v980_v45 = vmul.f32 %v4663_v31, %v979_v10 }
 0x4f5   :  { %v6013_v35 = vadd.f32 %v981_v32, %v980_v45 }
 0x4f7   :  { %4438 = vmatmul.msk.f32.vlgmr.msra.gmra.mxu3 %vm398_vm1, %v6013_v35  ;;  %4439 = vmatmul.msk.f32.vlgmr.msra.gmra.mxu0 %vm398_vm1, %v6013_v35 }
 0x4f8   :  { %4440 = vmatmul.msk.f32.vlgmr.msra.gmra.mxu1 %vm398_vm1, %v6013_v35  ;;  %1256 = vmatpush.msra.mxu0 %v5747_v48 }
 0x4f9   :  { %1236 = vmatpush.msra.mxu3 %v5750_v49  ;;  %1292 = vmatpush.msra.mxu1 %v5796_v6 }
 0x4fa   :  { %1257 = vmatpush.msra.mxu0 %v5753_v50 }
 0x4fb   :  { %1237 = vmatpush.msra.mxu3 %v5765_v58  ;;  %1293 = vmatpush.msra.mxu1 %v5799_v7 }
 0x4fc   :  { %1258 = vmatpush.msra.mxu0 %v5769_v59 }
 0x4fd   :  { %1238 = vmatpush.msra.mxu3 %v5772_v60 }
 0x4fe   :  { %1259 = vmatpush.msra.mxu0 %v5777_v61 }
 0x4ff   :  { %1096 = vmatmul.f32.vlgmr.msrb.gmra.mxu3 %v7212_v22  ;;  %1116 = vmatmul.f32.vlgmr.msrb.gmra.mxu0 %v7212_v22 }
 0x500   :  { %1239 = vmatpush.msra.mxu3 %v5780_v62  ;;  %1362 = vmatpush.msrb.mxu0 %v5812_v14 }
 0x502   :  { %1338 = vmatpush.msrb.mxu3 %v5810_v13  ;;  %1363 = vmatpush.msrb.mxu0 %v5830_v37 }
 0x504   :  { %1339 = vmatpush.msrb.mxu3 %v5828_v36  ;;  %1364 = vmatpush.msrb.mxu0 %v5838_v40 }
 0x506   :  { %1340 = vmatpush.msrb.mxu3 %v5836_v39  ;;  %1365 = vmatpush.msrb.mxu0 %v5850_v53 }
 0x508   :  { %1341 = vmatpush.msrb.mxu3 %v5846_v51 }
 0x559   :  { %v1077_v34 = vpop.f32.mrf.mxu2 }
 0x55a   :  { %v1078_v11 = vadd.f32 %v6042_v33, %v1077_v34 }
 0x574   :  { %v1032_v46 = vpop.f32.mrf.mxu0 }
 0x575   :  { %v1033_v44 = vadd.f32 %v6050_v52, %v1032_v46 }
 0x57a   :  { %v1007_v28 = vpop.f32.mrf.mxu3 }
 0x57b   :  { %v1008_v22 = vadd.f32 %v6045_v47, %v1007_v28 }
 0x57d   :  { %v1120_v30 = vadd.f32 %v1078_v11, %v1008_v22  ;;  %v6058_v22 = vld [vmem:[%s7219_s2 + $0x2] ss:$0 sm:$0xff] }
 0x57f   :  { %v4441_v8 = vmul.f32 -1.442695, %v1120_v30 }
 0x581   :  { %4664 = vpow2.f32 %v4441_v8  ;;  %v1117_v8 = vpop.f32.mrf.mxu0 }
 0x582   :  { %v1097_v24 = vpop.f32.mrf.mxu3 }
 0x583   :  { %v1098_v18 = vadd.f32 %v6053_v43, %v1097_v24 }
 0x585   :  { %v1140_v21 = vadd.f32 %v1098_v18, %v1033_v44  ;;  %v6061_v44 = vld [vmem:[%s7220_s20 + $0x2] ss:$0 sm:$0xff]  ;;  %v1118_v18 = vadd.f32 %v6058_v22, %v1117_v8 }
 0x587   :  { %v4665_v10 = vpop.eup %4664  ;;  %v4442_v31 = vmul.f32 -1.442695, %v1140_v21 }
 0x588   :  { %v1124_v45 = vadd.f32 1.0, %v4665_v10 }
 0x589   :  { %4666 = vpow2.f32 %v4442_v31  ;;  %v1057_v31 = vpop.f32.mrf.mxu1 }
 0x58a   :  { %4668 = vrcp.f32 %v1124_v45  ;;  %v1136_v47 = vand.u32 2147483648, %v1124_v45  ;;  %v1134_v24 = vand.u32 2147483647, %v1124_v45  ;;  %vm1130_vm11 = vweird.f32 %v1124_v45 }
 0x58c   :  { %vm1135_vm13 = vcmp.eq.f32.partialorder %v1134_v24, 8.507059e+37 }
 0x58f   :  { %v4667_v32 = vpop.eup %4666 }
 0x590   :  { %v4669_v34 = vpop.eup %4668  ;;  %v1144_v11 = vadd.f32 1.0, %v4667_v32  ;;  %v1137_v32 = vor.u32 1.1754944e-38, %v1136_v47 }
 0x591   :  { %v1126_v28 = vmul.f32 %v4669_v34, %v1124_v45  ;;  %vm1131_vm10 = vweird.f32 %v4669_v34 }
 0x592   :  { %4670 = vrcp.f32 %v1144_v11  ;;  %vm1132_vm12 = vmor %vm1130_vm11, %vm1131_vm10  ;;  %v1156_v53 = vand.u32 2147483648, %v1144_v11  ;;  %v1154_v40 = vand.u32 2147483647, %v1144_v11  ;;  %vm1150_vm15 = vweird.f32 %v1144_v11 }
 0x593   :  { %v1127_v30 = vsub.f32 1.0, %v1126_v28  ;;  %v1058_v28 = vadd.f32 %v6061_v44, %v1057_v31 }
 0x594   :  { %v1157_v45 = vor.u32 1.1754944e-38, %v1156_v53  ;;  %vm1155_vm3 = vcmp.eq.f32.partialorder %v1154_v40, 8.507059e+37 }
 0x595   :  { %v1128_v46 = vmul.f32 %v4669_v34, %v1127_v30 }
 0x597   :  { %v1129_v21 = vadd.f32 %v4669_v34, %v1128_v46 }
 0x598   :  { %v4671_v10 = vpop.eup %4670 }
 0x599   :  { %v1146_v43 = vmul.f32 %v4671_v10, %v1144_v11  ;;  %v1133_v52 = vsel %vm1132_vm12, %v4669_v34, %v1129_v21  ;;  %vm1151_vm14 = vweird.f32 %v4671_v10 }
 0x59a   :  { %v1138_v33 = vsel %vm1135_vm13, %v1137_v32, %v1133_v52  ;;  %vm1152_vm2 = vmor %vm1150_vm15, %vm1151_vm14 }
 0x59b   :  { %v1147_v51 = vsub.f32 1.0, %v1146_v43  ;;  %v1160_v30 = vmul.f32 %v1138_v33, %v1118_v18 }
 0x59d   :  { %v1148_v39 = vmul.f32 %v4671_v10, %v1147_v51  ;;  %v1161_v36 = vadd.f32 %v1160_v30, %v1058_v28 }
 0x59f   :  { %v1149_v8 = vadd.f32 %v4671_v10, %v1148_v39  ;;  %4672 = vtanh.f32 %v1161_v36 }
 0x5a1   :  { %v1153_v46 = vsel %vm1152_vm2, %v4671_v10, %v1149_v8 }
 0x5a2   :  { %v1158_v47 = vsel %vm1155_vm3, %v1157_v45, %v1153_v46  ;;  %v1167_v46 = vld [vmem:[#allocation3 + $0x2] sm:$0x3] }
 0x5a3   :  { %v1163_v34 = vsub.f32 1.0, %v1158_v47  ;;  %v1165_v21 = vmul.f32 0.0, %v1158_v47 }
 0x5a5   :  { %v4673_v24 = vpop.eup %4672 }
 0x5a6   :  { %v1164_v52 = vmul.f32 %v4673_v24, %v1163_v34 }
 0x5a8   :  { %v6065_v31 = vadd.f32 %v1165_v21, %v1164_v52 }
 0x5aa   :  { %4443 = vmatmul.msk.f32.vlgmr.msrb.gmra.mxu1 %vm398_vm1, %v6065_v31 }
 0x5ab   :  { %1386 = vmatpush.msrb.mxu1 %v5808_v12 }
 0x5ad   :  { %1387 = vmatpush.msrb.mxu1 %v5818_v17 }
 0x5af   :  { %1388 = vmatpush.msrb.mxu1 %v5834_v38 }
 0x5b1   :  { %1389 = vmatpush.msrb.mxu1 %v5844_v42 }
 0x627   :  { %v1188_v36 = vpop.f32.mrf.mxu1 }
 0x628   :  { %v1192_v39 = vrot.slane %v1188_v36, 6  ;;  %v7226_v36 = vld [vmem:[#allocation84_spill] sm:$0xff] }
 0x62a   :  { %v1194_v40 = vadd.f32 %v1192_v39, %v5760_v54  ;;  %v7227_v39 = vld [vmem:[#allocation90_spill] sm:$0xff] }
 0x62c   :  { %v1195_v51 = vmax.f32 %v1194_v40, 0.0  ;;  %v7228_v40 = vld [vmem:[#allocation91_spill] sm:$0xff] }
 0x62e   :  { %v1197_v53 = vrot.slane %v1195_v51, 2 }
 0x630   :  { %4444 = vmatmul.msk.f32.vlgmr.msra.gmra.mxu2 %vm398_vm1, %v1197_v53  ;;  %v7230_v53 = vld [vmem:[#allocation70_spill] sm:$0xff] }
 0x631   :  { %1406 = vmatpush.msra.mxu2 %v5856_v55 }
 0x633   :  { %1407 = vmatpush.msra.mxu2 %v5858_v56 }
 0x635   :  { %1408 = vmatpush.msra.mxu2 %v5861_v57 }
 0x637   :  { %1409 = vmatpush.msra.mxu2 %v5864_v2 }
 0x6b3   :  { %v1217_v12 = vpop.f32.mrf.mxu2 }
 0x6b4   :  { %v1218_v17 = vadd.f32 %v5788_v1, %v1217_v12 }
 0x6b6   :  { %v1220_v33 = vmax.f32 %v1218_v17, 0.0 }
 0x6b8   :  { %4445 = vmatmul.msk.f32.vlgmr.msra.gmra.mxu3 %vm398_vm1, %v1220_v33  ;;  %4446 = vmatmul.msk.f32.vlgmr.msra.gmra.mxu0 %vm398_vm1, %v1220_v33  ;;  %v7231_v33 = vld [vmem:[#allocation76_spill] sm:$0xff] }
 0x6b9   :  { %1426 = vmatpush.msra.mxu3 %v5868_v3  ;;  %1508 = vmatpush.msra.mxu0 %v5912_v26 }
 0x6bb   :  { %1427 = vmatpush.msra.mxu3 %v5870_v4  ;;  %1509 = vmatpush.msra.mxu0 %v5924_v0 }
 0x6bd   :  { %1428 = vmatpush.msra.mxu3 %v5873_v9  ;;  %1510 = vmatpush.msra.mxu0 %v5936_v19 }
 0x6bf   :  { %1429 = vmatpush.msra.mxu3 %v5876_v15  ;;  %1511 = vmatpush.msra.mxu0 %v5948_v29 }
 0x735   :  { %v1261_v1 = vpop.f32.mrf.mxu0 }
 0x736   :  { %v1262_v43 = vadd.f32 %v5794_v5, %v1261_v1  ;;  %v7225_v5 = vld [vmem:[#allocation81_spill] sm:$0xff] }
 0x737   :  { %v7232_v1 = vld [vmem:[#allocation77_spill] sm:$0xff] }
 0x738   :  { %v1265_v11 = vand.u32 2147483647, %v1262_v43  ;;  %v1264_v8 = vmax.f32 %v1262_v43, 0.0  ;;  %v7233_v43 = vld [vmem:[#allocation86_spill] sm:$0xff] }
 0x73a   :  { %v1266_v18 = vsub.f32 0.0, %v1265_v11  ;;  %v7234_v11 = vld [vmem:[#allocation78_spill] sm:$0xff] }
 0x73b   :  { %v1241_v47 = vpop.f32.mrf.mxu3 }
 0x73c   :  { %v1267_v10 = vmul.f32 1.442695, %v1266_v18  ;;  %v1242_v24 = vadd.f32 %v5824_v23, %v1241_v47  ;;  %v7229_v23 = vld [vmem:[#allocation93_spill] sm:$0xff]  ;;  %v7235_v18 = vld [vmem:[#allocation79_spill] sm:$0xff]  ;;  %v7243_v47 = vld [vmem:[#allocation52_spill] sm:$0xff] }
 0x73e   :  { %4674 = vpow2.f32 %v1267_v10  ;;  %v7236_v10 = vld [vmem:[#allocation87_spill] sm:$0xff] }
 0x744   :  { %v4675_v32 = vpop.eup %4674 }
 0x745   :  { %v1269_v28 = vadd.f32 1.0, %v4675_v32  ;;  %v7237_v32 = vld [vmem:[#allocation80_spill] sm:$0xff] }
 0x747   :  { %4676 = vlog2.f32 %v1269_v28  ;;  %v7238_v28 = vld [vmem:[#allocation82_spill] sm:$0xff] }
 0x74d   :  { %v4677_v30 = vpop.eup %4676 }
 0x74e   :  { %v1271_v45 = vmul.f32 0.6931472, %v4677_v30  ;;  %v7239_v30 = vld [vmem:[#allocation88_spill] sm:$0xff] }
 0x750   :  { %v1272_v34 = vadd.f32 %v1271_v45, %v1264_v8  ;;  %v7240_v8 = vld [vmem:[#allocation83_spill] sm:$0xff]  ;;  %v7241_v45 = vld [vmem:[#allocation85_spill] sm:$0xff] }
 0x752   :  { %v1273_v52 = vmul.f32 %v1272_v34, %v1167_v46  ;;  %v7242_v46 = vld [vmem:[#allocation89_spill] sm:$0xff]  ;;  %v7244_v34 = vld [vmem:[#allocation56_spill] sm:$0xff] }
 0x754   :  { %v1274_v21 = vadd.f32 %v1273_v52, %v1242_v24  ;;  %v7245_v24 = vld [vmem:[#allocation53_spill] sm:$0xff] }
 0x755   :  { %v7246_v52 = vld [vmem:[#allocation57_spill] sm:$0xff] }
 0x756   :  { %4447 = vmatmul.msk.f32.vlgmr.msra.gmra.mxu1 %vm358_vm0, %v1274_v21  ;;  %v7247_v21 = vld [vmem:[#allocation54_spill] sm:$0xff] }
 0x757   :  { %1528 = vmatpush.msra.mxu1 %v5916_v27 }
 0x759   :  { %1529 = vmatpush.msra.mxu1 %v5928_v25 }
 0x75b   :  { %1530 = vmatpush.msra.mxu1 %v7225_v5 }
 0x75d   :  { %1531 = vmatpush.msra.mxu1 %v7226_v36 }
 0x75e   :  { %4451 = vmatmul.msk.f32.vlgmr.msrb.gmra.mxu1 %vm398_vm1, %v6013_v35 }
 0x75f   :  { %1608 = vmatpush.msrb.mxu1 %v7227_v39 }
 0x761   :  { %1609 = vmatpush.msrb.mxu1 %v7228_v40 }
 0x763   :  { %1610 = vmatpush.msrb.mxu1 %v7229_v23 }
 0x765   :  { %1611 = vmatpush.msrb.mxu1 %v6000_v20 }
 0x7d3   :  { %v1295_v51 = vpop.f32.mrf.mxu1 }
 0x7d4   :  { %v1296_v12 = vadd.f32 %v7230_v53, %v1295_v51  ;;  %v7248_v51 = vld [vmem:[#allocation58_spill] sm:$0xff]  ;;  %v7249_v53 = vld [vmem:[#allocation55_spill] sm:$0xff] }
 0x7d6   :  { %v1298_v17 = vmax.f32 %v1296_v12, 0.0  ;;  %v7250_v12 = vld [vmem:[#allocation59_spill] sm:$0xff] }
 0x7d8   :  { %4448 = vmatmul.msk.f32.vlgmr.msrb.gmra.mxu2 %vm398_vm1, %v1298_v17  ;;  %4449 = vmatmul.msk.f32.vlgmr.msrb.gmra.mxu3 %vm398_vm1, %v1298_v17 }
 0x7d9   :  { %4450 = vmatmul.msk.f32.vlgmr.msrb.gmra.mxu0 %vm398_vm1, %v1298_v17  ;;  %1568 = vmatpush.msrb.mxu3 %v7231_v33  ;;  %v7251_v17 = vld [vmem:[#allocation62_spill] sm:$0xff] }
 0x7da   :  { %1548 = vmatpush.msrb.mxu2 %v7232_v1  ;;  %1588 = vmatpush.msrb.mxu0 %v7233_v43 }
 0x7db   :  { %1569 = vmatpush.msrb.mxu3 %v7234_v11 }
 0x7dc   :  { %1549 = vmatpush.msrb.mxu2 %v7235_v18  ;;  %1589 = vmatpush.msrb.mxu0 %v7236_v10  ;;  %v7256_v10 = vld [vmem:[#allocation75_spill] sm:$0xff] }
 0x7dd   :  { %1570 = vmatpush.msrb.mxu3 %v7237_v32 }
 0x7de   :  { %1550 = vmatpush.msrb.mxu2 %v7238_v28  ;;  %1590 = vmatpush.msrb.mxu0 %v7239_v30 }
 0x7df   :  { %1571 = vmatpush.msrb.mxu3 %v7240_v8 }
 0x7e0   :  { %4452 = vmatmul.msk.f32.vlgmr.msra.gmra.mxu2 %vm398_vm1, %v6013_v35  ;;  %4453 = vmatmul.msk.f32.vlgmr.msra.gmra.mxu3 %vm398_vm1, %v6013_v35 }
 0x7e1   :  { %1551 = vmatpush.msrb.mxu2 %v7241_v45  ;;  %1591 = vmatpush.msrb.mxu0 %v7242_v46  ;;  %v7254_v45 = vld [vmem:[#allocation73_spill] sm:$0xff] }
 0x7e2   :  { %1708 = vmatpush.msra.mxu3 %v7244_v34  ;;  %v1391_v34 = vpop.f32.mrf.mxu1 }
 0x7e3   :  { %1679 = vmatpush.msra.mxu2 %v7243_v47  ;;  %v7252_v47 = vld [vmem:[#allocation63_spill] sm:$0xff] }
 0x7e4   :  { %1709 = vmatpush.msra.mxu3 %v7246_v52 }
 0x7e5   :  { %1680 = vmatpush.msra.mxu2 %v7245_v24  ;;  %v7253_v24 = vld [vmem:[#allocation72_spill] sm:$0xff] }
 0x7e6   :  { %1710 = vmatpush.msra.mxu3 %v7248_v51  ;;  %v1392_v52 = vadd.f32 %v7253_v24, %v1391_v34 }
 0x7e7   :  { %1681 = vmatpush.msra.mxu2 %v7247_v21 }
 0x7e8   :  { %4459 = vmatmul.msk.f32.vlgmr.msrb.gmra.mxu3 %vm398_vm1, %v6065_v31  ;;  %v1435_v46 = vrot.slane %v1392_v52, 6 }
 0x7e9   :  { %1682 = vmatpush.msra.mxu2 %v7249_v53  ;;  %1711 = vmatpush.msra.mxu3 %v7250_v12 }
 0x7eb   :  { %1810 = vmatpush.msrb.mxu3 %v7251_v17  ;;  %v7255_v17 = vld [vmem:[#allocation74_spill] sm:$0xff] }
 0x7ed   :  { %1811 = vmatpush.msrb.mxu3 %v7252_v47 }
 0x7ef   :  { %1812 = vmatpush.msrb.mxu3 %v5814_v16 }
 0x7f1   :  { %1813 = vmatpush.msrb.mxu3 %v5840_v41 }
 0x85b   :  { %v1319_v21 = vpop.f32.mrf.mxu2  ;;  %v1343_v30 = vpop.f32.mrf.mxu3 }
 0x85c   :  { %v1323_v51 = vrot.slane %v1319_v21, 6  ;;  %v1347_v12 = vrot.slane %v1343_v30, 6 }
 0x85e   :  { %v1325_v8 = vadd.f32 %v1323_v51, %v7254_v45  ;;  %v1349_v16 = vadd.f32 %v1347_v12, %v7256_v10 }
 0x860   :  { %v1437_v53 = vadd.f32 %v1435_v46, %v1325_v8  ;;  %v1367_v46 = vpop.f32.mrf.mxu0 }
 0x862   :  { %v4454_v28 = vmul.f32 -1.442695, %v1437_v53  ;;  %v7257_v53 = vld [vmem:[#allocation92_spill] sm:$0xff] }
 0x863   :  { %v1411_v32 = vpop.f32.mrf.mxu2  ;;  %v1431_v8 = vpop.f32.mrf.mxu3 }
 0x864   :  { %4678 = vpow2.f32 %v4454_v28  ;;  %v1412_v47 = vadd.f32 %v7255_v17, %v1411_v32  ;;  %v1432_v32 = vadd.f32 %v7257_v53, %v1431_v8 }
 0x866   :  { %v1458_v18 = vrot.slane %v1412_v47, 6 }
 0x868   :  { %v1460_v41 = vadd.f32 %v1458_v18, %v1349_v16  ;;  %v1371_v18 = vrot.slane %v1367_v46, 6 }
 0x86a   :  { %v4679_v11 = vpop.eup %4678  ;;  %v4455_v43 = vmul.f32 -1.442695, %v1460_v41 }
 0x86b   :  { %v1441_v34 = vadd.f32 1.0, %v4679_v11 }
 0x86c   :  { %4680 = vpow2.f32 %v4455_v43 }
 0x86d   :  { %4682 = vrcp.f32 %v1441_v34  ;;  %v1453_v28 = vand.u32 2147483648, %v1441_v34  ;;  %v1451_v12 = vand.u32 2147483647, %v1441_v34  ;;  %vm1447_vm5 = vweird.f32 %v1441_v34 }
 0x86f   :  { %v1454_v43 = vor.u32 1.1754944e-38, %v1453_v28  ;;  %vm1452_vm7 = vcmp.eq.f32.partialorder %v1451_v12, 8.507059e+37 }
 0x872   :  { %v4681_v24 = vpop.eup %4680 }
 0x873   :  { %v4683_v52 = vpop.eup %4682  ;;  %v1464_v21 = vadd.f32 1.0, %v4681_v24  ;;  %v1481_v24 = vrot.slane %v1432_v32, 6  ;;  %v1488_v32 = vrot.slane %v6013_v35, 6 }
 0x874   :  { %v1443_v51 = vmul.f32 %v4683_v52, %v1441_v34  ;;  %vm1448_vm4 = vweird.f32 %v4683_v52 }
 0x875   :  { %4684 = vrcp.f32 %v1464_v21  ;;  %vm1449_vm6 = vmor %vm1447_vm5, %vm1448_vm4  ;;  %v1476_v33 = vand.u32 2147483648, %v1464_v21  ;;  %vm1470_vm9 = vweird.f32 %v1464_v21 }
 0x876   :  { %v1444_v30 = vsub.f32 1.0, %v1443_v51  ;;  %v1373_v51 = vadd.f32 %v1371_v18, %v6007_v63 }
 0x877   :  { %v1477_v34 = vor.u32 1.1754944e-38, %v1476_v33 }
 0x878   :  { %v1445_v17 = vmul.f32 %v4683_v52, %v1444_v30  ;;  %v1474_v30 = vand.u32 2147483647, %v1464_v21 }
 0x87a   :  { %v1446_v47 = vadd.f32 %v4683_v52, %v1445_v17  ;;  %vm1475_vm11 = vcmp.eq.f32.partialorder %v1474_v30, 8.507059e+37 }
 0x87b   :  { %v4685_v11 = vpop.eup %4684 }
 0x87c   :  { %v1466_v16 = vmul.f32 %v4685_v11, %v1464_v21  ;;  %v1450_v41 = vsel %vm1449_vm6, %v4683_v52, %v1446_v47  ;;  %vm1471_vm8 = vweird.f32 %v4685_v11 }
 0x87d   :  { %v1455_v10 = vsel %vm1452_vm7, %v1454_v43, %v1450_v41  ;;  %vm1472_vm10 = vmor %vm1470_vm9, %vm1471_vm8 }
 0x87e   :  { %v1467_v45 = vsub.f32 1.0, %v1466_v16  ;;  %v1483_v1 = vmul.f32 %v1481_v24, %v1455_v10 }
 0x880   :  { %v1468_v8 = vmul.f32 %v4685_v11, %v1467_v45  ;;  %v1484_v53 = vadd.f32 %v1483_v1, %v1373_v51  ;;  %v7265_v1 = vld [vmem:[#allocation96_spill] sm:$0xff] }
 0x882   :  { %v1469_v46 = vadd.f32 %v4685_v11, %v1468_v8  ;;  %4686 = vtanh.f32 %v1484_v53  ;;  %v7266_v53 = vld [vmem:[#allocation97_spill] sm:$0xff] }
 0x884   :  { %v1473_v28 = vsel %vm1472_vm10, %v4685_v11, %v1469_v46 }
 0x885   :  { %v1478_v52 = vsel %vm1475_vm11, %v1477_v34, %v1473_v28 }
 0x886   :  { %v1486_v17 = vsub.f32 1.0, %v1478_v52  ;;  %v1490_v47 = vmul.f32 %v1488_v32, %v1478_v52 }
 0x888   :  { %v4687_v12 = vpop.eup %4686 }
 0x889   :  { %v1487_v18 = vmul.f32 %v4687_v12, %v1486_v17 }
 0x88b   :  { %v6144_v10 = vadd.f32 %v1490_v47, %v1487_v18 }
 0x88d   :  { %v6147_v45 = vrot.slane %v6144_v10, 2 }
 0x88f   :  { %4456 = vmatmul.msk.f32.vlgmr.msra.gmra.mxu0 %vm398_vm1, %v6147_v45  ;;  %4457 = vmatmul.msk.f32.vlgmr.msra.gmra.mxu1 %vm398_vm1, %v6147_v45 }
 0x890   :  { %4458 = vmatmul.msk.f32.vlgmr.msrb.gmra.mxu2 %vm398_vm1, %v6147_v45  ;;  %1752 = vmatpush.msra.mxu1 %v5747_v48  ;;  %v7258_v48 = vld [vmem:[#allocation64_spill] sm:$0xff] }
 0x891   :  { %1732 = vmatpush.msra.mxu0 %v5750_v49  ;;  %1788 = vmatpush.msrb.mxu2 %v5796_v6  ;;  %v7259_v49 = vld [vmem:[#allocation66_spill] sm:$0xff] }
 0x892   :  { %1753 = vmatpush.msra.mxu1 %v5753_v50  ;;  %v7260_v50 = vld [vmem:[#allocation65_spill] sm:$0xff]  ;;  %v7263_v6 = vld [vmem:[#allocation94_spill] sm:$0xff] }
 0x893   :  { %1733 = vmatpush.msra.mxu0 %v5765_v58  ;;  %1789 = vmatpush.msrb.mxu2 %v5799_v7  ;;  %v7261_v58 = vld [vmem:[#allocation68_spill] sm:$0xff]  ;;  %v7264_v7 = vld [vmem:[#allocation95_spill] sm:$0xff] }
 0x894   :  { %1754 = vmatpush.msra.mxu1 %v5769_v59  ;;  %v7262_v59 = vld [vmem:[#allocation67_spill] sm:$0xff] }
 0x895   :  { %1734 = vmatpush.msra.mxu0 %v5772_v60  ;;  %v1573_v60 = vpop.f32.mrf.mxu3 }
 0x896   :  { %1755 = vmatpush.msra.mxu1 %v5777_v61 }
 0x897   :  { %4460 = vmatmul.msk.f32.vlgmr.msrb.gmra.mxu0 %vm398_vm1, %v6065_v31  ;;  %4461 = vmatmul.msk.f32.vlgmr.msrb.gmra.mxu1 %vm398_vm1, %v6065_v31 }
 0x898   :  { %1735 = vmatpush.msra.mxu0 %v5780_v62  ;;  %1858 = vmatpush.msrb.mxu1 %v5812_v14  ;;  %v1574_v62 = vadd.f32 %v7263_v6, %v1573_v60 }
 0x89a   :  { %1834 = vmatpush.msrb.mxu0 %v5810_v13  ;;  %1859 = vmatpush.msrb.mxu1 %v5830_v37 }
 0x89c   :  { %1835 = vmatpush.msrb.mxu0 %v7258_v48  ;;  %1860 = vmatpush.msrb.mxu1 %v7259_v49 }
 0x89e   :  { %1836 = vmatpush.msrb.mxu0 %v7260_v50  ;;  %1861 = vmatpush.msrb.mxu1 %v7261_v58 }
 0x8a0   :  { %1837 = vmatpush.msrb.mxu0 %v7262_v59 }
 0x90c   :  { %v1513_v61 = vpop.f32.mrf.mxu0  ;;  %v1533_v33 = vpop.f32.mrf.mxu1 }
 0x90d   :  { %v1514_v14 = vadd.f32 %v7264_v7, %v1513_v61  ;;  %v1534_v21 = vadd.f32 %v7265_v1, %v1533_v33 }
 0x90f   :  { %v1616_v35 = vadd.f32 %v1574_v62, %v1514_v14 }
 0x911   :  { %v4462_v13 = vmul.f32 -1.442695, %v1616_v35 }
 0x913   :  { %4688 = vpow2.f32 %v4462_v13  ;;  %v1553_v47 = vpop.f32.mrf.mxu2 }
 0x914   :  { %v1593_v37 = vpop.f32.mrf.mxu0  ;;  %v1613_v32 = vpop.f32.mrf.mxu1  ;;  %v1554_v60 = vadd.f32 %v6061_v44, %v1553_v47 }
 0x915   :  { %v1594_v11 = vadd.f32 %v7266_v53, %v1593_v37  ;;  %v1614_v50 = vadd.f32 %v6058_v22, %v1613_v32  ;;  %v6202_v32 = vld [vmem:[#allocation12] ss:$0 sm:$0xff] }
 0x917   :  { %v1636_v43 = vadd.f32 %v1594_v11, %v1534_v21 }
 0x919   :  { %v4689_v16 = vpop.eup %4688  ;;  %v4463_v41 = vmul.f32 -1.442695, %v1636_v43 }
 0x91a   :  { %v1620_v24 = vadd.f32 1.0, %v4689_v16 }
 0x91b   :  { %4690 = vpow2.f32 %v4463_v41 }
 0x91c   :  { %4692 = vrcp.f32 %v1620_v24  ;;  %v1632_v28 = vand.u32 2147483648, %v1620_v24  ;;  %v1630_v17 = vand.u32 2147483647, %v1620_v24  ;;  %vm1626_vm13 = vweird.f32 %v1620_v24 }
 0x91e   :  { %v1633_v48 = vor.u32 1.1754944e-38, %v1632_v28  ;;  %vm1631_vm15 = vcmp.eq.f32.partialorder %v1630_v17, 8.507059e+37 }
 0x921   :  { %v4691_v51 = vpop.eup %4690 }
 0x922   :  { %v4693_v8 = vpop.eup %4692  ;;  %v1640_v30 = vadd.f32 1.0, %v4691_v51 }
 0x923   :  { %v1622_v46 = vmul.f32 %v4693_v8, %v1620_v24  ;;  %vm1627_vm12 = vweird.f32 %v4693_v8 }
 0x924   :  { %4694 = vrcp.f32 %v1640_v30  ;;  %vm1628_vm14 = vmor %vm1626_vm13, %vm1627_vm12  ;;  %v1652_v14 = vand.u32 2147483648, %v1640_v30  ;;  %v1650_v13 = vand.u32 2147483647, %v1640_v30  ;;  %vm1646_vm3 = vweird.f32 %v1640_v30 }
 0x925   :  { %v1623_v34 = vsub.f32 1.0, %v1622_v46  ;;  %v6188_v46 = vld [vmem:[#allocation20 + $0x18] sm:$0xff] }
 0x926   :  { %v1653_v21 = vor.u32 1.1754944e-38, %v1652_v14  ;;  %vm1651_vm5 = vcmp.eq.f32.partialorder %v1650_v13, 8.507059e+37  ;;  %v7275_v14 = vld [vmem:[#allocation88_spill] sm:$0xff]  ;;  %v7277_v13 = vld [vmem:[#allocation85_spill] sm:$0xff] }
 0x927   :  { %v1624_v52 = vmul.f32 %v4693_v8, %v1623_v34 }
 0x929   :  { %v1625_v12 = vadd.f32 %v4693_v8, %v1624_v52 }
 0x92a   :  { %v4695_v18 = vpop.eup %4694 }
 0x92b   :  { %v1642_v49 = vmul.f32 %v4695_v18, %v1640_v30  ;;  %v1629_v58 = vsel %vm1628_vm14, %v4693_v8, %v1625_v12  ;;  %vm1647_vm2 = vweird.f32 %v4695_v18  ;;  %v6191_v30 = vld [vmem:[#allocation20 + $0x10] sm:$0xff] }
 0x92c   :  { %v1634_v59 = vsel %vm1631_vm15, %v1633_v48, %v1629_v58  ;;  %vm1648_vm4 = vmor %vm1646_vm3, %vm1647_vm2  ;;  %v1663_v48 = vld [vmem:[#allocation3 + $0x4] sm:$0x3] }
 0x92d   :  { %v1643_v61 = vsub.f32 1.0, %v1642_v49  ;;  %v1656_v62 = vmul.f32 %v1634_v59, %v1614_v50 }
 0x92f   :  { %v1644_v35 = vmul.f32 %v4695_v18, %v1643_v61  ;;  %v1657_v33 = vadd.f32 %v1656_v62, %v1554_v60  ;;  %v6234_v60 = vld [vmem:[%s7190_s1] ss:$0 sm:$0xff]  ;;  %v7274_v62 = vld [vmem:[#allocation82_spill] sm:$0xff] }
 0x930   :  { %v7273_v61 = vld [vmem:[#allocation80_spill] sm:$0xff] }
 0x931   :  { %v1645_v37 = vadd.f32 %v4695_v18, %v1644_v35  ;;  %4696 = vtanh.f32 %v1657_v33  ;;  %v7276_v35 = vld [vmem:[#allocation83_spill] sm:$0xff]  ;;  %v7278_v33 = vld [vmem:[#allocation89_spill] sm:$0xff] }
 0x933   :  { %v1649_v11 = vsel %vm1648_vm4, %v4695_v18, %v1645_v37  ;;  %v6257_v37 = vld [vmem:[%s7169_s26 + $0x18] sm:$0xff] }
 0x934   :  { %v1654_v43 = vsel %vm1651_vm5, %v1653_v21, %v1649_v11  ;;  %7279 = vst [vmem:[#allocation81_spill] sm:$0xff] %v6257_v37  ;;  %v6260_v21 = vld [vmem:[#allocation11 + $0x18] sm:$0xff]  ;;  %v6264_v11 = vld [vmem:[%s7169_s26 + $0x10] sm:$0xff] }
 0x935   :  { %v1659_v16 = vsub.f32 1.0, %v1654_v43  ;;  %v1661_v51 = vmul.f32 %v1654_v43, %v6065_v31  ;;  %7280 = vst [vmem:[#allocation84_spill] sm:$0xff] %v6260_v21  ;;  %v6267_v43 = vld [vmem:[#allocation11 + $0x10] sm:$0xff] }
 0x936   :  { %7281 = vst [vmem:[#allocation90_spill] sm:$0xff] %v6264_v11 }
 0x937   :  { %v4697_v41 = vpop.eup %4696  ;;  %7282 = vst [vmem:[#allocation91_spill] sm:$0xff] %v6267_v43 }
 0x938   :  { %v1660_v24 = vmul.f32 %v4697_v41, %v1659_v16  ;;  %v6274_v16 = vld [vmem:[#allocation11 + $0x8] sm:$0xff]  ;;  %v6280_v41 = vld [vmem:[%s7169_s26] sm:$0xff] }
 0x939   :  { %7284 = vst [vmem:[#allocation70_spill] sm:$0xff] %v6274_v16 }
 0x93a   :  { %v6184_v8 = vadd.f32 %v1661_v51, %v1660_v24  ;;  %7285 = vst [vmem:[#allocation52_spill] sm:$0xff] %v6280_v41  ;;  %v6283_v24 = vld [vmem:[#allocation11] sm:$0xff]  ;;  %v6286_v51 = vld [vmem:[#allocation18 + $0x18] sm:$0xff] }
 0x93b   :  { %7286 = vst [vmem:[#allocation56_spill] sm:$0xff] %v6283_v24 }
 0x93c   :  { %4464 = vmatmul.msk.f32.vlgmr.msra.gmra.mxu2 %vm398_vm1, %v6184_v8  ;;  %7287 = vst [vmem:[#allocation53_spill] sm:$0xff] %v6286_v51 }
 0x93d   :  { %1882 = vmatpush.msra.mxu2 %v6188_v46 }
 0x93f   :  { %1883 = vmatpush.msra.mxu2 %v6191_v30 }
 0x941   :  { %1884 = vmatpush.msra.mxu2 %v5834_v38 }
 0x943   :  { %1885 = vmatpush.msra.mxu2 %v5844_v42 }
 0x9bf   :  { %v1684_v34 = vpop.f32.mrf.mxu2 }
 0x9c0   :  { %v1688_v28 = vrot.slane %v1684_v34, 4  ;;  %v6289_v34 = vld [vmem:[#allocation18 + $0x10] sm:$0xff] }
 0x9c1   :  { %7288 = vst [vmem:[#allocation57_spill] sm:$0xff] %v6289_v34 }
 0x9c2   :  { %v1690_v31 = vadd.f32 %v1688_v28, %v5760_v54  ;;  %v6292_v28 = vld [vmem:[#allocation18 + $0x8] sm:$0xff] }
 0x9c3   :  { %7289 = vst [vmem:[#allocation54_spill] sm:$0xff] %v6292_v28 }
 0x9c4   :  { %v1691_v52 = vmax.f32 %v1690_v31, 0.0  ;;  %v6295_v31 = vld [vmem:[#allocation18] sm:$0xff] }
 0x9c5   :  { %7290 = vst [vmem:[#allocation58_spill] sm:$0xff] %v6295_v31 }
 0x9c6   :  { %v1693_v17 = vrot.slane %v1691_v52, 4 }
 0x9c8   :  { %4465 = vmatmul.msk.f32.vlgmr.msra.gmra.mxu3 %vm398_vm1, %v1693_v17  ;;  %v6299_v17 = vld [vmem:[%s7192_s30] ss:$0 sm:$0xff] }
 0x9c9   :  { %1902 = vmatpush.msra.mxu3 %v5856_v55  ;;  %7291 = vst [vmem:[#allocation55_spill] sm:$0xff] %v6299_v17 }
 0x9cb   :  { %1903 = vmatpush.msra.mxu3 %v5858_v56  ;;  %v6216_v56 = vld [vmem:[%s7181_s19] ss:$0 sm:$0xff] }
 0x9cd   :  { %1904 = vmatpush.msra.mxu3 %v5861_v57 }
 0x9cf   :  { %1905 = vmatpush.msra.mxu3 %v5864_v2 }
 0xa4b   :  { %v1713_v38 = vpop.f32.mrf.mxu3 }
 0xa4c   :  { %v1714_v42 = vadd.f32 %v6202_v32, %v1713_v38 }
 0xa4e   :  { %v1716_v12 = vmax.f32 %v1714_v42, 0.0 }
 0xa50   :  { %4466 = vmatmul.msk.f32.vlgmr.msra.gmra.mxu0 %vm398_vm1, %v1716_v12  ;;  %4467 = vmatmul.msk.f32.vlgmr.msra.gmra.mxu1 %vm398_vm1, %v1716_v12 }
 0xa51   :  { %1922 = vmatpush.msra.mxu0 %v5868_v3  ;;  %2004 = vmatpush.msra.mxu1 %v5912_v26 }
 0xa53   :  { %1923 = vmatpush.msra.mxu0 %v5870_v4  ;;  %2005 = vmatpush.msra.mxu1 %v5924_v0 }
 0xa55   :  { %1924 = vmatpush.msra.mxu0 %v5873_v9  ;;  %2006 = vmatpush.msra.mxu1 %v5936_v19 }
 0xa57   :  { %1925 = vmatpush.msra.mxu0 %v5876_v15  ;;  %2007 = vmatpush.msra.mxu1 %v5948_v29  ;;  %v6219_v29 = vld [vmem:[#allocation14] ss:$0 sm:$0xff] }
 0xacd   :  { %v1757_v55 = vpop.f32.mrf.mxu1  ;;  %v1737_v19 = vpop.f32.mrf.mxu0 }
 0xace   :  { %v1758_v57 = vadd.f32 %v6216_v56, %v1757_v55  ;;  %v1738_v49 = vadd.f32 %v6219_v29, %v1737_v19  ;;  %v7294_v19 = vld [vmem:[#allocation75_spill] sm:$0xff] }
 0xad0   :  { %v1761_v2 = vand.u32 2147483647, %v1758_v57  ;;  %v1760_v9 = vmax.f32 %v1758_v57, 0.0  ;;  %v7292_v57 = vld [vmem:[#allocation73_spill] sm:$0xff] }
 0xad2   :  { %v1762_v3 = vsub.f32 0.0, %v1761_v2 }
 0xad4   :  { %v1763_v26 = vmul.f32 1.442695, %v1762_v3 }
 0xad6   :  { %4698 = vpow2.f32 %v1763_v26 }
 0xadc   :  { %v4699_v4 = vpop.eup %4698 }
 0xadd   :  { %v1765_v18 = vadd.f32 1.0, %v4699_v4 }
 0xadf   :  { %4700 = vlog2.f32 %v1765_v18 }
 0xae5   :  { %v4701_v0 = vpop.eup %4700 }
 0xae6   :  { %v1767_v47 = vmul.f32 0.6931472, %v4701_v0 }
 0xae8   :  { %v1768_v15 = vadd.f32 %v1767_v47, %v1760_v9  ;;  %v6304_v9 = vld [vmem:[%s7192_s30 + $0x1] ss:$0 sm:$0xff] }
 0xae9   :  { %7293 = vst [vmem:[#allocation59_spill] sm:$0xff] %v6304_v9 }
 0xaea   :  { %v1769_v50 = vmul.f32 %v1768_v15, %v1663_v48 }
 0xaec   :  { %v1770_v58 = vadd.f32 %v1769_v50, %v1738_v49 }
 0xaee   :  { %4468 = vmatmul.msk.f32.vlgmr.msrb.gmra.mxu2 %vm358_vm0, %v1770_v58 }
 0xaef   :  { %2024 = vmatpush.msrb.mxu2 %v5916_v27 }
 0xaf1   :  { %2025 = vmatpush.msrb.mxu2 %v5928_v25 }
 0xaf3   :  { %2026 = vmatpush.msrb.mxu2 %v7225_v5  ;;  %v7267_v5 = vld [vmem:[#allocation76_spill] sm:$0xff] }
 0xaf5   :  { %2027 = vmatpush.msrb.mxu2 %v7226_v36  ;;  %v7268_v36 = vld [vmem:[#allocation77_spill] sm:$0xff] }
 0xaf6   :  { %4472 = vmatmul.msk.f32.vlgmr.msra.gmra.mxu2 %vm398_vm1, %v6147_v45 }
 0xaf7   :  { %2104 = vmatpush.msra.mxu2 %v7227_v39  ;;  %v7269_v39 = vld [vmem:[#allocation86_spill] sm:$0xff] }
 0xaf9   :  { %2105 = vmatpush.msra.mxu2 %v7228_v40  ;;  %v7271_v40 = vld [vmem:[#allocation79_spill] sm:$0xff] }
 0xafb   :  { %2106 = vmatpush.msra.mxu2 %v7229_v23  ;;  %v7272_v23 = vld [vmem:[#allocation87_spill] sm:$0xff] }
 0xafd   :  { %2107 = vmatpush.msra.mxu2 %v6000_v20  ;;  %v7270_v20 = vld [vmem:[#allocation78_spill] sm:$0xff] }
 0xb71   :  { %v1791_v59 = vpop.f32.mrf.mxu2 }
 0xb72   :  { %v1792_v27 = vadd.f32 %v6234_v60, %v1791_v59 }
 0xb74   :  { %v1794_v25 = vmax.f32 %v1792_v27, 0.0 }
 0xb76   :  { %4469 = vmatmul.msk.f32.vlgmr.msrb.gmra.mxu3 %vm398_vm1, %v1794_v25  ;;  %4470 = vmatmul.msk.f32.vlgmr.msrb.gmra.mxu0 %vm398_vm1, %v1794_v25 }
 0xb77   :  { %4471 = vmatmul.msk.f32.vlgmr.msrb.gmra.mxu1 %vm398_vm1, %v1794_v25  ;;  %2064 = vmatpush.msrb.mxu0 %v7267_v5 }
 0xb78   :  { %2044 = vmatpush.msrb.mxu3 %v7268_v36  ;;  %2084 = vmatpush.msrb.mxu1 %v7269_v39 }
 0xb79   :  { %2065 = vmatpush.msrb.mxu0 %v7270_v20  ;;  %v1887_v52 = vpop.f32.mrf.mxu2 }
 0xb7a   :  { %2045 = vmatpush.msrb.mxu3 %v7271_v40  ;;  %2085 = vmatpush.msrb.mxu1 %v7272_v23  ;;  %v1888_v38 = vadd.f32 %v6299_v17, %v1887_v52 }
 0xb7b   :  { %2066 = vmatpush.msrb.mxu0 %v7273_v61  ;;  %v7295_v61 = vld [vmem:[#allocation92_spill] sm:$0xff] }
 0xb7c   :  { %2046 = vmatpush.msrb.mxu3 %v7274_v62  ;;  %2086 = vmatpush.msrb.mxu1 %v7275_v14  ;;  %v1931_v55 = vrot.slane %v1888_v38, 4 }
 0xb7d   :  { %2067 = vmatpush.msrb.mxu0 %v7276_v35 }
 0xb7e   :  { %4473 = vmatmul.msk.f32.vlgmr.msra.gmra.mxu3 %vm398_vm1, %v6147_v45  ;;  %4474 = vmatmul.msk.f32.vlgmr.msra.gmra.mxu0 %vm398_vm1, %v6147_v45  ;;  %v6271_v45 = vld [vmem:[%s7169_s26 + $0x8] sm:$0xff] }
 0xb7f   :  { %2047 = vmatpush.msrb.mxu3 %v7277_v13  ;;  %2087 = vmatpush.msrb.mxu1 %v7278_v33  ;;  %7283 = vst [vmem:[#allocation93_spill] sm:$0xff] %v6271_v45 }
 0xb80   :  { %2204 = vmatpush.msra.mxu0 %v6260_v21 }
 0xb81   :  { %2175 = vmatpush.msra.mxu3 %v6257_v37 }
 0xb82   :  { %2205 = vmatpush.msra.mxu0 %v6267_v43 }
 0xb83   :  { %2176 = vmatpush.msra.mxu3 %v6264_v11 }
 0xb84   :  { %2206 = vmatpush.msra.mxu0 %v6274_v16 }
 0xb85   :  { %2177 = vmatpush.msra.mxu3 %v6271_v45 }
 0xb86   :  { %4480 = vmatmul.msk.f32.vlgmr.msrb.gmra.mxu0 %vm398_vm1, %v6184_v8 }
 0xb87   :  { %2178 = vmatpush.msra.mxu3 %v6280_v41  ;;  %2207 = vmatpush.msra.mxu0 %v6283_v24 }
 0xb89   :  { %2306 = vmatpush.msrb.mxu0 %v6286_v51 }
 0xb8b   :  { %2307 = vmatpush.msrb.mxu0 %v6289_v34 }
 0xb8d   :  { %2308 = vmatpush.msrb.mxu0 %v6292_v28 }
 0xb8f   :  { %2309 = vmatpush.msrb.mxu0 %v6295_v31 }
 0xbf3   :  { %v1839_v3 = vpop.f32.mrf.mxu0 }
 0xbf4   :  { %v1843_v4 = vrot.slane %v1839_v3, 4  ;;  %v1863_v40 = vpop.f32.mrf.mxu1 }
 0xbf5   :  { %v1867_v13 = vrot.slane %v1863_v40, 4 }
 0xbf6   :  { %v1845_v48 = vadd.f32 %v1843_v4, %v7294_v19 }
 0xbf7   :  { %v1869_v3 = vadd.f32 %v1867_v13, %v6007_v63  ;;  %v6349_v13 = vld [vmem:[%s7175_s3 + $0x8] sm:$0xff] }
 0xbf9   :  { %v1815_v42 = vpop.f32.mrf.mxu3 }
 0xbfa   :  { %v1819_v12 = vrot.slane %v1815_v42, 4 }
 0xbfb   :  { %v1927_v39 = vpop.f32.mrf.mxu0 }
 0xbfc   :  { %v1821_v2 = vadd.f32 %v1819_v12, %v7292_v57  ;;  %v1928_v62 = vadd.f32 %v7295_v61, %v1927_v39  ;;  %v6334_v61 = vld [vmem:[%s7174_s13 + $0x10] sm:$0xff] }
 0xbfe   :  { %v1933_v26 = vadd.f32 %v1931_v55, %v1821_v2  ;;  %v1977_v12 = vrot.slane %v1928_v62, 4  ;;  %v6338_v62 = vld [vmem:[%s7175_s3 + $0x10] sm:$0xff] }
 0xc00   :  { %v4475_v18 = vmul.f32 -1.442695, %v1933_v26 }
 0xc01   :  { %v1907_v0 = vpop.f32.mrf.mxu3 }
 0xc02   :  { %4702 = vpow2.f32 %v4475_v18  ;;  %v1908_v47 = vadd.f32 %v6304_v9, %v1907_v0 }
 0xc04   :  { %v1954_v15 = vrot.slane %v1908_v47, 4 }
 0xc06   :  { %v1956_v49 = vadd.f32 %v1954_v15, %v1845_v48 }
 0xc08   :  { %v4703_v50 = vpop.eup %4702  ;;  %v4476_v58 = vmul.f32 -1.442695, %v1956_v49 }
 0xc09   :  { %v1937_v59 = vadd.f32 1.0, %v4703_v50 }
 0xc0a   :  { %4704 = vpow2.f32 %v4476_v58 }
 0xc0b   :  { %4706 = vrcp.f32 %v1937_v59  ;;  %v1949_v23 = vand.u32 2147483648, %v1937_v59  ;;  %v1947_v35 = vand.u32 2147483647, %v1937_v59  ;;  %vm1943_vm7 = vweird.f32 %v1937_v59 }
 0xc0d   :  { %v1950_v38 = vor.u32 1.1754944e-38, %v1949_v23  ;;  %vm1948_vm9 = vcmp.eq.f32.partialorder %v1947_v35, 8.507059e+37  ;;  %v6330_v23 = vld [vmem:[#allocation15 + $0x8] sm:$0xff]  ;;  %v6345_v35 = vld [vmem:[%s7174_s13 + $0x8] sm:$0xff] }
 0xc10   :  { %v4705_v27 = vpop.eup %4704 }
 0xc11   :  { %v4707_v25 = vpop.eup %4706  ;;  %v1960_v5 = vadd.f32 1.0, %v4705_v27  ;;  %v1984_v27 = vrot.slane %v6144_v10, 6  ;;  %v6323_v10 = vld [vmem:[%s7174_s13 + $0x18] sm:$0xff] }
 0xc12   :  { %v1939_v36 = vmul.f32 %v4707_v25, %v1937_v59  ;;  %vm1944_vm6 = vweird.f32 %v4707_v25 }
 0xc13   :  { %4708 = vrcp.f32 %v1960_v5  ;;  %vm1945_vm8 = vmor %vm1943_vm7, %vm1944_vm6  ;;  %v1972_v18 = vand.u32 2147483648, %v1960_v5  ;;  %v1970_v48 = vand.u32 2147483647, %v1960_v5  ;;  %vm1966_vm11 = vweird.f32 %v1960_v5 }
 0xc14   :  { %v1940_v20 = vsub.f32 1.0, %v1939_v36 }
 0xc15   :  { %v1973_v49 = vor.u32 1.1754944e-38, %v1972_v18  ;;  %vm1971_vm13 = vcmp.eq.f32.partialorder %v1970_v48, 8.507059e+37  ;;  %v2069_v18 = vpop.f32.mrf.mxu0 }
 0xc16   :  { %v1941_v14 = vmul.f32 %v4707_v25, %v1940_v20 }
 0xc18   :  { %v1942_v33 = vadd.f32 %v4707_v25, %v1941_v14  ;;  %v6341_v14 = vld [vmem:[#allocation15] sm:$0xff] }
 0xc19   :  { %v4709_v52 = vpop.eup %4708 }
 0xc1a   :  { %v1946_v42 = vsel %vm1945_vm8, %v4707_v25, %v1942_v33  ;;  %v1962_v55 = vmul.f32 %v4709_v52, %v1960_v5  ;;  %vm1967_vm10 = vweird.f32 %v4709_v52  ;;  %v6327_v5 = vld [vmem:[%s7175_s3 + $0x18] sm:$0xff]  ;;  %v6353_v33 = vld [vmem:[%s7174_s13] sm:$0xff] }
 0xc1b   :  { %v1951_v2 = vsel %vm1948_vm9, %v1950_v38, %v1946_v42  ;;  %vm1968_vm12 = vmor %vm1966_vm11, %vm1967_vm10  ;;  %v6364_v38 = vld [vmem:[#allocation18 + $0x58] sm:$0xff] }
 0xc1c   :  { %v1979_v26 = vmul.f32 %v1977_v12, %v1951_v2  ;;  %v1963_v4 = vsub.f32 1.0, %v1962_v55  ;;  %v6367_v42 = vld [vmem:[#allocation18 + $0x38] sm:$0xff]  ;;  %v6370_v12 = vld [vmem:[#allocation18 + $0x50] sm:$0xff]  ;;  %v6376_v2 = vld [vmem:[#allocation18 + $0x48] sm:$0xff] }
 0xc1d   :  { %v6373_v55 = vld [vmem:[#allocation18 + $0x30] sm:$0xff]  ;;  %7297 = vst [vmem:[#allocation63_spill] sm:$0xff] %v6376_v2 }
 0xc1e   :  { %v1980_v0 = vadd.f32 %v1979_v26, %v1869_v3  ;;  %v1964_v47 = vmul.f32 %v4709_v52, %v1963_v4  ;;  %7296 = vst [vmem:[#allocation62_spill] sm:$0xff] %v6373_v55  ;;  %v6379_v3 = vld [vmem:[#allocation18 + $0x28] sm:$0xff]  ;;  %v6382_v26 = vld [vmem:[#allocation18 + $0x40] sm:$0xff] }
 0xc1f   :  { %7298 = vst [vmem:[#allocation72_spill] sm:$0xff] %v6379_v3  ;;  %v6385_v4 = vld [vmem:[#allocation18 + $0x20] sm:$0xff] }
 0xc20   :  { %4710 = vtanh.f32 %v1980_v0  ;;  %v1965_v15 = vadd.f32 %v4709_v52, %v1964_v47  ;;  %7299 = vst [vmem:[#allocation74_spill] sm:$0xff] %v6382_v26  ;;  %v2070_v47 = vadd.f32 %v7263_v6, %v2069_v18 }
 0xc21   :  { %7300 = vst [vmem:[#allocation64_spill] sm:$0xff] %v6385_v4 }
 0xc22   :  { %v1969_v50 = vsel %vm1968_vm12, %v4709_v52, %v1965_v15  ;;  %v6361_v52 = vld [vmem:[%s7175_s3] sm:$0xff] }
 0xc23   :  { %v1974_v58 = vsel %vm1971_vm13, %v1973_v49, %v1969_v50 }
 0xc24   :  { %v1982_v59 = vsub.f32 1.0, %v1974_v58  ;;  %v1986_v39 = vmul.f32 %v1984_v27, %v1974_v58 }
 0xc26   :  { %v4711_v25 = vpop.eup %4710 }
 0xc27   :  { %v1983_v36 = vmul.f32 %v4711_v25, %v1982_v59 }
 0xc29   :  { %v6311_v20 = vadd.f32 %v1986_v39, %v1983_v36 }
 0xc2b   :  { %v6314_v40 = vrot.slane %v6311_v20, 4 }
 0xc2d   :  { %4477 = vmatmul.msk.f32.vlgmr.msra.gmra.mxu1 %vm398_vm1, %v6314_v40  ;;  %4478 = vmatmul.msk.f32.vlgmr.msrb.gmra.mxu2 %vm398_vm1, %v6314_v40 }
 0xc2e   :  { %4479 = vmatmul.msk.f32.vlgmr.msrb.gmra.mxu3 %vm398_vm1, %v6314_v40  ;;  %2248 = vmatpush.msrb.mxu2 %v6323_v10 }
 0xc2f   :  { %2228 = vmatpush.msra.mxu1 %v6327_v5  ;;  %2284 = vmatpush.msrb.mxu3 %v6330_v23 }
 0xc30   :  { %2249 = vmatpush.msrb.mxu2 %v6334_v61 }
 0xc31   :  { %2229 = vmatpush.msra.mxu1 %v6338_v62  ;;  %2285 = vmatpush.msrb.mxu3 %v6341_v14 }
 0xc32   :  { %2250 = vmatpush.msrb.mxu2 %v6345_v35 }
 0xc33   :  { %2230 = vmatpush.msra.mxu1 %v6349_v13 }
 0xc34   :  { %2251 = vmatpush.msrb.mxu2 %v6353_v33 }
 0xc35   :  { %4481 = vmatmul.msk.f32.vlgmr.msrb.gmra.mxu1 %vm398_vm1, %v6184_v8  ;;  %4482 = vmatmul.msk.f32.vlgmr.msra.gmra.mxu2 %vm398_vm1, %v6184_v8 }
 0xc36   :  { %2231 = vmatpush.msra.mxu1 %v6361_v52  ;;  %2354 = vmatpush.msra.mxu2 %v6364_v38 }
 0xc38   :  { %2330 = vmatpush.msrb.mxu1 %v6367_v42  ;;  %2355 = vmatpush.msra.mxu2 %v6370_v12 }
 0xc3a   :  { %2331 = vmatpush.msrb.mxu1 %v6373_v55  ;;  %2356 = vmatpush.msra.mxu2 %v6376_v2 }
 0xc3c   :  { %2332 = vmatpush.msrb.mxu1 %v6379_v3  ;;  %2357 = vmatpush.msra.mxu2 %v6382_v26 }
 0xc3e   :  { %2333 = vmatpush.msrb.mxu1 %v6385_v4 }
 0xcaa   :  { %v2009_v0 = vpop.f32.mrf.mxu1 }
 0xcab   :  { %v2010_v48 = vadd.f32 %v7264_v7, %v2009_v0 }
 0xcad   :  { %v2112_v15 = vadd.f32 %v2070_v47, %v2010_v48 }
 0xcaf   :  { %v4483_v49 = vmul.f32 -1.442695, %v2112_v15 }
 0xcb0   :  { %v2029_v50 = vpop.f32.mrf.mxu2 }
 0xcb1   :  { %4712 = vpow2.f32 %v4483_v49  ;;  %v2030_v59 = vadd.f32 %v7265_v1, %v2029_v50  ;;  %v2049_v49 = vpop.f32.mrf.mxu3 }
 0xcb2   :  { %v2089_v58 = vpop.f32.mrf.mxu1 }
 0xcb3   :  { %v2090_v27 = vadd.f32 %v7266_v53, %v2089_v58 }
 0xcb5   :  { %v2132_v25 = vadd.f32 %v2090_v27, %v2030_v59 }
 0xcb7   :  { %v4713_v36 = vpop.eup %4712  ;;  %v4484_v39 = vmul.f32 -1.442695, %v2132_v25  ;;  %v2050_v25 = vadd.f32 %v6061_v44, %v2049_v49 }
 0xcb8   :  { %v2116_v26 = vadd.f32 1.0, %v4713_v36  ;;  %v2109_v15 = vpop.f32.mrf.mxu2 }
 0xcb9   :  { %4714 = vpow2.f32 %v4484_v39  ;;  %v2110_v59 = vadd.f32 %v6058_v22, %v2109_v15 }
 0xcba   :  { %4716 = vrcp.f32 %v2116_v26  ;;  %v2128_v0 = vand.u32 2147483648, %v2116_v26  ;;  %v2126_v48 = vand.u32 2147483647, %v2116_v26  ;;  %vm2122_vm15 = vweird.f32 %v2116_v26 }
 0xcbc   :  { %v2129_v50 = vor.u32 1.1754944e-38, %v2128_v0  ;;  %vm2127_vm3 = vcmp.eq.f32.partialorder %v2126_v48, 8.507059e+37 }
 0xcbf   :  { %v4715_v4 = vpop.eup %4714 }
 0xcc0   :  { %v4717_v3 = vpop.eup %4716  ;;  %v2136_v6 = vadd.f32 1.0, %v4715_v4 }
 0xcc1   :  { %v2118_v18 = vmul.f32 %v4717_v3, %v2116_v26  ;;  %vm2123_vm14 = vweird.f32 %v4717_v3 }
 0xcc2   :  { %4718 = vrcp.f32 %v2136_v6  ;;  %vm2124_vm2 = vmor %vm2122_vm15, %vm2123_vm14  ;;  %v2146_v2 = vand.u32 2147483647, %v2136_v6  ;;  %vm2142_vm5 = vweird.f32 %v2136_v6 }
 0xcc3   :  { %v2119_v7 = vsub.f32 1.0, %v2118_v18  ;;  %v2148_v18 = vand.u32 2147483648, %v2136_v6 }
 0xcc4   :  { %vm2147_vm7 = vcmp.eq.f32.partialorder %v2146_v2, 8.507059e+37  ;;  %v6404_v2 = vld [vmem:[#allocation20] sm:$0xff] }
 0xcc5   :  { %v2120_v47 = vmul.f32 %v4717_v3, %v2119_v7  ;;  %v2149_v0 = vor.u32 1.1754944e-38, %v2148_v18  ;;  %v6427_v18 = vld [vmem:[#allocation21 + $0x18] sm:$0xff] }
 0xcc7   :  { %v2121_v1 = vadd.f32 %v4717_v3, %v2120_v47 }
 0xcc8   :  { %v4719_v53 = vpop.eup %4718 }
 0xcc9   :  { %v2138_v58 = vmul.f32 %v4719_v53, %v2136_v6  ;;  %v2125_v27 = vsel %vm2124_vm2, %v4717_v3, %v2121_v1  ;;  %vm2143_vm4 = vweird.f32 %v4719_v53  ;;  %v6401_v6 = vld [vmem:[#allocation20 + $0x8] sm:$0xff] }
 0xcca   :  { %v2130_v4 = vsel %vm2127_vm3, %v2129_v50, %v2125_v27  ;;  %vm2144_vm6 = vmor %vm2142_vm5, %vm2143_vm4  ;;  %v6415_v27 = vld [vmem:[#allocation20 + $0x28] sm:$0xff] }
 0xccb   :  { %v2139_v36 = vsub.f32 1.0, %v2138_v58  ;;  %v2152_v39 = vmul.f32 %v2130_v4, %v2110_v59  ;;  %v6409_v58 = vld [vmem:[#allocation20 + $0x38] sm:$0xff]  ;;  %v6412_v59 = vld [vmem:[#allocation20 + $0x30] sm:$0xff]  ;;  %v6418_v4 = vld [vmem:[#allocation20 + $0x20] sm:$0xff] }
 0xccd   :  { %v2140_v7 = vmul.f32 %v4719_v53, %v2139_v36  ;;  %v2153_v47 = vadd.f32 %v2152_v39, %v2050_v25  ;;  %v6424_v39 = vld [vmem:[#allocation20 + $0x58] sm:$0xff] }
 0xccf   :  { %v2141_v26 = vadd.f32 %v4719_v53, %v2140_v7  ;;  %4720 = vtanh.f32 %v2153_v47  ;;  %v6430_v7 = vld [vmem:[#allocation20 + $0x50] sm:$0xff] }
 0xcd0   :  { %v6433_v47 = vld [vmem:[#allocation21 + $0x10] sm:$0xff] }
 0xcd1   :  { %v2145_v55 = vsel %vm2144_vm6, %v4719_v53, %v2141_v26  ;;  %7301 = vst [vmem:[#allocation66_spill] sm:$0xff] %v6433_v47  ;;  %v6436_v26 = vld [vmem:[#allocation20 + $0x48] sm:$0xff] }
 0xcd2   :  { %v2150_v22 = vsel %vm2147_vm7, %v2149_v0, %v2145_v55  ;;  %7302 = vst [vmem:[#allocation65_spill] sm:$0xff] %v6436_v26  ;;  %v6439_v0 = vld [vmem:[#allocation21 + $0x8] sm:$0xff] }
 0xcd3   :  { %v2155_v3 = vsub.f32 1.0, %v2150_v22  ;;  %v2157_v44 = vmul.f32 %v2150_v22, %v6184_v8  ;;  %7303 = vst [vmem:[#allocation68_spill] sm:$0xff] %v6439_v0  ;;  %v6442_v22 = vld [vmem:[#allocation20 + $0x40] sm:$0xff] }
 0xcd4   :  { %7304 = vst [vmem:[#allocation67_spill] sm:$0xff] %v6442_v22 }
 0xcd5   :  { %v4721_v48 = vpop.eup %4720 }
 0xcd6   :  { %v2156_v15 = vmul.f32 %v4721_v48, %v2155_v3  ;;  %v6445_v3 = vld [vmem:[#allocation21] sm:$0xff] }
 0xcd7   :  { %7305 = vst [vmem:[#allocation94_spill] sm:$0xff] %v6445_v3 }
 0xcd8   :  { %v6395_v1 = vadd.f32 %v2157_v44, %v2156_v15 }
 0xcda   :  { %4485 = vmatmul.msk.f32.vlgmr.msra.gmra.mxu3 %vm398_vm1, %v6395_v1 }
 0xcdb   :  { %2378 = vmatpush.msra.mxu3 %v6188_v46 }
 0xcdd   :  { %2379 = vmatpush.msra.mxu3 %v6191_v30 }
 0xcdf   :  { %2380 = vmatpush.msra.mxu3 %v6401_v6 }
 0xce1   :  { %2381 = vmatpush.msra.mxu3 %v6404_v2 }
 0xd5d   :  { %v2180_v55 = vpop.f32.mrf.mxu3 }
 0xd5e   :  { %v2184_v53 = vrot.slane %v2180_v55, 2 }
 0xd60   :  { %v2186_v8 = vadd.f32 %v2184_v53, %v5760_v54 }
 0xd62   :  { %v2187_v49 = vmax.f32 %v2186_v8, 0.0 }
 0xd64   :  { %v2189_v50 = vrot.slane %v2187_v49, 6 }
 0xd66   :  { %4486 = vmatmul.msk.f32.vlgmr.msra.gmra.mxu0 %vm398_vm1, %v2189_v50 }
 0xd67   :  { %2398 = vmatpush.msra.mxu0 %v6409_v58 }
 0xd69   :  { %2399 = vmatpush.msra.mxu0 %v6412_v59 }
 0xd6b   :  { %2400 = vmatpush.msra.mxu0 %v6415_v27 }
 0xd6d   :  { %2401 = vmatpush.msra.mxu0 %v6418_v4 }
 0xde3   :  { %v2209_v54 = vpop.f32.mrf.mxu0 }
 0xde4   :  { %v2210_v25 = vadd.f32 %v6202_v32, %v2209_v54 }
 0xde6   :  { %v2212_v36 = vmax.f32 %v2210_v25, 0.0 }
 0xde8   :  { %4487 = vmatmul.msk.f32.vlgmr.msra.gmra.mxu1 %vm398_vm1, %v2212_v36  ;;  %4488 = vmatmul.msk.f32.vlgmr.msrb.gmra.mxu2 %vm398_vm1, %v2212_v36 }
 0xde9   :  { %2418 = vmatpush.msra.mxu1 %v6424_v39  ;;  %2500 = vmatpush.msrb.mxu2 %v6427_v18 }
 0xdeb   :  { %2419 = vmatpush.msra.mxu1 %v6430_v7  ;;  %2501 = vmatpush.msrb.mxu2 %v6433_v47 }
 0xded   :  { %2420 = vmatpush.msra.mxu1 %v6436_v26  ;;  %2502 = vmatpush.msrb.mxu2 %v6439_v0  ;;  %v2159_v0 = vld [vmem:[#allocation3 + $0x6] sm:$0x3] }
 0xdef   :  { %2421 = vmatpush.msra.mxu1 %v6442_v22  ;;  %2503 = vmatpush.msrb.mxu2 %v6445_v3 }
 0xe65   :  { %v2233_v36 = vpop.f32.mrf.mxu1 }
 0xe66   :  { %v2234_v26 = vadd.f32 %v6219_v29, %v2233_v36  ;;  %v6493_v36 = vld [vmem:[#allocation21 + $0x50] sm:$0xff] }
 0xe67   :  { %7311 = vst [vmem:[#allocation86_spill] sm:$0xff] %v6493_v36 }
 0xe6b   :  { %v2253_v48 = vpop.f32.mrf.mxu2 }
 0xe6c   :  { %v2254_v15 = vadd.f32 %v6216_v56, %v2253_v48  ;;  %v6451_v48 = vld [vmem:[#allocation21 + $0x38] sm:$0xff] }
 0xe6e   :  { %v2257_v44 = vand.u32 2147483647, %v2254_v15  ;;  %v2256_v54 = vmax.f32 %v2254_v15, 0.0  ;;  %v6460_v15 = vld [vmem:[#allocation21 + $0x20] sm:$0xff] }
 0xe70   :  { %v2258_v55 = vsub.f32 0.0, %v2257_v44  ;;  %v6454_v44 = vld [vmem:[#allocation21 + $0x30] sm:$0xff] }
 0xe72   :  { %v2259_v53 = vmul.f32 1.442695, %v2258_v55  ;;  %v6457_v55 = vld [vmem:[#allocation21 + $0x28] sm:$0xff] }
 0xe74   :  { %4722 = vpow2.f32 %v2259_v53 }
 0xe7a   :  { %v4723_v8 = vpop.eup %4722 }
 0xe7b   :  { %v2261_v49 = vadd.f32 1.0, %v4723_v8 }
 0xe7d   :  { %4724 = vlog2.f32 %v2261_v49  ;;  %v6481_v49 = vld [vmem:[#allocation23 + $0x18] sm:$0xff] }
 0xe7e   :  { %7307 = vst [vmem:[#allocation96_spill] sm:$0xff] %v6481_v49 }
 0xe83   :  { %v4725_v50 = vpop.eup %4724 }
 0xe84   :  { %v2263_v25 = vmul.f32 0.6931472, %v4725_v50  ;;  %v6484_v50 = vld [vmem:[#allocation21 + $0x58] sm:$0xff] }
 0xe85   :  { %7308 = vst [vmem:[#allocation97_spill] sm:$0xff] %v6484_v50 }
 0xe86   :  { %v2264_v22 = vadd.f32 %v2263_v25, %v2256_v54  ;;  %v6487_v54 = vld [vmem:[#allocation23 + $0x38] sm:$0xff]  ;;  %v6490_v25 = vld [vmem:[#allocation23 + $0x10] sm:$0xff] }
 0xe87   :  { %7309 = vst [vmem:[#allocation76_spill] sm:$0xff] %v6487_v54 }
 0xe88   :  { %v2265_v47 = vmul.f32 %v2264_v22, %v2159_v0  ;;  %v6471_v0 = vld [vmem:[#allocation23 + $0x48] sm:$0xff]  ;;  %v6474_v22 = vld [vmem:[#allocation23 + $0x40] sm:$0xff]  ;;  %7310 = vst [vmem:[#allocation77_spill] sm:$0xff] %v6490_v25 }
 0xe89   :  { %7306 = vst [vmem:[#allocation95_spill] sm:$0xff] %v6474_v22 }
 0xe8a   :  { %v2266_v3 = vadd.f32 %v2265_v47, %v2234_v26  ;;  %v6465_v47 = vld [vmem:[#allocation23 + $0x58] sm:$0xff]  ;;  %v6468_v26 = vld [vmem:[#allocation23 + $0x50] sm:$0xff] }
 0xe8c   :  { %4489 = vmatmul.msk.f32.vlgmr.msrb.gmra.mxu3 %vm358_vm0, %v2266_v3 }
 0xe8d   :  { %2520 = vmatpush.msrb.mxu3 %v6451_v48 }
 0xe8f   :  { %2521 = vmatpush.msrb.mxu3 %v6454_v44 }
 0xe91   :  { %2522 = vmatpush.msrb.mxu3 %v6457_v55 }
 0xe93   :  { %2523 = vmatpush.msrb.mxu3 %v6460_v15 }
 0xe94   :  { %4493 = vmatmul.msk.f32.vlgmr.msra.gmra.mxu3 %vm398_vm1, %v6314_v40 }
 0xe95   :  { %2600 = vmatpush.msra.mxu3 %v6465_v47 }
 0xe97   :  { %2601 = vmatpush.msra.mxu3 %v6468_v26 }
 0xe99   :  { %2602 = vmatpush.msra.mxu3 %v6471_v0 }
 0xe9b   :  { %2603 = vmatpush.msra.mxu3 %v6474_v22 }
 0xf0f   :  { %v2287_v3 = vpop.f32.mrf.mxu3 }
 0xf10   :  { %v2288_v53 = vadd.f32 %v6234_v60, %v2287_v3  ;;  %v6496_v3 = vld [vmem:[#allocation23 + $0x30] sm:$0xff] }
 0xf11   :  { %7312 = vst [vmem:[#allocation78_spill] sm:$0xff] %v6496_v3 }
 0xf12   :  { %v2290_v8 = vmax.f32 %v2288_v53, 0.0  ;;  %v6499_v53 = vld [vmem:[#allocation23 + $0x8] sm:$0xff] }
 0xf13   :  { %7313 = vst [vmem:[#allocation79_spill] sm:$0xff] %v6499_v53 }
 0xf14   :  { %4490 = vmatmul.msk.f32.vlgmr.msrb.gmra.mxu0 %vm398_vm1, %v2290_v8  ;;  %4491 = vmatmul.msk.f32.vlgmr.msrb.gmra.mxu1 %vm398_vm1, %v2290_v8 }
 0xf15   :  { %4492 = vmatmul.msk.f32.vlgmr.msra.gmra.mxu2 %vm398_vm1, %v2290_v8  ;;  %2560 = vmatpush.msrb.mxu1 %v6481_v49  ;;  %v6502_v8 = vld [vmem:[#allocation21 + $0x48] sm:$0xff] }
 0xf16   :  { %2540 = vmatpush.msrb.mxu0 %v6484_v50  ;;  %2580 = vmatpush.msra.mxu2 %v6487_v54  ;;  %7314 = vst [vmem:[#allocation87_spill] sm:$0xff] %v6502_v8  ;;  %v6505_v54 = vld [vmem:[#allocation23 + $0x28] sm:$0xff] }
 0xf17   :  { %2561 = vmatpush.msrb.mxu1 %v6490_v25  ;;  %7315 = vst [vmem:[#allocation80_spill] sm:$0xff] %v6505_v54  ;;  %v6508_v25 = vld [vmem:[#allocation23] sm:$0xff] }
 0xf18   :  { %2541 = vmatpush.msrb.mxu0 %v6493_v36  ;;  %2581 = vmatpush.msra.mxu2 %v6496_v3  ;;  %7316 = vst [vmem:[#allocation82_spill] sm:$0xff] %v6508_v25  ;;  %v6515_v3 = vld [vmem:[#allocation21 + $0x40] sm:$0xff] }
 0xf19   :  { %2562 = vmatpush.msrb.mxu1 %v6499_v53  ;;  %7317 = vst [vmem:[#allocation88_spill] sm:$0xff] %v6515_v3  ;;  %v6518_v53 = vld [vmem:[#allocation23 + $0x20] sm:$0xff] }
 0xf1a   :  { %2542 = vmatpush.msrb.mxu0 %v6502_v8  ;;  %2582 = vmatpush.msra.mxu2 %v6505_v54  ;;  %7318 = vst [vmem:[#allocation83_spill] sm:$0xff] %v6518_v53 }
 0xf1b   :  { %2563 = vmatpush.msrb.mxu1 %v6508_v25 }
 0xf1c   :  { %4494 = vmatmul.msk.f32.vlgmr.msra.gmra.mxu0 %vm398_vm1, %v6314_v40  ;;  %4495 = vmatmul.msk.f32.vlgmr.msra.gmra.mxu1 %vm398_vm1, %v6314_v40  ;;  %v2383_v40 = vpop.f32.mrf.mxu3 }
 0xf1d   :  { %2543 = vmatpush.msrb.mxu0 %v6515_v3  ;;  %2583 = vmatpush.msra.mxu2 %v6518_v53 }
 0xf1e   :  { %2696 = vmatpush.msra.mxu1 %v6260_v21 }
 0xf1f   :  { %2671 = vmatpush.msra.mxu0 %v6257_v37 }
 0xf20   :  { %2697 = vmatpush.msra.mxu1 %v6267_v43 }
 0xf21   :  { %2672 = vmatpush.msra.mxu0 %v6264_v11 }
 0xf22   :  { %2698 = vmatpush.msra.mxu1 %v6274_v16 }
 0xf23   :  { %2673 = vmatpush.msra.mxu0 %v6271_v45  ;;  %v2384_v45 = vadd.f32 %v6299_v17, %v2383_v40 }
 0xf24   :  { %4501 = vmatmul.msk.f32.vlgmr.msrb.gmra.mxu1 %vm398_vm1, %v6395_v1 }
 0xf25   :  { %2674 = vmatpush.msra.mxu0 %v6280_v41  ;;  %2699 = vmatpush.msra.mxu1 %v6283_v24  ;;  %v2427_v11 = vrot.slane %v2384_v45, 2 }
 0xf27   :  { %2798 = vmatpush.msrb.mxu1 %v6286_v51 }
 0xf29   :  { %2799 = vmatpush.msrb.mxu1 %v6289_v34 }
 0xf2b   :  { %2800 = vmatpush.msrb.mxu1 %v6292_v28 }
 0xf2d   :  { %2801 = vmatpush.msrb.mxu1 %v6295_v31 }
 0xf91   :  { %v2311_v43 = vpop.f32.mrf.mxu0  ;;  %v2335_v37 = vpop.f32.mrf.mxu1 }
 0xf92   :  { %v2315_v16 = vrot.slane %v2311_v43, 2  ;;  %v2339_v24 = vrot.slane %v2335_v37, 2 }
 0xf94   :  { %v2317_v21 = vadd.f32 %v2315_v16, %v7292_v57  ;;  %v2341_v28 = vadd.f32 %v2339_v24, %v7294_v19 }
 0xf96   :  { %v2429_v41 = vadd.f32 %v2427_v11, %v2317_v21 }
 0xf98   :  { %v4496_v53 = vmul.f32 -1.442695, %v2429_v41  ;;  %v2359_v41 = vpop.f32.mrf.mxu2 }
 0xf99   :  { %v2403_v3 = vpop.f32.mrf.mxu0  ;;  %v2423_v37 = vpop.f32.mrf.mxu1 }
 0xf9a   :  { %4726 = vpow2.f32 %v4496_v53  ;;  %v2404_v34 = vadd.f32 %v6304_v9, %v2403_v3  ;;  %v6540_v3 = vld [vmem:[%s7192_s30 + $0x2] ss:$0 sm:$0xff] }
 0xf9b   :  { %7319 = vst [vmem:[#allocation85_spill] sm:$0xff] %v6540_v3  ;;  %v2424_v24 = vadd.f32 %v6540_v3, %v2423_v37 }
 0xf9c   :  { %v2450_v51 = vrot.slane %v2404_v34, 2 }
 0xf9e   :  { %v2452_v31 = vadd.f32 %v2450_v51, %v2341_v28  ;;  %v2363_v28 = vrot.slane %v2359_v41, 2 }
 0xfa0   :  { %v4727_v25 = vpop.eup %4726  ;;  %v4497_v40 = vmul.f32 -1.442695, %v2452_v31  ;;  %v2365_v9 = vadd.f32 %v2363_v28, %v6007_v63 }
 0xfa1   :  { %v2433_v17 = vadd.f32 1.0, %v4727_v25 }
 0xfa2   :  { %4728 = vpow2.f32 %v4497_v40 }
 0xfa3   :  { %4730 = vrcp.f32 %v2433_v17  ;;  %v2445_v57 = vand.u32 2147483648, %v2433_v17  ;;  %v2443_v51 = vand.u32 2147483647, %v2433_v17  ;;  %vm2439_vm9 = vweird.f32 %v2433_v17 }
 0xfa5   :  { %v2446_v25 = vor.u32 1.1754944e-38, %v2445_v57  ;;  %vm2444_vm11 = vcmp.eq.f32.partialorder %v2443_v51, 8.507059e+37 }
 0xfa8   :  { %v4729_v43 = vpop.eup %4728 }
 0xfa9   :  { %v4731_v45 = vpop.eup %4730  ;;  %v2456_v16 = vadd.f32 1.0, %v4729_v43  ;;  %v2473_v43 = vrot.slane %v2424_v24, 2  ;;  %v2480_v24 = vrot.slane %v6311_v20, 6  ;;  %v7321_v20 = vld [vmem:[#allocation63_spill] sm:$0xff] }
 0xfaa   :  { %v2435_v21 = vmul.f32 %v4731_v45, %v2433_v17  ;;  %vm2440_vm8 = vweird.f32 %v4731_v45 }
 0xfab   :  { %4732 = vrcp.f32 %v2456_v16  ;;  %vm2441_vm10 = vmor %vm2439_vm9, %vm2440_vm8  ;;  %v2468_v36 = vand.u32 2147483648, %v2456_v16  ;;  %vm2462_vm13 = vweird.f32 %v2456_v16 }
 0xfac   :  { %v2436_v11 = vsub.f32 1.0, %v2435_v21 }
 0xfad   :  { %v2469_v17 = vor.u32 1.1754944e-38, %v2468_v36  ;;  %v7323_v36 = vld [vmem:[#allocation74_spill] sm:$0xff] }
 0xfae   :  { %v2437_v34 = vmul.f32 %v4731_v45, %v2436_v11  ;;  %v2466_v11 = vand.u32 2147483647, %v2456_v16 }
 0xfb0   :  { %v2438_v31 = vadd.f32 %v4731_v45, %v2437_v34  ;;  %vm2467_vm15 = vcmp.eq.f32.partialorder %v2466_v11, 8.507059e+37 }
 0xfb1   :  { %v4733_v19 = vpop.eup %4732 }
 0xfb2   :  { %v2458_v53 = vmul.f32 %v4733_v19, %v2456_v16  ;;  %v2442_v40 = vsel %vm2441_vm10, %v4731_v45, %v2438_v31  ;;  %vm2463_vm12 = vweird.f32 %v4733_v19  ;;  %v2565_v16 = vpop.f32.mrf.mxu1 }
 0xfb3   :  { %v2447_v21 = vsel %vm2444_vm11, %v2446_v25, %v2442_v40  ;;  %vm2464_vm14 = vmor %vm2462_vm13, %vm2463_vm12  ;;  %v6580_v40 = vld [vmem:[%s7220_s20] ss:$0 sm:$0xff] }
 0xfb4   :  { %v2459_v54 = vsub.f32 1.0, %v2458_v53  ;;  %v2475_v8 = vmul.f32 %v2473_v43, %v2447_v21  ;;  %7326 = vst [vmem:[#allocation73_spill] sm:$0xff] %v6580_v40 }
 0xfb6   :  { %v2460_v37 = vmul.f32 %v4733_v19, %v2459_v54  ;;  %v2476_v3 = vadd.f32 %v2475_v8, %v2365_v9  ;;  %v7320_v9 = vld [vmem:[#allocation62_spill] sm:$0xff]  ;;  %v7322_v54 = vld [vmem:[#allocation72_spill] sm:$0xff] }
 0xfb7   :  { %v7324_v8 = vld [vmem:[#allocation64_spill] sm:$0xff] }
 0xfb8   :  { %v2461_v41 = vadd.f32 %v4733_v19, %v2460_v37  ;;  %4734 = vtanh.f32 %v2476_v3 }
 0xfba   :  { %v2465_v57 = vsel %vm2464_vm14, %v4733_v19, %v2461_v41  ;;  %v6576_v19 = vld [vmem:[%s7219_s2] ss:$0 sm:$0xff] }
 0xfbb   :  { %v2470_v45 = vsel %vm2467_vm15, %v2469_v17, %v2465_v57  ;;  %7325 = vst [vmem:[#allocation89_spill] sm:$0xff] %v6576_v19  ;;  %v2566_v53 = vadd.f32 %v6576_v19, %v2565_v16  ;;  %v6584_v17 = vld [vmem:[%s7220_s20 + $0x1] ss:$0 sm:$0xff] }
 0xfbc   :  { %v2478_v34 = vsub.f32 1.0, %v2470_v45  ;;  %v2482_v28 = vmul.f32 %v2480_v24, %v2470_v45  ;;  %7327 = vst [vmem:[#allocation75_spill] sm:$0xff] %v6584_v17  ;;  %v6588_v45 = vld [vmem:[%s7219_s2 + $0x1] ss:$0 sm:$0xff] }
 0xfbd   :  { %7328 = vst [vmem:[#allocation92_spill] sm:$0xff] %v6588_v45 }
 0xfbe   :  { %v4735_v51 = vpop.eup %4734 }
 0xfbf   :  { %v2479_v63 = vmul.f32 %v4735_v51, %v2478_v34 }
 0xfc1   :  { %v2483_v31 = vadd.f32 %v2482_v28, %v2479_v63 }
 0xfc3   :  { %v6545_v25 = vrot.slane %v2483_v31, 6 }
 0xfc5   :  { %4498 = vmatmul.msk.f32.vlgmr.msrb.gmra.mxu2 %vm398_vm1, %v6545_v25  ;;  %4499 = vmatmul.msk.f32.vlgmr.msrb.gmra.mxu3 %vm398_vm1, %v6545_v25 }
 0xfc6   :  { %4500 = vmatmul.msk.f32.vlgmr.msrb.gmra.mxu0 %vm398_vm1, %v6545_v25  ;;  %2740 = vmatpush.msrb.mxu3 %v6323_v10 }
 0xfc7   :  { %2720 = vmatpush.msrb.mxu2 %v6327_v5  ;;  %2776 = vmatpush.msrb.mxu0 %v6330_v23 }
 0xfc8   :  { %2741 = vmatpush.msrb.mxu3 %v6334_v61 }
 0xfc9   :  { %2721 = vmatpush.msrb.mxu2 %v6338_v62  ;;  %2777 = vmatpush.msrb.mxu0 %v6341_v14 }
 0xfca   :  { %2742 = vmatpush.msrb.mxu3 %v6345_v35 }
 0xfcb   :  { %2722 = vmatpush.msrb.mxu2 %v6349_v13 }
 0xfcc   :  { %2743 = vmatpush.msrb.mxu3 %v6353_v33 }
 0xfcd   :  { %4502 = vmatmul.msk.f32.vlgmr.msra.gmra.mxu2 %vm398_vm1, %v6395_v1  ;;  %4503 = vmatmul.msk.f32.vlgmr.msra.gmra.mxu3 %vm398_vm1, %v6395_v1 }
 0xfce   :  { %2723 = vmatpush.msrb.mxu2 %v6361_v52  ;;  %2840 = vmatpush.msra.mxu3 %v6364_v38 }
 0xfd0   :  { %2819 = vmatpush.msra.mxu2 %v6367_v42  ;;  %2841 = vmatpush.msra.mxu3 %v6370_v12 }
 0xfd2   :  { %2820 = vmatpush.msra.mxu2 %v7320_v9  ;;  %2842 = vmatpush.msra.mxu3 %v7321_v20 }
 0xfd4   :  { %2821 = vmatpush.msra.mxu2 %v7322_v54  ;;  %2843 = vmatpush.msra.mxu3 %v7323_v36 }
 0xfd6   :  { %2822 = vmatpush.msra.mxu2 %v7324_v8 }
0x1048   :  { %v2505_v3 = vpop.f32.mrf.mxu2  ;;  %v2525_v11 = vpop.f32.mrf.mxu3 }
0x1049   :  { %v2506_v43 = vadd.f32 %v6580_v40, %v2505_v3  ;;  %v2526_v57 = vadd.f32 %v6584_v17, %v2525_v11  ;;  %v6596_v40 = vld [vmem:[%s7220_s20 + $0x2] ss:$0 sm:$0xff] }
0x104b   :  { %v2608_v21 = vadd.f32 %v2566_v53, %v2506_v43 }
0x104d   :  { %v4504_v37 = vmul.f32 -1.442695, %v2608_v21 }
0x104f   :  { %4736 = vpow2.f32 %v4504_v37 }
0x1050   :  { %v2585_v41 = vpop.f32.mrf.mxu2  ;;  %v2605_v17 = vpop.f32.mrf.mxu3 }
0x1051   :  { %v2586_v34 = vadd.f32 %v6588_v45, %v2585_v41 }
0x1053   :  { %v2628_v24 = vadd.f32 %v2586_v34, %v2526_v57  ;;  %v2545_v34 = vpop.f32.mrf.mxu0 }
0x1055   :  { %v4737_v51 = vpop.eup %4736  ;;  %v4505_v63 = vmul.f32 -1.442695, %v2628_v24 }
0x1056   :  { %v2612_v28 = vadd.f32 1.0, %v4737_v51 }
0x1057   :  { %4738 = vpow2.f32 %v4505_v63  ;;  %v6592_v63 = vld [vmem:[%s7219_s2 + $0x2] ss:$0 sm:$0xff] }
0x1058   :  { %4740 = vrcp.f32 %v2612_v28  ;;  %v2624_v21 = vand.u32 2147483648, %v2612_v28  ;;  %v2622_v11 = vand.u32 2147483647, %v2612_v28  ;;  %vm2618_vm3 = vweird.f32 %v2612_v28 }
0x105a   :  { %v2625_v24 = vor.u32 1.1754944e-38, %v2624_v21  ;;  %vm2623_vm5 = vcmp.eq.f32.partialorder %v2622_v11, 8.507059e+37 }
0x105d   :  { %v4739_v31 = vpop.eup %4738 }
0x105e   :  { %v4741_v16 = vpop.eup %4740  ;;  %v2632_v3 = vadd.f32 1.0, %v4739_v31  ;;  %v2606_v31 = vadd.f32 %v6592_v63, %v2605_v17 }
0x105f   :  { %v2614_v53 = vmul.f32 %v4741_v16, %v2612_v28  ;;  %vm2619_vm2 = vweird.f32 %v4741_v16 }
0x1060   :  { %4742 = vrcp.f32 %v2632_v3  ;;  %vm2620_vm4 = vmor %vm2618_vm3, %vm2619_vm2  ;;  %v2642_v36 = vand.u32 2147483647, %v2632_v3  ;;  %vm2638_vm7 = vweird.f32 %v2632_v3 }
0x1061   :  { %v2615_v43 = vsub.f32 1.0, %v2614_v53 }
0x1062   :  { %vm2643_vm9 = vcmp.eq.f32.partialorder %v2642_v36, 8.507059e+37 }
0x1063   :  { %v2616_v37 = vmul.f32 %v4741_v16, %v2615_v43  ;;  %v2546_v43 = vadd.f32 %v6596_v40, %v2545_v34 }
0x1065   :  { %v2617_v41 = vadd.f32 %v4741_v16, %v2616_v37  ;;  %v2644_v37 = vand.u32 2147483648, %v2632_v3 }
0x1066   :  { %v4743_v57 = vpop.eup %4742 }
0x1067   :  { %v2634_v51 = vmul.f32 %v4743_v57, %v2632_v3  ;;  %v2621_v45 = vsel %vm2620_vm4, %v4741_v16, %v2617_v41  ;;  %vm2639_vm6 = vweird.f32 %v4743_v57  ;;  %v2645_v20 = vor.u32 1.1754944e-38, %v2644_v37 }
0x1068   :  { %v2626_v53 = vsel %vm2623_vm5, %v2625_v24, %v2621_v45  ;;  %vm2640_vm8 = vmor %vm2638_vm7, %vm2639_vm6 }
0x1069   :  { %v2635_v19 = vsub.f32 1.0, %v2634_v51  ;;  %v2648_v8 = vmul.f32 %v2626_v53, %v2606_v31  ;;  %v7331_v51 = vld [vmem:[#allocation65_spill] sm:$0xff]  ;;  %v7332_v31 = vld [vmem:[#allocation68_spill] sm:$0xff]  ;;  %v7333_v53 = vld [vmem:[#allocation67_spill] sm:$0xff] }
0x106b   :  { %v2636_v28 = vmul.f32 %v4743_v57, %v2635_v19  ;;  %v2649_v54 = vadd.f32 %v2648_v8, %v2546_v43 }
0x106d   :  { %v2637_v21 = vadd.f32 %v4743_v57, %v2636_v28  ;;  %4744 = vtanh.f32 %v2649_v54  ;;  %v4901_v54 = vld [vmem:[#allocation9] ss:$0 sm:$0xff] }
0x106f   :  { %v2641_v17 = vsel %vm2640_vm8, %v4743_v57, %v2637_v21  ;;  %v7330_v57 = vld [vmem:[#allocation66_spill] sm:$0xff] }
0x1070   :  { %v2646_v16 = vsel %vm2643_vm9, %v2645_v20, %v2641_v17  ;;  %v7329_v20 = vld [vmem:[#allocation60_spill] sm:$0xff] }
0x1071   :  { %v2651_v45 = vsub.f32 1.0, %v2646_v16  ;;  %v2653_v34 = vmul.f32 %v2646_v16, %v6395_v1  ;;  %v6609_v36 = vadd.f32 %v4901_v54, %v7329_v20  ;;  %v2655_v20 = vld [vmem:[#allocation3 + $0x8] sm:$0x3] }
0x1073   :  { %v4745_v11 = vpop.eup %4744 }
0x1074   :  { %v2652_v41 = vmul.f32 %v4745_v11, %v2651_v45 }
0x1076   :  { %v6600_v24 = vadd.f32 %v2653_v34, %v2652_v41 }
0x1078   :  { %4506 = vmatmul.msk.f32.vlgmr.msra.gmra.mxu0 %vm398_vm1, %v6600_v24 }
0x1079   :  { %2861 = vmatpush.msra.mxu0 %v6188_v46 }
0x107b   :  { %2862 = vmatpush.msra.mxu0 %v6191_v30 }
0x107d   :  { %2863 = vmatpush.msra.mxu0 %v6401_v6 }
0x107f   :  { %2864 = vmatpush.msra.mxu0 %v6404_v2 }
0x10f5   :  { %v2676_v8 = vpop.f32.mrf.mxu0 }
0x10f6   :  { %v2679_v1 = vadd.f32 %v2676_v8, %v6609_v36 }
0x10f8   :  { %v2680_v19 = vmax.f32 %v2679_v1, 0.0 }
0x10fa   :  { %4507 = vmatmul.msk.f32.vlgmr.msra.gmra.mxu1 %vm398_vm1, %v2680_v19 }
0x10fb   :  { %2881 = vmatpush.msra.mxu1 %v6409_v58 }
0x10fd   :  { %2882 = vmatpush.msra.mxu1 %v6412_v59 }
0x10ff   :  { %2883 = vmatpush.msra.mxu1 %v6415_v27 }
0x1101   :  { %2884 = vmatpush.msra.mxu1 %v6418_v4 }
0x1177   :  { %v2701_v46 = vpop.f32.mrf.mxu1 }
0x1178   :  { %v2702_v30 = vadd.f32 %v6202_v32, %v2701_v46  ;;  %v7334_v32 = vld [vmem:[#allocation94_spill] sm:$0xff] }
0x117a   :  { %v2704_v3 = vmax.f32 %v2702_v30, 0.0 }
0x117c   :  { %4508 = vmatmul.msk.f32.vlgmr.msrb.gmra.mxu2 %vm398_vm1, %v2704_v3  ;;  %4509 = vmatmul.msk.f32.vlgmr.msrb.gmra.mxu3 %vm398_vm1, %v2704_v3  ;;  %v7335_v3 = vld [vmem:[#allocation76_spill] sm:$0xff] }
0x117d   :  { %2901 = vmatpush.msrb.mxu2 %v6424_v39  ;;  %2972 = vmatpush.msrb.mxu3 %v6427_v18 }
0x117f   :  { %2902 = vmatpush.msrb.mxu2 %v6430_v7  ;;  %2973 = vmatpush.msrb.mxu3 %v7330_v57 }
0x1181   :  { %2903 = vmatpush.msrb.mxu2 %v7331_v51  ;;  %2974 = vmatpush.msrb.mxu3 %v7332_v31 }
0x1183   :  { %2904 = vmatpush.msrb.mxu2 %v7333_v53  ;;  %2975 = vmatpush.msrb.mxu3 %v7334_v32 }
0x11ff   :  { %v2745_v43 = vpop.f32.mrf.mxu3  ;;  %v2725_v54 = vpop.f32.mrf.mxu2 }
0x1200   :  { %v2746_v37 = vadd.f32 %v6216_v56, %v2745_v43  ;;  %v2726_v1 = vadd.f32 %v6219_v29, %v2725_v54  ;;  %v7336_v43 = vld [vmem:[#allocation77_spill] sm:$0xff]  ;;  %v7347_v54 = vld [vmem:[#allocation90_spill] sm:$0xff] }
0x1202   :  { %v2749_v28 = vand.u32 2147483647, %v2746_v37  ;;  %v2748_v41 = vmax.f32 %v2746_v37, 0.0  ;;  %v7337_v37 = vld [vmem:[#allocation86_spill] sm:$0xff] }
0x1204   :  { %v2750_v21 = vsub.f32 0.0, %v2749_v28  ;;  %v7338_v28 = vld [vmem:[#allocation78_spill] sm:$0xff] }
0x1206   :  { %v2751_v17 = vmul.f32 1.442695, %v2750_v21  ;;  %v7340_v21 = vld [vmem:[#allocation87_spill] sm:$0xff] }
0x1208   :  { %4746 = vpow2.f32 %v2751_v17  ;;  %v7341_v17 = vld [vmem:[#allocation80_spill] sm:$0xff] }
0x120e   :  { %v4747_v16 = vpop.eup %4746 }
0x120f   :  { %v2753_v45 = vadd.f32 1.0, %v4747_v16  ;;  %v7342_v16 = vld [vmem:[#allocation82_spill] sm:$0xff] }
0x1211   :  { %4748 = vlog2.f32 %v2753_v45  ;;  %v7343_v45 = vld [vmem:[#allocation88_spill] sm:$0xff] }
0x1217   :  { %v4749_v11 = vpop.eup %4748 }
0x1218   :  { %v2755_v34 = vmul.f32 0.6931472, %v4749_v11  ;;  %v7344_v11 = vld [vmem:[#allocation83_spill] sm:$0xff] }
0x121a   :  { %v2756_v8 = vadd.f32 %v2755_v34, %v2748_v41  ;;  %v7345_v41 = vld [vmem:[#allocation81_spill] sm:$0xff]  ;;  %v7346_v34 = vld [vmem:[#allocation84_spill] sm:$0xff] }
0x121c   :  { %v2757_v19 = vmul.f32 %v2756_v8, %v2655_v20  ;;  %v7348_v20 = vld [vmem:[#allocation91_spill] sm:$0xff]  ;;  %v7349_v8 = vld [vmem:[#allocation93_spill] sm:$0xff] }
0x121e   :  { %v2758_v46 = vadd.f32 %v2757_v19, %v2726_v1  ;;  %v7350_v1 = vld [vmem:[#allocation70_spill] sm:$0xff]  ;;  %v7351_v19 = vld [vmem:[#allocation52_spill] sm:$0xff] }
0x1220   :  { %4510 = vmatmul.msk.f32.vlgmr.msrb.gmra.mxu0 %vm358_vm0, %v2758_v46  ;;  %v7352_v46 = vld [vmem:[#allocation56_spill] sm:$0xff] }
0x1221   :  { %2992 = vmatpush.msrb.mxu0 %v6451_v48 }
0x1223   :  { %2993 = vmatpush.msrb.mxu0 %v6454_v44 }
0x1225   :  { %2994 = vmatpush.msrb.mxu0 %v6457_v55 }
0x1227   :  { %2995 = vmatpush.msrb.mxu0 %v6460_v15 }
0x1228   :  { %4514 = vmatmul.msk.f32.vlgmr.msra.gmra.mxu0 %vm398_vm1, %v6545_v25 }
0x1229   :  { %3072 = vmatpush.msra.mxu0 %v6465_v47 }
0x122b   :  { %3073 = vmatpush.msra.mxu0 %v6468_v26 }
0x122d   :  { %3074 = vmatpush.msra.mxu0 %v6471_v0 }
0x122f   :  { %3075 = vmatpush.msra.mxu0 %v6474_v22 }
0x129d   :  { %v2779_v56 = vpop.f32.mrf.mxu0 }
0x129e   :  { %v2780_v29 = vadd.f32 %v6234_v60, %v2779_v56  ;;  %v7339_v60 = vld [vmem:[#allocation79_spill] sm:$0xff]  ;;  %v7353_v56 = vld [vmem:[#allocation53_spill] sm:$0xff] }
0x12a0   :  { %v2782_v30 = vmax.f32 %v2780_v29, 0.0  ;;  %v7354_v29 = vld [vmem:[#allocation57_spill] sm:$0xff] }
0x12a2   :  { %4511 = vmatmul.msk.f32.vlgmr.msrb.gmra.mxu1 %vm398_vm1, %v2782_v30  ;;  %4512 = vmatmul.msk.f32.vlgmr.msra.gmra.mxu2 %vm398_vm1, %v2782_v30 }
0x12a3   :  { %4513 = vmatmul.msk.f32.vlgmr.msra.gmra.mxu3 %vm398_vm1, %v2782_v30  ;;  %3032 = vmatpush.msra.mxu2 %v6481_v49  ;;  %v7355_v30 = vld [vmem:[#allocation54_spill] sm:$0xff] }
0x12a4   :  { %3012 = vmatpush.msrb.mxu1 %v6484_v50  ;;  %3052 = vmatpush.msra.mxu3 %v7335_v3 }
0x12a5   :  { %3033 = vmatpush.msra.mxu2 %v7336_v43 }
0x12a6   :  { %3013 = vmatpush.msrb.mxu1 %v7337_v37  ;;  %3053 = vmatpush.msra.mxu3 %v7338_v28 }
0x12a7   :  { %3034 = vmatpush.msra.mxu2 %v7339_v60  ;;  %v7362_v60 = vld [vmem:[#allocation59_spill] sm:$0xff] }
0x12a8   :  { %3014 = vmatpush.msrb.mxu1 %v7340_v21  ;;  %3054 = vmatpush.msra.mxu3 %v7341_v17  ;;  %v7360_v21 = vld [vmem:[#allocation69_spill] sm:$0xff] }
0x12a9   :  { %3035 = vmatpush.msra.mxu2 %v7342_v16 }
0x12aa   :  { %4515 = vmatmul.msk.f32.vlgmr.msra.gmra.mxu1 %vm398_vm1, %v6545_v25  ;;  %4516 = vmatmul.msk.f32.vlgmr.msrb.gmra.mxu2 %vm398_vm1, %v6545_v25 }
0x12ab   :  { %3015 = vmatpush.msrb.mxu1 %v7343_v45  ;;  %3055 = vmatpush.msra.mxu3 %v7344_v11  ;;  %v7359_v11 = vld [vmem:[#allocation55_spill] sm:$0xff] }
0x12ac   :  { %3172 = vmatpush.msrb.mxu2 %v7346_v34  ;;  %v2866_v34 = vpop.f32.mrf.mxu0 }
0x12ad   :  { %3143 = vmatpush.msra.mxu1 %v7345_v41  ;;  %v7356_v41 = vld [vmem:[#allocation58_spill] sm:$0xff]  ;;  %v2867_v45 = vadd.f32 %v7359_v11, %v2866_v34 }
0x12ae   :  { %3173 = vmatpush.msrb.mxu2 %v7348_v20  ;;  %v7357_v20 = vld [vmem:[#allocation61_spill] sm:$0xff] }
0x12af   :  { %3144 = vmatpush.msra.mxu1 %v7347_v54  ;;  %v4902_v54 = vld [vmem:[%s7191_s28] ss:$0 sm:$0xff] }
0x12b0   :  { %3174 = vmatpush.msrb.mxu2 %v7350_v1 }
0x12b1   :  { %3145 = vmatpush.msra.mxu1 %v7349_v8  ;;  %v6677_v8 = vadd.f32 %v4902_v54, %v7357_v20 }
0x12b2   :  { %4522 = vmatmul.msk.f32.vlgmr.msra.gmra.mxu2 %vm398_vm1, %v6600_v24 }
0x12b3   :  { %3146 = vmatpush.msra.mxu1 %v7351_v19  ;;  %3175 = vmatpush.msrb.mxu2 %v7352_v46  ;;  %7358 = vst [vmem:[#allocation62_spill] sm:$0xff] %v6677_v8 }
0x12b5   :  { %3274 = vmatpush.msra.mxu2 %v7353_v56  ;;  %v4903_v56 = vld [vmem:[%s7191_s28 + $0x1] ss:$0 sm:$0xff] }
0x12b7   :  { %3275 = vmatpush.msra.mxu2 %v7354_v29  ;;  %v6683_v29 = vadd.f32 %v4903_v56, %v7360_v21 }
0x12b9   :  { %3276 = vmatpush.msra.mxu2 %v7355_v30  ;;  %7361 = vst [vmem:[#allocation60_spill] sm:$0xff] %v6683_v29 }
0x12bb   :  { %3277 = vmatpush.msra.mxu2 %v7356_v41 }
0x131f   :  { %v2803_v1 = vpop.f32.mrf.mxu1 }
0x1320   :  { %v2806_v19 = vadd.f32 %v2803_v1, %v6677_v8 }
0x1322   :  { %v2909_v16 = vadd.f32 %v2867_v45, %v2806_v19 }
0x1324   :  { %v4517_v46 = vmul.f32 -1.442695, %v2909_v16 }
0x1325   :  { %v2824_v17 = vpop.f32.mrf.mxu2 }
0x1326   :  { %4750 = vpow2.f32 %v4517_v46  ;;  %v2827_v41 = vadd.f32 %v2824_v17, %v6683_v29 }
0x1327   :  { %v2886_v30 = vpop.f32.mrf.mxu1 }
0x1328   :  { %v2887_v28 = vadd.f32 %v7362_v60, %v2886_v30  ;;  %v4904_v60 = vld [vmem:[%s7191_s28 + $0x2] ss:$0 sm:$0xff]  ;;  %v7363_v30 = vld [vmem:[#allocation71_spill] sm:$0xff] }
0x132a   :  { %v2929_v54 = vadd.f32 %v2887_v28, %v2827_v41  ;;  %v6689_v41 = vadd.f32 %v4904_v60, %v7363_v30 }
0x132c   :  { %v4751_v20 = vpop.eup %4750  ;;  %v4518_v37 = vmul.f32 -1.442695, %v2929_v54 }
0x132d   :  { %v2913_v43 = vadd.f32 1.0, %v4751_v20  ;;  %v2906_v17 = vpop.f32.mrf.mxu2 }
0x132e   :  { %4752 = vpow2.f32 %v4518_v37  ;;  %v2845_v37 = vpop.f32.mrf.mxu3 }
0x132f   :  { %4754 = vrcp.f32 %v2913_v43  ;;  %v2925_v1 = vand.u32 2147483648, %v2913_v43  ;;  %v2923_v46 = vand.u32 2147483647, %v2913_v43  ;;  %vm2919_vm11 = vweird.f32 %v2913_v43 }
0x1331   :  { %v2926_v54 = vor.u32 1.1754944e-38, %v2925_v1  ;;  %vm2924_vm13 = vcmp.eq.f32.partialorder %v2923_v46, 8.507059e+37 }
0x1334   :  { %v4753_v45 = vpop.eup %4752 }
0x1335   :  { %v4755_v16 = vpop.eup %4754  ;;  %v2933_v11 = vadd.f32 1.0, %v4753_v45  ;;  %v7364_v45 = vld [vmem:[#allocation85_spill] sm:$0xff] }
0x1336   :  { %v2915_v34 = vmul.f32 %v4755_v16, %v2913_v43  ;;  %vm2920_vm10 = vweird.f32 %v4755_v16  ;;  %v2907_v29 = vadd.f32 %v7364_v45, %v2906_v17 }
0x1337   :  { %4756 = vrcp.f32 %v2933_v11  ;;  %vm2921_vm12 = vmor %vm2919_vm11, %vm2920_vm10  ;;  %v2943_v49 = vand.u32 2147483647, %v2933_v11  ;;  %vm2939_vm15 = vweird.f32 %v2933_v11 }
0x1338   :  { %v2916_v21 = vsub.f32 1.0, %v2915_v34 }
0x1339   :  { %vm2944_vm3 = vcmp.eq.f32.partialorder %v2943_v49, 8.507059e+37  ;;  %v7371_v49 = vld [vmem:[#allocation75_spill] sm:$0xff] }
0x133a   :  { %v2917_v19 = vmul.f32 %v4755_v16, %v2916_v21  ;;  %v2848_v21 = vadd.f32 %v2845_v37, %v6689_v41 }
0x133c   :  { %v2918_v56 = vadd.f32 %v4755_v16, %v2917_v19  ;;  %v2945_v19 = vand.u32 2147483648, %v2933_v11 }
0x133d   :  { %v4757_v28 = vpop.eup %4756 }
0x133e   :  { %v2935_v20 = vmul.f32 %v4757_v28, %v2933_v11  ;;  %v2922_v8 = vsel %vm2921_vm12, %v4755_v16, %v2918_v56  ;;  %vm2940_vm14 = vweird.f32 %v4757_v28  ;;  %v2946_v1 = vor.u32 1.1754944e-38, %v2945_v19 }
0x133f   :  { %v2927_v34 = vsel %vm2924_vm13, %v2926_v54, %v2922_v8  ;;  %vm2941_vm2 = vmor %vm2939_vm15, %vm2940_vm14 }
0x1340   :  { %v2936_v3 = vsub.f32 1.0, %v2935_v20  ;;  %v2949_v50 = vmul.f32 %v2927_v34, %v2907_v29 }
0x1342   :  { %v2937_v43 = vmul.f32 %v4757_v28, %v2936_v3  ;;  %v2950_v22 = vadd.f32 %v2949_v50, %v2848_v21 }
0x1344   :  { %v2938_v60 = vadd.f32 %v4757_v28, %v2937_v43  ;;  %4758 = vtanh.f32 %v2950_v22 }
0x1346   :  { %v2942_v30 = vsel %vm2941_vm2, %v4757_v28, %v2938_v60 }
0x1347   :  { %v2947_v17 = vsel %vm2944_vm3, %v2946_v1, %v2942_v30 }
0x1348   :  { %v2952_v16 = vsub.f32 1.0, %v2947_v17  ;;  %v2955_v56 = vmul.f32 %v2947_v17, %v6545_v25  ;;  %v7372_v25 = vld [vmem:[#allocation92_spill] sm:$0xff] }
0x134a   :  { %v4759_v46 = vpop.eup %4758 }
0x134b   :  { %v2953_v8 = vmul.f32 %v4759_v46, %v2952_v16 }
0x134d   :  { %v6694_v37 = vadd.f32 %v2955_v56, %v2953_v8 }
0x134f   :  { %4519 = vmatmul.msk.f32.vlgmr.msrb.gmra.mxu3 %vm398_vm1, %v6694_v37  ;;  %4520 = vmatmul.msk.f32.vlgmr.msrb.gmra.mxu0 %vm398_vm1, %v6694_v37 }
0x1350   :  { %4521 = vmatmul.msk.f32.vlgmr.msrb.gmra.mxu1 %vm398_vm1, %v6694_v37  ;;  %3216 = vmatpush.msrb.mxu0 %v6323_v10  ;;  %v7365_v10 = vld [vmem:[#allocation63_spill] sm:$0xff] }
0x1351   :  { %3196 = vmatpush.msrb.mxu3 %v6327_v5  ;;  %3252 = vmatpush.msrb.mxu1 %v6330_v23  ;;  %v7366_v5 = vld [vmem:[#allocation72_spill] sm:$0xff]  ;;  %v7367_v23 = vld [vmem:[#allocation74_spill] sm:$0xff] }
0x1352   :  { %3217 = vmatpush.msrb.mxu0 %v6334_v61  ;;  %v7368_v61 = vld [vmem:[#allocation64_spill] sm:$0xff] }
0x1353   :  { %3197 = vmatpush.msrb.mxu3 %v6338_v62  ;;  %3253 = vmatpush.msrb.mxu1 %v6341_v14  ;;  %v3037_v62 = vpop.f32.mrf.mxu2 }
0x1354   :  { %3218 = vmatpush.msrb.mxu0 %v6345_v35  ;;  %v7369_v35 = vld [vmem:[#allocation89_spill] sm:$0xff] }
0x1355   :  { %3198 = vmatpush.msrb.mxu3 %v6349_v13  ;;  %v3038_v13 = vadd.f32 %v7369_v35, %v3037_v62 }
0x1356   :  { %3219 = vmatpush.msrb.mxu0 %v6353_v33  ;;  %v7370_v33 = vld [vmem:[#allocation73_spill] sm:$0xff] }
0x1357   :  { %4523 = vmatmul.msk.f32.vlgmr.msra.gmra.mxu3 %vm398_vm1, %v6600_v24  ;;  %4524 = vmatmul.msk.f32.vlgmr.msra.gmra.mxu0 %vm398_vm1, %v6600_v24 }
0x1358   :  { %3199 = vmatpush.msrb.mxu3 %v6361_v52  ;;  %3322 = vmatpush.msra.mxu0 %v6364_v38 }
0x135a   :  { %3298 = vmatpush.msra.mxu3 %v6367_v42  ;;  %3323 = vmatpush.msra.mxu0 %v6370_v12 }
0x135c   :  { %3299 = vmatpush.msra.mxu3 %v7320_v9  ;;  %3324 = vmatpush.msra.mxu0 %v7365_v10 }
0x135e   :  { %3300 = vmatpush.msra.mxu3 %v7366_v5  ;;  %3325 = vmatpush.msra.mxu0 %v7367_v23 }
0x1360   :  { %3301 = vmatpush.msra.mxu3 %v7368_v61 }
0x13cc   :  { %v2997_v22 = vpop.f32.mrf.mxu0 }
0x13cd   :  { %v2998_v50 = vadd.f32 %v7371_v49, %v2997_v22  ;;  %v3017_v46 = vpop.f32.mrf.mxu1 }
0x13ce   :  { %v3018_v61 = vadd.f32 %v6596_v40, %v3017_v46 }
0x13d2   :  { %v2977_v14 = vpop.f32.mrf.mxu3 }
0x13d3   :  { %v2978_v52 = vadd.f32 %v7370_v33, %v2977_v14 }
0x13d4   :  { %v3077_v30 = vpop.f32.mrf.mxu0 }
0x13d5   :  { %v3080_v38 = vadd.f32 %v3038_v13, %v2978_v52  ;;  %v3078_v56 = vadd.f32 %v6592_v63, %v3077_v30 }
0x13d7   :  { %v4525_v42 = vmul.f32 -1.442695, %v3080_v38 }
0x13d9   :  { %4760 = vpow2.f32 %v4525_v42 }
0x13da   :  { %v3057_v12 = vpop.f32.mrf.mxu3 }
0x13db   :  { %v3058_v9 = vadd.f32 %v7372_v25, %v3057_v12 }
0x13dd   :  { %v3100_v3 = vadd.f32 %v3058_v9, %v2998_v50 }
0x13df   :  { %v4761_v29 = vpop.eup %4760  ;;  %v4526_v11 = vmul.f32 -1.442695, %v3100_v3 }
0x13e0   :  { %v3084_v28 = vadd.f32 1.0, %v4761_v29 }
0x13e1   :  { %4762 = vpow2.f32 %v4526_v11 }
0x13e2   :  { %4764 = vrcp.f32 %v3084_v28  ;;  %v3096_v43 = vand.u32 2147483648, %v3084_v28  ;;  %v3094_v1 = vand.u32 2147483647, %v3084_v28  ;;  %vm3090_vm5 = vweird.f32 %v3084_v28 }
0x13e4   :  { %v3097_v8 = vor.u32 1.1754944e-38, %v3096_v43  ;;  %vm3095_vm7 = vcmp.eq.f32.partialorder %v3094_v1, 8.507059e+37  ;;  %v6749_v1 = vld [vmem:[#allocation12] ss:$0 sm:$0xff] }
0x13e7   :  { %v4763_v54 = vpop.eup %4762 }
0x13e8   :  { %v4765_v20 = vpop.eup %4764  ;;  %v3104_v34 = vadd.f32 1.0, %v4763_v54 }
0x13e9   :  { %v3086_v21 = vmul.f32 %v4765_v20, %v3084_v28  ;;  %vm3091_vm4 = vweird.f32 %v4765_v20 }
0x13ea   :  { %4766 = vrcp.f32 %v3104_v34  ;;  %vm3092_vm6 = vmor %vm3090_vm5, %vm3091_vm4  ;;  %v3116_v13 = vand.u32 2147483648, %v3104_v34  ;;  %v3114_v42 = vand.u32 2147483647, %v3104_v34  ;;  %vm3110_vm9 = vweird.f32 %v3104_v34 }
0x13eb   :  { %v3087_v19 = vsub.f32 1.0, %v3086_v21 }
0x13ec   :  { %v3117_v12 = vor.u32 1.1754944e-38, %v3116_v13  ;;  %vm3115_vm11 = vcmp.eq.f32.partialorder %v3114_v42, 8.507059e+37  ;;  %v7381_v13 = vld [vmem:[#allocation87_spill] sm:$0xff]  ;;  %v7384_v42 = vld [vmem:[#allocation88_spill] sm:$0xff] }
0x13ed   :  { %v3088_v60 = vmul.f32 %v4765_v20, %v3087_v19 }
0x13ef   :  { %v3089_v17 = vadd.f32 %v4765_v20, %v3088_v60 }
0x13f0   :  { %v4767_v16 = vpop.eup %4766 }
0x13f1   :  { %v3093_v10 = vsel %vm3092_vm6, %v4765_v20, %v3089_v17  ;;  %v3106_v5 = vmul.f32 %v4767_v16, %v3104_v34  ;;  %vm3111_vm8 = vweird.f32 %v4767_v16  ;;  %v6735_v20 = vld [vmem:[#allocation20 + $0x18] sm:$0xff]  ;;  %v6738_v34 = vld [vmem:[#allocation20 + $0x10] sm:$0xff] }
0x13f2   :  { %v3098_v23 = vsel %vm3095_vm7, %v3097_v8, %v3093_v10  ;;  %vm3112_vm10 = vmor %vm3110_vm9, %vm3111_vm8 }
0x13f3   :  { %v3120_v62 = vmul.f32 %v3098_v23, %v3078_v56  ;;  %v3107_v14 = vsub.f32 1.0, %v3106_v5  ;;  %v7373_v5 = vld [vmem:[#allocation95_spill] sm:$0xff] }
0x13f5   :  { %v3121_v52 = vadd.f32 %v3120_v62, %v3018_v61  ;;  %v3108_v38 = vmul.f32 %v4767_v16, %v3107_v14  ;;  %v6781_v61 = vld [vmem:[%s7190_s1] ss:$0 sm:$0xff]  ;;  %v7379_v62 = vld [vmem:[#allocation78_spill] sm:$0xff]  ;;  %v7380_v14 = vld [vmem:[#allocation79_spill] sm:$0xff] }
0x13f7   :  { %4768 = vtanh.f32 %v3121_v52  ;;  %v3109_v22 = vadd.f32 %v4767_v16, %v3108_v38  ;;  %v7382_v52 = vld [vmem:[#allocation80_spill] sm:$0xff]  ;;  %v7383_v38 = vld [vmem:[#allocation82_spill] sm:$0xff] }
0x13f9   :  { %v3113_v50 = vsel %vm3112_vm10, %v4767_v16, %v3109_v22  ;;  %v7385_v22 = vld [vmem:[#allocation83_spill] sm:$0xff] }
0x13fa   :  { %v3118_v9 = vsel %vm3115_vm11, %v3117_v12, %v3113_v50  ;;  %v6804_v12 = vld [vmem:[%s7169_s26 + $0x18] sm:$0xff] }
0x13fb   :  { %v3123_v3 = vsub.f32 1.0, %v3118_v9  ;;  %v3125_v28 = vmul.f32 %v3118_v9, %v6600_v24  ;;  %v6807_v50 = vld [vmem:[#allocation11 + $0x18] sm:$0xff]  ;;  %v6811_v9 = vld [vmem:[%s7169_s26 + $0x10] sm:$0xff] }
0x13fd   :  { %v4769_v29 = vpop.eup %4768 }
0x13fe   :  { %v3124_v11 = vmul.f32 %v4769_v29, %v3123_v3  ;;  %v6814_v3 = vld [vmem:[#allocation11 + $0x10] sm:$0xff]  ;;  %v6818_v29 = vld [vmem:[%s7169_s26 + $0x8] sm:$0xff] }
0x1400   :  { %v6731_v54 = vadd.f32 %v3125_v28, %v3124_v11  ;;  %v6821_v11 = vld [vmem:[#allocation11 + $0x8] sm:$0xff]  ;;  %v6827_v28 = vld [vmem:[%s7169_s26] sm:$0xff] }
0x1402   :  { %4527 = vmatmul.msk.f32.vlgmr.msra.gmra.mxu1 %vm398_vm1, %v6731_v54 }
0x1403   :  { %3346 = vmatpush.msra.mxu1 %v6735_v20 }
0x1405   :  { %3347 = vmatpush.msra.mxu1 %v6738_v34 }
0x1407   :  { %3348 = vmatpush.msra.mxu1 %v6401_v6 }
0x1409   :  { %3349 = vmatpush.msra.mxu1 %v6404_v2 }
0x147f   :  { %v3148_v21 = vpop.f32.mrf.mxu1 }
0x1480   :  { %v3152_v19 = vrot.slane %v3148_v21, 6  ;;  %v6830_v21 = vld [vmem:[#allocation11] sm:$0xff] }
0x1482   :  { %v3154_v24 = vadd.f32 %v3152_v19, %v6609_v36  ;;  %v4919_v19 = vld [vmem:[#allocation18 + $0x18] sm:$0xff] }
0x1484   :  { %v3155_v43 = vmax.f32 %v3154_v24, 0.0  ;;  %v4920_v24 = vld [vmem:[#allocation18 + $0x10] sm:$0xff] }
0x1486   :  { %v3157_v60 = vrot.slane %v3155_v43, 2  ;;  %v4921_v43 = vld [vmem:[#allocation18 + $0x8] sm:$0xff] }
0x1488   :  { %4528 = vmatmul.msk.f32.vlgmr.msrb.gmra.mxu2 %vm398_vm1, %v3157_v60  ;;  %v4922_v60 = vld [vmem:[#allocation18] sm:$0xff] }
0x1489   :  { %3366 = vmatpush.msrb.mxu2 %v6409_v58 }
0x148b   :  { %3367 = vmatpush.msrb.mxu2 %v6412_v59  ;;  %v6763_v59 = vld [vmem:[%s7181_s19] ss:$0 sm:$0xff] }
0x148d   :  { %3368 = vmatpush.msrb.mxu2 %v6415_v27 }
0x148f   :  { %3369 = vmatpush.msrb.mxu2 %v6418_v4 }
0x150b   :  { %v3177_v6 = vpop.f32.mrf.mxu2 }
0x150c   :  { %v3178_v2 = vadd.f32 %v6749_v1, %v3177_v6 }
0x150e   :  { %v3180_v30 = vmax.f32 %v3178_v2, 0.0  ;;  %v6834_v2 = vld [vmem:[%s7192_s30] ss:$0 sm:$0xff] }
0x1510   :  { %4529 = vmatmul.msk.f32.vlgmr.msrb.gmra.mxu3 %vm398_vm1, %v3180_v30  ;;  %4530 = vmatmul.msk.f32.vlgmr.msrb.gmra.mxu0 %vm398_vm1, %v3180_v30 }
0x1511   :  { %3386 = vmatpush.msrb.mxu3 %v6424_v39  ;;  %3468 = vmatpush.msrb.mxu0 %v6427_v18 }
0x1513   :  { %3387 = vmatpush.msrb.mxu3 %v6430_v7  ;;  %3469 = vmatpush.msrb.mxu0 %v7330_v57 }
0x1515   :  { %3388 = vmatpush.msrb.mxu3 %v7331_v51  ;;  %3470 = vmatpush.msrb.mxu0 %v7332_v31  ;;  %v3127_v31 = vld [vmem:[#allocation3 + $0xa] sm:$0x3] }
0x1517   :  { %3389 = vmatpush.msrb.mxu3 %v7333_v53  ;;  %3471 = vmatpush.msrb.mxu0 %v7334_v32  ;;  %v6766_v32 = vld [vmem:[#allocation14] ss:$0 sm:$0xff] }
0x158d   :  { %v3221_v58 = vpop.f32.mrf.mxu0 }
0x158e   :  { %v3222_v27 = vadd.f32 %v6763_v59, %v3221_v58 }
0x1590   :  { %v3225_v4 = vand.u32 2147483647, %v3222_v27  ;;  %v3224_v51 = vmax.f32 %v3222_v27, 0.0 }
0x1592   :  { %v3226_v39 = vsub.f32 0.0, %v3225_v4 }
0x1593   :  { %v3201_v46 = vpop.f32.mrf.mxu3 }
0x1594   :  { %v3227_v18 = vmul.f32 1.442695, %v3226_v39  ;;  %v3202_v8 = vadd.f32 %v6766_v32, %v3201_v46  ;;  %v7386_v39 = vld [vmem:[#allocation62_spill] sm:$0xff] }
0x1596   :  { %4770 = vpow2.f32 %v3227_v18 }
0x159c   :  { %v4771_v7 = vpop.eup %4770 }
0x159d   :  { %v3229_v17 = vadd.f32 1.0, %v4771_v7 }
0x159f   :  { %4772 = vlog2.f32 %v3229_v17 }
0x15a5   :  { %v4773_v57 = vpop.eup %4772 }
0x15a6   :  { %v3231_v16 = vmul.f32 0.6931472, %v4773_v57 }
0x15a8   :  { %v3232_v53 = vadd.f32 %v3231_v16, %v3224_v51 }
0x15aa   :  { %v3233_v56 = vmul.f32 %v3232_v53, %v3127_v31  ;;  %v6839_v31 = vld [vmem:[%s7192_s30 + $0x1] ss:$0 sm:$0xff] }
0x15ab   :  { %v7387_v53 = vld [vmem:[#allocation60_spill] sm:$0xff] }
0x15ac   :  { %v3234_v10 = vadd.f32 %v3233_v56, %v3202_v8 }
0x15ae   :  { %4531 = vmatmul.msk.f32.vlgmr.msrb.gmra.mxu1 %vm358_vm0, %v3234_v10 }
0x15af   :  { %3488 = vmatpush.msrb.mxu1 %v6451_v48 }
0x15b1   :  { %3489 = vmatpush.msrb.mxu1 %v6454_v44 }
0x15b3   :  { %3490 = vmatpush.msrb.mxu1 %v6457_v55  ;;  %v7374_v55 = vld [vmem:[#allocation96_spill] sm:$0xff] }
0x15b5   :  { %3491 = vmatpush.msrb.mxu1 %v6460_v15  ;;  %v7375_v15 = vld [vmem:[#allocation97_spill] sm:$0xff] }
0x15b6   :  { %4535 = vmatmul.msk.f32.vlgmr.msra.gmra.mxu1 %vm398_vm1, %v6694_v37 }
0x15b7   :  { %3568 = vmatpush.msra.mxu1 %v6465_v47  ;;  %v7376_v47 = vld [vmem:[#allocation76_spill] sm:$0xff] }
0x15b9   :  { %3569 = vmatpush.msra.mxu1 %v6468_v26  ;;  %v7377_v26 = vld [vmem:[#allocation77_spill] sm:$0xff] }
0x15bb   :  { %3570 = vmatpush.msra.mxu1 %v6471_v0  ;;  %v7378_v0 = vld [vmem:[#allocation86_spill] sm:$0xff] }
0x15bd   :  { %3571 = vmatpush.msra.mxu1 %v7373_v5 }
0x162b   :  { %v3255_v23 = vpop.f32.mrf.mxu1 }
0x162c   :  { %v3256_v48 = vadd.f32 %v6781_v61, %v3255_v23 }
0x162e   :  { %v3258_v44 = vmax.f32 %v3256_v48, 0.0 }
0x1630   :  { %4532 = vmatmul.msk.f32.vlgmr.msra.gmra.mxu2 %vm398_vm1, %v3258_v44  ;;  %4533 = vmatmul.msk.f32.vlgmr.msra.gmra.mxu3 %vm398_vm1, %v3258_v44 }
0x1631   :  { %4534 = vmatmul.msk.f32.vlgmr.msra.gmra.mxu0 %vm398_vm1, %v3258_v44  ;;  %3528 = vmatpush.msra.mxu3 %v7374_v55 }
0x1632   :  { %3508 = vmatpush.msra.mxu2 %v7375_v15  ;;  %3548 = vmatpush.msra.mxu0 %v7376_v47 }
0x1633   :  { %3529 = vmatpush.msra.mxu3 %v7377_v26  ;;  %v3351_v6 = vpop.f32.mrf.mxu1 }
0x1634   :  { %3509 = vmatpush.msra.mxu2 %v7378_v0  ;;  %3549 = vmatpush.msra.mxu0 %v7379_v62  ;;  %v3352_v30 = vadd.f32 %v6834_v2, %v3351_v6 }
0x1635   :  { %3530 = vmatpush.msra.mxu3 %v7380_v14 }
0x1636   :  { %3510 = vmatpush.msra.mxu2 %v7381_v13  ;;  %3550 = vmatpush.msra.mxu0 %v7382_v52  ;;  %v3395_v4 = vrot.slane %v3352_v30, 6 }
0x1637   :  { %3531 = vmatpush.msra.mxu3 %v7383_v38 }
0x1638   :  { %4536 = vmatmul.msk.f32.vlgmr.msrb.gmra.mxu2 %vm398_vm1, %v6694_v37  ;;  %4537 = vmatmul.msk.f32.vlgmr.msrb.gmra.mxu3 %vm398_vm1, %v6694_v37 }
0x1639   :  { %3511 = vmatpush.msra.mxu2 %v7384_v42  ;;  %3551 = vmatpush.msra.mxu0 %v7385_v22 }
0x163a   :  { %3668 = vmatpush.msrb.mxu3 %v6807_v50 }
0x163b   :  { %3639 = vmatpush.msrb.mxu2 %v6804_v12 }
0x163c   :  { %3669 = vmatpush.msrb.mxu3 %v6814_v3 }
0x163d   :  { %3640 = vmatpush.msrb.mxu2 %v6811_v9 }
0x163e   :  { %3670 = vmatpush.msrb.mxu3 %v6821_v11 }
0x163f   :  { %3641 = vmatpush.msrb.mxu2 %v6818_v29 }
0x1640   :  { %4543 = vmatmul.msk.f32.vlgmr.msra.gmra.mxu3 %vm398_vm1, %v6731_v54 }
0x1641   :  { %3642 = vmatpush.msrb.mxu2 %v6827_v28  ;;  %3671 = vmatpush.msrb.mxu3 %v6830_v21 }
0x1643   :  { %3770 = vmatpush.msra.mxu3 %v4919_v19 }
0x1645   :  { %3771 = vmatpush.msra.mxu3 %v4920_v24 }
0x1647   :  { %3772 = vmatpush.msra.mxu3 %v4921_v43 }
0x1649   :  { %3773 = vmatpush.msra.mxu3 %v4922_v60 }
0x16ae   :  { %v3327_v62 = vpop.f32.mrf.mxu0 }
0x16af   :  { %v3331_v42 = vrot.slane %v3327_v62, 6  ;;  %v6880_v62 = vld [vmem:[%s7174_s13 + $0x8] sm:$0xff] }
0x16b3   :  { %v3279_v58 = vpop.f32.mrf.mxu2  ;;  %v3303_v7 = vpop.f32.mrf.mxu3 }
0x16b4   :  { %v3283_v27 = vrot.slane %v3279_v58, 6  ;;  %v3307_v51 = vrot.slane %v3303_v7, 6  ;;  %v3333_v58 = vadd.f32 %v3331_v42, %v6689_v41  ;;  %v4936_v42 = vld [vmem:[#allocation18 + $0x38] sm:$0xff] }
0x16b6   :  { %v3285_v18 = vadd.f32 %v3283_v27, %v7386_v39  ;;  %v3309_v8 = vadd.f32 %v3307_v51, %v7387_v53 }
0x16b8   :  { %v3397_v17 = vadd.f32 %v3395_v4, %v3285_v18 }
0x16ba   :  { %v4538_v57 = vmul.f32 -1.442695, %v3397_v17 }
0x16bb   :  { %v3371_v16 = vpop.f32.mrf.mxu2  ;;  %v3391_v26 = vpop.f32.mrf.mxu3 }
0x16bc   :  { %4774 = vpow2.f32 %v4538_v57  ;;  %v3372_v46 = vadd.f32 %v6839_v31, %v3371_v16  ;;  %v3392_v13 = vadd.f32 %v7364_v45, %v3391_v26  ;;  %v6873_v26 = vld [vmem:[%s7175_s3 + $0x10] sm:$0xff] }
0x16be   :  { %v3418_v56 = vrot.slane %v3372_v46, 6  ;;  %v3441_v6 = vrot.slane %v3392_v13, 6  ;;  %v6888_v13 = vld [vmem:[%s7174_s13] sm:$0xff] }
0x16c0   :  { %v3420_v10 = vadd.f32 %v3418_v56, %v3309_v8  ;;  %v3448_v56 = vrot.slane %v6694_v37, 6  ;;  %v6858_v37 = vld [vmem:[%s7174_s13 + $0x18] sm:$0xff] }
0x16c2   :  { %v4775_v5 = vpop.eup %4774  ;;  %v4539_v23 = vmul.f32 -1.442695, %v3420_v10 }
0x16c3   :  { %v3401_v48 = vadd.f32 1.0, %v4775_v5 }
0x16c4   :  { %4776 = vpow2.f32 %v4539_v23 }
0x16c5   :  { %4778 = vrcp.f32 %v3401_v48  ;;  %v3413_v14 = vand.u32 2147483648, %v3401_v48  ;;  %v3411_v38 = vand.u32 2147483647, %v3401_v48  ;;  %vm3407_vm13 = vweird.f32 %v3401_v48 }
0x16c7   :  { %v3414_v24 = vor.u32 1.1754944e-38, %v3413_v14  ;;  %vm3412_vm15 = vcmp.eq.f32.partialorder %v3411_v38, 8.507059e+37  ;;  %v6884_v14 = vld [vmem:[%s7175_s3 + $0x8] sm:$0xff]  ;;  %v4935_v38 = vld [vmem:[#allocation18 + $0x58] sm:$0xff] }
0x16ca   :  { %v4777_v44 = vpop.eup %4776 }
0x16cb   :  { %v4779_v55 = vpop.eup %4778  ;;  %v3424_v15 = vadd.f32 1.0, %v4777_v44 }
0x16cc   :  { %v3403_v47 = vmul.f32 %v4779_v55, %v3401_v48  ;;  %vm3408_vm12 = vweird.f32 %v4779_v55 }
0x16cd   :  { %4780 = vrcp.f32 %v3424_v15  ;;  %vm3409_vm14 = vmor %vm3407_vm13, %vm3408_vm12  ;;  %v3436_v18 = vand.u32 2147483648, %v3424_v15  ;;  %v3434_v7 = vand.u32 2147483647, %v3424_v15  ;;  %vm3430_vm3 = vweird.f32 %v3424_v15 }
0x16ce   :  { %v3404_v0 = vsub.f32 1.0, %v3403_v47  ;;  %v6869_v47 = vld [vmem:[%s7174_s13 + $0x10] sm:$0xff] }
0x16cf   :  { %v3437_v51 = vor.u32 1.1754944e-38, %v3436_v18  ;;  %vm3435_vm5 = vcmp.eq.f32.partialorder %v3434_v7, 8.507059e+37 }
0x16d0   :  { %v3405_v52 = vmul.f32 %v4779_v55, %v3404_v0  ;;  %v6876_v0 = vld [vmem:[#allocation15] sm:$0xff] }
0x16d2   :  { %v3406_v22 = vadd.f32 %v4779_v55, %v3405_v52  ;;  %v6896_v52 = vld [vmem:[%s7175_s3] sm:$0xff] }
0x16d3   :  { %v4781_v19 = vpop.eup %4780 }
0x16d4   :  { %v3426_v43 = vmul.f32 %v4781_v19, %v3424_v15  ;;  %v3410_v60 = vsel %vm3409_vm14, %v4779_v55, %v3406_v22  ;;  %vm3431_vm2 = vweird.f32 %v4781_v19  ;;  %v6862_v55 = vld [vmem:[%s7175_s3 + $0x18] sm:$0xff]  ;;  %v4937_v22 = vld [vmem:[#allocation18 + $0x50] sm:$0xff] }
0x16d5   :  { %v3415_v30 = vsel %vm3412_vm15, %v3414_v24, %v3410_v60  ;;  %vm3432_vm4 = vmor %vm3430_vm3, %vm3431_vm2  ;;  %v6865_v15 = vld [vmem:[#allocation15 + $0x8] sm:$0xff]  ;;  %v4939_v24 = vld [vmem:[#allocation18 + $0x48] sm:$0xff] }
0x16d6   :  { %v3427_v27 = vsub.f32 1.0, %v3426_v43  ;;  %v3443_v4 = vmul.f32 %v3441_v6, %v3415_v30  ;;  %v4940_v43 = vld [vmem:[#allocation18 + $0x28] sm:$0xff]  ;;  %v4941_v60 = vld [vmem:[#allocation18 + $0x40] sm:$0xff]  ;;  %v3533_v30 = vpop.f32.mrf.mxu3 }
0x16d7   :  { %v4942_v6 = vld [vmem:[#allocation18 + $0x20] sm:$0xff] }
0x16d8   :  { %v3428_v45 = vmul.f32 %v4781_v19, %v3427_v27  ;;  %v3444_v17 = vadd.f32 %v3443_v4, %v3333_v58  ;;  %v3534_v27 = vadd.f32 %v7369_v35, %v3533_v30 }
0x16da   :  { %v3429_v57 = vadd.f32 %v4781_v19, %v3428_v45  ;;  %4782 = vtanh.f32 %v3444_v17 }
0x16dc   :  { %v3433_v16 = vsel %vm3432_vm4, %v4781_v19, %v3429_v57  ;;  %v4938_v19 = vld [vmem:[#allocation18 + $0x30] sm:$0xff] }
0x16dd   :  { %v3438_v46 = vsel %vm3435_vm5, %v3437_v51, %v3433_v16 }
0x16de   :  { %v3446_v8 = vsub.f32 1.0, %v3438_v46  ;;  %v3450_v23 = vmul.f32 %v3448_v56, %v3438_v46 }
0x16e0   :  { %v4783_v10 = vpop.eup %4782 }
0x16e1   :  { %v3447_v5 = vmul.f32 %v4783_v10, %v3446_v8 }
0x16e3   :  { %v6846_v48 = vadd.f32 %v3450_v23, %v3447_v5 }
0x16e5   :  { %v6849_v44 = vrot.slane %v6846_v48, 2 }
0x16e7   :  { %4540 = vmatmul.msk.f32.vlgmr.msrb.gmra.mxu0 %vm398_vm1, %v6849_v44  ;;  %4541 = vmatmul.msk.f32.vlgmr.msrb.gmra.mxu1 %vm398_vm1, %v6849_v44 }
0x16e8   :  { %4542 = vmatmul.msk.f32.vlgmr.msra.gmra.mxu2 %vm398_vm1, %v6849_v44  ;;  %3712 = vmatpush.msrb.mxu1 %v6858_v37 }
0x16e9   :  { %3692 = vmatpush.msrb.mxu0 %v6862_v55  ;;  %3748 = vmatpush.msra.mxu2 %v6865_v15 }
0x16ea   :  { %3713 = vmatpush.msrb.mxu1 %v6869_v47 }
0x16eb   :  { %3693 = vmatpush.msrb.mxu0 %v6873_v26  ;;  %3749 = vmatpush.msra.mxu2 %v6876_v0 }
0x16ec   :  { %3714 = vmatpush.msrb.mxu1 %v6880_v62 }
0x16ed   :  { %3694 = vmatpush.msrb.mxu0 %v6884_v14 }
0x16ee   :  { %3715 = vmatpush.msrb.mxu1 %v6888_v13 }
0x16ef   :  { %4544 = vmatmul.msk.f32.vlgmr.msra.gmra.mxu0 %vm398_vm1, %v6731_v54  ;;  %4545 = vmatmul.msk.f32.vlgmr.msra.gmra.mxu1 %vm398_vm1, %v6731_v54 }
0x16f0   :  { %3695 = vmatpush.msrb.mxu0 %v6896_v52  ;;  %3818 = vmatpush.msra.mxu1 %v4935_v38 }
0x16f2   :  { %3794 = vmatpush.msra.mxu0 %v4936_v42  ;;  %3819 = vmatpush.msra.mxu1 %v4937_v22 }
0x16f4   :  { %3795 = vmatpush.msra.mxu0 %v4938_v19  ;;  %3820 = vmatpush.msra.mxu1 %v4939_v24 }
0x16f6   :  { %3796 = vmatpush.msra.mxu0 %v4940_v43  ;;  %3821 = vmatpush.msra.mxu1 %v4941_v60 }
0x16f8   :  { %3797 = vmatpush.msra.mxu0 %v4942_v6 }
0x1764   :  { %v3473_v58 = vpop.f32.mrf.mxu0  ;;  %v3493_v7 = vpop.f32.mrf.mxu1 }
0x1765   :  { %v3474_v4 = vadd.f32 %v7370_v33, %v3473_v58  ;;  %v3494_v57 = vadd.f32 %v7371_v49, %v3493_v7 }
0x1767   :  { %v3576_v18 = vadd.f32 %v3534_v27, %v3474_v4 }
0x1769   :  { %v4546_v45 = vmul.f32 -1.442695, %v3576_v18 }
0x176b   :  { %4784 = vpow2.f32 %v4546_v45  ;;  %v3513_v24 = vpop.f32.mrf.mxu2 }
0x176c   :  { %v3553_v17 = vpop.f32.mrf.mxu0  ;;  %v3573_v19 = vpop.f32.mrf.mxu1  ;;  %v3514_v27 = vadd.f32 %v6596_v40, %v3513_v24 }
0x176d   :  { %v3554_v51 = vadd.f32 %v7372_v25, %v3553_v17  ;;  %v3574_v6 = vadd.f32 %v6592_v63, %v3573_v19 }
0x176f   :  { %v3596_v16 = vadd.f32 %v3554_v51, %v3494_v57 }
0x1771   :  { %v4785_v46 = vpop.eup %4784  ;;  %v4547_v8 = vmul.f32 -1.442695, %v3596_v16 }
0x1772   :  { %v3580_v56 = vadd.f32 1.0, %v4785_v46 }
0x1773   :  { %4786 = vpow2.f32 %v4547_v8 }
0x1774   :  { %4788 = vrcp.f32 %v3580_v56  ;;  %v3592_v38 = vand.u32 2147483648, %v3580_v56  ;;  %v3590_v22 = vand.u32 2147483647, %v3580_v56  ;;  %vm3586_vm7 = vweird.f32 %v3580_v56 }
0x1776   :  { %v3593_v43 = vor.u32 1.1754944e-38, %v3592_v38  ;;  %vm3591_vm9 = vcmp.eq.f32.partialorder %v3590_v22, 8.507059e+37 }
0x1779   :  { %v4787_v10 = vpop.eup %4786 }
0x177a   :  { %v4789_v5 = vpop.eup %4788  ;;  %v3600_v35 = vadd.f32 1.0, %v4787_v10 }
0x177b   :  { %v3582_v23 = vmul.f32 %v4789_v5, %v3580_v56  ;;  %vm3587_vm6 = vweird.f32 %v4789_v5 }
0x177c   :  { %4790 = vrcp.f32 %v3600_v35  ;;  %vm3588_vm8 = vmor %vm3586_vm7, %vm3587_vm6  ;;  %v3612_v45 = vand.u32 2147483648, %v3600_v35  ;;  %v3610_v17 = vand.u32 2147483647, %v3600_v35  ;;  %vm3606_vm11 = vweird.f32 %v3600_v35 }
0x177d   :  { %v3583_v33 = vsub.f32 1.0, %v3582_v23  ;;  %v4944_v23 = vld [vmem:[#allocation20] sm:$0xff] }
0x177e   :  { %v3613_v16 = vor.u32 1.1754944e-38, %v3612_v45  ;;  %vm3611_vm13 = vcmp.eq.f32.partialorder %v3610_v17, 8.507059e+37  ;;  %v4956_v45 = vld [vmem:[#allocation21] sm:$0xff] }
0x177f   :  { %v3584_v42 = vmul.f32 %v4789_v5, %v3583_v33 }
0x1781   :  { %v3585_v49 = vadd.f32 %v4789_v5, %v3584_v42 }
0x1782   :  { %v4791_v25 = vpop.eup %4790 }
0x1783   :  { %v3602_v60 = vmul.f32 %v4791_v25, %v3600_v35  ;;  %v3589_v30 = vsel %vm3588_vm8, %v4789_v5, %v3585_v49  ;;  %vm3607_vm10 = vweird.f32 %v4791_v25  ;;  %v4943_v35 = vld [vmem:[#allocation20 + $0x8] sm:$0xff]  ;;  %v4946_v49 = vld [vmem:[#allocation20 + $0x30] sm:$0xff] }
0x1784   :  { %v3594_v58 = vsel %vm3591_vm9, %v3593_v43, %v3589_v30  ;;  %vm3608_vm12 = vmor %vm3606_vm11, %vm3607_vm10  ;;  %v4951_v30 = vld [vmem:[#allocation20 + $0x50] sm:$0xff] }
0x1785   :  { %v3603_v4 = vsub.f32 1.0, %v3602_v60  ;;  %v3616_v18 = vmul.f32 %v3594_v58, %v3574_v6  ;;  %v4949_v60 = vld [vmem:[#allocation20 + $0x58] sm:$0xff]  ;;  %v4952_v58 = vld [vmem:[#allocation21 + $0x10] sm:$0xff] }
0x1786   :  { %v4950_v6 = vld [vmem:[#allocation21 + $0x18] sm:$0xff] }
0x1787   :  { %v3604_v7 = vmul.f32 %v4791_v25, %v3603_v4  ;;  %v3617_v57 = vadd.f32 %v3616_v18, %v3514_v27  ;;  %v4953_v27 = vld [vmem:[#allocation20 + $0x48] sm:$0xff]  ;;  %v4955_v18 = vld [vmem:[#allocation20 + $0x40] sm:$0xff] }
0x1788   :  { %v4954_v4 = vld [vmem:[#allocation21 + $0x8] sm:$0xff] }
0x1789   :  { %v3605_v51 = vadd.f32 %v4791_v25, %v3604_v7  ;;  %4792 = vtanh.f32 %v3617_v57 }
0x178b   :  { %v3609_v46 = vsel %vm3608_vm12, %v4791_v25, %v3605_v51  ;;  %v4947_v25 = vld [vmem:[#allocation20 + $0x28] sm:$0xff] }
0x178c   :  { %v3614_v63 = vsel %vm3611_vm13, %v3613_v16, %v3609_v46 }
0x178d   :  { %v3619_v8 = vsub.f32 1.0, %v3614_v63  ;;  %v3621_v40 = vmul.f32 %v3614_v63, %v6731_v54  ;;  %v4945_v54 = vld [vmem:[#allocation20 + $0x38] sm:$0xff] }
0x178f   :  { %v4793_v56 = vpop.eup %4792 }
0x1790   :  { %v3620_v10 = vmul.f32 %v4793_v56, %v3619_v8 }
0x1792   :  { %v6906_v5 = vadd.f32 %v3621_v40, %v3620_v10 }
0x1794   :  { %4548 = vmatmul.msk.f32.vlgmr.msrb.gmra.mxu2 %vm398_vm1, %v6906_v5 }
0x1795   :  { %3842 = vmatpush.msrb.mxu2 %v6735_v20  ;;  %v4948_v20 = vld [vmem:[#allocation20 + $0x20] sm:$0xff] }
0x1797   :  { %3843 = vmatpush.msrb.mxu2 %v6738_v34 }
0x1799   :  { %3844 = vmatpush.msrb.mxu2 %v4943_v35  ;;  %v3623_v35 = vld [vmem:[#allocation3 + $0xc] sm:$0x3] }
0x179b   :  { %3845 = vmatpush.msrb.mxu2 %v4944_v23 }
0x1817   :  { %v3644_v33 = vpop.f32.mrf.mxu2 }
0x1818   :  { %v3648_v38 = vrot.slane %v3644_v33, 4 }
0x181a   :  { %v3650_v42 = vadd.f32 %v3648_v38, %v6609_v36 }
0x181c   :  { %v3651_v22 = vmax.f32 %v3650_v42, 0.0 }
0x181e   :  { %v3653_v19 = vrot.slane %v3651_v22, 4  ;;  %v4957_v22 = vld [vmem:[#allocation21 + $0x38] sm:$0xff] }
0x1820   :  { %4549 = vmatmul.msk.f32.vlgmr.msrb.gmra.mxu3 %vm398_vm1, %v3653_v19  ;;  %v4958_v19 = vld [vmem:[#allocation21 + $0x30] sm:$0xff] }
0x1821   :  { %3862 = vmatpush.msrb.mxu3 %v4945_v54  ;;  %v4959_v54 = vld [vmem:[#allocation21 + $0x28] sm:$0xff] }
0x1823   :  { %3863 = vmatpush.msrb.mxu3 %v4946_v49  ;;  %v4960_v49 = vld [vmem:[#allocation21 + $0x20] sm:$0xff] }
0x1825   :  { %3864 = vmatpush.msrb.mxu3 %v4947_v25  ;;  %v4961_v25 = vld [vmem:[#allocation23 + $0x58] sm:$0xff] }
0x1827   :  { %3865 = vmatpush.msrb.mxu3 %v4948_v20  ;;  %v4962_v20 = vld [vmem:[#allocation23 + $0x50] sm:$0xff] }
0x18a3   :  { %v3673_v34 = vpop.f32.mrf.mxu3 }
0x18a4   :  { %v3674_v24 = vadd.f32 %v6749_v1, %v3673_v34  ;;  %v4963_v34 = vld [vmem:[#allocation23 + $0x48] sm:$0xff] }
0x18a6   :  { %v3676_v43 = vmax.f32 %v3674_v24, 0.0  ;;  %v4964_v24 = vld [vmem:[#allocation23 + $0x40] sm:$0xff] }
0x18a8   :  { %4550 = vmatmul.msk.f32.vlgmr.msrb.gmra.mxu0 %vm398_vm1, %v3676_v43  ;;  %4551 = vmatmul.msk.f32.vlgmr.msrb.gmra.mxu1 %vm398_vm1, %v3676_v43 }
0x18a9   :  { %3882 = vmatpush.msrb.mxu0 %v4949_v60  ;;  %3964 = vmatpush.msrb.mxu1 %v4950_v6 }
0x18ab   :  { %3883 = vmatpush.msrb.mxu0 %v4951_v30  ;;  %3965 = vmatpush.msrb.mxu1 %v4952_v58  ;;  %v4965_v30 = vld [vmem:[#allocation23 + $0x18] sm:$0xff] }
0x18ac   :  { %v4966_v58 = vld [vmem:[#allocation21 + $0x58] sm:$0xff] }
0x18ad   :  { %3884 = vmatpush.msrb.mxu0 %v4953_v27  ;;  %3966 = vmatpush.msrb.mxu1 %v4954_v4  ;;  %v4967_v27 = vld [vmem:[#allocation23 + $0x38] sm:$0xff]  ;;  %v4968_v4 = vld [vmem:[#allocation23 + $0x10] sm:$0xff] }
0x18af   :  { %3885 = vmatpush.msrb.mxu0 %v4955_v18  ;;  %3967 = vmatpush.msrb.mxu1 %v4956_v45  ;;  %v4969_v18 = vld [vmem:[#allocation21 + $0x50] sm:$0xff] }
0x18b0   :  { %v4970_v45 = vld [vmem:[#allocation23 + $0x30] sm:$0xff] }
0x1925   :  { %v3717_v7 = vpop.f32.mrf.mxu1  ;;  %v3697_v40 = vpop.f32.mrf.mxu0 }
0x1926   :  { %v3718_v17 = vadd.f32 %v6763_v59, %v3717_v7  ;;  %v3698_v33 = vadd.f32 %v6766_v32, %v3697_v40  ;;  %v4971_v7 = vld [vmem:[#allocation23 + $0x8] sm:$0xff] }
0x1928   :  { %v3721_v57 = vand.u32 2147483647, %v3718_v17  ;;  %v3720_v56 = vmax.f32 %v3718_v17, 0.0  ;;  %v4972_v17 = vld [vmem:[#allocation21 + $0x48] sm:$0xff] }
0x192a   :  { %v3722_v51 = vsub.f32 0.0, %v3721_v57  ;;  %v4973_v57 = vld [vmem:[#allocation23 + $0x28] sm:$0xff] }
0x192c   :  { %v3723_v16 = vmul.f32 1.442695, %v3722_v51  ;;  %v4974_v51 = vld [vmem:[#allocation23] sm:$0xff] }
0x192e   :  { %4794 = vpow2.f32 %v3723_v16  ;;  %v4975_v16 = vld [vmem:[#allocation21 + $0x40] sm:$0xff] }
0x1934   :  { %v4795_v46 = vpop.eup %4794 }
0x1935   :  { %v3725_v63 = vadd.f32 1.0, %v4795_v46  ;;  %v4976_v46 = vld [vmem:[#allocation23 + $0x20] sm:$0xff] }
0x1937   :  { %4796 = vlog2.f32 %v3725_v63 }
0x193d   :  { %v4797_v8 = vpop.eup %4796 }
0x193e   :  { %v3727_v10 = vmul.f32 0.6931472, %v4797_v8 }
0x1940   :  { %v3728_v23 = vadd.f32 %v3727_v10, %v3720_v56 }
0x1942   :  { %v3729_v38 = vmul.f32 %v3728_v23, %v3623_v35 }
0x1944   :  { %v3730_v42 = vadd.f32 %v3729_v38, %v3698_v33 }
0x1946   :  { %4552 = vmatmul.msk.f32.vlgmr.msra.gmra.mxu2 %vm358_vm0, %v3730_v42 }
0x1947   :  { %3984 = vmatpush.msra.mxu2 %v4957_v22 }
0x1949   :  { %3985 = vmatpush.msra.mxu2 %v4958_v19 }
0x194b   :  { %3986 = vmatpush.msra.mxu2 %v4959_v54 }
0x194d   :  { %3987 = vmatpush.msra.mxu2 %v4960_v49 }
0x194e   :  { %4556 = vmatmul.msk.f32.vlgmr.msrb.gmra.mxu2 %vm398_vm1, %v6849_v44 }
0x194f   :  { %4064 = vmatpush.msrb.mxu2 %v4961_v25 }
0x1951   :  { %4065 = vmatpush.msrb.mxu2 %v4962_v20 }
0x1953   :  { %4066 = vmatpush.msrb.mxu2 %v4963_v34 }
0x1955   :  { %4067 = vmatpush.msrb.mxu2 %v4964_v24 }
0x19c9   :  { %v3751_v43 = vpop.f32.mrf.mxu2 }
0x19ca   :  { %v3752_v60 = vadd.f32 %v6781_v61, %v3751_v43 }
0x19cc   :  { %v3754_v6 = vmax.f32 %v3752_v60, 0.0 }
0x19ce   :  { %4553 = vmatmul.msk.f32.vlgmr.msra.gmra.mxu3 %vm398_vm1, %v3754_v6  ;;  %4554 = vmatmul.msk.f32.vlgmr.msra.gmra.mxu0 %vm398_vm1, %v3754_v6 }
0x19cf   :  { %4555 = vmatmul.msk.f32.vlgmr.msra.gmra.mxu1 %vm398_vm1, %v3754_v6  ;;  %4024 = vmatpush.msra.mxu0 %v4965_v30 }
0x19d0   :  { %4004 = vmatpush.msra.mxu3 %v4966_v58  ;;  %4044 = vmatpush.msra.mxu1 %v4967_v27 }
0x19d1   :  { %4025 = vmatpush.msra.mxu0 %v4968_v4 }
0x19d2   :  { %4005 = vmatpush.msra.mxu3 %v4969_v18  ;;  %4045 = vmatpush.msra.mxu1 %v4970_v45 }
0x19d3   :  { %4026 = vmatpush.msra.mxu0 %v4971_v7 }
0x19d4   :  { %4006 = vmatpush.msra.mxu3 %v4972_v17  ;;  %4046 = vmatpush.msra.mxu1 %v4973_v57 }
0x19d5   :  { %4027 = vmatpush.msra.mxu0 %v4974_v51 }
0x19d6   :  { %4557 = vmatmul.msk.f32.vlgmr.msrb.gmra.mxu3 %vm398_vm1, %v6849_v44  ;;  %4558 = vmatmul.msk.f32.vlgmr.msrb.gmra.mxu0 %vm398_vm1, %v6849_v44  ;;  %v3847_v44 = vpop.f32.mrf.mxu2 }
0x19d7   :  { %4007 = vmatpush.msra.mxu3 %v4975_v16  ;;  %4047 = vmatpush.msra.mxu1 %v4976_v46 }
0x19d8   :  { %4164 = vmatpush.msrb.mxu0 %v6807_v50 }
0x19d9   :  { %4135 = vmatpush.msrb.mxu3 %v6804_v12  ;;  %v3848_v12 = vadd.f32 %v6834_v2, %v3847_v44 }
0x19da   :  { %4165 = vmatpush.msrb.mxu0 %v6814_v3 }
0x19db   :  { %4136 = vmatpush.msrb.mxu3 %v6811_v9  ;;  %v3891_v8 = vrot.slane %v3848_v12, 4 }
0x19dc   :  { %4166 = vmatpush.msrb.mxu0 %v6821_v11 }
0x19dd   :  { %4137 = vmatpush.msrb.mxu3 %v6818_v29 }
0x19de   :  { %4564 = vmatmul.msk.f32.vlgmr.msra.gmra.mxu0 %vm398_vm1, %v6906_v5 }
0x19df   :  { %4138 = vmatpush.msrb.mxu3 %v6827_v28  ;;  %4167 = vmatpush.msrb.mxu0 %v6830_v21 }
0x1a4b   :  { %v3799_v3 = vpop.f32.mrf.mxu0 }
0x1a4c   :  { %v3803_v29 = vrot.slane %v3799_v3, 4  ;;  %v3823_v49 = vpop.f32.mrf.mxu1 }
0x1a4d   :  { %v3827_v24 = vrot.slane %v3823_v49, 4 }
0x1a4e   :  { %v3805_v28 = vadd.f32 %v3803_v29, %v7387_v53 }
0x1a4f   :  { %v3829_v18 = vadd.f32 %v3827_v24, %v6689_v41  ;;  %v4982_v24 = vld [vmem:[%s7219_s2 + $0x2] ss:$0 sm:$0xff] }
0x1a51   :  { %v3775_v63 = vpop.f32.mrf.mxu3 }
0x1a52   :  { %v3779_v50 = vrot.slane %v3775_v63, 4 }
0x1a53   :  { %v3887_v19 = vpop.f32.mrf.mxu0 }
0x1a54   :  { %v3781_v9 = vadd.f32 %v3779_v50, %v7386_v39 }
0x1a56   :  { %v3893_v56 = vadd.f32 %v3891_v8, %v3781_v9  ;;  %v3944_v8 = vrot.slane %v6846_v48, 6 }
0x1a58   :  { %v4559_v10 = vmul.f32 -1.442695, %v3893_v56 }
0x1a59   :  { %v3867_v11 = vpop.f32.mrf.mxu3 }
0x1a5a   :  { %4798 = vpow2.f32 %v4559_v10  ;;  %v3868_v40 = vadd.f32 %v6839_v31, %v3867_v11  ;;  %v4977_v31 = vld [vmem:[%s7192_s30 + $0x2] ss:$0 sm:$0xff]  ;;  %v4980_v10 = vld [vmem:[%s7220_s20 + $0x1] ss:$0 sm:$0xff] }
0x1a5b   :  { %v3888_v20 = vadd.f32 %v4977_v31, %v3887_v19  ;;  %v4029_v48 = vpop.f32.mrf.mxu0 }
0x1a5c   :  { %v3914_v35 = vrot.slane %v3868_v40, 4  ;;  %v4981_v40 = vld [vmem:[%s7219_s2 + $0x1] ss:$0 sm:$0xff] }
0x1a5d   :  { %v3937_v58 = vrot.slane %v3888_v20, 4 }
0x1a5e   :  { %v3916_v21 = vadd.f32 %v3914_v35, %v3805_v28 }
0x1a60   :  { %v4799_v23 = vpop.eup %4798  ;;  %v4560_v2 = vmul.f32 -1.442695, %v3916_v21 }
0x1a61   :  { %v3897_v33 = vadd.f32 1.0, %v4799_v23 }
0x1a62   :  { %4800 = vpow2.f32 %v4560_v2 }
0x1a63   :  { %4802 = vrcp.f32 %v3897_v33  ;;  %v3909_v25 = vand.u32 2147483648, %v3897_v33  ;;  %v3907_v34 = vand.u32 2147483647, %v3897_v33  ;;  %vm3903_vm15 = vweird.f32 %v3897_v33 }
0x1a65   :  { %v3910_v6 = vor.u32 1.1754944e-38, %v3909_v25  ;;  %vm3908_vm3 = vcmp.eq.f32.partialorder %v3907_v34, 8.507059e+37 }
0x1a68   :  { %v4801_v38 = vpop.eup %4800 }
0x1a69   :  { %v4803_v39 = vpop.eup %4802  ;;  %v3920_v42 = vadd.f32 1.0, %v4801_v38 }
0x1a6a   :  { %v3899_v22 = vmul.f32 %v4803_v39, %v3897_v33  ;;  %vm3904_vm14 = vweird.f32 %v4803_v39 }
0x1a6b   :  { %4804 = vrcp.f32 %v3920_v42  ;;  %vm3905_vm2 = vmor %vm3903_vm15, %vm3904_vm14  ;;  %v3932_v17 = vand.u32 2147483648, %v3920_v42  ;;  %v3930_v16 = vand.u32 2147483647, %v3920_v42  ;;  %vm3926_vm5 = vweird.f32 %v3920_v42 }
0x1a6c   :  { %v3900_v54 = vsub.f32 1.0, %v3899_v22 }
0x1a6d   :  { %v3933_v44 = vor.u32 1.1754944e-38, %v3932_v17  ;;  %vm3931_vm7 = vcmp.eq.f32.partialorder %v3930_v16, 8.507059e+37 }
0x1a6e   :  { %v3901_v53 = vmul.f32 %v4803_v39, %v3900_v54 }
0x1a70   :  { %v3902_v43 = vadd.f32 %v4803_v39, %v3901_v53 }
0x1a71   :  { %v4805_v60 = vpop.eup %4804 }
0x1a72   :  { %v3906_v30 = vsel %vm3905_vm2, %v4803_v39, %v3902_v43  ;;  %v3922_v27 = vmul.f32 %v4805_v60, %v3920_v42  ;;  %vm3927_vm4 = vweird.f32 %v4805_v60  ;;  %vm4346_vm2 = vcmask 254976  }
0x1a73   :  { %v3911_v4 = vsel %vm3908_vm3, %v3910_v6, %v3906_v30  ;;  %vm3928_vm6 = vmor %vm3926_vm5, %vm3927_vm4  ;;  %v4983_v30 = vld [vmem:[%s7220_s20 + $0x2] ss:$0 sm:$0xff] }
0x1a74   :  { %v3939_v45 = vmul.f32 %v3937_v58, %v3911_v4  ;;  %v3923_v7 = vsub.f32 1.0, %v3922_v27 }
0x1a76   :  { %v3940_v57 = vadd.f32 %v3939_v45, %v3829_v18  ;;  %v3924_v51 = vmul.f32 %v4805_v60, %v3923_v7 }
0x1a78   :  { %4806 = vtanh.f32 %v3940_v57  ;;  %v3925_v46 = vadd.f32 %v4805_v60, %v3924_v51 }
0x1a7a   :  { %v3929_v12 = vsel %vm3928_vm6, %v4805_v60, %v3925_v46 }
0x1a7b   :  { %v3934_v63 = vsel %vm3931_vm7, %v3933_v44, %v3929_v12 }
0x1a7c   :  { %v3942_v50 = vsub.f32 1.0, %v3934_v63  ;;  %v3946_v3 = vmul.f32 %v3944_v8, %v3934_v63 }
0x1a7e   :  { %v4807_v9 = vpop.eup %4806 }
0x1a7f   :  { %v3943_v41 = vmul.f32 %v4807_v9, %v3942_v50 }
0x1a81   :  { %v3947_v56 = vadd.f32 %v3946_v3, %v3943_v41 }
0x1a83   :  { %v3949_v29 = vrot.slane %v3947_v56, 4 }
0x1a85   :  { %4561 = vmatmul.msk.f32.vlgmr.msrb.gmra.mxu1 %vm398_vm1, %v3949_v29  ;;  %4562 = vmatmul.msk.f32.vlgmr.msra.gmra.mxu2 %vm398_vm1, %v3949_v29 }
0x1a86   :  { %4563 = vmatmul.msk.f32.vlgmr.msra.gmra.mxu3 %vm398_vm1, %v3949_v29  ;;  %4208 = vmatpush.msra.mxu2 %v6858_v37 }
0x1a87   :  { %4188 = vmatpush.msrb.mxu1 %v6862_v55  ;;  %4244 = vmatpush.msra.mxu3 %v6865_v15  ;;  %v4978_v55 = vld [vmem:[%s7219_s2] ss:$0 sm:$0xff] }
0x1a88   :  { %4209 = vmatpush.msra.mxu2 %v6869_v47  ;;  %v4030_v15 = vadd.f32 %v4978_v55, %v4029_v48  ;;  %v4979_v47 = vld [vmem:[%s7220_s20] ss:$0 sm:$0xff] }
0x1a89   :  { %4189 = vmatpush.msrb.mxu1 %v6873_v26  ;;  %4245 = vmatpush.msra.mxu3 %v6876_v0 }
0x1a8a   :  { %4210 = vmatpush.msra.mxu2 %v6880_v62 }
0x1a8b   :  { %4190 = vmatpush.msrb.mxu1 %v6884_v14 }
0x1a8c   :  { %4211 = vmatpush.msra.mxu2 %v6888_v13 }
0x1a8d   :  { %4565 = vmatmul.msk.f32.vlgmr.msra.gmra.mxu1 %vm398_vm1, %v6906_v5  ;;  %4566 = vmatmul.msk.f32.vlgmr.msrb.gmra.mxu2 %vm398_vm1, %v6906_v5 }
0x1a8e   :  { %4191 = vmatpush.msrb.mxu1 %v6896_v52 }
0x1b02   :  { %v3969_v37 = vpop.f32.mrf.mxu1 }
0x1b03   :  { %v3970_v26 = vadd.f32 %v4979_v47, %v3969_v37  ;;  %v4254_v47 = vld [vmem:[#allocation24 + $0x18] sm:$0xff] }
0x1b04   :  { %4274 = vmatpush.msra.mxu0 %v4254_v47 }
0x1b05   :  { %v4072_v0 = vadd.f32 %v4030_v15, %v3970_v26  ;;  %v4253_v26 = vld [vmem:[#allocation24 + $0x10] sm:$0xff] }
0x1b06   :  { %4275 = vmatpush.msra.mxu0 %v4253_v26 }
0x1b07   :  { %v4567_v62 = vmul.f32 -1.442695, %v4072_v0 }
0x1b08   :  { %v3989_v14 = vpop.f32.mrf.mxu2 }
0x1b09   :  { %4808 = vpow2.f32 %v4567_v62  ;;  %v3990_v11 = vadd.f32 %v4980_v10, %v3989_v14  ;;  %v4009_v20 = vpop.f32.mrf.mxu3 }
0x1b0a   :  { %v4049_v13 = vpop.f32.mrf.mxu1  ;;  %v4010_v58 = vadd.f32 %v4983_v30, %v4009_v20 }
0x1b0b   :  { %v4050_v28 = vadd.f32 %v4981_v40, %v4049_v13 }
0x1b0d   :  { %v4092_v35 = vadd.f32 %v4050_v28, %v3990_v11  ;;  %v4119_v28 = vld [vmem:[#allocation3 + $0xe] sm:$0x3] }
0x1b0f   :  { %v4809_v21 = vpop.eup %4808  ;;  %v4568_v23 = vmul.f32 -1.442695, %v4092_v35 }
0x1b10   :  { %v4076_v2 = vadd.f32 1.0, %v4809_v21  ;;  %v4069_v49 = vpop.f32.mrf.mxu2 }
0x1b11   :  { %4810 = vpow2.f32 %v4568_v23  ;;  %v4070_v43 = vadd.f32 %v4982_v24, %v4069_v49  ;;  %v4647_v49 = vld [vmem:[%s7389_s4] ss:$0 sm:$0xff] }
0x1b12   :  { %4812 = vrcp.f32 %v4076_v2  ;;  %v4088_v22 = vand.u32 2147483648, %v4076_v2  ;;  %v4086_v54 = vand.u32 2147483647, %v4076_v2  ;;  %vm4082_vm9 = vweird.f32 %v4076_v2 }
0x1b14   :  { %v4089_v53 = vor.u32 1.1754944e-38, %v4088_v22  ;;  %vm4087_vm11 = vcmp.eq.f32.partialorder %v4086_v54, 8.507059e+37  ;;  %v4284_v22 = vld [vmem:[%s7388_s9 + $0x8] sm:$0xff] }
0x1b15   :  { %v4316_v54 = vld [vmem:[%s5571_s5 + $0x8] sm:$0xff] }
0x1b16   :  { %4338 = vmatpush.msrb.mxu2 %v4316_v54 }
0x1b17   :  { %v4811_v52 = vpop.eup %4810 }
0x1b18   :  { %v4813_v33 = vpop.eup %4812  ;;  %v4096_v38 = vadd.f32 1.0, %v4811_v52  ;;  %v4251_v52 = vld [vmem:[#allocation24] sm:$0xff] }
0x1b19   :  { %v4078_v39 = vmul.f32 %v4813_v33, %v4076_v2  ;;  %vm4083_vm8 = vweird.f32 %v4813_v33  ;;  %v4252_v2 = vld [vmem:[#allocation24 + $0x8] sm:$0xff] }
0x1b1a   :  { %4814 = vrcp.f32 %v4096_v38  ;;  %vm4084_vm10 = vmor %vm4082_vm9, %vm4083_vm8  ;;  %v4108_v18 = vand.u32 2147483648, %v4096_v38  ;;  %v4106_v7 = vand.u32 2147483647, %v4096_v38  ;;  %vm4102_vm13 = vweird.f32 %v4096_v38  ;;  %4276 = vmatpush.msra.mxu0 %v4252_v2 }
0x1b1b   :  { %v4079_v42 = vsub.f32 1.0, %v4078_v39 }
0x1b1c   :  { %v4109_v51 = vor.u32 1.1754944e-38, %v4108_v18  ;;  %vm4107_vm15 = vcmp.eq.f32.partialorder %v4106_v7, 8.507059e+37  ;;  %4277 = vmatpush.msra.mxu0 %v4251_v52 }
0x1b1d   :  { %v4080_v19 = vmul.f32 %v4813_v33, %v4079_v42 }
0x1b1f   :  { %v4081_v25 = vadd.f32 %v4813_v33, %v4080_v19  ;;  %v4283_v19 = vld [vmem:[%s7388_s9] sm:$0xff] }
0x1b20   :  { %v4815_v31 = vpop.eup %4814 }
0x1b21   :  { %v4098_v34 = vmul.f32 %v4815_v31, %v4096_v38  ;;  %v4085_v60 = vsel %vm4084_vm10, %v4813_v33, %v4081_v25  ;;  %vm4103_vm12 = vweird.f32 %v4815_v31  ;;  %v4286_v33 = vld [vmem:[%s7388_s9 + $0x18] sm:$0xff]  ;;  %v4285_v38 = vld [vmem:[%s7388_s9 + $0x10] sm:$0xff] }
0x1b22   :  { %v4090_v6 = vsel %vm4087_vm11, %v4089_v53, %v4085_v60  ;;  %vm4104_vm14 = vmor %vm4102_vm13, %vm4103_vm12  ;;  %4306 = vmatpush.msra.mxu1 %v4286_v33  ;;  %v4648_v53 = vld [vmem:[%s7390_s10] ss:$0 sm:$0xff] }
0x1b23   :  { %v4099_v27 = vsub.f32 1.0, %v4098_v34  ;;  %v4112_v4 = vmul.f32 %v4090_v6, %v4070_v43 }
0x1b24   :  { %4307 = vmatpush.msra.mxu1 %v4285_v38 }
0x1b25   :  { %v4100_v45 = vmul.f32 %v4815_v31, %v4099_v27  ;;  %v4113_v17 = vadd.f32 %v4112_v4, %v4010_v58 }
0x1b26   :  { %4308 = vmatpush.msra.mxu1 %v4284_v22 }
0x1b27   :  { %v4101_v57 = vadd.f32 %v4815_v31, %v4100_v45  ;;  %4816 = vtanh.f32 %v4113_v17 }
0x1b28   :  { %4309 = vmatpush.msra.mxu1 %v4283_v19 }
0x1b29   :  { %v4105_v16 = vsel %vm4104_vm14, %v4815_v31, %v4101_v57 }
0x1b2a   :  { %v4110_v46 = vsel %vm4107_vm15, %v4109_v51, %v4105_v16 }
0x1b2b   :  { %v4115_v44 = vsub.f32 1.0, %v4110_v46  ;;  %v4117_v50 = vmul.f32 %v4110_v46, %v6906_v5 }
0x1b2d   :  { %v4817_v12 = vpop.eup %4816 }
0x1b2e   :  { %v4116_v63 = vmul.f32 %v4817_v12, %v4115_v44 }
0x1b30   :  { %v4118_v8 = vadd.f32 %v4117_v50, %v4116_v63 }
0x1b32   :  { %4569 = vmatmul.msk.f32.vlgmr.msrb.gmra.mxu3 %vm398_vm1, %v4118_v8 }
0x1bb5   :  { %v4140_v9 = vpop.f32.mrf.mxu3 }
0x1bb6   :  { %v4144_v41 = vrot.slane %v4140_v9, 2 }
0x1bb8   :  { %v4146_v3 = vadd.f32 %v4144_v41, %v6609_v36 }
0x1bba   :  { %v4147_v56 = vmax.f32 %v4146_v3, 0.0 }
0x1bbc   :  { %v4149_v29 = vrot.slane %v4147_v56, 6 }
0x1bbe   :  { %4570 = vmatmul.msk.f32.vlgmr.msrb.gmra.mxu0 %vm398_vm1, %v4149_v29 }
0x1c3b   :  { %v4169_v48 = vpop.f32.mrf.mxu0 }
0x1c3c   :  { %v4170_v37 = vadd.f32 %v6749_v1, %v4169_v48 }
0x1c3e   :  { %v4172_v55 = vmax.f32 %v4170_v37, 0.0 }
0x1c40   :  { %4571 = vmatmul.msk.f32.vlgmr.msrb.gmra.mxu1 %vm398_vm1, %v4172_v55  ;;  %4572 = vmatmul.msk.f32.vlgmr.msra.gmra.mxu2 %vm398_vm1, %v4172_v55 }
0x1cbd   :  { %v4193_v40 = vpop.f32.mrf.mxu1 }
0x1cc3   :  { %v4213_v5 = vpop.f32.mrf.mxu2 }
0x1cc4   :  { %v4214_v15 = vadd.f32 %v6763_v59, %v4213_v5  ;;  %v4194_v59 = vadd.f32 %v6766_v32, %v4193_v40 }
0x1cc6   :  { %v4217_v0 = vand.u32 2147483647, %v4214_v15  ;;  %v4216_v10 = vmax.f32 %v4214_v15, 0.0 }
0x1cc8   :  { %v4218_v36 = vsub.f32 0.0, %v4217_v0 }
0x1cca   :  { %v4219_v62 = vmul.f32 1.442695, %v4218_v36 }
0x1ccc   :  { %4818 = vpow2.f32 %v4219_v62 }
0x1cd2   :  { %v4819_v14 = vpop.eup %4818 }
0x1cd3   :  { %v4221_v13 = vadd.f32 1.0, %v4819_v14 }
0x1cd5   :  { %4820 = vlog2.f32 %v4221_v13 }
0x1cdb   :  { %v4821_v1 = vpop.eup %4820 }
0x1cdc   :  { %v4223_v11 = vmul.f32 0.6931472, %v4821_v1 }
0x1cde   :  { %v4224_v35 = vadd.f32 %v4223_v11, %v4216_v10 }
0x1ce0   :  { %v4225_v21 = vmul.f32 %v4224_v35, %v4119_v28 }
0x1ce2   :  { %v4226_v23 = vadd.f32 %v4225_v21, %v4194_v59 }
0x1ce4   :  { %4573 = vmatmul.msk.f32.vlgmr.msra.gmra.mxu3 %vm358_vm0, %v4226_v23 }
0x1d67   :  { %v4247_v39 = vpop.f32.mrf.mxu3 }
0x1d68   :  { %v4248_v42 = vadd.f32 %v6781_v61, %v4247_v39  ;;  %v4315_v61 = vld [vmem:[%s5571_s5] sm:$0xff] }
0x1d69   :  { %4339 = vmatpush.msrb.mxu2 %v4315_v61 }
0x1d6a   :  { %v4250_v32 = vmax.f32 %v4248_v42, 0.0 }
0x1d6c   :  { %4574 = vmatmul.msk.f32.vlgmr.msra.gmra.mxu0 %vm398_vm1, %v4250_v32  ;;  %4347 = vst.msk [vmem:[#allocation26] sm:$0x3] %vm4346_vm2, %v4250_v32 }
0x1de9   :  { %v4279_v25 = vpop.f32.mrf.mxu0 }
0x1dea   :  { %v4280_v31 = vadd.f32 %v4647_v49, %v4279_v25 }
0x1dec   :  { %v4282_v20 = vmax.f32 %v4280_v31, 0.0 }
0x1dee   :  { %4575 = vmatmul.msk.f32.vlgmr.msra.gmra.mxu1 %vm398_vm1, %v4282_v20 }
0x1e6b   :  { %v4311_v34 = vpop.f32.mrf.mxu1 }
0x1e6c   :  { %v4312_v24 = vadd.f32 %v4648_v53, %v4311_v34 }
0x1e6e   :  { %v4314_v43 = vmax.f32 %v4312_v24, 0.0 }
0x1e70   :  { %4576 = vmatmul.msk.f32.vlgmr.msrb.gmra.mxu2 %vm358_vm0, %v4314_v43 }
0x1e71   :  { %5343 = shalt.err (!%p5340_p4)
}
0x1e72   :  { %4360 = dma.vmem_to_hbm [thread:$0]  %s4356_s7, 32, %s4358_s11, [#allocation5]   ;;  %v4649_v60 = vld [vmem:[#allocation2] ss:$0 sm:$0xff]  ;;  %vm4344_vm0 = vcmask 1024  }
0x1ef3   :  { %v4341_v6 = vpop.f32.mrf.mxu2 }
0x1ef4   :  { %v4342_v30 = vadd.f32 %v4649_v60, %v4341_v6 }
0x1ef6   :  { %4345 = vst.msk [vmem:[%s5579_s21] sm:$0x3] %vm4344_vm0, %v4342_v30 }
0x1ef7   :  { %5360 = dma.done.wait [#allocation5], 32  }
0x1ef8   :  { %5361 = vsyncadd [#allocation5], 4294967264 }
0x1ef9   :  { %4367 = vsyncpa [#allocation4], 1 }
0x1efa   :  { %4368 = vsyncpa [#allocation7], 1 }
0x1efb   :  { %4369 = vsyncpa [#allocation10], 1 }
0x1efc   :  { %4370 = vsyncpa [#allocation13], 1 }
0x1efd   :  { %4371 = vsyncpa [#allocation16], 1 }
0x1efe   :  { %4372 = vsyncpa [#allocation19], 1 }
0x1eff   :  { %4373 = vsyncpa [#allocation22], 1 }
0x1f00   :  { %4374 = vsyncpa [#allocation25], 1 }
0x1f01   :  { %4375 = vsyncpa [#allocation5], 1 }

</bundles_post_ra>
